<compile_context>
chip_gen: v7x
topology: tpu7x:2x2x1
jax: 0.10.0
libtpu: 0.0.40
codegen_flags: <defaults>
</compile_context>

<pallas_src>
import jax
import jax.numpy as jnp
import numpy as np
from jax import lax
from jax.experimental import pallas as pl
from jax.experimental.pallas import tpu as pltpu


def _round_up(x, m):
    return (x + m - 1) // m * m


def _tap_weights(w_oihw):
    """(Cout, Cin, 4, 4) -> (4, 4, Cin, Cout) indexed [2a+b, 2p+q, c, o],
    where ky = 2a+p, kx = 2b+q (tap = coarse 2x2 offset, slot = pixel parity)."""
    cout, cin = w_oihw.shape[0], w_oihw.shape[1]
    w_hwio = jnp.transpose(w_oihw, (2, 3, 1, 0))               # (ky, kx, c, o)
    w6 = w_hwio.reshape(2, 2, 2, 2, cin, cout)                 # [a, p, b, q, c, o]
    return jnp.transpose(w6, (0, 2, 1, 3, 4, 5)).reshape(4, 4, cin, cout)


def _s2d_gather_matrices(ho, wo, wq, r_next):
    """0/1 matrices G[s] of shape (r_next, ho*wq) that build the next stage's
    flattened space-to-depth input from the current output slab Y:
        (G[s] @ Y)[i'*wq' + j', :] = Y[(2i'+p-1)*wq + (2j'+q-1), :],  s = 2p+q
    when the source pixel is inside the image, else 0 (zero padding).  Rows
    past the next image (alignment padding) are all-zero, so the full scratch
    buffer is rewritten each grid step and never read uninitialized."""
    hq_n, wq_n = ho // 2 + 1, wo // 2 + 1
    g = np.zeros((4, r_next, ho * wq), np.float32)
    for s in range(4):
        p, q = s // 2, s % 2
        for ip in range(hq_n):
            for jp in range(wq_n):
                mi, mj = 2 * ip + p - 1, 2 * jp + q - 1
                if 0 <= mi < ho and 0 <= mj < wo:
                    g[s, ip * wq_n + jp, mi * wq + mj] = 1.0
    return g


def encoder_block_forward(x, params):
    """x: (B, 3, H, W) f32 -> (B, base_channel*8, H/16, W/16) f32."""
    B, cin0, H, W = x.shape
    assert H % 16 == 0 and W % 16 == 0, "spatial dims must be divisible by 16"
    assert len(params) == 4

    c = [w.shape[0] for (w, _) in params]                      # per-stage Cout
    ho = [H >> (i + 1) for i in range(4)]                      # output heights
    wo = [W >> (i + 1) for i in range(4)]                      # output widths
    hq = [h + 1 for h in ho]                                   # s2d grid height
    wq = [w + 1 for w in wo]                                   # s2d grid width
    m = [ho[i] * wq[i] for i in range(4)]                      # slab rows/stage
    r = [_round_up(hq[i] * wq[i] + 1, 8) for i in range(4)]    # s2d buffer rows
    k1 = 4 * cin0

    # ---- stage-1 input: pad + space-to-depth + flatten (only wrapper relayout).
    h_nhwc = jnp.transpose(x, (0, 2, 3, 1)).astype(jnp.float32)
    hp = jnp.pad(h_nhwc, ((0, 0), (1, 1), (1, 1), (0, 0)))
    x6 = hp.reshape(B, hq[0], 2, wq[0], 2, cin0)
    x_s2d = jnp.transpose(x6, (0, 1, 3, 2, 4, 5)).reshape(B, hq[0] * wq[0], k1)
    x1 = jnp.pad(x_s2d, ((0, 0), (0, r[0] - hq[0] * wq[0]), (0, 0)))

    # ---- weights / biases in tap-slot layout; selection matrices per transition.
    w_taps = [_tap_weights(w).astype(jnp.float32) for (w, _) in params]
    biases = [b.reshape(1, -1).astype(jnp.float32) for (_, b) in params]
    w1 = w_taps[0].reshape(4, 1, k1, c[0])                     # slots packed in K
    g = [jnp.asarray(_s2d_gather_matrices(ho[i], wo[i], wq[i], r[i + 1]))
         for i in range(3)]

    def kernel(x1_ref, w1_ref, b1_ref,
               g12_ref, w2_ref, b2_ref,
               g23_ref, w3_ref, b3_ref,
               g34_ref, w4_ref, b4_ref,
               o_ref, a2_ref, a3_ref, a4_ref):

        def conv_stage(read_lhs, w_ref, b_ref, mm, wqq, nslots, cout):
            # 4 taps x nslots whole-image matmuls, f32 accumulation on the MXU.
            acc = jnp.zeros((mm, cout), jnp.float32)
            for ta in range(2):
                for tb in range(2):
                    t, off = 2 * ta + tb, ta * wqq + tb
                    for s in range(nslots):
                        acc = acc + jnp.dot(read_lhs(s, off, mm), w_ref[t, s],
                                            preferred_element_type=jnp.float32)
            y = acc + b_ref[...]
            return jnp.where(y >= 0.0, y, 0.2 * y)             # LeakyReLU(0.2)

        def s2d_store(g_ref, y, a_ref):
            # Next stage's padded space-to-depth input: one selection matmul per
            # parity slot (also writes the zero-padding rows, no init needed).
            for s in range(4):
                a_ref[s] = jnp.dot(g_ref[s], y,
                                   preferred_element_type=jnp.float32)

        y1 = conv_stage(lambda s, off, mm: x1_ref[0, pl.ds(off, mm), :],
                        w1_ref, b1_ref, m[0], wq[0], 1, c[0])
        s2d_store(g12_ref, y1, a2_ref)
        y2 = conv_stage(lambda s, off, mm: a2_ref[s, pl.ds(off, mm), :],
                        w2_ref, b2_ref, m[1], wq[1], 4, c[1])
        s2d_store(g23_ref, y2, a3_ref)
        y3 = conv_stage(lambda s, off, mm: a3_ref[s, pl.ds(off, mm), :],
                        w3_ref, b3_ref, m[2], wq[2], 4, c[2])
        s2d_store(g34_ref, y3, a4_ref)
        y4 = conv_stage(lambda s, off, mm: a4_ref[s, pl.ds(off, mm), :],
                        w4_ref, b4_ref, m[3], wq[3], 4, c[3])
        o_ref[0] = y4                                          # lane-dense (128)

    def fixed(ndim):
        return lambda b: (0,) * ndim

    in_specs = [
        pl.BlockSpec((1, r[0], k1), lambda b: (b, 0, 0)),
        pl.BlockSpec((4, 1, k1, c[0]), fixed(4)),
        pl.BlockSpec((1, c[0]), fixed(2)),
        pl.BlockSpec((4, r[1], m[0]), fixed(3)),
        pl.BlockSpec((4, 4, c[0], c[1]), fixed(4)),
        pl.BlockSpec((1, c[1]), fixed(2)),
        pl.BlockSpec((4, r[2], m[1]), fixed(3)),
        pl.BlockSpec((4, 4, c[1], c[2]), fixed(4)),
        pl.BlockSpec((1, c[2]), fixed(2)),
        pl.BlockSpec((4, r[3], m[2]), fixed(3)),
        pl.BlockSpec((4, 4, c[2], c[3]), fixed(4)),
        pl.BlockSpec((1, c[3]), fixed(2)),
    ]

    slab = pl.pallas_call(
        kernel,
        out_shape=jax.ShapeDtypeStruct((B, m[3], c[3]), jnp.float32),
        grid=(B,),
        in_specs=in_specs,
        out_specs=pl.BlockSpec((1, m[3], c[3]), lambda b: (b, 0, 0)),
        scratch_shapes=[
            pltpu.VMEM((4, r[1], c[0]), jnp.float32),
            pltpu.VMEM((4, r[2], c[1]), jnp.float32),
            pltpu.VMEM((4, r[3], c[2]), jnp.float32),
        ],
        compiler_params=pltpu.CompilerParams(dimension_semantics=("parallel",)),
    )(x1, w1, biases[0],
      g[0], w_taps[1], biases[1],
      g[1], w_taps[2], biases[2],
      g[2], w_taps[3], biases[3])

    # Drop the junk seam column (j == Wo) and return NCHW.
    y = slab.reshape(B, ho[3], wq[3], c[3])[:, :, : wo[3], :]
    return jnp.transpose(y, (0, 3, 1, 2))


def init_params(key, base_channel):
    chans = [3, base_channel, base_channel * 2, base_channel * 4, base_channel * 8]
    params = []
    for i in range(4):
        cin, cout = chans[i], chans[i + 1]
        key, kw, kb = jax.random.split(key, 3)
        fan_in = cin * 16
        w = jax.random.normal(kw, (cout, cin, 4, 4), jnp.float32) / jnp.sqrt(fan_in)
        b = 0.05 * jax.random.normal(kb, (cout,), jnp.float32)
        params.append((w, b))
    return params


def ref_forward(x, params):
    """Pure-JAX reference matching nn.Conv2d(k=4, s=2, p=1) + LeakyReLU(0.2)."""
    h = x
    for w, b in params:
        h = lax.conv_general_dilated(
            h, w, window_strides=(2, 2), padding=((1, 1), (1, 1)),
            dimension_numbers=("NCHW", "OIHW", "NCHW"))
        h = h + b[None, :, None, None]
        h = jnp.where(h >= 0, h, 0.2 * h)
    return h


if __name__ == "__main__":
    base_channel = 16
    B, H, W = 2, 32, 32
    key = jax.random.PRNGKey(0)
    kx, kp = jax.random.split(key)
    x = jax.random.normal(kx, (B, 3, H, W), jnp.float32)
    params = init_params(kp, base_channel)

    out = jax.block_until_ready(jax.jit(encoder_block_forward)(x, params))
    ref = jax.block_until_ready(jax.jit(ref_forward)(x, params))

    assert out.shape == (B, base_channel * 8, H // 16, W // 16), out.shape
    assert bool(jnp.all(jnp.isfinite(out)))
    # f32 storage everywhere; residual error is only MXU matmul rounding.
    err = float(jnp.max(jnp.abs(out - ref)))
    assert err < 5e-2, err
    print("KERNEL_OK")
</pallas_src>

<mosaic_0001>
module attributes {stable_mosaic.version = 11 : i64} {
  func.func @kernel(%arg0: i32, %arg1: memref<1x296x12xf32, #tpu.memory_space<vmem>>, %arg2: memref<4x1x12x16xf32, #tpu.memory_space<vmem>>, %arg3: memref<1x16xf32, #tpu.memory_space<vmem>>, %arg4: memref<4x88x272xf32, #tpu.memory_space<vmem>>, %arg5: memref<4x4x16x32xf32, #tpu.memory_space<vmem>>, %arg6: memref<1x32xf32, #tpu.memory_space<vmem>>, %arg7: memref<4x32x72xf32, #tpu.memory_space<vmem>>, %arg8: memref<4x4x32x64xf32, #tpu.memory_space<vmem>>, %arg9: memref<1x64xf32, #tpu.memory_space<vmem>>, %arg10: memref<4x16x20xf32, #tpu.memory_space<vmem>>, %arg11: memref<4x4x64x128xf32, #tpu.memory_space<vmem>>, %arg12: memref<1x128xf32, #tpu.memory_space<vmem>>, %arg13: memref<1x6x128xf32, #tpu.memory_space<vmem>>, %arg14: memref<4x88x16xf32, #tpu.memory_space<vmem>>, %arg15: memref<4x32x32xf32, #tpu.memory_space<vmem>>, %arg16: memref<4x16x64xf32, #tpu.memory_space<vmem>>) attributes {dimension_semantics = [#tpu.dimension_semantics<parallel>], iteration_bounds = array<i64: 2>, scalar_prefetch = 0 : i64, scratch_operands = 3 : i64, tpu.core_type = #tpu.core_type<tc>, window_params = [{transform_indices = @transform_0, window_bounds = array<i64: 1, 296, 12>}, {pipeline_mode = #tpu.pipeline_mode<synchronous>, transform_indices = @transform_1, window_bounds = array<i64: 4, 1, 12, 16>}, {pipeline_mode = #tpu.pipeline_mode<synchronous>, transform_indices = @transform_2, window_bounds = array<i64: 1, 16>}, {pipeline_mode = #tpu.pipeline_mode<synchronous>, transform_indices = @transform_3, window_bounds = array<i64: 4, 88, 272>}, {pipeline_mode = #tpu.pipeline_mode<synchronous>, transform_indices = @transform_4, window_bounds = array<i64: 4, 4, 16, 32>}, {pipeline_mode = #tpu.pipeline_mode<synchronous>, transform_indices = @transform_5, window_bounds = array<i64: 1, 32>}, {pipeline_mode = #tpu.pipeline_mode<synchronous>, transform_indices = @transform_6, window_bounds = array<i64: 4, 32, 72>}, {pipeline_mode = #tpu.pipeline_mode<synchronous>, transform_indices = @transform_7, window_bounds = array<i64: 4, 4, 32, 64>}, {pipeline_mode = #tpu.pipeline_mode<synchronous>, transform_indices = @transform_8, window_bounds = array<i64: 1, 64>}, {pipeline_mode = #tpu.pipeline_mode<synchronous>, transform_indices = @transform_9, window_bounds = array<i64: 4, 16, 20>}, {pipeline_mode = #tpu.pipeline_mode<synchronous>, transform_indices = @transform_10, window_bounds = array<i64: 4, 4, 64, 128>}, {pipeline_mode = #tpu.pipeline_mode<synchronous>, transform_indices = @transform_11, window_bounds = array<i64: 1, 128>}, {transform_indices = @transform_12, window_bounds = array<i64: 1, 6, 128>}]} {
    %cst = arith.constant 0.000000e+00 : f32
    %0 = vector.broadcast %cst : f32 to vector<272x16xf32>
    %c0 = arith.constant 0 : index
    %c0_0 = arith.constant 0 : index
    %c0_1 = arith.constant 0 : index
    %1 = vector.load %arg1[%c0, %c0_0, %c0_1] : memref<1x296x12xf32, #tpu.memory_space<vmem>>, vector<1x272x12xf32>
    %2 = vector.shape_cast %1 : vector<1x272x12xf32> to vector<272x12xf32>
    %c0_2 = arith.constant 0 : index
    %c0_3 = arith.constant 0 : index
    %c0_4 = arith.constant 0 : index
    %c0_5 = arith.constant 0 : index
    %3 = vector.load %arg2[%c0_2, %c0_3, %c0_4, %c0_5] : memref<4x1x12x16xf32, #tpu.memory_space<vmem>>, vector<1x1x12x16xf32>
    %4 = vector.shape_cast %3 : vector<1x1x12x16xf32> to vector<12x16xf32>
    %cst_6 = arith.constant dense<0.000000e+00> : vector<272x16xf32>
    %5 = tpu.matmul %2, %4, %cst_6 {dimension_numbers = #tpu.dot_dimension_numbers<[1], [0], [0], [1], [0, 0, 1, 1], [], []>} : vector<272x12xf32>, vector<12x16xf32>, vector<272x16xf32> -> vector<272x16xf32>
    %6 = arith.addf %0, %5 : vector<272x16xf32>
    %c0_7 = arith.constant 0 : index
    %c1 = arith.constant 1 : index
    %c0_8 = arith.constant 0 : index
    %7 = vector.load %arg1[%c0_7, %c1, %c0_8] : memref<1x296x12xf32, #tpu.memory_space<vmem>>, vector<1x272x12xf32>
    %8 = vector.shape_cast %7 : vector<1x272x12xf32> to vector<272x12xf32>
    %c1_9 = arith.constant 1 : index
    %c0_10 = arith.constant 0 : index
    %c0_11 = arith.constant 0 : index
    %c0_12 = arith.constant 0 : index
    %9 = vector.load %arg2[%c1_9, %c0_10, %c0_11, %c0_12] : memref<4x1x12x16xf32, #tpu.memory_space<vmem>>, vector<1x1x12x16xf32>
    %10 = vector.shape_cast %9 : vector<1x1x12x16xf32> to vector<12x16xf32>
    %cst_13 = arith.constant dense<0.000000e+00> : vector<272x16xf32>
    %11 = tpu.matmul %8, %10, %cst_13 {dimension_numbers = #tpu.dot_dimension_numbers<[1], [0], [0], [1], [0, 0, 1, 1], [], []>} : vector<272x12xf32>, vector<12x16xf32>, vector<272x16xf32> -> vector<272x16xf32>
    %12 = arith.addf %6, %11 : vector<272x16xf32>
    %c0_14 = arith.constant 0 : index
    %c17 = arith.constant 17 : index
    %c0_15 = arith.constant 0 : index
    %13 = vector.load %arg1[%c0_14, %c17, %c0_15] : memref<1x296x12xf32, #tpu.memory_space<vmem>>, vector<1x272x12xf32>
    %14 = vector.shape_cast %13 : vector<1x272x12xf32> to vector<272x12xf32>
    %c2 = arith.constant 2 : index
    %c0_16 = arith.constant 0 : index
    %c0_17 = arith.constant 0 : index
    %c0_18 = arith.constant 0 : index
    %15 = vector.load %arg2[%c2, %c0_16, %c0_17, %c0_18] : memref<4x1x12x16xf32, #tpu.memory_space<vmem>>, vector<1x1x12x16xf32>
    %16 = vector.shape_cast %15 : vector<1x1x12x16xf32> to vector<12x16xf32>
    %cst_19 = arith.constant dense<0.000000e+00> : vector<272x16xf32>
    %17 = tpu.matmul %14, %16, %cst_19 {dimension_numbers = #tpu.dot_dimension_numbers<[1], [0], [0], [1], [0, 0, 1, 1], [], []>} : vector<272x12xf32>, vector<12x16xf32>, vector<272x16xf32> -> vector<272x16xf32>
    %18 = arith.addf %12, %17 : vector<272x16xf32>
    %c0_20 = arith.constant 0 : index
    %c18 = arith.constant 18 : index
    %c0_21 = arith.constant 0 : index
    %19 = vector.load %arg1[%c0_20, %c18, %c0_21] : memref<1x296x12xf32, #tpu.memory_space<vmem>>, vector<1x272x12xf32>
    %20 = vector.shape_cast %19 : vector<1x272x12xf32> to vector<272x12xf32>
    %c3 = arith.constant 3 : index
    %c0_22 = arith.constant 0 : index
    %c0_23 = arith.constant 0 : index
    %c0_24 = arith.constant 0 : index
    %21 = vector.load %arg2[%c3, %c0_22, %c0_23, %c0_24] : memref<4x1x12x16xf32, #tpu.memory_space<vmem>>, vector<1x1x12x16xf32>
    %22 = vector.shape_cast %21 : vector<1x1x12x16xf32> to vector<12x16xf32>
    %cst_25 = arith.constant dense<0.000000e+00> : vector<272x16xf32>
    %23 = tpu.matmul %20, %22, %cst_25 {dimension_numbers = #tpu.dot_dimension_numbers<[1], [0], [0], [1], [0, 0, 1, 1], [], []>} : vector<272x12xf32>, vector<12x16xf32>, vector<272x16xf32> -> vector<272x16xf32>
    %24 = arith.addf %18, %23 : vector<272x16xf32>
    %c0_26 = arith.constant 0 : index
    %c0_27 = arith.constant 0 : index
    %25 = vector.load %arg3[%c0_26, %c0_27] : memref<1x16xf32, #tpu.memory_space<vmem>>, vector<1x16xf32>
    %26 = vector.broadcast %25 : vector<1x16xf32> to vector<272x16xf32>
    %27 = arith.addf %24, %26 : vector<272x16xf32>
    %cst_28 = arith.constant 0.000000e+00 : f32
    %28 = vector.broadcast %cst_28 : f32 to vector<272x16xf32>
    %29 = arith.cmpf oge, %27, %28 : vector<272x16xf32>
    %cst_29 = arith.constant 2.000000e-01 : f32
    %30 = vector.broadcast %cst_29 : f32 to vector<272x16xf32>
    %31 = arith.mulf %30, %27 : vector<272x16xf32>
    %32 = arith.select %29, %27, %31 : vector<272x16xi1>, vector<272x16xf32>
    %c0_30 = arith.constant 0 : index
    %c0_31 = arith.constant 0 : index
    %c0_32 = arith.constant 0 : index
    %33 = vector.load %arg4[%c0_30, %c0_31, %c0_32] : memref<4x88x272xf32, #tpu.memory_space<vmem>>, vector<1x88x272xf32>
    %34 = vector.shape_cast %33 : vector<1x88x272xf32> to vector<88x272xf32>
    %cst_33 = arith.constant dense<0.000000e+00> : vector<88x16xf32>
    %35 = tpu.matmul %34, %32, %cst_33 {dimension_numbers = #tpu.dot_dimension_numbers<[1], [0], [0], [1], [0, 0, 1, 1], [], []>} : vector<88x272xf32>, vector<272x16xf32>, vector<88x16xf32> -> vector<88x16xf32>
    %c0_34 = arith.constant 0 : index
    %c0_35 = arith.constant 0 : index
    %c0_36 = arith.constant 0 : index
    %36 = vector.load %arg14[%c0_34, %c0_35, %c0_36] : memref<4x88x16xf32, #tpu.memory_space<vmem>>, vector<1x88x16xf32>
    %37 = vector.shape_cast %36 : vector<1x88x16xf32> to vector<88x16xf32>
    %38 = vector.shape_cast %35 : vector<88x16xf32> to vector<1x88x16xf32>
    tpu.vector_store %arg14[%c0_34, %c0_35, %c0_36], %38 {strides = array<i32>} : memref<4x88x16xf32, #tpu.memory_space<vmem>>, vector<1x88x16xf32>,
    %c1_37 = arith.constant 1 : index
    %c0_38 = arith.constant 0 : index
    %c0_39 = arith.constant 0 : index
    %39 = vector.load %arg4[%c1_37, %c0_38, %c0_39] : memref<4x88x272xf32, #tpu.memory_space<vmem>>, vector<1x88x272xf32>
    %40 = vector.shape_cast %39 : vector<1x88x272xf32> to vector<88x272xf32>
    %cst_40 = arith.constant dense<0.000000e+00> : vector<88x16xf32>
    %41 = tpu.matmul %40, %32, %cst_40 {dimension_numbers = #tpu.dot_dimension_numbers<[1], [0], [0], [1], [0, 0, 1, 1], [], []>} : vector<88x272xf32>, vector<272x16xf32>, vector<88x16xf32> -> vector<88x16xf32>
    %c1_41 = arith.constant 1 : index
    %c0_42 = arith.constant 0 : index
    %c0_43 = arith.constant 0 : index
    %42 = vector.load %arg14[%c1_41, %c0_42, %c0_43] : memref<4x88x16xf32, #tpu.memory_space<vmem>>, vector<1x88x16xf32>
    %43 = vector.shape_cast %42 : vector<1x88x16xf32> to vector<88x16xf32>
    %44 = vector.shape_cast %41 : vector<88x16xf32> to vector<1x88x16xf32>
    tpu.vector_store %arg14[%c1_41, %c0_42, %c0_43], %44 {strides = array<i32>} : memref<4x88x16xf32, #tpu.memory_space<vmem>>, vector<1x88x16xf32>,
    %c2_44 = arith.constant 2 : index
    %c0_45 = arith.constant 0 : index
    %c0_46 = arith.constant 0 : index
    %45 = vector.load %arg4[%c2_44, %c0_45, %c0_46] : memref<4x88x272xf32, #tpu.memory_space<vmem>>, vector<1x88x272xf32>
    %46 = vector.shape_cast %45 : vector<1x88x272xf32> to vector<88x272xf32>
    %cst_47 = arith.constant dense<0.000000e+00> : vector<88x16xf32>
    %47 = tpu.matmul %46, %32, %cst_47 {dimension_numbers = #tpu.dot_dimension_numbers<[1], [0], [0], [1], [0, 0, 1, 1], [], []>} : vector<88x272xf32>, vector<272x16xf32>, vector<88x16xf32> -> vector<88x16xf32>
    %c2_48 = arith.constant 2 : index
    %c0_49 = arith.constant 0 : index
    %c0_50 = arith.constant 0 : index
    %48 = vector.load %arg14[%c2_48, %c0_49, %c0_50] : memref<4x88x16xf32, #tpu.memory_space<vmem>>, vector<1x88x16xf32>
    %49 = vector.shape_cast %48 : vector<1x88x16xf32> to vector<88x16xf32>
    %50 = vector.shape_cast %47 : vector<88x16xf32> to vector<1x88x16xf32>
    tpu.vector_store %arg14[%c2_48, %c0_49, %c0_50], %50 {strides = array<i32>} : memref<4x88x16xf32, #tpu.memory_space<vmem>>, vector<1x88x16xf32>,
    %c3_51 = arith.constant 3 : index
    %c0_52 = arith.constant 0 : index
    %c0_53 = arith.constant 0 : index
    %51 = vector.load %arg4[%c3_51, %c0_52, %c0_53] : memref<4x88x272xf32, #tpu.memory_space<vmem>>, vector<1x88x272xf32>
    %52 = vector.shape_cast %51 : vector<1x88x272xf32> to vector<88x272xf32>
    %cst_54 = arith.constant dense<0.000000e+00> : vector<88x16xf32>
    %53 = tpu.matmul %52, %32, %cst_54 {dimension_numbers = #tpu.dot_dimension_numbers<[1], [0], [0], [1], [0, 0, 1, 1], [], []>} : vector<88x272xf32>, vector<272x16xf32>, vector<88x16xf32> -> vector<88x16xf32>
    %c3_55 = arith.constant 3 : index
    %c0_56 = arith.constant 0 : index
    %c0_57 = arith.constant 0 : index
    %54 = vector.load %arg14[%c3_55, %c0_56, %c0_57] : memref<4x88x16xf32, #tpu.memory_space<vmem>>, vector<1x88x16xf32>
    %55 = vector.shape_cast %54 : vector<1x88x16xf32> to vector<88x16xf32>
    %56 = vector.shape_cast %53 : vector<88x16xf32> to vector<1x88x16xf32>
    tpu.vector_store %arg14[%c3_55, %c0_56, %c0_57], %56 {strides = array<i32>} : memref<4x88x16xf32, #tpu.memory_space<vmem>>, vector<1x88x16xf32>,
    %cst_58 = arith.constant 0.000000e+00 : f32
    %57 = vector.broadcast %cst_58 : f32 to vector<72x32xf32>
    %c0_59 = arith.constant 0 : index
    %c0_60 = arith.constant 0 : index
    %c0_61 = arith.constant 0 : index
    %58 = vector.load %arg14[%c0_59, %c0_60, %c0_61] : memref<4x88x16xf32, #tpu.memory_space<vmem>>, vector<1x72x16xf32>
    %59 = vector.shape_cast %58 : vector<1x72x16xf32> to vector<72x16xf32>
    %c0_62 = arith.constant 0 : index
    %c0_63 = arith.constant 0 : index
    %c0_64 = arith.constant 0 : index
    %c0_65 = arith.constant 0 : index
    %60 = vector.load %arg5[%c0_62, %c0_63, %c0_64, %c0_65] : memref<4x4x16x32xf32, #tpu.memory_space<vmem>>, vector<1x1x16x32xf32>
    %61 = vector.shape_cast %60 : vector<1x1x16x32xf32> to vector<16x32xf32>
    %cst_66 = arith.constant dense<0.000000e+00> : vector<72x32xf32>
    %62 = tpu.matmul %59, %61, %cst_66 {dimension_numbers = #tpu.dot_dimension_numbers<[1], [0], [0], [1], [0, 0, 1, 1], [], []>} : vector<72x16xf32>, vector<16x32xf32>, vector<72x32xf32> -> vector<72x32xf32>
    %63 = arith.addf %57, %62 : vector<72x32xf32>
    %c1_67 = arith.constant 1 : index
    %c0_68 = arith.constant 0 : index
    %c0_69 = arith.constant 0 : index
    %64 = vector.load %arg14[%c1_67, %c0_68, %c0_69] : memref<4x88x16xf32, #tpu.memory_space<vmem>>, vector<1x72x16xf32>
    %65 = vector.shape_cast %64 : vector<1x72x16xf32> to vector<72x16xf32>
    %c0_70 = arith.constant 0 : index
    %c1_71 = arith.constant 1 : index
    %c0_72 = arith.constant 0 : index
    %c0_73 = arith.constant 0 : index
    %66 = vector.load %arg5[%c0_70, %c1_71, %c0_72, %c0_73] : memref<4x4x16x32xf32, #tpu.memory_space<vmem>>, vector<1x1x16x32xf32>
    %67 = vector.shape_cast %66 : vector<1x1x16x32xf32> to vector<16x32xf32>
    %cst_74 = arith.constant dense<0.000000e+00> : vector<72x32xf32>
    %68 = tpu.matmul %65, %67, %cst_74 {dimension_numbers = #tpu.dot_dimension_numbers<[1], [0], [0], [1], [0, 0, 1, 1], [], []>} : vector<72x16xf32>, vector<16x32xf32>, vector<72x32xf32> -> vector<72x32xf32>
    %69 = arith.addf %63, %68 : vector<72x32xf32>
    %c2_75 = arith.constant 2 : index
    %c0_76 = arith.constant 0 : index
    %c0_77 = arith.constant 0 : index
    %70 = vector.load %arg14[%c2_75, %c0_76, %c0_77] : memref<4x88x16xf32, #tpu.memory_space<vmem>>, vector<1x72x16xf32>
    %71 = vector.shape_cast %70 : vector<1x72x16xf32> to vector<72x16xf32>
    %c0_78 = arith.constant 0 : index
    %c2_79 = arith.constant 2 : index
    %c0_80 = arith.constant 0 : index
    %c0_81 = arith.constant 0 : index
    %72 = vector.load %arg5[%c0_78, %c2_79, %c0_80, %c0_81] : memref<4x4x16x32xf32, #tpu.memory_space<vmem>>, vector<1x1x16x32xf32>
    %73 = vector.shape_cast %72 : vector<1x1x16x32xf32> to vector<16x32xf32>
    %cst_82 = arith.constant dense<0.000000e+00> : vector<72x32xf32>
    %74 = tpu.matmul %71, %73, %cst_82 {dimension_numbers = #tpu.dot_dimension_numbers<[1], [0], [0], [1], [0, 0, 1, 1], [], []>} : vector<72x16xf32>, vector<16x32xf32>, vector<72x32xf32> -> vector<72x32xf32>
    %75 = arith.addf %69, %74 : vector<72x32xf32>
    %c3_83 = arith.constant 3 : index
    %c0_84 = arith.constant 0 : index
    %c0_85 = arith.constant 0 : index
    %76 = vector.load %arg14[%c3_83, %c0_84, %c0_85] : memref<4x88x16xf32, #tpu.memory_space<vmem>>, vector<1x72x16xf32>
    %77 = vector.shape_cast %76 : vector<1x72x16xf32> to vector<72x16xf32>
    %c0_86 = arith.constant 0 : index
    %c3_87 = arith.constant 3 : index
    %c0_88 = arith.constant 0 : index
    %c0_89 = arith.constant 0 : index
    %78 = vector.load %arg5[%c0_86, %c3_87, %c0_88, %c0_89] : memref<4x4x16x32xf32, #tpu.memory_space<vmem>>, vector<1x1x16x32xf32>
    %79 = vector.shape_cast %78 : vector<1x1x16x32xf32> to vector<16x32xf32>
    %cst_90 = arith.constant dense<0.000000e+00> : vector<72x32xf32>
    %80 = tpu.matmul %77, %79, %cst_90 {dimension_numbers = #tpu.dot_dimension_numbers<[1], [0], [0], [1], [0, 0, 1, 1], [], []>} : vector<72x16xf32>, vector<16x32xf32>, vector<72x32xf32> -> vector<72x32xf32>
    %81 = arith.addf %75, %80 : vector<72x32xf32>
    %c0_91 = arith.constant 0 : index
    %c1_92 = arith.constant 1 : index
    %c0_93 = arith.constant 0 : index
    %82 = vector.load %arg14[%c0_91, %c1_92, %c0_93] : memref<4x88x16xf32, #tpu.memory_space<vmem>>, vector<1x72x16xf32>
    %83 = vector.shape_cast %82 : vector<1x72x16xf32> to vector<72x16xf32>
    %c1_94 = arith.constant 1 : index
    %c0_95 = arith.constant 0 : index
    %c0_96 = arith.constant 0 : index
    %c0_97 = arith.constant 0 : index
    %84 = vector.load %arg5[%c1_94, %c0_95, %c0_96, %c0_97] : memref<4x4x16x32xf32, #tpu.memory_space<vmem>>, vector<1x1x16x32xf32>
    %85 = vector.shape_cast %84 : vector<1x1x16x32xf32> to vector<16x32xf32>
    %cst_98 = arith.constant dense<0.000000e+00> : vector<72x32xf32>
    %86 = tpu.matmul %83, %85, %cst_98 {dimension_numbers = #tpu.dot_dimension_numbers<[1], [0], [0], [1], [0, 0, 1, 1], [], []>} : vector<72x16xf32>, vector<16x32xf32>, vector<72x32xf32> -> vector<72x32xf32>
    %87 = arith.addf %81, %86 : vector<72x32xf32>
    %c1_99 = arith.constant 1 : index
    %c1_100 = arith.constant 1 : index
    %c0_101 = arith.constant 0 : index
    %88 = vector.load %arg14[%c1_99, %c1_100, %c0_101] : memref<4x88x16xf32, #tpu.memory_space<vmem>>, vector<1x72x16xf32>
    %89 = vector.shape_cast %88 : vector<1x72x16xf32> to vector<72x16xf32>
    %c1_102 = arith.constant 1 : index
    %c1_103 = arith.constant 1 : index
    %c0_104 = arith.constant 0 : index
    %c0_105 = arith.constant 0 : index
    %90 = vector.load %arg5[%c1_102, %c1_103, %c0_104, %c0_105] : memref<4x4x16x32xf32, #tpu.memory_space<vmem>>, vector<1x1x16x32xf32>
    %91 = vector.shape_cast %90 : vector<1x1x16x32xf32> to vector<16x32xf32>
    %cst_106 = arith.constant dense<0.000000e+00> : vector<72x32xf32>
    %92 = tpu.matmul %89, %91, %cst_106 {dimension_numbers = #tpu.dot_dimension_numbers<[1], [0], [0], [1], [0, 0, 1, 1], [], []>} : vector<72x16xf32>, vector<16x32xf32>, vector<72x32xf32> -> vector<72x32xf32>
    %93 = arith.addf %87, %92 : vector<72x32xf32>
    %c2_107 = arith.constant 2 : index
    %c1_108 = arith.constant 1 : index
    %c0_109 = arith.constant 0 : index
    %94 = vector.load %arg14[%c2_107, %c1_108, %c0_109] : memref<4x88x16xf32, #tpu.memory_space<vmem>>, vector<1x72x16xf32>
    %95 = vector.shape_cast %94 : vector<1x72x16xf32> to vector<72x16xf32>
    %c1_110 = arith.constant 1 : index
    %c2_111 = arith.constant 2 : index
    %c0_112 = arith.constant 0 : index
    %c0_113 = arith.constant 0 : index
    %96 = vector.load %arg5[%c1_110, %c2_111, %c0_112, %c0_113] : memref<4x4x16x32xf32, #tpu.memory_space<vmem>>, vector<1x1x16x32xf32>
    %97 = vector.shape_cast %96 : vector<1x1x16x32xf32> to vector<16x32xf32>
    %cst_114 = arith.constant dense<0.000000e+00> : vector<72x32xf32>
    %98 = tpu.matmul %95, %97, %cst_114 {dimension_numbers = #tpu.dot_dimension_numbers<[1], [0], [0], [1], [0, 0, 1, 1], [], []>} : vector<72x16xf32>, vector<16x32xf32>, vector<72x32xf32> -> vector<72x32xf32>
    %99 = arith.addf %93, %98 : vector<72x32xf32>
    %c3_115 = arith.constant 3 : index
    %c1_116 = arith.constant 1 : index
    %c0_117 = arith.constant 0 : index
    %100 = vector.load %arg14[%c3_115, %c1_116, %c0_117] : memref<4x88x16xf32, #tpu.memory_space<vmem>>, vector<1x72x16xf32>
    %101 = vector.shape_cast %100 : vector<1x72x16xf32> to vector<72x16xf32>
    %c1_118 = arith.constant 1 : index
    %c3_119 = arith.constant 3 : index
    %c0_120 = arith.constant 0 : index
    %c0_121 = arith.constant 0 : index
    %102 = vector.load %arg5[%c1_118, %c3_119, %c0_120, %c0_121] : memref<4x4x16x32xf32, #tpu.memory_space<vmem>>, vector<1x1x16x32xf32>
    %103 = vector.shape_cast %102 : vector<1x1x16x32xf32> to vector<16x32xf32>
    %cst_122 = arith.constant dense<0.000000e+00> : vector<72x32xf32>
    %104 = tpu.matmul %101, %103, %cst_122 {dimension_numbers = #tpu.dot_dimension_numbers<[1], [0], [0], [1], [0, 0, 1, 1], [], []>} : vector<72x16xf32>, vector<16x32xf32>, vector<72x32xf32> -> vector<72x32xf32>
    %105 = arith.addf %99, %104 : vector<72x32xf32>
    %c0_123 = arith.constant 0 : index
    %c9 = arith.constant 9 : index
    %c0_124 = arith.constant 0 : index
    %106 = vector.load %arg14[%c0_123, %c9, %c0_124] : memref<4x88x16xf32, #tpu.memory_space<vmem>>, vector<1x72x16xf32>
    %107 = vector.shape_cast %106 : vector<1x72x16xf32> to vector<72x16xf32>
    %c2_125 = arith.constant 2 : index
    %c0_126 = arith.constant 0 : index
    %c0_127 = arith.constant 0 : index
    %c0_128 = arith.constant 0 : index
    %108 = vector.load %arg5[%c2_125, %c0_126, %c0_127, %c0_128] : memref<4x4x16x32xf32, #tpu.memory_space<vmem>>, vector<1x1x16x32xf32>
    %109 = vector.shape_cast %108 : vector<1x1x16x32xf32> to vector<16x32xf32>
    %cst_129 = arith.constant dense<0.000000e+00> : vector<72x32xf32>
    %110 = tpu.matmul %107, %109, %cst_129 {dimension_numbers = #tpu.dot_dimension_numbers<[1], [0], [0], [1], [0, 0, 1, 1], [], []>} : vector<72x16xf32>, vector<16x32xf32>, vector<72x32xf32> -> vector<72x32xf32>
    %111 = arith.addf %105, %110 : vector<72x32xf32>
    %c1_130 = arith.constant 1 : index
    %c9_131 = arith.constant 9 : index
    %c0_132 = arith.constant 0 : index
    %112 = vector.load %arg14[%c1_130, %c9_131, %c0_132] : memref<4x88x16xf32, #tpu.memory_space<vmem>>, vector<1x72x16xf32>
    %113 = vector.shape_cast %112 : vector<1x72x16xf32> to vector<72x16xf32>
    %c2_133 = arith.constant 2 : index
    %c1_134 = arith.constant 1 : index
    %c0_135 = arith.constant 0 : index
    %c0_136 = arith.constant 0 : index
    %114 = vector.load %arg5[%c2_133, %c1_134, %c0_135, %c0_136] : memref<4x4x16x32xf32, #tpu.memory_space<vmem>>, vector<1x1x16x32xf32>
    %115 = vector.shape_cast %114 : vector<1x1x16x32xf32> to vector<16x32xf32>
    %cst_137 = arith.constant dense<0.000000e+00> : vector<72x32xf32>
    %116 = tpu.matmul %113, %115, %cst_137 {dimension_numbers = #tpu.dot_dimension_numbers<[1], [0], [0], [1], [0, 0, 1, 1], [], []>} : vector<72x16xf32>, vector<16x32xf32>, vector<72x32xf32> -> vector<72x32xf32>
    %117 = arith.addf %111, %116 : vector<72x32xf32>
    %c2_138 = arith.constant 2 : index
    %c9_139 = arith.constant 9 : index
    %c0_140 = arith.constant 0 : index
    %118 = vector.load %arg14[%c2_138, %c9_139, %c0_140] : memref<4x88x16xf32, #tpu.memory_space<vmem>>, vector<1x72x16xf32>
    %119 = vector.shape_cast %118 : vector<1x72x16xf32> to vector<72x16xf32>
    %c2_141 = arith.constant 2 : index
    %c2_142 = arith.constant 2 : index
    %c0_143 = arith.constant 0 : index
    %c0_144 = arith.constant 0 : index
    %120 = vector.load %arg5[%c2_141, %c2_142, %c0_143, %c0_144] : memref<4x4x16x32xf32, #tpu.memory_space<vmem>>, vector<1x1x16x32xf32>
    %121 = vector.shape_cast %120 : vector<1x1x16x32xf32> to vector<16x32xf32>
    %cst_145 = arith.constant dense<0.000000e+00> : vector<72x32xf32>
    %122 = tpu.matmul %119, %121, %cst_145 {dimension_numbers = #tpu.dot_dimension_numbers<[1], [0], [0], [1], [0, 0, 1, 1], [], []>} : vector<72x16xf32>, vector<16x32xf32>, vector<72x32xf32> -> vector<72x32xf32>
    %123 = arith.addf %117, %122 : vector<72x32xf32>
    %c3_146 = arith.constant 3 : index
    %c9_147 = arith.constant 9 : index
    %c0_148 = arith.constant 0 : index
    %124 = vector.load %arg14[%c3_146, %c9_147, %c0_148] : memref<4x88x16xf32, #tpu.memory_space<vmem>>, vector<1x72x16xf32>
    %125 = vector.shape_cast %124 : vector<1x72x16xf32> to vector<72x16xf32>
    %c2_149 = arith.constant 2 : index
    %c3_150 = arith.constant 3 : index
    %c0_151 = arith.constant 0 : index
    %c0_152 = arith.constant 0 : index
    %126 = vector.load %arg5[%c2_149, %c3_150, %c0_151, %c0_152] : memref<4x4x16x32xf32, #tpu.memory_space<vmem>>, vector<1x1x16x32xf32>
    %127 = vector.shape_cast %126 : vector<1x1x16x32xf32> to vector<16x32xf32>
    %cst_153 = arith.constant dense<0.000000e+00> : vector<72x32xf32>
    %128 = tpu.matmul %125, %127, %cst_153 {dimension_numbers = #tpu.dot_dimension_numbers<[1], [0], [0], [1], [0, 0, 1, 1], [], []>} : vector<72x16xf32>, vector<16x32xf32>, vector<72x32xf32> -> vector<72x32xf32>
    %129 = arith.addf %123, %128 : vector<72x32xf32>
    %c0_154 = arith.constant 0 : index
    %c10 = arith.constant 10 : index
    %c0_155 = arith.constant 0 : index
    %130 = vector.load %arg14[%c0_154, %c10, %c0_155] : memref<4x88x16xf32, #tpu.memory_space<vmem>>, vector<1x72x16xf32>
    %131 = vector.shape_cast %130 : vector<1x72x16xf32> to vector<72x16xf32>
    %c3_156 = arith.constant 3 : index
    %c0_157 = arith.constant 0 : index
    %c0_158 = arith.constant 0 : index
    %c0_159 = arith.constant 0 : index
    %132 = vector.load %arg5[%c3_156, %c0_157, %c0_158, %c0_159] : memref<4x4x16x32xf32, #tpu.memory_space<vmem>>, vector<1x1x16x32xf32>
    %133 = vector.shape_cast %132 : vector<1x1x16x32xf32> to vector<16x32xf32>
    %cst_160 = arith.constant dense<0.000000e+00> : vector<72x32xf32>
    %134 = tpu.matmul %131, %133, %cst_160 {dimension_numbers = #tpu.dot_dimension_numbers<[1], [0], [0], [1], [0, 0, 1, 1], [], []>} : vector<72x16xf32>, vector<16x32xf32>, vector<72x32xf32> -> vector<72x32xf32>
    %135 = arith.addf %129, %134 : vector<72x32xf32>
    %c1_161 = arith.constant 1 : index
    %c10_162 = arith.constant 10 : index
    %c0_163 = arith.constant 0 : index
    %136 = vector.load %arg14[%c1_161, %c10_162, %c0_163] : memref<4x88x16xf32, #tpu.memory_space<vmem>>, vector<1x72x16xf32>
    %137 = vector.shape_cast %136 : vector<1x72x16xf32> to vector<72x16xf32>
    %c3_164 = arith.constant 3 : index
    %c1_165 = arith.constant 1 : index
    %c0_166 = arith.constant 0 : index
    %c0_167 = arith.constant 0 : index
    %138 = vector.load %arg5[%c3_164, %c1_165, %c0_166, %c0_167] : memref<4x4x16x32xf32, #tpu.memory_space<vmem>>, vector<1x1x16x32xf32>
    %139 = vector.shape_cast %138 : vector<1x1x16x32xf32> to vector<16x32xf32>
    %cst_168 = arith.constant dense<0.000000e+00> : vector<72x32xf32>
    %140 = tpu.matmul %137, %139, %cst_168 {dimension_numbers = #tpu.dot_dimension_numbers<[1], [0], [0], [1], [0, 0, 1, 1], [], []>} : vector<72x16xf32>, vector<16x32xf32>, vector<72x32xf32> -> vector<72x32xf32>
    %141 = arith.addf %135, %140 : vector<72x32xf32>
    %c2_169 = arith.constant 2 : index
    %c10_170 = arith.constant 10 : index
    %c0_171 = arith.constant 0 : index
    %142 = vector.load %arg14[%c2_169, %c10_170, %c0_171] : memref<4x88x16xf32, #tpu.memory_space<vmem>>, vector<1x72x16xf32>
    %143 = vector.shape_cast %142 : vector<1x72x16xf32> to vector<72x16xf32>
    %c3_172 = arith.constant 3 : index
    %c2_173 = arith.constant 2 : index
    %c0_174 = arith.constant 0 : index
    %c0_175 = arith.constant 0 : index
    %144 = vector.load %arg5[%c3_172, %c2_173, %c0_174, %c0_175] : memref<4x4x16x32xf32, #tpu.memory_space<vmem>>, vector<1x1x16x32xf32>
    %145 = vector.shape_cast %144 : vector<1x1x16x32xf32> to vector<16x32xf32>
    %cst_176 = arith.constant dense<0.000000e+00> : vector<72x32xf32>
    %146 = tpu.matmul %143, %145, %cst_176 {dimension_numbers = #tpu.dot_dimension_numbers<[1], [0], [0], [1], [0, 0, 1, 1], [], []>} : vector<72x16xf32>, vector<16x32xf32>, vector<72x32xf32> -> vector<72x32xf32>
    %147 = arith.addf %141, %146 : vector<72x32xf32>
    %c3_177 = arith.constant 3 : index
    %c10_178 = arith.constant 10 : index
    %c0_179 = arith.constant 0 : index
    %148 = vector.load %arg14[%c3_177, %c10_178, %c0_179] : memref<4x88x16xf32, #tpu.memory_space<vmem>>, vector<1x72x16xf32>
    %149 = vector.shape_cast %148 : vector<1x72x16xf32> to vector<72x16xf32>
    %c3_180 = arith.constant 3 : index
    %c3_181 = arith.constant 3 : index
    %c0_182 = arith.constant 0 : index
    %c0_183 = arith.constant 0 : index
    %150 = vector.load %arg5[%c3_180, %c3_181, %c0_182, %c0_183] : memref<4x4x16x32xf32, #tpu.memory_space<vmem>>, vector<1x1x16x32xf32>
    %151 = vector.shape_cast %150 : vector<1x1x16x32xf32> to vector<16x32xf32>
    %cst_184 = arith.constant dense<0.000000e+00> : vector<72x32xf32>
    %152 = tpu.matmul %149, %151, %cst_184 {dimension_numbers = #tpu.dot_dimension_numbers<[1], [0], [0], [1], [0, 0, 1, 1], [], []>} : vector<72x16xf32>, vector<16x32xf32>, vector<72x32xf32> -> vector<72x32xf32>
    %153 = arith.addf %147, %152 : vector<72x32xf32>
    %c0_185 = arith.constant 0 : index
    %c0_186 = arith.constant 0 : index
    %154 = vector.load %arg6[%c0_185, %c0_186] : memref<1x32xf32, #tpu.memory_space<vmem>>, vector<1x32xf32>
    %155 = vector.broadcast %154 : vector<1x32xf32> to vector<72x32xf32>
    %156 = arith.addf %153, %155 : vector<72x32xf32>
    %cst_187 = arith.constant 0.000000e+00 : f32
    %157 = vector.broadcast %cst_187 : f32 to vector<72x32xf32>
    %158 = arith.cmpf oge, %156, %157 : vector<72x32xf32>
    %cst_188 = arith.constant 2.000000e-01 : f32
    %159 = vector.broadcast %cst_188 : f32 to vector<72x32xf32>
    %160 = arith.mulf %159, %156 : vector<72x32xf32>
    %161 = arith.select %158, %156, %160 : vector<72x32xi1>, vector<72x32xf32>
    %c0_189 = arith.constant 0 : index
    %c0_190 = arith.constant 0 : index
    %c0_191 = arith.constant 0 : index
    %162 = vector.load %arg7[%c0_189, %c0_190, %c0_191] : memref<4x32x72xf32, #tpu.memory_space<vmem>>, vector<1x32x72xf32>
    %163 = vector.shape_cast %162 : vector<1x32x72xf32> to vector<32x72xf32>
    %cst_192 = arith.constant dense<0.000000e+00> : vector<32x32xf32>
    %164 = tpu.matmul %163, %161, %cst_192 {dimension_numbers = #tpu.dot_dimension_numbers<[1], [0], [0], [1], [0, 0, 1, 1], [], []>} : vector<32x72xf32>, vector<72x32xf32>, vector<32x32xf32> -> vector<32x32xf32>
    %c0_193 = arith.constant 0 : index
    %c0_194 = arith.constant 0 : index
    %c0_195 = arith.constant 0 : index
    %165 = vector.load %arg15[%c0_193, %c0_194, %c0_195] : memref<4x32x32xf32, #tpu.memory_space<vmem>>, vector<1x32x32xf32>
    %166 = vector.shape_cast %165 : vector<1x32x32xf32> to vector<32x32xf32>
    %167 = vector.shape_cast %164 : vector<32x32xf32> to vector<1x32x32xf32>
    tpu.vector_store %arg15[%c0_193, %c0_194, %c0_195], %167 {strides = array<i32>} : memref<4x32x32xf32, #tpu.memory_space<vmem>>, vector<1x32x32xf32>,
    %c1_196 = arith.constant 1 : index
    %c0_197 = arith.constant 0 : index
    %c0_198 = arith.constant 0 : index
    %168 = vector.load %arg7[%c1_196, %c0_197, %c0_198] : memref<4x32x72xf32, #tpu.memory_space<vmem>>, vector<1x32x72xf32>
    %169 = vector.shape_cast %168 : vector<1x32x72xf32> to vector<32x72xf32>
    %cst_199 = arith.constant dense<0.000000e+00> : vector<32x32xf32>
    %170 = tpu.matmul %169, %161, %cst_199 {dimension_numbers = #tpu.dot_dimension_numbers<[1], [0], [0], [1], [0, 0, 1, 1], [], []>} : vector<32x72xf32>, vector<72x32xf32>, vector<32x32xf32> -> vector<32x32xf32>
    %c1_200 = arith.constant 1 : index
    %c0_201 = arith.constant 0 : index
    %c0_202 = arith.constant 0 : index
    %171 = vector.load %arg15[%c1_200, %c0_201, %c0_202] : memref<4x32x32xf32, #tpu.memory_space<vmem>>, vector<1x32x32xf32>
    %172 = vector.shape_cast %171 : vector<1x32x32xf32> to vector<32x32xf32>
    %173 = vector.shape_cast %170 : vector<32x32xf32> to vector<1x32x32xf32>
    tpu.vector_store %arg15[%c1_200, %c0_201, %c0_202], %173 {strides = array<i32>} : memref<4x32x32xf32, #tpu.memory_space<vmem>>, vector<1x32x32xf32>,
    %c2_203 = arith.constant 2 : index
    %c0_204 = arith.constant 0 : index
    %c0_205 = arith.constant 0 : index
    %174 = vector.load %arg7[%c2_203, %c0_204, %c0_205] : memref<4x32x72xf32, #tpu.memory_space<vmem>>, vector<1x32x72xf32>
    %175 = vector.shape_cast %174 : vector<1x32x72xf32> to vector<32x72xf32>
    %cst_206 = arith.constant dense<0.000000e+00> : vector<32x32xf32>
    %176 = tpu.matmul %175, %161, %cst_206 {dimension_numbers = #tpu.dot_dimension_numbers<[1], [0], [0], [1], [0, 0, 1, 1], [], []>} : vector<32x72xf32>, vector<72x32xf32>, vector<32x32xf32> -> vector<32x32xf32>
    %c2_207 = arith.constant 2 : index
    %c0_208 = arith.constant 0 : index
    %c0_209 = arith.constant 0 : index
    %177 = vector.load %arg15[%c2_207, %c0_208, %c0_209] : memref<4x32x32xf32, #tpu.memory_space<vmem>>, vector<1x32x32xf32>
    %178 = vector.shape_cast %177 : vector<1x32x32xf32> to vector<32x32xf32>
    %179 = vector.shape_cast %176 : vector<32x32xf32> to vector<1x32x32xf32>
    tpu.vector_store %arg15[%c2_207, %c0_208, %c0_209], %179 {strides = array<i32>} : memref<4x32x32xf32, #tpu.memory_space<vmem>>, vector<1x32x32xf32>,
    %c3_210 = arith.constant 3 : index
    %c0_211 = arith.constant 0 : index
    %c0_212 = arith.constant 0 : index
    %180 = vector.load %arg7[%c3_210, %c0_211, %c0_212] : memref<4x32x72xf32, #tpu.memory_space<vmem>>, vector<1x32x72xf32>
    %181 = vector.shape_cast %180 : vector<1x32x72xf32> to vector<32x72xf32>
    %cst_213 = arith.constant dense<0.000000e+00> : vector<32x32xf32>
    %182 = tpu.matmul %181, %161, %cst_213 {dimension_numbers = #tpu.dot_dimension_numbers<[1], [0], [0], [1], [0, 0, 1, 1], [], []>} : vector<32x72xf32>, vector<72x32xf32>, vector<32x32xf32> -> vector<32x32xf32>
    %c3_214 = arith.constant 3 : index
    %c0_215 = arith.constant 0 : index
    %c0_216 = arith.constant 0 : index
    %183 = vector.load %arg15[%c3_214, %c0_215, %c0_216] : memref<4x32x32xf32, #tpu.memory_space<vmem>>, vector<1x32x32xf32>
    %184 = vector.shape_cast %183 : vector<1x32x32xf32> to vector<32x32xf32>
    %185 = vector.shape_cast %182 : vector<32x32xf32> to vector<1x32x32xf32>
    tpu.vector_store %arg15[%c3_214, %c0_215, %c0_216], %185 {strides = array<i32>} : memref<4x32x32xf32, #tpu.memory_space<vmem>>, vector<1x32x32xf32>,
    %cst_217 = arith.constant 0.000000e+00 : f32
    %186 = vector.broadcast %cst_217 : f32 to vector<20x64xf32>
    %c0_218 = arith.constant 0 : index
    %c0_219 = arith.constant 0 : index
    %c0_220 = arith.constant 0 : index
    %187 = vector.load %arg15[%c0_218, %c0_219, %c0_220] : memref<4x32x32xf32, #tpu.memory_space<vmem>>, vector<1x20x32xf32>
    %188 = vector.shape_cast %187 : vector<1x20x32xf32> to vector<20x32xf32>
    %c0_221 = arith.constant 0 : index
    %c0_222 = arith.constant 0 : index
    %c0_223 = arith.constant 0 : index
    %c0_224 = arith.constant 0 : index
    %189 = vector.load %arg8[%c0_221, %c0_222, %c0_223, %c0_224] : memref<4x4x32x64xf32, #tpu.memory_space<vmem>>, vector<1x1x32x64xf32>
    %190 = vector.shape_cast %189 : vector<1x1x32x64xf32> to vector<32x64xf32>
    %cst_225 = arith.constant dense<0.000000e+00> : vector<20x64xf32>
    %191 = tpu.matmul %188, %190, %cst_225 {dimension_numbers = #tpu.dot_dimension_numbers<[1], [0], [0], [1], [0, 0, 1, 1], [], []>} : vector<20x32xf32>, vector<32x64xf32>, vector<20x64xf32> -> vector<20x64xf32>
    %192 = arith.addf %186, %191 : vector<20x64xf32>
    %c1_226 = arith.constant 1 : index
    %c0_227 = arith.constant 0 : index
    %c0_228 = arith.constant 0 : index
    %193 = vector.load %arg15[%c1_226, %c0_227, %c0_228] : memref<4x32x32xf32, #tpu.memory_space<vmem>>, vector<1x20x32xf32>
    %194 = vector.shape_cast %193 : vector<1x20x32xf32> to vector<20x32xf32>
    %c0_229 = arith.constant 0 : index
    %c1_230 = arith.constant 1 : index
    %c0_231 = arith.constant 0 : index
    %c0_232 = arith.constant 0 : index
    %195 = vector.load %arg8[%c0_229, %c1_230, %c0_231, %c0_232] : memref<4x4x32x64xf32, #tpu.memory_space<vmem>>, vector<1x1x32x64xf32>
    %196 = vector.shape_cast %195 : vector<1x1x32x64xf32> to vector<32x64xf32>
    %cst_233 = arith.constant dense<0.000000e+00> : vector<20x64xf32>
    %197 = tpu.matmul %194, %196, %cst_233 {dimension_numbers = #tpu.dot_dimension_numbers<[1], [0], [0], [1], [0, 0, 1, 1], [], []>} : vector<20x32xf32>, vector<32x64xf32>, vector<20x64xf32> -> vector<20x64xf32>
    %198 = arith.addf %192, %197 : vector<20x64xf32>
    %c2_234 = arith.constant 2 : index
    %c0_235 = arith.constant 0 : index
    %c0_236 = arith.constant 0 : index
    %199 = vector.load %arg15[%c2_234, %c0_235, %c0_236] : memref<4x32x32xf32, #tpu.memory_space<vmem>>, vector<1x20x32xf32>
    %200 = vector.shape_cast %199 : vector<1x20x32xf32> to vector<20x32xf32>
    %c0_237 = arith.constant 0 : index
    %c2_238 = arith.constant 2 : index
    %c0_239 = arith.constant 0 : index
    %c0_240 = arith.constant 0 : index
    %201 = vector.load %arg8[%c0_237, %c2_238, %c0_239, %c0_240] : memref<4x4x32x64xf32, #tpu.memory_space<vmem>>, vector<1x1x32x64xf32>
    %202 = vector.shape_cast %201 : vector<1x1x32x64xf32> to vector<32x64xf32>
    %cst_241 = arith.constant dense<0.000000e+00> : vector<20x64xf32>
    %203 = tpu.matmul %200, %202, %cst_241 {dimension_numbers = #tpu.dot_dimension_numbers<[1], [0], [0], [1], [0, 0, 1, 1], [], []>} : vector<20x32xf32>, vector<32x64xf32>, vector<20x64xf32> -> vector<20x64xf32>
    %204 = arith.addf %198, %203 : vector<20x64xf32>
    %c3_242 = arith.constant 3 : index
    %c0_243 = arith.constant 0 : index
    %c0_244 = arith.constant 0 : index
    %205 = vector.load %arg15[%c3_242, %c0_243, %c0_244] : memref<4x32x32xf32, #tpu.memory_space<vmem>>, vector<1x20x32xf32>
    %206 = vector.shape_cast %205 : vector<1x20x32xf32> to vector<20x32xf32>
    %c0_245 = arith.constant 0 : index
    %c3_246 = arith.constant 3 : index
    %c0_247 = arith.constant 0 : index
    %c0_248 = arith.constant 0 : index
    %207 = vector.load %arg8[%c0_245, %c3_246, %c0_247, %c0_248] : memref<4x4x32x64xf32, #tpu.memory_space<vmem>>, vector<1x1x32x64xf32>
    %208 = vector.shape_cast %207 : vector<1x1x32x64xf32> to vector<32x64xf32>
    %cst_249 = arith.constant dense<0.000000e+00> : vector<20x64xf32>
    %209 = tpu.matmul %206, %208, %cst_249 {dimension_numbers = #tpu.dot_dimension_numbers<[1], [0], [0], [1], [0, 0, 1, 1], [], []>} : vector<20x32xf32>, vector<32x64xf32>, vector<20x64xf32> -> vector<20x64xf32>
    %210 = arith.addf %204, %209 : vector<20x64xf32>
    %c0_250 = arith.constant 0 : index
    %c1_251 = arith.constant 1 : index
    %c0_252 = arith.constant 0 : index
    %211 = vector.load %arg15[%c0_250, %c1_251, %c0_252] : memref<4x32x32xf32, #tpu.memory_space<vmem>>, vector<1x20x32xf32>
    %212 = vector.shape_cast %211 : vector<1x20x32xf32> to vector<20x32xf32>
    %c1_253 = arith.constant 1 : index
    %c0_254 = arith.constant 0 : index
    %c0_255 = arith.constant 0 : index
    %c0_256 = arith.constant 0 : index
    %213 = vector.load %arg8[%c1_253, %c0_254, %c0_255, %c0_256] : memref<4x4x32x64xf32, #tpu.memory_space<vmem>>, vector<1x1x32x64xf32>
    %214 = vector.shape_cast %213 : vector<1x1x32x64xf32> to vector<32x64xf32>
    %cst_257 = arith.constant dense<0.000000e+00> : vector<20x64xf32>
    %215 = tpu.matmul %212, %214, %cst_257 {dimension_numbers = #tpu.dot_dimension_numbers<[1], [0], [0], [1], [0, 0, 1, 1], [], []>} : vector<20x32xf32>, vector<32x64xf32>, vector<20x64xf32> -> vector<20x64xf32>
    %216 = arith.addf %210, %215 : vector<20x64xf32>
    %c1_258 = arith.constant 1 : index
    %c1_259 = arith.constant 1 : index
    %c0_260 = arith.constant 0 : index
    %217 = vector.load %arg15[%c1_258, %c1_259, %c0_260] : memref<4x32x32xf32, #tpu.memory_space<vmem>>, vector<1x20x32xf32>
    %218 = vector.shape_cast %217 : vector<1x20x32xf32> to vector<20x32xf32>
    %c1_261 = arith.constant 1 : index
    %c1_262 = arith.constant 1 : index
    %c0_263 = arith.constant 0 : index
    %c0_264 = arith.constant 0 : index
    %219 = vector.load %arg8[%c1_261, %c1_262, %c0_263, %c0_264] : memref<4x4x32x64xf32, #tpu.memory_space<vmem>>, vector<1x1x32x64xf32>
    %220 = vector.shape_cast %219 : vector<1x1x32x64xf32> to vector<32x64xf32>
    %cst_265 = arith.constant dense<0.000000e+00> : vector<20x64xf32>
    %221 = tpu.matmul %218, %220, %cst_265 {dimension_numbers = #tpu.dot_dimension_numbers<[1], [0], [0], [1], [0, 0, 1, 1], [], []>} : vector<20x32xf32>, vector<32x64xf32>, vector<20x64xf32> -> vector<20x64xf32>
    %222 = arith.addf %216, %221 : vector<20x64xf32>
    %c2_266 = arith.constant 2 : index
    %c1_267 = arith.constant 1 : index
    %c0_268 = arith.constant 0 : index
    %223 = vector.load %arg15[%c2_266, %c1_267, %c0_268] : memref<4x32x32xf32, #tpu.memory_space<vmem>>, vector<1x20x32xf32>
    %224 = vector.shape_cast %223 : vector<1x20x32xf32> to vector<20x32xf32>
    %c1_269 = arith.constant 1 : index
    %c2_270 = arith.constant 2 : index
    %c0_271 = arith.constant 0 : index
    %c0_272 = arith.constant 0 : index
    %225 = vector.load %arg8[%c1_269, %c2_270, %c0_271, %c0_272] : memref<4x4x32x64xf32, #tpu.memory_space<vmem>>, vector<1x1x32x64xf32>
    %226 = vector.shape_cast %225 : vector<1x1x32x64xf32> to vector<32x64xf32>
    %cst_273 = arith.constant dense<0.000000e+00> : vector<20x64xf32>
    %227 = tpu.matmul %224, %226, %cst_273 {dimension_numbers = #tpu.dot_dimension_numbers<[1], [0], [0], [1], [0, 0, 1, 1], [], []>} : vector<20x32xf32>, vector<32x64xf32>, vector<20x64xf32> -> vector<20x64xf32>
    %228 = arith.addf %222, %227 : vector<20x64xf32>
    %c3_274 = arith.constant 3 : index
    %c1_275 = arith.constant 1 : index
    %c0_276 = arith.constant 0 : index
    %229 = vector.load %arg15[%c3_274, %c1_275, %c0_276] : memref<4x32x32xf32, #tpu.memory_space<vmem>>, vector<1x20x32xf32>
    %230 = vector.shape_cast %229 : vector<1x20x32xf32> to vector<20x32xf32>
    %c1_277 = arith.constant 1 : index
    %c3_278 = arith.constant 3 : index
    %c0_279 = arith.constant 0 : index
    %c0_280 = arith.constant 0 : index
    %231 = vector.load %arg8[%c1_277, %c3_278, %c0_279, %c0_280] : memref<4x4x32x64xf32, #tpu.memory_space<vmem>>, vector<1x1x32x64xf32>
    %232 = vector.shape_cast %231 : vector<1x1x32x64xf32> to vector<32x64xf32>
    %cst_281 = arith.constant dense<0.000000e+00> : vector<20x64xf32>
    %233 = tpu.matmul %230, %232, %cst_281 {dimension_numbers = #tpu.dot_dimension_numbers<[1], [0], [0], [1], [0, 0, 1, 1], [], []>} : vector<20x32xf32>, vector<32x64xf32>, vector<20x64xf32> -> vector<20x64xf32>
    %234 = arith.addf %228, %233 : vector<20x64xf32>
    %c0_282 = arith.constant 0 : index
    %c5 = arith.constant 5 : index
    %c0_283 = arith.constant 0 : index
    %235 = vector.load %arg15[%c0_282, %c5, %c0_283] : memref<4x32x32xf32, #tpu.memory_space<vmem>>, vector<1x20x32xf32>
    %236 = vector.shape_cast %235 : vector<1x20x32xf32> to vector<20x32xf32>
    %c2_284 = arith.constant 2 : index
    %c0_285 = arith.constant 0 : index
    %c0_286 = arith.constant 0 : index
    %c0_287 = arith.constant 0 : index
    %237 = vector.load %arg8[%c2_284, %c0_285, %c0_286, %c0_287] : memref<4x4x32x64xf32, #tpu.memory_space<vmem>>, vector<1x1x32x64xf32>
    %238 = vector.shape_cast %237 : vector<1x1x32x64xf32> to vector<32x64xf32>
    %cst_288 = arith.constant dense<0.000000e+00> : vector<20x64xf32>
    %239 = tpu.matmul %236, %238, %cst_288 {dimension_numbers = #tpu.dot_dimension_numbers<[1], [0], [0], [1], [0, 0, 1, 1], [], []>} : vector<20x32xf32>, vector<32x64xf32>, vector<20x64xf32> -> vector<20x64xf32>
    %240 = arith.addf %234, %239 : vector<20x64xf32>
    %c1_289 = arith.constant 1 : index
    %c5_290 = arith.constant 5 : index
    %c0_291 = arith.constant 0 : index
    %241 = vector.load %arg15[%c1_289, %c5_290, %c0_291] : memref<4x32x32xf32, #tpu.memory_space<vmem>>, vector<1x20x32xf32>
    %242 = vector.shape_cast %241 : vector<1x20x32xf32> to vector<20x32xf32>
    %c2_292 = arith.constant 2 : index
    %c1_293 = arith.constant 1 : index
    %c0_294 = arith.constant 0 : index
    %c0_295 = arith.constant 0 : index
    %243 = vector.load %arg8[%c2_292, %c1_293, %c0_294, %c0_295] : memref<4x4x32x64xf32, #tpu.memory_space<vmem>>, vector<1x1x32x64xf32>
    %244 = vector.shape_cast %243 : vector<1x1x32x64xf32> to vector<32x64xf32>
    %cst_296 = arith.constant dense<0.000000e+00> : vector<20x64xf32>
    %245 = tpu.matmul %242, %244, %cst_296 {dimension_numbers = #tpu.dot_dimension_numbers<[1], [0], [0], [1], [0, 0, 1, 1], [], []>} : vector<20x32xf32>, vector<32x64xf32>, vector<20x64xf32> -> vector<20x64xf32>
    %246 = arith.addf %240, %245 : vector<20x64xf32>
    %c2_297 = arith.constant 2 : index
    %c5_298 = arith.constant 5 : index
    %c0_299 = arith.constant 0 : index
    %247 = vector.load %arg15[%c2_297, %c5_298, %c0_299] : memref<4x32x32xf32, #tpu.memory_space<vmem>>, vector<1x20x32xf32>
    %248 = vector.shape_cast %247 : vector<1x20x32xf32> to vector<20x32xf32>
    %c2_300 = arith.constant 2 : index
    %c2_301 = arith.constant 2 : index
    %c0_302 = arith.constant 0 : index
    %c0_303 = arith.constant 0 : index
    %249 = vector.load %arg8[%c2_300, %c2_301, %c0_302, %c0_303] : memref<4x4x32x64xf32, #tpu.memory_space<vmem>>, vector<1x1x32x64xf32>
    %250 = vector.shape_cast %249 : vector<1x1x32x64xf32> to vector<32x64xf32>
    %cst_304 = arith.constant dense<0.000000e+00> : vector<20x64xf32>
    %251 = tpu.matmul %248, %250, %cst_304 {dimension_numbers = #tpu.dot_dimension_numbers<[1], [0], [0], [1], [0, 0, 1, 1], [], []>} : vector<20x32xf32>, vector<32x64xf32>, vector<20x64xf32> -> vector<20x64xf32>
    %252 = arith.addf %246, %251 : vector<20x64xf32>
    %c3_305 = arith.constant 3 : index
    %c5_306 = arith.constant 5 : index
    %c0_307 = arith.constant 0 : index
    %253 = vector.load %arg15[%c3_305, %c5_306, %c0_307] : memref<4x32x32xf32, #tpu.memory_space<vmem>>, vector<1x20x32xf32>
    %254 = vector.shape_cast %253 : vector<1x20x32xf32> to vector<20x32xf32>
    %c2_308 = arith.constant 2 : index
    %c3_309 = arith.constant 3 : index
    %c0_310 = arith.constant 0 : index
    %c0_311 = arith.constant 0 : index
    %255 = vector.load %arg8[%c2_308, %c3_309, %c0_310, %c0_311] : memref<4x4x32x64xf32, #tpu.memory_space<vmem>>, vector<1x1x32x64xf32>
    %256 = vector.shape_cast %255 : vector<1x1x32x64xf32> to vector<32x64xf32>
    %cst_312 = arith.constant dense<0.000000e+00> : vector<20x64xf32>
    %257 = tpu.matmul %254, %256, %cst_312 {dimension_numbers = #tpu.dot_dimension_numbers<[1], [0], [0], [1], [0, 0, 1, 1], [], []>} : vector<20x32xf32>, vector<32x64xf32>, vector<20x64xf32> -> vector<20x64xf32>
    %258 = arith.addf %252, %257 : vector<20x64xf32>
    %c0_313 = arith.constant 0 : index
    %c6 = arith.constant 6 : index
    %c0_314 = arith.constant 0 : index
    %259 = vector.load %arg15[%c0_313, %c6, %c0_314] : memref<4x32x32xf32, #tpu.memory_space<vmem>>, vector<1x20x32xf32>
    %260 = vector.shape_cast %259 : vector<1x20x32xf32> to vector<20x32xf32>
    %c3_315 = arith.constant 3 : index
    %c0_316 = arith.constant 0 : index
    %c0_317 = arith.constant 0 : index
    %c0_318 = arith.constant 0 : index
    %261 = vector.load %arg8[%c3_315, %c0_316, %c0_317, %c0_318] : memref<4x4x32x64xf32, #tpu.memory_space<vmem>>, vector<1x1x32x64xf32>
    %262 = vector.shape_cast %261 : vector<1x1x32x64xf32> to vector<32x64xf32>
    %cst_319 = arith.constant dense<0.000000e+00> : vector<20x64xf32>
    %263 = tpu.matmul %260, %262, %cst_319 {dimension_numbers = #tpu.dot_dimension_numbers<[1], [0], [0], [1], [0, 0, 1, 1], [], []>} : vector<20x32xf32>, vector<32x64xf32>, vector<20x64xf32> -> vector<20x64xf32>
    %264 = arith.addf %258, %263 : vector<20x64xf32>
    %c1_320 = arith.constant 1 : index
    %c6_321 = arith.constant 6 : index
    %c0_322 = arith.constant 0 : index
    %265 = vector.load %arg15[%c1_320, %c6_321, %c0_322] : memref<4x32x32xf32, #tpu.memory_space<vmem>>, vector<1x20x32xf32>
    %266 = vector.shape_cast %265 : vector<1x20x32xf32> to vector<20x32xf32>
    %c3_323 = arith.constant 3 : index
    %c1_324 = arith.constant 1 : index
    %c0_325 = arith.constant 0 : index
    %c0_326 = arith.constant 0 : index
    %267 = vector.load %arg8[%c3_323, %c1_324, %c0_325, %c0_326] : memref<4x4x32x64xf32, #tpu.memory_space<vmem>>, vector<1x1x32x64xf32>
    %268 = vector.shape_cast %267 : vector<1x1x32x64xf32> to vector<32x64xf32>
    %cst_327 = arith.constant dense<0.000000e+00> : vector<20x64xf32>
    %269 = tpu.matmul %266, %268, %cst_327 {dimension_numbers = #tpu.dot_dimension_numbers<[1], [0], [0], [1], [0, 0, 1, 1], [], []>} : vector<20x32xf32>, vector<32x64xf32>, vector<20x64xf32> -> vector<20x64xf32>
    %270 = arith.addf %264, %269 : vector<20x64xf32>
    %c2_328 = arith.constant 2 : index
    %c6_329 = arith.constant 6 : index
    %c0_330 = arith.constant 0 : index
    %271 = vector.load %arg15[%c2_328, %c6_329, %c0_330] : memref<4x32x32xf32, #tpu.memory_space<vmem>>, vector<1x20x32xf32>
    %272 = vector.shape_cast %271 : vector<1x20x32xf32> to vector<20x32xf32>
    %c3_331 = arith.constant 3 : index
    %c2_332 = arith.constant 2 : index
    %c0_333 = arith.constant 0 : index
    %c0_334 = arith.constant 0 : index
    %273 = vector.load %arg8[%c3_331, %c2_332, %c0_333, %c0_334] : memref<4x4x32x64xf32, #tpu.memory_space<vmem>>, vector<1x1x32x64xf32>
    %274 = vector.shape_cast %273 : vector<1x1x32x64xf32> to vector<32x64xf32>
    %cst_335 = arith.constant dense<0.000000e+00> : vector<20x64xf32>
    %275 = tpu.matmul %272, %274, %cst_335 {dimension_numbers = #tpu.dot_dimension_numbers<[1], [0], [0], [1], [0, 0, 1, 1], [], []>} : vector<20x32xf32>, vector<32x64xf32>, vector<20x64xf32> -> vector<20x64xf32>
    %276 = arith.addf %270, %275 : vector<20x64xf32>
    %c3_336 = arith.constant 3 : index
    %c6_337 = arith.constant 6 : index
    %c0_338 = arith.constant 0 : index
    %277 = vector.load %arg15[%c3_336, %c6_337, %c0_338] : memref<4x32x32xf32, #tpu.memory_space<vmem>>, vector<1x20x32xf32>
    %278 = vector.shape_cast %277 : vector<1x20x32xf32> to vector<20x32xf32>
    %c3_339 = arith.constant 3 : index
    %c3_340 = arith.constant 3 : index
    %c0_341 = arith.constant 0 : index
    %c0_342 = arith.constant 0 : index
    %279 = vector.load %arg8[%c3_339, %c3_340, %c0_341, %c0_342] : memref<4x4x32x64xf32, #tpu.memory_space<vmem>>, vector<1x1x32x64xf32>
    %280 = vector.shape_cast %279 : vector<1x1x32x64xf32> to vector<32x64xf32>
    %cst_343 = arith.constant dense<0.000000e+00> : vector<20x64xf32>
    %281 = tpu.matmul %278, %280, %cst_343 {dimension_numbers = #tpu.dot_dimension_numbers<[1], [0], [0], [1], [0, 0, 1, 1], [], []>} : vector<20x32xf32>, vector<32x64xf32>, vector<20x64xf32> -> vector<20x64xf32>
    %282 = arith.addf %276, %281 : vector<20x64xf32>
    %c0_344 = arith.constant 0 : index
    %c0_345 = arith.constant 0 : index
    %283 = vector.load %arg9[%c0_344, %c0_345] : memref<1x64xf32, #tpu.memory_space<vmem>>, vector<1x64xf32>
    %284 = vector.broadcast %283 : vector<1x64xf32> to vector<20x64xf32>
    %285 = arith.addf %282, %284 : vector<20x64xf32>
    %cst_346 = arith.constant 0.000000e+00 : f32
    %286 = vector.broadcast %cst_346 : f32 to vector<20x64xf32>
    %287 = arith.cmpf oge, %285, %286 : vector<20x64xf32>
    %cst_347 = arith.constant 2.000000e-01 : f32
    %288 = vector.broadcast %cst_347 : f32 to vector<20x64xf32>
    %289 = arith.mulf %288, %285 : vector<20x64xf32>
    %290 = arith.select %287, %285, %289 : vector<20x64xi1>, vector<20x64xf32>
    %c0_348 = arith.constant 0 : index
    %c0_349 = arith.constant 0 : index
    %c0_350 = arith.constant 0 : index
    %291 = vector.load %arg10[%c0_348, %c0_349, %c0_350] : memref<4x16x20xf32, #tpu.memory_space<vmem>>, vector<1x16x20xf32>
    %292 = vector.shape_cast %291 : vector<1x16x20xf32> to vector<16x20xf32>
    %cst_351 = arith.constant dense<0.000000e+00> : vector<16x64xf32>
    %293 = tpu.matmul %292, %290, %cst_351 {dimension_numbers = #tpu.dot_dimension_numbers<[1], [0], [0], [1], [0, 0, 1, 1], [], []>} : vector<16x20xf32>, vector<20x64xf32>, vector<16x64xf32> -> vector<16x64xf32>
    %c0_352 = arith.constant 0 : index
    %c0_353 = arith.constant 0 : index
    %c0_354 = arith.constant 0 : index
    %294 = vector.load %arg16[%c0_352, %c0_353, %c0_354] : memref<4x16x64xf32, #tpu.memory_space<vmem>>, vector<1x16x64xf32>
    %295 = vector.shape_cast %294 : vector<1x16x64xf32> to vector<16x64xf32>
    %296 = vector.shape_cast %293 : vector<16x64xf32> to vector<1x16x64xf32>
    tpu.vector_store %arg16[%c0_352, %c0_353, %c0_354], %296 {strides = array<i32>} : memref<4x16x64xf32, #tpu.memory_space<vmem>>, vector<1x16x64xf32>,
    %c1_355 = arith.constant 1 : index
    %c0_356 = arith.constant 0 : index
    %c0_357 = arith.constant 0 : index
    %297 = vector.load %arg10[%c1_355, %c0_356, %c0_357] : memref<4x16x20xf32, #tpu.memory_space<vmem>>, vector<1x16x20xf32>
    %298 = vector.shape_cast %297 : vector<1x16x20xf32> to vector<16x20xf32>
    %cst_358 = arith.constant dense<0.000000e+00> : vector<16x64xf32>
    %299 = tpu.matmul %298, %290, %cst_358 {dimension_numbers = #tpu.dot_dimension_numbers<[1], [0], [0], [1], [0, 0, 1, 1], [], []>} : vector<16x20xf32>, vector<20x64xf32>, vector<16x64xf32> -> vector<16x64xf32>
    %c1_359 = arith.constant 1 : index
    %c0_360 = arith.constant 0 : index
    %c0_361 = arith.constant 0 : index
    %300 = vector.load %arg16[%c1_359, %c0_360, %c0_361] : memref<4x16x64xf32, #tpu.memory_space<vmem>>, vector<1x16x64xf32>
    %301 = vector.shape_cast %300 : vector<1x16x64xf32> to vector<16x64xf32>
    %302 = vector.shape_cast %299 : vector<16x64xf32> to vector<1x16x64xf32>
    tpu.vector_store %arg16[%c1_359, %c0_360, %c0_361], %302 {strides = array<i32>} : memref<4x16x64xf32, #tpu.memory_space<vmem>>, vector<1x16x64xf32>,
    %c2_362 = arith.constant 2 : index
    %c0_363 = arith.constant 0 : index
    %c0_364 = arith.constant 0 : index
    %303 = vector.load %arg10[%c2_362, %c0_363, %c0_364] : memref<4x16x20xf32, #tpu.memory_space<vmem>>, vector<1x16x20xf32>
    %304 = vector.shape_cast %303 : vector<1x16x20xf32> to vector<16x20xf32>
    %cst_365 = arith.constant dense<0.000000e+00> : vector<16x64xf32>
    %305 = tpu.matmul %304, %290, %cst_365 {dimension_numbers = #tpu.dot_dimension_numbers<[1], [0], [0], [1], [0, 0, 1, 1], [], []>} : vector<16x20xf32>, vector<20x64xf32>, vector<16x64xf32> -> vector<16x64xf32>
    %c2_366 = arith.constant 2 : index
    %c0_367 = arith.constant 0 : index
    %c0_368 = arith.constant 0 : index
    %306 = vector.load %arg16[%c2_366, %c0_367, %c0_368] : memref<4x16x64xf32, #tpu.memory_space<vmem>>, vector<1x16x64xf32>
    %307 = vector.shape_cast %306 : vector<1x16x64xf32> to vector<16x64xf32>
    %308 = vector.shape_cast %305 : vector<16x64xf32> to vector<1x16x64xf32>
    tpu.vector_store %arg16[%c2_366, %c0_367, %c0_368], %308 {strides = array<i32>} : memref<4x16x64xf32, #tpu.memory_space<vmem>>, vector<1x16x64xf32>,
    %c3_369 = arith.constant 3 : index
    %c0_370 = arith.constant 0 : index
    %c0_371 = arith.constant 0 : index
    %309 = vector.load %arg10[%c3_369, %c0_370, %c0_371] : memref<4x16x20xf32, #tpu.memory_space<vmem>>, vector<1x16x20xf32>
    %310 = vector.shape_cast %309 : vector<1x16x20xf32> to vector<16x20xf32>
    %cst_372 = arith.constant dense<0.000000e+00> : vector<16x64xf32>
    %311 = tpu.matmul %310, %290, %cst_372 {dimension_numbers = #tpu.dot_dimension_numbers<[1], [0], [0], [1], [0, 0, 1, 1], [], []>} : vector<16x20xf32>, vector<20x64xf32>, vector<16x64xf32> -> vector<16x64xf32>
    %c3_373 = arith.constant 3 : index
    %c0_374 = arith.constant 0 : index
    %c0_375 = arith.constant 0 : index
    %312 = vector.load %arg16[%c3_373, %c0_374, %c0_375] : memref<4x16x64xf32, #tpu.memory_space<vmem>>, vector<1x16x64xf32>
    %313 = vector.shape_cast %312 : vector<1x16x64xf32> to vector<16x64xf32>
    %314 = vector.shape_cast %311 : vector<16x64xf32> to vector<1x16x64xf32>
    tpu.vector_store %arg16[%c3_373, %c0_374, %c0_375], %314 {strides = array<i32>} : memref<4x16x64xf32, #tpu.memory_space<vmem>>, vector<1x16x64xf32>,
    %cst_376 = arith.constant 0.000000e+00 : f32
    %315 = vector.broadcast %cst_376 : f32 to vector<6x128xf32>
    %c0_377 = arith.constant 0 : index
    %c0_378 = arith.constant 0 : index
    %c0_379 = arith.constant 0 : index
    %316 = vector.load %arg16[%c0_377, %c0_378, %c0_379] : memref<4x16x64xf32, #tpu.memory_space<vmem>>, vector<1x6x64xf32>
    %317 = vector.shape_cast %316 : vector<1x6x64xf32> to vector<6x64xf32>
    %c0_380 = arith.constant 0 : index
    %c0_381 = arith.constant 0 : index
    %c0_382 = arith.constant 0 : index
    %c0_383 = arith.constant 0 : index
    %318 = vector.load %arg11[%c0_380, %c0_381, %c0_382, %c0_383] : memref<4x4x64x128xf32, #tpu.memory_space<vmem>>, vector<1x1x64x128xf32>
    %319 = vector.shape_cast %318 : vector<1x1x64x128xf32> to vector<64x128xf32>
    %cst_384 = arith.constant dense<0.000000e+00> : vector<6x128xf32>
    %320 = tpu.matmul %317, %319, %cst_384 {dimension_numbers = #tpu.dot_dimension_numbers<[1], [0], [0], [1], [0, 0, 1, 1], [], []>} : vector<6x64xf32>, vector<64x128xf32>, vector<6x128xf32> -> vector<6x128xf32>
    %321 = arith.addf %315, %320 : vector<6x128xf32>
    %c1_385 = arith.constant 1 : index
    %c0_386 = arith.constant 0 : index
    %c0_387 = arith.constant 0 : index
    %322 = vector.load %arg16[%c1_385, %c0_386, %c0_387] : memref<4x16x64xf32, #tpu.memory_space<vmem>>, vector<1x6x64xf32>
    %323 = vector.shape_cast %322 : vector<1x6x64xf32> to vector<6x64xf32>
    %c0_388 = arith.constant 0 : index
    %c1_389 = arith.constant 1 : index
    %c0_390 = arith.constant 0 : index
    %c0_391 = arith.constant 0 : index
    %324 = vector.load %arg11[%c0_388, %c1_389, %c0_390, %c0_391] : memref<4x4x64x128xf32, #tpu.memory_space<vmem>>, vector<1x1x64x128xf32>
    %325 = vector.shape_cast %324 : vector<1x1x64x128xf32> to vector<64x128xf32>
    %cst_392 = arith.constant dense<0.000000e+00> : vector<6x128xf32>
    %326 = tpu.matmul %323, %325, %cst_392 {dimension_numbers = #tpu.dot_dimension_numbers<[1], [0], [0], [1], [0, 0, 1, 1], [], []>} : vector<6x64xf32>, vector<64x128xf32>, vector<6x128xf32> -> vector<6x128xf32>
    %327 = arith.addf %321, %326 : vector<6x128xf32>
    %c2_393 = arith.constant 2 : index
    %c0_394 = arith.constant 0 : index
    %c0_395 = arith.constant 0 : index
    %328 = vector.load %arg16[%c2_393, %c0_394, %c0_395] : memref<4x16x64xf32, #tpu.memory_space<vmem>>, vector<1x6x64xf32>
    %329 = vector.shape_cast %328 : vector<1x6x64xf32> to vector<6x64xf32>
    %c0_396 = arith.constant 0 : index
    %c2_397 = arith.constant 2 : index
    %c0_398 = arith.constant 0 : index
    %c0_399 = arith.constant 0 : index
    %330 = vector.load %arg11[%c0_396, %c2_397, %c0_398, %c0_399] : memref<4x4x64x128xf32, #tpu.memory_space<vmem>>, vector<1x1x64x128xf32>
    %331 = vector.shape_cast %330 : vector<1x1x64x128xf32> to vector<64x128xf32>
    %cst_400 = arith.constant dense<0.000000e+00> : vector<6x128xf32>
    %332 = tpu.matmul %329, %331, %cst_400 {dimension_numbers = #tpu.dot_dimension_numbers<[1], [0], [0], [1], [0, 0, 1, 1], [], []>} : vector<6x64xf32>, vector<64x128xf32>, vector<6x128xf32> -> vector<6x128xf32>
    %333 = arith.addf %327, %332 : vector<6x128xf32>
    %c3_401 = arith.constant 3 : index
    %c0_402 = arith.constant 0 : index
    %c0_403 = arith.constant 0 : index
    %334 = vector.load %arg16[%c3_401, %c0_402, %c0_403] : memref<4x16x64xf32, #tpu.memory_space<vmem>>, vector<1x6x64xf32>
    %335 = vector.shape_cast %334 : vector<1x6x64xf32> to vector<6x64xf32>
    %c0_404 = arith.constant 0 : index
    %c3_405 = arith.constant 3 : index
    %c0_406 = arith.constant 0 : index
    %c0_407 = arith.constant 0 : index
    %336 = vector.load %arg11[%c0_404, %c3_405, %c0_406, %c0_407] : memref<4x4x64x128xf32, #tpu.memory_space<vmem>>, vector<1x1x64x128xf32>
    %337 = vector.shape_cast %336 : vector<1x1x64x128xf32> to vector<64x128xf32>
    %cst_408 = arith.constant dense<0.000000e+00> : vector<6x128xf32>
    %338 = tpu.matmul %335, %337, %cst_408 {dimension_numbers = #tpu.dot_dimension_numbers<[1], [0], [0], [1], [0, 0, 1, 1], [], []>} : vector<6x64xf32>, vector<64x128xf32>, vector<6x128xf32> -> vector<6x128xf32>
    %339 = arith.addf %333, %338 : vector<6x128xf32>
    %c0_409 = arith.constant 0 : index
    %c1_410 = arith.constant 1 : index
    %c0_411 = arith.constant 0 : index
    %340 = vector.load %arg16[%c0_409, %c1_410, %c0_411] : memref<4x16x64xf32, #tpu.memory_space<vmem>>, vector<1x6x64xf32>
    %341 = vector.shape_cast %340 : vector<1x6x64xf32> to vector<6x64xf32>
    %c1_412 = arith.constant 1 : index
    %c0_413 = arith.constant 0 : index
    %c0_414 = arith.constant 0 : index
    %c0_415 = arith.constant 0 : index
    %342 = vector.load %arg11[%c1_412, %c0_413, %c0_414, %c0_415] : memref<4x4x64x128xf32, #tpu.memory_space<vmem>>, vector<1x1x64x128xf32>
    %343 = vector.shape_cast %342 : vector<1x1x64x128xf32> to vector<64x128xf32>
    %cst_416 = arith.constant dense<0.000000e+00> : vector<6x128xf32>
    %344 = tpu.matmul %341, %343, %cst_416 {dimension_numbers = #tpu.dot_dimension_numbers<[1], [0], [0], [1], [0, 0, 1, 1], [], []>} : vector<6x64xf32>, vector<64x128xf32>, vector<6x128xf32> -> vector<6x128xf32>
    %345 = arith.addf %339, %344 : vector<6x128xf32>
    %c1_417 = arith.constant 1 : index
    %c1_418 = arith.constant 1 : index
    %c0_419 = arith.constant 0 : index
    %346 = vector.load %arg16[%c1_417, %c1_418, %c0_419] : memref<4x16x64xf32, #tpu.memory_space<vmem>>, vector<1x6x64xf32>
    %347 = vector.shape_cast %346 : vector<1x6x64xf32> to vector<6x64xf32>
    %c1_420 = arith.constant 1 : index
    %c1_421 = arith.constant 1 : index
    %c0_422 = arith.constant 0 : index
    %c0_423 = arith.constant 0 : index
    %348 = vector.load %arg11[%c1_420, %c1_421, %c0_422, %c0_423] : memref<4x4x64x128xf32, #tpu.memory_space<vmem>>, vector<1x1x64x128xf32>
    %349 = vector.shape_cast %348 : vector<1x1x64x128xf32> to vector<64x128xf32>
    %cst_424 = arith.constant dense<0.000000e+00> : vector<6x128xf32>
    %350 = tpu.matmul %347, %349, %cst_424 {dimension_numbers = #tpu.dot_dimension_numbers<[1], [0], [0], [1], [0, 0, 1, 1], [], []>} : vector<6x64xf32>, vector<64x128xf32>, vector<6x128xf32> -> vector<6x128xf32>
    %351 = arith.addf %345, %350 : vector<6x128xf32>
    %c2_425 = arith.constant 2 : index
    %c1_426 = arith.constant 1 : index
    %c0_427 = arith.constant 0 : index
    %352 = vector.load %arg16[%c2_425, %c1_426, %c0_427] : memref<4x16x64xf32, #tpu.memory_space<vmem>>, vector<1x6x64xf32>
    %353 = vector.shape_cast %352 : vector<1x6x64xf32> to vector<6x64xf32>
    %c1_428 = arith.constant 1 : index
    %c2_429 = arith.constant 2 : index
    %c0_430 = arith.constant 0 : index
    %c0_431 = arith.constant 0 : index
    %354 = vector.load %arg11[%c1_428, %c2_429, %c0_430, %c0_431] : memref<4x4x64x128xf32, #tpu.memory_space<vmem>>, vector<1x1x64x128xf32>
    %355 = vector.shape_cast %354 : vector<1x1x64x128xf32> to vector<64x128xf32>
    %cst_432 = arith.constant dense<0.000000e+00> : vector<6x128xf32>
    %356 = tpu.matmul %353, %355, %cst_432 {dimension_numbers = #tpu.dot_dimension_numbers<[1], [0], [0], [1], [0, 0, 1, 1], [], []>} : vector<6x64xf32>, vector<64x128xf32>, vector<6x128xf32> -> vector<6x128xf32>
    %357 = arith.addf %351, %356 : vector<6x128xf32>
    %c3_433 = arith.constant 3 : index
    %c1_434 = arith.constant 1 : index
    %c0_435 = arith.constant 0 : index
    %358 = vector.load %arg16[%c3_433, %c1_434, %c0_435] : memref<4x16x64xf32, #tpu.memory_space<vmem>>, vector<1x6x64xf32>
    %359 = vector.shape_cast %358 : vector<1x6x64xf32> to vector<6x64xf32>
    %c1_436 = arith.constant 1 : index
    %c3_437 = arith.constant 3 : index
    %c0_438 = arith.constant 0 : index
    %c0_439 = arith.constant 0 : index
    %360 = vector.load %arg11[%c1_436, %c3_437, %c0_438, %c0_439] : memref<4x4x64x128xf32, #tpu.memory_space<vmem>>, vector<1x1x64x128xf32>
    %361 = vector.shape_cast %360 : vector<1x1x64x128xf32> to vector<64x128xf32>
    %cst_440 = arith.constant dense<0.000000e+00> : vector<6x128xf32>
    %362 = tpu.matmul %359, %361, %cst_440 {dimension_numbers = #tpu.dot_dimension_numbers<[1], [0], [0], [1], [0, 0, 1, 1], [], []>} : vector<6x64xf32>, vector<64x128xf32>, vector<6x128xf32> -> vector<6x128xf32>
    %363 = arith.addf %357, %362 : vector<6x128xf32>
    %c0_441 = arith.constant 0 : index
    %c3_442 = arith.constant 3 : index
    %c0_443 = arith.constant 0 : index
    %364 = vector.load %arg16[%c0_441, %c3_442, %c0_443] : memref<4x16x64xf32, #tpu.memory_space<vmem>>, vector<1x6x64xf32>
    %365 = vector.shape_cast %364 : vector<1x6x64xf32> to vector<6x64xf32>
    %c2_444 = arith.constant 2 : index
    %c0_445 = arith.constant 0 : index
    %c0_446 = arith.constant 0 : index
    %c0_447 = arith.constant 0 : index
    %366 = vector.load %arg11[%c2_444, %c0_445, %c0_446, %c0_447] : memref<4x4x64x128xf32, #tpu.memory_space<vmem>>, vector<1x1x64x128xf32>
    %367 = vector.shape_cast %366 : vector<1x1x64x128xf32> to vector<64x128xf32>
    %cst_448 = arith.constant dense<0.000000e+00> : vector<6x128xf32>
    %368 = tpu.matmul %365, %367, %cst_448 {dimension_numbers = #tpu.dot_dimension_numbers<[1], [0], [0], [1], [0, 0, 1, 1], [], []>} : vector<6x64xf32>, vector<64x128xf32>, vector<6x128xf32> -> vector<6x128xf32>
    %369 = arith.addf %363, %368 : vector<6x128xf32>
    %c1_449 = arith.constant 1 : index
    %c3_450 = arith.constant 3 : index
    %c0_451 = arith.constant 0 : index
    %370 = vector.load %arg16[%c1_449, %c3_450, %c0_451] : memref<4x16x64xf32, #tpu.memory_space<vmem>>, vector<1x6x64xf32>
    %371 = vector.shape_cast %370 : vector<1x6x64xf32> to vector<6x64xf32>
    %c2_452 = arith.constant 2 : index
    %c1_453 = arith.constant 1 : index
    %c0_454 = arith.constant 0 : index
    %c0_455 = arith.constant 0 : index
    %372 = vector.load %arg11[%c2_452, %c1_453, %c0_454, %c0_455] : memref<4x4x64x128xf32, #tpu.memory_space<vmem>>, vector<1x1x64x128xf32>
    %373 = vector.shape_cast %372 : vector<1x1x64x128xf32> to vector<64x128xf32>
    %cst_456 = arith.constant dense<0.000000e+00> : vector<6x128xf32>
    %374 = tpu.matmul %371, %373, %cst_456 {dimension_numbers = #tpu.dot_dimension_numbers<[1], [0], [0], [1], [0, 0, 1, 1], [], []>} : vector<6x64xf32>, vector<64x128xf32>, vector<6x128xf32> -> vector<6x128xf32>
    %375 = arith.addf %369, %374 : vector<6x128xf32>
    %c2_457 = arith.constant 2 : index
    %c3_458 = arith.constant 3 : index
    %c0_459 = arith.constant 0 : index
    %376 = vector.load %arg16[%c2_457, %c3_458, %c0_459] : memref<4x16x64xf32, #tpu.memory_space<vmem>>, vector<1x6x64xf32>
    %377 = vector.shape_cast %376 : vector<1x6x64xf32> to vector<6x64xf32>
    %c2_460 = arith.constant 2 : index
    %c2_461 = arith.constant 2 : index
    %c0_462 = arith.constant 0 : index
    %c0_463 = arith.constant 0 : index
    %378 = vector.load %arg11[%c2_460, %c2_461, %c0_462, %c0_463] : memref<4x4x64x128xf32, #tpu.memory_space<vmem>>, vector<1x1x64x128xf32>
    %379 = vector.shape_cast %378 : vector<1x1x64x128xf32> to vector<64x128xf32>
    %cst_464 = arith.constant dense<0.000000e+00> : vector<6x128xf32>
    %380 = tpu.matmul %377, %379, %cst_464 {dimension_numbers = #tpu.dot_dimension_numbers<[1], [0], [0], [1], [0, 0, 1, 1], [], []>} : vector<6x64xf32>, vector<64x128xf32>, vector<6x128xf32> -> vector<6x128xf32>
    %381 = arith.addf %375, %380 : vector<6x128xf32>
    %c3_465 = arith.constant 3 : index
    %c3_466 = arith.constant 3 : index
    %c0_467 = arith.constant 0 : index
    %382 = vector.load %arg16[%c3_465, %c3_466, %c0_467] : memref<4x16x64xf32, #tpu.memory_space<vmem>>, vector<1x6x64xf32>
    %383 = vector.shape_cast %382 : vector<1x6x64xf32> to vector<6x64xf32>
    %c2_468 = arith.constant 2 : index
    %c3_469 = arith.constant 3 : index
    %c0_470 = arith.constant 0 : index
    %c0_471 = arith.constant 0 : index
    %384 = vector.load %arg11[%c2_468, %c3_469, %c0_470, %c0_471] : memref<4x4x64x128xf32, #tpu.memory_space<vmem>>, vector<1x1x64x128xf32>
    %385 = vector.shape_cast %384 : vector<1x1x64x128xf32> to vector<64x128xf32>
    %cst_472 = arith.constant dense<0.000000e+00> : vector<6x128xf32>
    %386 = tpu.matmul %383, %385, %cst_472 {dimension_numbers = #tpu.dot_dimension_numbers<[1], [0], [0], [1], [0, 0, 1, 1], [], []>} : vector<6x64xf32>, vector<64x128xf32>, vector<6x128xf32> -> vector<6x128xf32>
    %387 = arith.addf %381, %386 : vector<6x128xf32>
    %c0_473 = arith.constant 0 : index
    %c4 = arith.constant 4 : index
    %c0_474 = arith.constant 0 : index
    %388 = vector.load %arg16[%c0_473, %c4, %c0_474] : memref<4x16x64xf32, #tpu.memory_space<vmem>>, vector<1x6x64xf32>
    %389 = vector.shape_cast %388 : vector<1x6x64xf32> to vector<6x64xf32>
    %c3_475 = arith.constant 3 : index
    %c0_476 = arith.constant 0 : index
    %c0_477 = arith.constant 0 : index
    %c0_478 = arith.constant 0 : index
    %390 = vector.load %arg11[%c3_475, %c0_476, %c0_477, %c0_478] : memref<4x4x64x128xf32, #tpu.memory_space<vmem>>, vector<1x1x64x128xf32>
    %391 = vector.shape_cast %390 : vector<1x1x64x128xf32> to vector<64x128xf32>
    %cst_479 = arith.constant dense<0.000000e+00> : vector<6x128xf32>
    %392 = tpu.matmul %389, %391, %cst_479 {dimension_numbers = #tpu.dot_dimension_numbers<[1], [0], [0], [1], [0, 0, 1, 1], [], []>} : vector<6x64xf32>, vector<64x128xf32>, vector<6x128xf32> -> vector<6x128xf32>
    %393 = arith.addf %387, %392 : vector<6x128xf32>
    %c1_480 = arith.constant 1 : index
    %c4_481 = arith.constant 4 : index
    %c0_482 = arith.constant 0 : index
    %394 = vector.load %arg16[%c1_480, %c4_481, %c0_482] : memref<4x16x64xf32, #tpu.memory_space<vmem>>, vector<1x6x64xf32>
    %395 = vector.shape_cast %394 : vector<1x6x64xf32> to vector<6x64xf32>
    %c3_483 = arith.constant 3 : index
    %c1_484 = arith.constant 1 : index
    %c0_485 = arith.constant 0 : index
    %c0_486 = arith.constant 0 : index
    %396 = vector.load %arg11[%c3_483, %c1_484, %c0_485, %c0_486] : memref<4x4x64x128xf32, #tpu.memory_space<vmem>>, vector<1x1x64x128xf32>
    %397 = vector.shape_cast %396 : vector<1x1x64x128xf32> to vector<64x128xf32>
    %cst_487 = arith.constant dense<0.000000e+00> : vector<6x128xf32>
    %398 = tpu.matmul %395, %397, %cst_487 {dimension_numbers = #tpu.dot_dimension_numbers<[1], [0], [0], [1], [0, 0, 1, 1], [], []>} : vector<6x64xf32>, vector<64x128xf32>, vector<6x128xf32> -> vector<6x128xf32>
    %399 = arith.addf %393, %398 : vector<6x128xf32>
    %c2_488 = arith.constant 2 : index
    %c4_489 = arith.constant 4 : index
    %c0_490 = arith.constant 0 : index
    %400 = vector.load %arg16[%c2_488, %c4_489, %c0_490] : memref<4x16x64xf32, #tpu.memory_space<vmem>>, vector<1x6x64xf32>
    %401 = vector.shape_cast %400 : vector<1x6x64xf32> to vector<6x64xf32>
    %c3_491 = arith.constant 3 : index
    %c2_492 = arith.constant 2 : index
    %c0_493 = arith.constant 0 : index
    %c0_494 = arith.constant 0 : index
    %402 = vector.load %arg11[%c3_491, %c2_492, %c0_493, %c0_494] : memref<4x4x64x128xf32, #tpu.memory_space<vmem>>, vector<1x1x64x128xf32>
    %403 = vector.shape_cast %402 : vector<1x1x64x128xf32> to vector<64x128xf32>
    %cst_495 = arith.constant dense<0.000000e+00> : vector<6x128xf32>
    %404 = tpu.matmul %401, %403, %cst_495 {dimension_numbers = #tpu.dot_dimension_numbers<[1], [0], [0], [1], [0, 0, 1, 1], [], []>} : vector<6x64xf32>, vector<64x128xf32>, vector<6x128xf32> -> vector<6x128xf32>
    %405 = arith.addf %399, %404 : vector<6x128xf32>
    %c3_496 = arith.constant 3 : index
    %c4_497 = arith.constant 4 : index
    %c0_498 = arith.constant 0 : index
    %406 = vector.load %arg16[%c3_496, %c4_497, %c0_498] : memref<4x16x64xf32, #tpu.memory_space<vmem>>, vector<1x6x64xf32>
    %407 = vector.shape_cast %406 : vector<1x6x64xf32> to vector<6x64xf32>
    %c3_499 = arith.constant 3 : index
    %c3_500 = arith.constant 3 : index
    %c0_501 = arith.constant 0 : index
    %c0_502 = arith.constant 0 : index
    %408 = vector.load %arg11[%c3_499, %c3_500, %c0_501, %c0_502] : memref<4x4x64x128xf32, #tpu.memory_space<vmem>>, vector<1x1x64x128xf32>
    %409 = vector.shape_cast %408 : vector<1x1x64x128xf32> to vector<64x128xf32>
    %cst_503 = arith.constant dense<0.000000e+00> : vector<6x128xf32>
    %410 = tpu.matmul %407, %409, %cst_503 {dimension_numbers = #tpu.dot_dimension_numbers<[1], [0], [0], [1], [0, 0, 1, 1], [], []>} : vector<6x64xf32>, vector<64x128xf32>, vector<6x128xf32> -> vector<6x128xf32>
    %411 = arith.addf %405, %410 : vector<6x128xf32>
    %c0_504 = arith.constant 0 : index
    %c0_505 = arith.constant 0 : index
    %412 = vector.load %arg12[%c0_504, %c0_505] : memref<1x128xf32, #tpu.memory_space<vmem>>, vector<1x128xf32>
    %413 = vector.broadcast %412 : vector<1x128xf32> to vector<6x128xf32>
    %414 = arith.addf %411, %413 : vector<6x128xf32>
    %cst_506 = arith.constant 0.000000e+00 : f32
    %415 = vector.broadcast %cst_506 : f32 to vector<6x128xf32>
    %416 = arith.cmpf oge, %414, %415 : vector<6x128xf32>
    %cst_507 = arith.constant 2.000000e-01 : f32
    %417 = vector.broadcast %cst_507 : f32 to vector<6x128xf32>
    %418 = arith.mulf %417, %414 : vector<6x128xf32>
    %419 = arith.select %416, %414, %418 : vector<6x128xi1>, vector<6x128xf32>
    %c0_508 = arith.constant 0 : index
    %c0_509 = arith.constant 0 : index
    %c0_510 = arith.constant 0 : index
    %420 = vector.load %arg13[%c0_508, %c0_509, %c0_510] : memref<1x6x128xf32, #tpu.memory_space<vmem>>, vector<1x6x128xf32>
    %421 = vector.shape_cast %420 : vector<1x6x128xf32> to vector<6x128xf32>
    %422 = vector.shape_cast %419 : vector<6x128xf32> to vector<1x6x128xf32>
    tpu.vector_store %arg13[%c0_508, %c0_509, %c0_510], %422 {strides = array<i32>} : memref<1x6x128xf32, #tpu.memory_space<vmem>>, vector<1x6x128xf32>,
    return
  }
  func.func @transform_0(%arg0: i32) -> (i32, i32, i32) {
    %c0_i32 = arith.constant 0 : i32
    %c0_i32_0 = arith.constant 0 : i32
    %c0_i32_1 = arith.constant 0 : i32
    return %arg0, %c0_i32, %c0_i32_0 : i32, i32, i32
  }
  func.func @transform_1(%arg0: i32) -> (i32, i32, i32, i32) {
    %c0_i32 = arith.constant 0 : i32
    %c0_i32_0 = arith.constant 0 : i32
    %c0_i32_1 = arith.constant 0 : i32
    %c0_i32_2 = arith.constant 0 : i32
    %c0_i32_3 = arith.constant 0 : i32
    return %c0_i32, %c0_i32_0, %c0_i32_1, %c0_i32_2 : i32, i32, i32, i32
  }
  func.func @transform_2(%arg0: i32) -> (i32, i32) {
    %c0_i32 = arith.constant 0 : i32
    %c0_i32_0 = arith.constant 0 : i32
    %c0_i32_1 = arith.constant 0 : i32
    return %c0_i32, %c0_i32_0 : i32, i32
  }
  func.func @transform_3(%arg0: i32) -> (i32, i32, i32) {
    %c0_i32 = arith.constant 0 : i32
    %c0_i32_0 = arith.constant 0 : i32
    %c0_i32_1 = arith.constant 0 : i32
    %c0_i32_2 = arith.constant 0 : i32
    return %c0_i32, %c0_i32_0, %c0_i32_1 : i32, i32, i32
  }
  func.func @transform_4(%arg0: i32) -> (i32, i32, i32, i32) {
    %c0_i32 = arith.constant 0 : i32
    %c0_i32_0 = arith.constant 0 : i32
    %c0_i32_1 = arith.constant 0 : i32
    %c0_i32_2 = arith.constant 0 : i32
    %c0_i32_3 = arith.constant 0 : i32
    return %c0_i32, %c0_i32_0, %c0_i32_1, %c0_i32_2 : i32, i32, i32, i32
  }
  func.func @transform_5(%arg0: i32) -> (i32, i32) {
    %c0_i32 = arith.constant 0 : i32
    %c0_i32_0 = arith.constant 0 : i32
    %c0_i32_1 = arith.constant 0 : i32
    return %c0_i32, %c0_i32_0 : i32, i32
  }
  func.func @transform_6(%arg0: i32) -> (i32, i32, i32) {
    %c0_i32 = arith.constant 0 : i32
    %c0_i32_0 = arith.constant 0 : i32
    %c0_i32_1 = arith.constant 0 : i32
    %c0_i32_2 = arith.constant 0 : i32
    return %c0_i32, %c0_i32_0, %c0_i32_1 : i32, i32, i32
  }
  func.func @transform_7(%arg0: i32) -> (i32, i32, i32, i32) {
    %c0_i32 = arith.constant 0 : i32
    %c0_i32_0 = arith.constant 0 : i32
    %c0_i32_1 = arith.constant 0 : i32
    %c0_i32_2 = arith.constant 0 : i32
    %c0_i32_3 = arith.constant 0 : i32
    return %c0_i32, %c0_i32_0, %c0_i32_1, %c0_i32_2 : i32, i32, i32, i32
  }
  func.func @transform_8(%arg0: i32) -> (i32, i32) {
    %c0_i32 = arith.constant 0 : i32
    %c0_i32_0 = arith.constant 0 : i32
    %c0_i32_1 = arith.constant 0 : i32
    return %c0_i32, %c0_i32_0 : i32, i32
  }
  func.func @transform_9(%arg0: i32) -> (i32, i32, i32) {
    %c0_i32 = arith.constant 0 : i32
    %c0_i32_0 = arith.constant 0 : i32
    %c0_i32_1 = arith.constant 0 : i32
    %c0_i32_2 = arith.constant 0 : i32
    return %c0_i32, %c0_i32_0, %c0_i32_1 : i32, i32, i32
  }
  func.func @transform_10(%arg0: i32) -> (i32, i32, i32, i32) {
    %c0_i32 = arith.constant 0 : i32
    %c0_i32_0 = arith.constant 0 : i32
    %c0_i32_1 = arith.constant 0 : i32
    %c0_i32_2 = arith.constant 0 : i32
    %c0_i32_3 = arith.constant 0 : i32
    return %c0_i32, %c0_i32_0, %c0_i32_1, %c0_i32_2 : i32, i32, i32, i32
  }
  func.func @transform_11(%arg0: i32) -> (i32, i32) {
    %c0_i32 = arith.constant 0 : i32
    %c0_i32_0 = arith.constant 0 : i32
    %c0_i32_1 = arith.constant 0 : i32
    return %c0_i32, %c0_i32_0 : i32, i32
  }
  func.func @transform_12(%arg0: i32) -> (i32, i32, i32) {
    %c0_i32 = arith.constant 0 : i32
    %c0_i32_0 = arith.constant 0 : i32
    %c0_i32_1 = arith.constant 0 : i32
    return %arg0, %c0_i32, %c0_i32_0 : i32, i32, i32
  }
}

</mosaic_0001>

<bundles_post_ra>
// kernel: encoder_block_forward.1
= control target key start
LH: loop header
LB: loop body
LE: loop exit
PB: predicated region body
PF: predicated region fallthrough
CT: control target
= control target key end

     0   :  { %s13826_s21 = smov 0   ;;  %s16911_s0 = inlined_call_operand.vmem [shape: f32[2,296,12], index: 0, kind: input, shape index: {}]   ;;  %s16912_s1 = inlined_call_operand.vmem [shape: f32[4,1,12,16], index: 1, kind: input, shape index: {}]   ;;  %s16913_s2 = inlined_call_operand.vmem [shape: f32[1,16], index: 2, kind: input, shape index: {}]   ;;  %s16914_s3 = inlined_call_operand.vmem [shape: f32[4,88,272], index: 3, kind: input, shape index: {}]   ;;  %s16915_s4 = inlined_call_operand.vmem [shape: f32[4,4,16,32], index: 4, kind: input, shape index: {}]   ;;  %s16916_s5 = inlined_call_operand.vmem [shape: f32[1,32], index: 5, kind: input, shape index: {}]   ;;  %s16917_s6 = inlined_call_operand.vmem [shape: f32[4,32,72], index: 6, kind: input, shape index: {}]   ;;  %s16918_s7 = inlined_call_operand.vmem [shape: f32[4,4,32,64], index: 7, kind: input, shape index: {}]   ;;  %s16919_s8 = inlined_call_operand.vmem [shape: f32[1,64], index: 8, kind: input, shape index: {}]   ;;  %s16920_s9 = inlined_call_operand.vmem [shape: f32[4,16,20], index: 9, kind: input, shape index: {}]   ;;  %s16921_s10 = inlined_call_operand.vmem [shape: f32[4,4,64,128], index: 10, kind: input, shape index: {}]   ;;  %s16922_s11 = inlined_call_operand.vmem [shape: f32[1,128], index: 11, kind: input, shape index: {}]   ;;  %s16923_s12 = inlined_call_operand.vmem [shape: f32[2,6,128], index: 12, kind: output, shape index: {}]  }
   0x1 LB: > { %s9756_s22 = sadd.s32 4294967295, %s13755_s21   ;;  %p9760_p0 = scmp.ge.s32.totalorder %s13755_s21, 1  ;;  %s13755_s21 = sphi %s13826_s21, %s22_s21  }
   0x2   : > { %p362_p1 = scmp.lt.s32.totalorder %s13755_s21, 3 }
   0x4   : > { %p363_p2 = pnand %p9760_p0, %p362_p1 }
   0x5   : > { %v9763_v0 = vld [vmem:[%s16912_s1 + $0x10] sm:$0xff] (!%p363_p2)  ;;  %v9764_v1 = vld [vmem:[%s16912_s1 + $0x18] sm:$0xf] (!%p363_p2)  ;;  %vm588_vm0 = vcmask (!%p363_p2), 1043456   ;;  %p403_p3 = scmp.lt.s32.totalorder (!%p363_p2), %s9756_s22, 1  ;;  %vm13757_vm1 = vmmov (!%p363_p2), 1  }
   0x6   : > { %366 = sbr.rel (%p363_p2) target bundleno = 2591 (0xa1f), region = 68  ;;  %v13054_v2 = vpack.c.bf16 (!%p363_p2), %v9764_v1, %v9763_v0  ;;  %vm13841_vm2 = vmpackc.low (!%p363_p2), %vm588_vm0, %vm13757_vm1  ;;  %v446_v4 = vld [vmem:[%s16912_s1] sm:$0xff] (!%p363_p2)  ;;  %v447_v5 = vld [vmem:[%s16912_s1 + $0x8] sm:$0xf] (!%p363_p2)  ;;  %vm485_vm3 = vcmask (!%p363_p2), 97280  }
   0x7   : > { %v13060_v6 = vpack.c.bf16 (!%p363_p2), %v447_v5, %v446_v4  ;;  %v9835_v7 = vld [vmem:[%s16912_s1 + $0x20] sm:$0xff] (!%p363_p2)  ;;  %v9836_v8 = vld [vmem:[%s16912_s1 + $0x28] sm:$0xf] (!%p363_p2)  ;;  %v9872_v45 = vld [vmem:[%s16912_s1 + $0x30] sm:$0xff] (!%p363_p2) }
   0x8   : > { %13056 = vmatprep.subr.msk.bf16.mxu0 (!%p363_p2), %vm13841_vm2, %v13054_v2  ;;  %v13876_v12 = vpack.c.bf16 (!%p363_p2), %v9836_v8, %v9835_v7  ;;  %v9873_v46 = vld [vmem:[%s16912_s1 + $0x38] sm:$0xf] (!%p363_p2) }
   0x9   : > { %13059 = vmatpush3.bf16.msk.msra.mxu0 (!%p363_p2), %vm13841_vm2, %v13054_v2  ;;  %v14052_v49 = vpack.c.bf16 (!%p363_p2), %v9873_v46, %v9872_v45 }
   0xa   : > { %13062 = vmatprep.subr.msk.bf16.mxu0 (!%p363_p2), %vm13841_vm2, %v13060_v6 }
   0xd   : > { %s16927_s22 = smov (!%p403_p3, %s9756_s22), 1 }
   0xe   : > { %s13736_s13 = smul.u32 296, %s16927_s22  ;;  %s9762_s27 = sshll.u32 %s16927_s22, 3 }
   0xf   : > { %s411_s30 = scalar_lea.vmem %s16923_s12, %s9762_s27 }
  0x10   : > { %s13869_s20 = scalar_lea.vmem %s16911_s0, %s13736_s13 }
  0x11   : > { %v448_v9 = vld [vmem:[%s13869_s20 + $0x1] sm:$0xff]  ;;  %v449_v10 = vld [vmem:[%s13869_s20 + $0x9] sm:$0xff]  ;;  %v13874_v11 = vld [vmem:[%s13869_s20 + $0x11] sm:$0xff] }
  0x12   : > { %11486 = vmatprep.mubr.msk.f32.mxu0 %vm485_vm3, %v448_v9  ;;  %v13883_v13 = vld [vmem:[%s13869_s20 + $0x19] sm:$0xff]  ;;  %v13888_v14 = vld [vmem:[%s13869_s20 + $0x21] sm:$0xff]  ;;  %v13898_v15 = vld [vmem:[%s13869_s20 + $0x29] sm:$0xff] }
  0x13   : > { %11487 = vmatmul.mubr.msk.f32.vlgmr.msra.gmra.mrb[0].mxu0 %vm485_vm3, %v449_v10  ;;  %v13901_v16 = vld [vmem:[%s13869_s20 + $0x31] sm:$0xff]  ;;  %v13908_v17 = vld [vmem:[%s13869_s20 + $0x39] sm:$0xff]  ;;  %v13911_v18 = vld [vmem:[%s13869_s20 + $0x41] sm:$0xff] }
  0x14   : > { %11489 = vmatprep.mubr.msk.f32.mxu0 %vm485_vm3, %v13874_v11  ;;  %13065 = vmatpush3.bf16.msk.msra.mxu0 %vm13841_vm2, %v13060_v6  ;;  %v13918_v19 = vld [vmem:[%s13869_s20 + $0x49] sm:$0xff]  ;;  %v13921_v20 = vld [vmem:[%s13869_s20 + $0x51] sm:$0xff]  ;;  %v13928_v21 = vld [vmem:[%s13869_s20 + $0x59] sm:$0xff] }
  0x15   : > { %13068 = vmatprep.subr.msk.bf16.mxu0 %vm13841_vm2, %v13876_v12  ;;  %v13931_v22 = vld [vmem:[%s13869_s20 + $0x61] sm:$0xff]  ;;  %v13938_v23 = vld [vmem:[%s13869_s20 + $0x69] sm:$0xff]  ;;  %v13941_v24 = vld [vmem:[%s13869_s20 + $0x71] sm:$0xff] }
  0x16   : > { %v13948_v25 = vld [vmem:[%s13869_s20 + $0x79] sm:$0xff]  ;;  %v13951_v26 = vld [vmem:[%s13869_s20 + $0x81] sm:$0xff]  ;;  %v13958_v27 = vld [vmem:[%s13869_s20 + $0x89] sm:$0xff] }
  0x17   : > { %11490 = vmatmul.mubr.msk.f32.gmra.mrb[2].mxu0 %vm485_vm3, %v13883_v13  ;;  %v13961_v28 = vld [vmem:[%s13869_s20 + $0x91] sm:$0xff]  ;;  %v13968_v29 = vld [vmem:[%s13869_s20 + $0x99] sm:$0xff]  ;;  %v13971_v30 = vld [vmem:[%s13869_s20 + $0xa1] sm:$0xff] }
  0x18   : > { %11492 = vmatprep.mubr.msk.f32.mxu0 %vm485_vm3, %v13888_v14  ;;  %v13978_v31 = vld [vmem:[%s13869_s20 + $0xa9] sm:$0xff]  ;;  %v13981_v32 = vld [vmem:[%s13869_s20 + $0xb1] sm:$0xff]  ;;  %v13988_v33 = vld [vmem:[%s13869_s20 + $0xb9] sm:$0xff] }
  0x19   : > { %v13991_v34 = vld [vmem:[%s13869_s20 + $0xc1] sm:$0xff]  ;;  %v13998_v35 = vld [vmem:[%s13869_s20 + $0xc9] sm:$0xff]  ;;  %v14001_v36 = vld [vmem:[%s13869_s20 + $0xd1] sm:$0xff] }
  0x1a   : > { %v14008_v37 = vld [vmem:[%s13869_s20 + $0xd9] sm:$0xff]  ;;  %v14011_v38 = vld [vmem:[%s13869_s20 + $0xe1] sm:$0xff]  ;;  %v14018_v39 = vld [vmem:[%s13869_s20 + $0xe9] sm:$0xff] }
  0x1b   : > { %11493 = vmatmul.mubr.msk.f32.gmra.mrb[4].mxu0 %vm485_vm3, %v13898_v15  ;;  %v14021_v40 = vld [vmem:[%s13869_s20 + $0xf1] sm:$0xff]  ;;  %v14028_v41 = vld [vmem:[%s13869_s20 + $0xf9] sm:$0xff]  ;;  %v14031_v42 = vld [vmem:[%s13869_s20 + $0x101] sm:$0xff] }
  0x1c   : > { %11495 = vmatprep.mubr.msk.f32.mxu0 %vm485_vm3, %v13901_v16  ;;  %v14038_v43 = vld [vmem:[%s13869_s20 + $0x109] sm:$0xff]  ;;  %v412_v44 = vld [vmem:[%s13869_s20] sm:$0xff]  ;;  %v415_v50 = vld [vmem:[%s13869_s20 + $0x18] sm:$0xff] }
  0x1d   : > { %v413_v47 = vld [vmem:[%s13869_s20 + $0x8] sm:$0xff]  ;;  %v414_v48 = vld [vmem:[%s13869_s20 + $0x10] sm:$0xff]  ;;  %v416_v51 = vld [vmem:[%s13869_s20 + $0x20] sm:$0xff] }
  0x1e   : > { %v417_v52 = vld [vmem:[%s13869_s20 + $0x28] sm:$0xff]  ;;  %v418_v53 = vld [vmem:[%s13869_s20 + $0x30] sm:$0xff]  ;;  %v419_v54 = vld [vmem:[%s13869_s20 + $0x38] sm:$0xff] }
  0x1f   : > { %11496 = vmatmul.mubr.msk.f32.gmra.mrb[6].mxu0 %vm485_vm3, %v13908_v17  ;;  %v420_v55 = vld [vmem:[%s13869_s20 + $0x40] sm:$0xff]  ;;  %v421_v56 = vld [vmem:[%s13869_s20 + $0x48] sm:$0xff]  ;;  %v422_v57 = vld [vmem:[%s13869_s20 + $0x50] sm:$0xff] }
  0x20   : > { %11498 = vmatprep.mubr.msk.f32.mxu0 %vm485_vm3, %v13911_v18  ;;  %v423_v58 = vld [vmem:[%s13869_s20 + $0x58] sm:$0xff]  ;;  %v424_v59 = vld [vmem:[%s13869_s20 + $0x60] sm:$0xff]  ;;  %v425_v60 = vld [vmem:[%s13869_s20 + $0x68] sm:$0xff] }
  0x21   : > { %v426_v61 = vld [vmem:[%s13869_s20 + $0x70] sm:$0xff]  ;;  %v427_v62 = vld [vmem:[%s13869_s20 + $0x78] sm:$0xff]  ;;  %v428_v63 = vld [vmem:[%s13869_s20 + $0x80] sm:$0xff] }
  0x22   : > { %v429_v0 = vld [vmem:[%s13869_s20 + $0x88] sm:$0xff]  ;;  %v430_v1 = vld [vmem:[%s13869_s20 + $0x90] sm:$0xff]  ;;  %v431_v2 = vld [vmem:[%s13869_s20 + $0x98] sm:$0xff] }
  0x23   : > { %11499 = vmatmul.mubr.msk.f32.gmra.mrb[8].mxu0 %vm485_vm3, %v13918_v19  ;;  %v432_v4 = vld [vmem:[%s13869_s20 + $0xa0] sm:$0xff]  ;;  %v433_v5 = vld [vmem:[%s13869_s20 + $0xa8] sm:$0xff]  ;;  %v434_v6 = vld [vmem:[%s13869_s20 + $0xb0] sm:$0xff] }
  0x24   : > { %11501 = vmatprep.mubr.msk.f32.mxu0 %vm485_vm3, %v13921_v20  ;;  %v435_v7 = vld [vmem:[%s13869_s20 + $0xb8] sm:$0xff]  ;;  %v436_v8 = vld [vmem:[%s13869_s20 + $0xc0] sm:$0xff]  ;;  %v437_v9 = vld [vmem:[%s13869_s20 + $0xc8] sm:$0xff] }
  0x25   : > { %v438_v10 = vld [vmem:[%s13869_s20 + $0xd0] sm:$0xff]  ;;  %v441_v45 = vld [vmem:[%s13869_s20 + $0xe8] sm:$0xff] }
  0x26   : > { %v442_v46 = vld [vmem:[%s13869_s20 + $0xf0] sm:$0xff] }
  0x27   : > { %11502 = vmatmul.mubr.msk.f32.gmra.mrb[10].mxu0 %vm485_vm3, %v13928_v21  ;;  %v1199_v3 = vld [vmem:[%s13869_s20 + $0x111] sm:$0xff] }
  0x28   : > { %11504 = vmatprep.mubr.msk.f32.mxu0 %vm485_vm3, %v13931_v22 }
  0x2b   : > { %11505 = vmatmul.mubr.msk.f32.gmra.mrb[12].mxu0 %vm485_vm3, %v13938_v23 }
  0x2c   : > { %11507 = vmatprep.mubr.msk.f32.mxu0 %vm485_vm3, %v13941_v24 }
  0x2f   : > { %11508 = vmatmul.mubr.msk.f32.gmra.mrb[14].mxu0 %vm485_vm3, %v13948_v25 }
  0x30   : > { %11510 = vmatprep.mubr.msk.f32.mxu0 %vm485_vm3, %v13951_v26 }
  0x33   : > { %11511 = vmatmul.mubr.msk.f32.gmra.mrb[16].mxu0 %vm485_vm3, %v13958_v27 }
  0x34   : > { %11513 = vmatprep.mubr.msk.f32.mxu0 %vm485_vm3, %v13961_v28 }
  0x37   : > { %11514 = vmatmul.mubr.msk.f32.gmra.mrb[18].mxu0 %vm485_vm3, %v13968_v29 }
  0x38   : > { %11516 = vmatprep.mubr.msk.f32.mxu0 %vm485_vm3, %v13971_v30 }
  0x3b   : > { %11517 = vmatmul.mubr.msk.f32.gmra.mrb[20].mxu0 %vm485_vm3, %v13978_v31 }
  0x3c   : > { %11519 = vmatprep.mubr.msk.f32.mxu0 %vm485_vm3, %v13981_v32 }
  0x3f   : > { %11520 = vmatmul.mubr.msk.f32.gmra.mrb[22].mxu0 %vm485_vm3, %v13988_v33 }
  0x40   : > { %11522 = vmatprep.mubr.msk.f32.mxu0 %vm485_vm3, %v13991_v34 }
  0x43   : > { %11523 = vmatmul.mubr.msk.f32.gmra.mrb[24].mxu0 %vm485_vm3, %v13998_v35 }
  0x44   : > { %11525 = vmatprep.mubr.msk.f32.mxu0 %vm485_vm3, %v14001_v36 }
  0x47   : > { %11526 = vmatmul.mubr.msk.f32.gmra.mrb[26].mxu0 %vm485_vm3, %v14008_v37 }
  0x48   : > { %11528 = vmatprep.mubr.msk.f32.mxu0 %vm485_vm3, %v14011_v38 }
  0x4b   : > { %11529 = vmatmul.mubr.msk.f32.gmra.mrb[28].mxu0 %vm485_vm3, %v14018_v39 }
  0x4c   : > { %11531 = vmatprep.mubr.msk.f32.mxu0 %vm485_vm3, %v14021_v40 }
  0x4f   : > { %11532 = vmatmul.mubr.msk.f32.gmra.mrb[30].mxu0 %vm485_vm3, %v14028_v41 }
  0x50   : > { %11534 = vmatprep.mubr.msk.f32.mxu0 %vm485_vm3, %v14031_v42 }
  0x53   : > { %11535 = vmatmul.mubr.msk.f32.gmra.mrb[32].mxu0 %vm485_vm3, %v14038_v43 }
  0x54   : > { %11541 = vmatprep.mubr.msk.f32.mxu0 %vm485_vm3, %v412_v44  ;;  %v440_v44 = vld [vmem:[%s13869_s20 + $0xe0] sm:$0xff] }
  0x57   : > { %11542 = vmatmul.mubr.msk.f32.vlgmr.msra.gmra.mrb[0].mxu0 %vm485_vm3, %v413_v47  ;;  %v443_v47 = vld [vmem:[%s13869_s20 + $0xf8] sm:$0xff] }
  0x58   : > { %11544 = vmatprep.mubr.msk.f32.mxu0 %vm485_vm3, %v414_v48  ;;  %13071 = vmatpush3.bf16.msk.msra.mxu0 %vm13841_vm2, %v13876_v12  ;;  %v439_v12 = vld [vmem:[%s13869_s20 + $0xd8] sm:$0xff]  ;;  %v444_v48 = vld [vmem:[%s13869_s20 + $0x100] sm:$0xff] }
  0x59   : > { %13074 = vmatprep.subr.msk.bf16.mxu0 %vm13841_vm2, %v14052_v49 }
  0x5b   : > { %11545 = vmatmul.mubr.msk.f32.gmra.mrb[2].mxu0 %vm485_vm3, %v415_v50  ;;  %v445_v50 = vld [vmem:[%s13869_s20 + $0x108] sm:$0xff] }
  0x5c   : > { %11547 = vmatprep.mubr.msk.f32.mxu0 %vm485_vm3, %v416_v51  ;;  %v1610_v51 = vld [vmem:[%s13869_s20 + $0x112] sm:$0xff] }
  0x5f   : > { %11548 = vmatmul.mubr.msk.f32.gmra.mrb[4].mxu0 %vm485_vm3, %v417_v52  ;;  %v1611_v52 = vld [vmem:[%s13869_s20 + $0x11a] sm:$0xff] }
  0x60   : > { %11550 = vmatprep.mubr.msk.f32.mxu0 %vm485_vm3, %v418_v53  ;;  %v2133_v53 = vld [vmem:[%s16914_s3 + $0x8] sm:$0xff] }
  0x61   : > { %2263 = vmatprep.mubr.f32.mxu1 %v2133_v53 }
  0x63   : > { %11551 = vmatmul.mubr.msk.f32.gmra.mrb[6].mxu0 %vm485_vm3, %v419_v54  ;;  %v14269_v54 = vld [vmem:[%s16913_s2] ss:$0 sm:$0xff] }
  0x64   : > { %11553 = vmatprep.mubr.msk.f32.mxu0 %vm485_vm3, %v420_v55 }
  0x67   : > { %11554 = vmatmul.mubr.msk.f32.gmra.mrb[8].mxu0 %vm485_vm3, %v421_v56 }
  0x68   : > { %11556 = vmatprep.mubr.msk.f32.mxu0 %vm485_vm3, %v422_v57 }
  0x6b   : > { %11557 = vmatmul.mubr.msk.f32.gmra.mrb[10].mxu0 %vm485_vm3, %v423_v58 }
  0x6c   : > { %11559 = vmatprep.mubr.msk.f32.mxu0 %vm485_vm3, %v424_v59 }
  0x6f   : > { %11560 = vmatmul.mubr.msk.f32.gmra.mrb[12].mxu0 %vm485_vm3, %v425_v60 }
  0x70   : > { %11562 = vmatprep.mubr.msk.f32.mxu0 %vm485_vm3, %v426_v61 }
  0x73   : > { %11563 = vmatmul.mubr.msk.f32.gmra.mrb[14].mxu0 %vm485_vm3, %v427_v62 }
  0x74   : > { %11565 = vmatprep.mubr.msk.f32.mxu0 %vm485_vm3, %v428_v63 }
  0x77   : > { %11566 = vmatmul.mubr.msk.f32.gmra.mrb[16].mxu0 %vm485_vm3, %v429_v0 }
  0x78   : > { %11568 = vmatprep.mubr.msk.f32.mxu0 %vm485_vm3, %v430_v1 }
  0x7b   : > { %11569 = vmatmul.mubr.msk.f32.gmra.mrb[18].mxu0 %vm485_vm3, %v431_v2 }
  0x7c   : > { %11571 = vmatprep.mubr.msk.f32.mxu0 %vm485_vm3, %v432_v4 }
  0x7f   : > { %11572 = vmatmul.mubr.msk.f32.gmra.mrb[20].mxu0 %vm485_vm3, %v433_v5 }
  0x80   : > { %11574 = vmatprep.mubr.msk.f32.mxu0 %vm485_vm3, %v434_v6 }
  0x83   : > { %11575 = vmatmul.mubr.msk.f32.gmra.mrb[22].mxu0 %vm485_vm3, %v435_v7 }
  0x84   : > { %11577 = vmatprep.mubr.msk.f32.mxu0 %vm485_vm3, %v436_v8 }
  0x87   : > { %11578 = vmatmul.mubr.msk.f32.gmra.mrb[24].mxu0 %vm485_vm3, %v437_v9 }
  0x88   : > { %11580 = vmatprep.mubr.msk.f32.mxu0 %vm485_vm3, %v438_v10 }
  0x8b   : > { %11581 = vmatmul.mubr.msk.f32.gmra.mrb[26].mxu0 %vm485_vm3, %v439_v12 }
  0x8c   : > { %11583 = vmatprep.mubr.msk.f32.mxu0 %vm485_vm3, %v440_v44 }
  0x8f   : > { %11584 = vmatmul.mubr.msk.f32.gmra.mrb[28].mxu0 %vm485_vm3, %v441_v45 }
  0x90   : > { %11586 = vmatprep.mubr.msk.f32.mxu0 %vm485_vm3, %v442_v46 }
  0x93   : > { %11587 = vmatmul.mubr.msk.f32.gmra.mrb[30].mxu0 %vm485_vm3, %v443_v47 }
  0x94   : > { %11589 = vmatprep.mubr.msk.f32.mxu0 %vm485_vm3, %v444_v48 }
  0x97   : > { %11590 = vmatmul.mubr.msk.f32.gmra.mrb[32].mxu0 %vm485_vm3, %v445_v50 }
  0x98   : > { %11596 = vmatprep.mubr.msk.f32.mxu0 %vm485_vm3, %v13874_v11  ;;  %v1200_v11 = vld [vmem:[%s13869_s20 + $0x119] sm:$0xff] }
  0x9b   : > { %11597 = vmatmul.mubr.msk.f32.vlgmr.msra.gmra.mrb[0].mxu0 %vm485_vm3, %v13883_v13  ;;  %v1578_v13 = vld [vmem:[%s13869_s20 + $0x12] sm:$0xff] }
  0x9c   : > { %11599 = vmatprep.mubr.msk.f32.mxu0 %vm485_vm3, %v13888_v14  ;;  %13077 = vmatpush3.bf16.msk.msra.mxu0 %vm13841_vm2, %v14052_v49  ;;  %v1579_v14 = vld [vmem:[%s13869_s20 + $0x1a] sm:$0xff]  ;;  %v1609_v49 = vld [vmem:[%s13869_s20 + $0x10a] sm:$0xff] }
  0x9f   : > { %11600 = vmatmul.mubr.msk.f32.gmra.mrb[2].mxu0 %vm485_vm3, %v13898_v15  ;;  %v1580_v15 = vld [vmem:[%s13869_s20 + $0x22] sm:$0xff] }
  0xa0   : > { %11602 = vmatprep.mubr.msk.f32.mxu0 %vm485_vm3, %v13901_v16  ;;  %v1581_v16 = vld [vmem:[%s13869_s20 + $0x2a] sm:$0xff] }
  0xa3   : > { %11603 = vmatmul.mubr.msk.f32.gmra.mrb[4].mxu0 %vm485_vm3, %v13908_v17  ;;  %v1582_v17 = vld [vmem:[%s13869_s20 + $0x32] sm:$0xff] }
  0xa4   : > { %11605 = vmatprep.mubr.msk.f32.mxu0 %vm485_vm3, %v13911_v18  ;;  %v1583_v18 = vld [vmem:[%s13869_s20 + $0x3a] sm:$0xff] }
  0xa7   : > { %11606 = vmatmul.mubr.msk.f32.gmra.mrb[6].mxu0 %vm485_vm3, %v13918_v19  ;;  %v1584_v19 = vld [vmem:[%s13869_s20 + $0x42] sm:$0xff] }
  0xa8   : > { %11608 = vmatprep.mubr.msk.f32.mxu0 %vm485_vm3, %v13921_v20  ;;  %v1585_v20 = vld [vmem:[%s13869_s20 + $0x4a] sm:$0xff] }
  0xab   : > { %11609 = vmatmul.mubr.msk.f32.gmra.mrb[8].mxu0 %vm485_vm3, %v13928_v21  ;;  %v1586_v21 = vld [vmem:[%s13869_s20 + $0x52] sm:$0xff] }
  0xac   : > { %11611 = vmatprep.mubr.msk.f32.mxu0 %vm485_vm3, %v13931_v22  ;;  %v1587_v22 = vld [vmem:[%s13869_s20 + $0x5a] sm:$0xff] }
  0xaf   : > { %11612 = vmatmul.mubr.msk.f32.gmra.mrb[10].mxu0 %vm485_vm3, %v13938_v23  ;;  %v1588_v23 = vld [vmem:[%s13869_s20 + $0x62] sm:$0xff] }
  0xb0   : > { %11614 = vmatprep.mubr.msk.f32.mxu0 %vm485_vm3, %v13941_v24  ;;  %v1589_v24 = vld [vmem:[%s13869_s20 + $0x6a] sm:$0xff] }
  0xb3   : > { %11615 = vmatmul.mubr.msk.f32.gmra.mrb[12].mxu0 %vm485_vm3, %v13948_v25  ;;  %v1590_v25 = vld [vmem:[%s13869_s20 + $0x72] sm:$0xff] }
  0xb4   : > { %11617 = vmatprep.mubr.msk.f32.mxu0 %vm485_vm3, %v13951_v26  ;;  %v1591_v26 = vld [vmem:[%s13869_s20 + $0x7a] sm:$0xff] }
  0xb7   : > { %11618 = vmatmul.mubr.msk.f32.gmra.mrb[14].mxu0 %vm485_vm3, %v13958_v27  ;;  %v1592_v27 = vld [vmem:[%s13869_s20 + $0x82] sm:$0xff] }
  0xb8   : > { %11620 = vmatprep.mubr.msk.f32.mxu0 %vm485_vm3, %v13961_v28  ;;  %v1593_v28 = vld [vmem:[%s13869_s20 + $0x8a] sm:$0xff] }
  0xbb   : > { %11621 = vmatmul.mubr.msk.f32.gmra.mrb[16].mxu0 %vm485_vm3, %v13968_v29  ;;  %v1594_v29 = vld [vmem:[%s13869_s20 + $0x92] sm:$0xff] }
  0xbc   : > { %11623 = vmatprep.mubr.msk.f32.mxu0 %vm485_vm3, %v13971_v30  ;;  %v1595_v30 = vld [vmem:[%s13869_s20 + $0x9a] sm:$0xff] }
  0xbf   : > { %11624 = vmatmul.mubr.msk.f32.gmra.mrb[18].mxu0 %vm485_vm3, %v13978_v31  ;;  %v1596_v31 = vld [vmem:[%s13869_s20 + $0xa2] sm:$0xff] }
  0xc0   : > { %11626 = vmatprep.mubr.msk.f32.mxu0 %vm485_vm3, %v13981_v32  ;;  %v1597_v32 = vld [vmem:[%s13869_s20 + $0xaa] sm:$0xff] }
  0xc3   : > { %11627 = vmatmul.mubr.msk.f32.gmra.mrb[20].mxu0 %vm485_vm3, %v13988_v33  ;;  %v1598_v33 = vld [vmem:[%s13869_s20 + $0xb2] sm:$0xff] }
  0xc4   : > { %11629 = vmatprep.mubr.msk.f32.mxu0 %vm485_vm3, %v13991_v34  ;;  %v1599_v34 = vld [vmem:[%s13869_s20 + $0xba] sm:$0xff] }
  0xc7   : > { %11630 = vmatmul.mubr.msk.f32.gmra.mrb[22].mxu0 %vm485_vm3, %v13998_v35  ;;  %v1600_v35 = vld [vmem:[%s13869_s20 + $0xc2] sm:$0xff] }
  0xc8   : > { %11632 = vmatprep.mubr.msk.f32.mxu0 %vm485_vm3, %v14001_v36  ;;  %v1601_v36 = vld [vmem:[%s13869_s20 + $0xca] sm:$0xff] }
  0xcb   : > { %11633 = vmatmul.mubr.msk.f32.gmra.mrb[24].mxu0 %vm485_vm3, %v14008_v37  ;;  %v1602_v37 = vld [vmem:[%s13869_s20 + $0xd2] sm:$0xff] }
  0xcc   : > { %11635 = vmatprep.mubr.msk.f32.mxu0 %vm485_vm3, %v14011_v38  ;;  %v1603_v38 = vld [vmem:[%s13869_s20 + $0xda] sm:$0xff] }
  0xcf   : > { %11636 = vmatmul.mubr.msk.f32.gmra.mrb[26].mxu0 %vm485_vm3, %v14018_v39  ;;  %v1604_v39 = vld [vmem:[%s13869_s20 + $0xe2] sm:$0xff] }
  0xd0   : > { %11638 = vmatprep.mubr.msk.f32.mxu0 %vm485_vm3, %v14021_v40  ;;  %v1605_v40 = vld [vmem:[%s13869_s20 + $0xea] sm:$0xff] }
  0xd3   : > { %11639 = vmatmul.mubr.msk.f32.gmra.mrb[28].mxu0 %vm485_vm3, %v14028_v41  ;;  %v1606_v41 = vld [vmem:[%s13869_s20 + $0xf2] sm:$0xff] }
  0xd4   : > { %11641 = vmatprep.mubr.msk.f32.mxu0 %vm485_vm3, %v14031_v42  ;;  %v1607_v42 = vld [vmem:[%s13869_s20 + $0xfa] sm:$0xff] }
  0xd7   : > { %11642 = vmatmul.mubr.msk.f32.gmra.mrb[30].mxu0 %vm485_vm3, %v14038_v43  ;;  %v1608_v43 = vld [vmem:[%s13869_s20 + $0x102] sm:$0xff] }
  0xd8   : > { %11644 = vmatprep.mubr.msk.f32.mxu0 %vm485_vm3, %v1199_v3 }
  0xdb   : > { %11645 = vmatmul.mubr.msk.f32.gmra.mrb[32].mxu0 %vm485_vm3, %v1200_v11 }
  0xdc   : > { %11651 = vmatprep.mubr.msk.f32.mxu0 %vm485_vm3, %v1578_v13 }
  0xdf   : > { %11652 = vmatmul.mubr.msk.f32.vlgmr.msra.gmra.mrb[0].mxu0 %vm485_vm3, %v1579_v14 }
  0xe0   : > { %11654 = vmatprep.mubr.msk.f32.mxu0 %vm485_vm3, %v1580_v15 }
  0xe3   : > { %11655 = vmatmul.mubr.msk.f32.gmra.mrb[2].mxu0 %vm485_vm3, %v1581_v16 }
  0xe4   : > { %11657 = vmatprep.mubr.msk.f32.mxu0 %vm485_vm3, %v1582_v17 }
  0xe7   : > { %11658 = vmatmul.mubr.msk.f32.gmra.mrb[4].mxu0 %vm485_vm3, %v1583_v18 }
  0xe8   : > { %11660 = vmatprep.mubr.msk.f32.mxu0 %vm485_vm3, %v1584_v19 }
  0xeb   : > { %11661 = vmatmul.mubr.msk.f32.gmra.mrb[6].mxu0 %vm485_vm3, %v1585_v20 }
  0xec   : > { %11663 = vmatprep.mubr.msk.f32.mxu0 %vm485_vm3, %v1586_v21 }
  0xef   : > { %11664 = vmatmul.mubr.msk.f32.gmra.mrb[8].mxu0 %vm485_vm3, %v1587_v22 }
  0xf0   : > { %11666 = vmatprep.mubr.msk.f32.mxu0 %vm485_vm3, %v1588_v23 }
  0xf3   : > { %11667 = vmatmul.mubr.msk.f32.gmra.mrb[10].mxu0 %vm485_vm3, %v1589_v24 }
  0xf4   : > { %11669 = vmatprep.mubr.msk.f32.mxu0 %vm485_vm3, %v1590_v25 }
  0xf7   : > { %11670 = vmatmul.mubr.msk.f32.gmra.mrb[12].mxu0 %vm485_vm3, %v1591_v26 }
  0xf8   : > { %11672 = vmatprep.mubr.msk.f32.mxu0 %vm485_vm3, %v1592_v27 }
  0xfb   : > { %11673 = vmatmul.mubr.msk.f32.gmra.mrb[14].mxu0 %vm485_vm3, %v1593_v28 }
  0xfc   : > { %11675 = vmatprep.mubr.msk.f32.mxu0 %vm485_vm3, %v1594_v29 }
  0xff   : > { %11676 = vmatmul.mubr.msk.f32.gmra.mrb[16].mxu0 %vm485_vm3, %v1595_v30 }
 0x100   : > { %11678 = vmatprep.mubr.msk.f32.mxu0 %vm485_vm3, %v1596_v31 }
 0x103   : > { %11679 = vmatmul.mubr.msk.f32.gmra.mrb[18].mxu0 %vm485_vm3, %v1597_v32 }
 0x104   : > { %11681 = vmatprep.mubr.msk.f32.mxu0 %vm485_vm3, %v1598_v33 }
 0x107   : > { %11682 = vmatmul.mubr.msk.f32.gmra.mrb[20].mxu0 %vm485_vm3, %v1599_v34 }
 0x108   : > { %11684 = vmatprep.mubr.msk.f32.mxu0 %vm485_vm3, %v1600_v35 }
 0x10b   : > { %11685 = vmatmul.mubr.msk.f32.gmra.mrb[22].mxu0 %vm485_vm3, %v1601_v36 }
 0x10c   : > { %11687 = vmatprep.mubr.msk.f32.mxu0 %vm485_vm3, %v1602_v37 }
 0x10f   : > { %11688 = vmatmul.mubr.msk.f32.gmra.mrb[24].mxu0 %vm485_vm3, %v1603_v38 }
 0x110   : > { %11690 = vmatprep.mubr.msk.f32.mxu0 %vm485_vm3, %v1604_v39 }
 0x113   : > { %11691 = vmatmul.mubr.msk.f32.gmra.mrb[26].mxu0 %vm485_vm3, %v1605_v40 }
 0x114   : > { %11693 = vmatprep.mubr.msk.f32.mxu0 %vm485_vm3, %v1606_v41 }
 0x117   : > { %11694 = vmatmul.mubr.msk.f32.gmra.mrb[28].mxu0 %vm485_vm3, %v1607_v42 }
 0x118   : > { %11696 = vmatprep.mubr.msk.f32.mxu0 %vm485_vm3, %v1608_v43 }
 0x11b   : > { %11697 = vmatmul.mubr.msk.f32.gmra.mrb[30].mxu0 %vm485_vm3, %v1609_v49 }
 0x11c   : > { %11699 = vmatprep.mubr.msk.f32.mxu0 %vm485_vm3, %v1610_v51 }
 0x11f   : > { %11700 = vmatmul.mubr.msk.f32.gmra.mrb[32].mxu0 %vm485_vm3, %v1611_v52 }
 0x1b2   : > { %v11653_v55 = vpop.f32.mrb[0].mxu0 }
 0x1b3   : > { %v1997_v56 = vadd.f32 %v11653_v55, %v14269_v54  ;;  %v1786_v57 = vpop.f32.mrb[1].mxu0 }
 0x1b4   : > { %v1996_v58 = vadd.f32 %v14269_v54, %v1786_v57 }
 0x1b5   : > { %vm2031_vm4 = vcmp.ge.f32.partialorder %v1997_v56, 0.0  ;;  %v2065_v59 = vmul.f32 0.2, %v1997_v56 }
 0x1b6   : > { %vm2030_vm5 = vcmp.ge.f32.partialorder %v1996_v58, 0.0  ;;  %v2064_v60 = vmul.f32 0.2, %v1996_v58  ;;  %v11656_v61 = vpop.f32.mrb[2].mxu0 }
 0x1b7   : > { %v2099_v62 = vsel %vm2031_vm4, %v1997_v56, %v2065_v59  ;;  %v1999_v63 = vadd.f32 %v11656_v61, %v14269_v54  ;;  %v1796_v0 = vpop.f32.mrb[3].mxu0 }
 0x1b8   : > { %v2098_v1 = vsel %vm2030_vm5, %v1996_v58, %v2064_v60  ;;  %v1998_v2 = vadd.f32 %v14269_v54, %v1796_v0 }
 0x1b9   : > { %vm2033_vm6 = vcmp.ge.f32.partialorder %v1999_v63, 0.0  ;;  %v2067_v4 = vmul.f32 0.2, %v1999_v63  ;;  %v14275_v5 = vpack.c.bf16 %v2099_v62, %v2098_v1 }
 0x1ba   : > { %vm2032_vm7 = vcmp.ge.f32.partialorder %v1998_v2, 0.0  ;;  %v2066_v6 = vmul.f32 0.2, %v1998_v2  ;;  %v11659_v7 = vpop.f32.mrb[4].mxu0 }
 0x1bb   : > { %v2101_v8 = vsel %vm2033_vm6, %v1999_v63, %v2067_v4  ;;  %v2001_v9 = vadd.f32 %v11659_v7, %v14269_v54  ;;  %v1806_v10 = vpop.f32.mrb[5].mxu0 }
 0x1bc   : > { %v2100_v12 = vsel %vm2032_vm7, %v1998_v2, %v2066_v6  ;;  %v2000_v44 = vadd.f32 %v14269_v54, %v1806_v10 }
 0x1bd   : > { %vm2035_vm8 = vcmp.ge.f32.partialorder %v2001_v9, 0.0  ;;  %v2069_v45 = vmul.f32 0.2, %v2001_v9  ;;  %v14279_v46 = vpack.c.bf16 %v2101_v8, %v2100_v12 }
 0x1be   : > { %vm2034_vm9 = vcmp.ge.f32.partialorder %v2000_v44, 0.0  ;;  %v2068_v47 = vmul.f32 0.2, %v2000_v44  ;;  %v11662_v48 = vpop.f32.mrb[6].mxu0 }
 0x1bf   : > { %v2103_v50 = vsel %vm2035_vm8, %v2001_v9, %v2069_v45  ;;  %v2003_v3 = vadd.f32 %v11662_v48, %v14269_v54  ;;  %v1816_v11 = vpop.f32.mrb[7].mxu0 }
 0x1c0   : > { %v2102_v13 = vsel %vm2034_vm9, %v2000_v44, %v2068_v47  ;;  %v2002_v14 = vadd.f32 %v14269_v54, %v1816_v11 }
 0x1c1   : > { %vm2037_vm10 = vcmp.ge.f32.partialorder %v2003_v3, 0.0  ;;  %v2071_v15 = vmul.f32 0.2, %v2003_v3  ;;  %v14283_v16 = vpack.c.bf16 %v2103_v50, %v2102_v13 }
 0x1c2   : > { %vm2036_vm11 = vcmp.ge.f32.partialorder %v2002_v14, 0.0  ;;  %v2070_v17 = vmul.f32 0.2, %v2002_v14  ;;  %v11665_v18 = vpop.f32.mrb[8].mxu0 }
 0x1c3   : > { %v2105_v19 = vsel %vm2037_vm10, %v2003_v3, %v2071_v15  ;;  %v2005_v20 = vadd.f32 %v11665_v18, %v14269_v54  ;;  %v1826_v21 = vpop.f32.mrb[9].mxu0 }
 0x1c4   : > { %v2104_v22 = vsel %vm2036_vm11, %v2002_v14, %v2070_v17  ;;  %v2004_v23 = vadd.f32 %v14269_v54, %v1826_v21 }
 0x1c5   : > { %vm2039_vm12 = vcmp.ge.f32.partialorder %v2005_v20, 0.0  ;;  %v2073_v24 = vmul.f32 0.2, %v2005_v20  ;;  %v14287_v25 = vpack.c.bf16 %v2105_v19, %v2104_v22 }
 0x1c6   : > { %vm2038_vm13 = vcmp.ge.f32.partialorder %v2004_v23, 0.0  ;;  %v2072_v26 = vmul.f32 0.2, %v2004_v23  ;;  %v11668_v27 = vpop.f32.mrb[10].mxu0 }
 0x1c7   : > { %v2107_v28 = vsel %vm2039_vm12, %v2005_v20, %v2073_v24  ;;  %v2007_v29 = vadd.f32 %v11668_v27, %v14269_v54  ;;  %v1836_v30 = vpop.f32.mrb[11].mxu0 }
 0x1c8   : > { %v2106_v31 = vsel %vm2038_vm13, %v2004_v23, %v2072_v26  ;;  %v2006_v32 = vadd.f32 %v14269_v54, %v1836_v30 }
 0x1c9   : > { %vm2041_vm14 = vcmp.ge.f32.partialorder %v2007_v29, 0.0  ;;  %v2075_v33 = vmul.f32 0.2, %v2007_v29  ;;  %v14291_v34 = vpack.c.bf16 %v2107_v28, %v2106_v31 }
 0x1ca   : > { %vm2040_vm15 = vcmp.ge.f32.partialorder %v2006_v32, 0.0  ;;  %v2074_v35 = vmul.f32 0.2, %v2006_v32  ;;  %v11671_v36 = vpop.f32.mrb[12].mxu0 }
 0x1cb   : > { %v2109_v37 = vsel %vm2041_vm14, %v2007_v29, %v2075_v33  ;;  %v2009_v38 = vadd.f32 %v11671_v36, %v14269_v54  ;;  %v1846_v39 = vpop.f32.mrb[13].mxu0 }
 0x1cc   : > { %v2108_v40 = vsel %vm2040_vm15, %v2006_v32, %v2074_v35  ;;  %v2008_v41 = vadd.f32 %v14269_v54, %v1846_v39 }
 0x1cd   : > { %vm2043_vm1 = vcmp.ge.f32.partialorder %v2009_v38, 0.0  ;;  %v2077_v42 = vmul.f32 0.2, %v2009_v38  ;;  %v14295_v43 = vpack.c.bf16 %v2109_v37, %v2108_v40 }
 0x1ce   : > { %vm2042_vm2 = vcmp.ge.f32.partialorder %v2008_v41, 0.0  ;;  %v2076_v49 = vmul.f32 0.2, %v2008_v41  ;;  %v11674_v51 = vpop.f32.mrb[14].mxu0 }
 0x1cf   : > { %v2111_v52 = vsel %vm2043_vm1, %v2009_v38, %v2077_v42  ;;  %v2011_v53 = vadd.f32 %v11674_v51, %v14269_v54  ;;  %v1856_v55 = vpop.f32.mrb[15].mxu0 }
 0x1d0   : > { %v2110_v56 = vsel %vm2042_vm2, %v2008_v41, %v2076_v49  ;;  %v2010_v57 = vadd.f32 %v14269_v54, %v1856_v55 }
 0x1d1   : > { %vm2045_vm3 = vcmp.ge.f32.partialorder %v2011_v53, 0.0  ;;  %v2079_v58 = vmul.f32 0.2, %v2011_v53  ;;  %v14299_v59 = vpack.c.bf16 %v2111_v52, %v2110_v56 }
 0x1d2   : > { %vm2044_vm4 = vcmp.ge.f32.partialorder %v2010_v57, 0.0  ;;  %v2078_v60 = vmul.f32 0.2, %v2010_v57  ;;  %v11677_v61 = vpop.f32.mrb[16].mxu0 }
 0x1d3   : > { %v2113_v62 = vsel %vm2045_vm3, %v2011_v53, %v2079_v58  ;;  %v2013_v63 = vadd.f32 %v11677_v61, %v14269_v54  ;;  %v1866_v0 = vpop.f32.mrb[17].mxu0 }
 0x1d4   : > { %v2112_v1 = vsel %vm2044_vm4, %v2010_v57, %v2078_v60  ;;  %v2012_v2 = vadd.f32 %v14269_v54, %v1866_v0 }
 0x1d5   : > { %vm2047_vm5 = vcmp.ge.f32.partialorder %v2013_v63, 0.0  ;;  %v2081_v4 = vmul.f32 0.2, %v2013_v63  ;;  %v14303_v6 = vpack.c.bf16 %v2113_v62, %v2112_v1 }
 0x1d6   : > { %vm2046_vm6 = vcmp.ge.f32.partialorder %v2012_v2, 0.0  ;;  %v2080_v7 = vmul.f32 0.2, %v2012_v2  ;;  %v11680_v8 = vpop.f32.mrb[18].mxu0 }
 0x1d7   : > { %v2115_v9 = vsel %vm2047_vm5, %v2013_v63, %v2081_v4  ;;  %v2015_v10 = vadd.f32 %v11680_v8, %v14269_v54  ;;  %v1876_v12 = vpop.f32.mrb[19].mxu0 }
 0x1d8   : > { %v2114_v44 = vsel %vm2046_vm6, %v2012_v2, %v2080_v7  ;;  %v2014_v45 = vadd.f32 %v14269_v54, %v1876_v12 }
 0x1d9   : > { %vm2049_vm7 = vcmp.ge.f32.partialorder %v2015_v10, 0.0  ;;  %v2083_v47 = vmul.f32 0.2, %v2015_v10  ;;  %v14307_v48 = vpack.c.bf16 %v2115_v9, %v2114_v44 }
 0x1da   : > { %vm2048_vm8 = vcmp.ge.f32.partialorder %v2014_v45, 0.0  ;;  %v2082_v50 = vmul.f32 0.2, %v2014_v45  ;;  %v11683_v3 = vpop.f32.mrb[20].mxu0 }
 0x1db   : > { %v2117_v11 = vsel %vm2049_vm7, %v2015_v10, %v2083_v47  ;;  %v2017_v13 = vadd.f32 %v11683_v3, %v14269_v54  ;;  %v1886_v14 = vpop.f32.mrb[21].mxu0  ;;  %13079 = vmatprep.subr.bf16.mxu1 %v14307_v48  ;;  %13184 = vmatprep.subr.bf16.mxu0 %v14307_v48 }
 0x1dc   : > { %v2116_v15 = vsel %vm2048_vm8, %v2014_v45, %v2082_v50  ;;  %v2016_v17 = vadd.f32 %v14269_v54, %v1886_v14  ;;  %13081 = vmatpush3.bf16.msra.mxu1 %v14275_v5  ;;  %13186 = vmatpush3.bf16.msra.mxu0 %v14275_v5  ;;  %vm13759_vm8 = vmmov 0  }
 0x1dd   : > { %vm2051_vm9 = vcmp.ge.f32.partialorder %v2017_v13, 0.0  ;;  %v2085_v18 = vmul.f32 0.2, %v2017_v13  ;;  %v14315_v19 = vpack.c.bf16 %v2117_v11, %v2116_v15 }
 0x1de   : > { %vm2050_vm10 = vcmp.ge.f32.partialorder %v2016_v17, 0.0  ;;  %v2084_v20 = vmul.f32 0.2, %v2016_v17  ;;  %v11686_v21 = vpop.f32.mrb[22].mxu0 }
 0x1df   : > { %v2119_v22 = vsel %vm2051_vm9, %v2017_v13, %v2085_v18  ;;  %v2019_v23 = vadd.f32 %v11686_v21, %v14269_v54  ;;  %v1896_v24 = vpop.f32.mrb[23].mxu0  ;;  %13083 = vmatprep.subr.bf16.mxu1 %v14315_v19  ;;  %13188 = vmatprep.subr.bf16.mxu0 %v14315_v19  ;;  %vm2165_vm9 = vcmask 130048  }
 0x1e0   : > { %v2118_v26 = vsel %vm2050_vm10, %v2016_v17, %v2084_v20  ;;  %v2018_v27 = vadd.f32 %v14269_v54, %v1896_v24  ;;  %13085 = vmatpush3.bf16.msra.mxu1 %v14279_v46  ;;  %13190 = vmatpush3.bf16.msra.mxu0 %v14279_v46  ;;  %vm5963_vm10 = vcmask 588800  }
 0x1e1   : > { %v14323_v28 = vpack.c.bf16 %v2119_v22, %v2118_v26  ;;  %vm2053_vm11 = vcmp.ge.f32.partialorder %v2019_v23, 0.0  ;;  %v2087_v29 = vmul.f32 0.2, %v2019_v23  ;;  %v13758_v26 = vmov 0.0|0.0  }
 0x1e2   : > { %vm2052_vm12 = vcmp.ge.f32.partialorder %v2018_v27, 0.0  ;;  %v2086_v30 = vmul.f32 0.2, %v2018_v27  ;;  %v11689_v31 = vpop.f32.mrb[24].mxu0 }
 0x1e3   : > { %v2121_v32 = vsel %vm2053_vm11, %v2019_v23, %v2087_v29  ;;  %v2021_v33 = vadd.f32 %v11689_v31, %v14269_v54  ;;  %v1906_v35 = vpop.f32.mrb[25].mxu0  ;;  %13087 = vmatprep.subr.bf16.mxu1 %v14323_v28  ;;  %13192 = vmatprep.subr.bf16.mxu0 %v14323_v28  ;;  %v2135_v29 = vld [vmem:[%s16914_s3 + $0x18] sm:$0xff]  ;;  %v2138_v31 = vld [vmem:[%s16914_s3 + $0x30] sm:$0xff] }
 0x1e4   : > { %v2120_v36 = vsel %vm2052_vm12, %v2018_v27, %v2086_v30  ;;  %v2020_v37 = vadd.f32 %v14269_v54, %v1906_v35  ;;  %13089 = vmatpush3.bf16.msra.mxu1 %v14283_v16  ;;  %13194 = vmatpush3.bf16.msra.mxu0 %v14283_v16  ;;  %v2136_v27 = vld [vmem:[%s16914_s3 + $0x20] sm:$0xff]  ;;  %v2139_v30 = vld [vmem:[%s16914_s3 + $0x38] sm:$0xff]  ;;  %v2145_v35 = vld [vmem:[%s16914_s3 + $0x68] sm:$0xff] }
 0x1e5   : > { %v14331_v38 = vpack.c.bf16 %v2121_v32, %v2120_v36  ;;  %vm2055_vm13 = vcmp.ge.f32.partialorder %v2021_v33, 0.0  ;;  %v2089_v39 = vmul.f32 0.2, %v2021_v33  ;;  %v2142_v32 = vld [vmem:[%s16914_s3 + $0x50] sm:$0xff]  ;;  %v2144_v36 = vld [vmem:[%s16914_s3 + $0x60] sm:$0xff] }
 0x1e6   : > { %vm2054_vm14 = vcmp.ge.f32.partialorder %v2020_v37, 0.0  ;;  %v2088_v40 = vmul.f32 0.2, %v2020_v37  ;;  %v11692_v41 = vpop.f32.mrb[26].mxu0 }
 0x1e7   : > { %v2123_v42 = vsel %vm2055_vm13, %v2021_v33, %v2089_v39  ;;  %v2023_v49 = vadd.f32 %v11692_v41, %v14269_v54  ;;  %v1916_v51 = vpop.f32.mrb[27].mxu0  ;;  %13091 = vmatprep.subr.bf16.mxu1 %v14331_v38  ;;  %13196 = vmatprep.subr.bf16.mxu0 %v14331_v38  ;;  %v2141_v33 = vld [vmem:[%s16914_s3 + $0x48] sm:$0xff]  ;;  %v2147_v39 = vld [vmem:[%s16914_s3 + $0x78] sm:$0xff]  ;;  %v2150_v41 = vld [vmem:[%s16914_s3 + $0x90] sm:$0xff] }
 0x1e8   : > { %v2122_v52 = vsel %vm2054_vm14, %v2020_v37, %v2088_v40  ;;  %v2022_v53 = vadd.f32 %v14269_v54, %v1916_v51  ;;  %13093 = vmatpush3.bf16.msra.mxu1 %v14287_v25  ;;  %13198 = vmatpush3.bf16.msra.mxu0 %v14287_v25  ;;  %v2148_v37 = vld [vmem:[%s16914_s3 + $0x80] sm:$0xff]  ;;  %v2151_v40 = vld [vmem:[%s16914_s3 + $0x98] sm:$0xff]  ;;  %v2157_v51 = vld [vmem:[%s16914_s3 + $0xc8] sm:$0xff] }
 0x1e9   : > { %v14339_v55 = vpack.c.bf16 %v2123_v42, %v2122_v52  ;;  %vm2057_vm15 = vcmp.ge.f32.partialorder %v2023_v49, 0.0  ;;  %v2091_v56 = vmul.f32 0.2, %v2023_v49  ;;  %v2154_v42 = vld [vmem:[%s16914_s3 + $0xb0] sm:$0xff]  ;;  %v2156_v52 = vld [vmem:[%s16914_s3 + $0xc0] sm:$0xff] }
 0x1ea   : > { %vm2056_vm1 = vcmp.ge.f32.partialorder %v2022_v53, 0.0  ;;  %v2090_v57 = vmul.f32 0.2, %v2022_v53  ;;  %v11695_v58 = vpop.f32.mrb[28].mxu0 }
 0x1eb   : > { %v2125_v60 = vsel %vm2057_vm15, %v2023_v49, %v2091_v56  ;;  %v2025_v61 = vadd.f32 %v11695_v58, %v14269_v54  ;;  %v1926_v62 = vpop.f32.mrb[29].mxu0  ;;  %13095 = vmatprep.subr.bf16.mxu1 %v14339_v55  ;;  %13200 = vmatprep.subr.bf16.mxu0 %v14339_v55  ;;  %v2153_v49 = vld [vmem:[%s16914_s3 + $0xa8] sm:$0xff]  ;;  %v2159_v56 = vld [vmem:[%s16914_s3 + $0xd8] sm:$0xff]  ;;  %v2162_v58 = vld [vmem:[%s16914_s3 + $0xf0] sm:$0xff] }
 0x1ec   : > { %v2124_v63 = vsel %vm2056_vm1, %v2022_v53, %v2090_v57  ;;  %v2024_v0 = vadd.f32 %v14269_v54, %v1926_v62  ;;  %13097 = vmatpush3.bf16.msra.mxu1 %v14291_v34  ;;  %13202 = vmatpush3.bf16.msra.mxu0 %v14291_v34  ;;  %v2160_v53 = vld [vmem:[%s16914_s3 + $0xe0] sm:$0xff]  ;;  %v2163_v57 = vld [vmem:[%s16914_s3 + $0xf8] sm:$0xff]  ;;  %v2137_v62 = vld [vmem:[%s16914_s3 + $0x28] sm:$0xff] }
 0x1ed   : > { %v14347_v1 = vpack.c.bf16 %v2125_v60, %v2124_v63  ;;  %vm2059_vm2 = vcmp.ge.f32.partialorder %v2025_v61, 0.0  ;;  %v2093_v2 = vmul.f32 0.2, %v2025_v61  ;;  %v13760_v60 = vmov 0.0   ;;  %v2140_v63 = vld [vmem:[%s16914_s3 + $0x40] sm:$0xff] }
 0x1ee   : > { %vm2058_vm3 = vcmp.ge.f32.partialorder %v2024_v0, 0.0  ;;  %v2092_v4 = vmul.f32 0.2, %v2024_v0  ;;  %v11698_v7 = vpop.f32.mrb[30].mxu0 }
 0x1ef   : > { %v2127_v8 = vsel %vm2059_vm2, %v2025_v61, %v2093_v2  ;;  %v2027_v9 = vadd.f32 %v11698_v7, %v14269_v54  ;;  %v1936_v10 = vpop.f32.mrb[31].mxu0  ;;  %13099 = vmatprep.subr.bf16.mxu1 %v14347_v1  ;;  %13204 = vmatprep.subr.bf16.mxu0 %v14347_v1  ;;  %v2134_v61 = vld [vmem:[%s16914_s3 + $0x10] sm:$0xff]  ;;  %v2152_v7 = vld [vmem:[%s16914_s3 + $0xa0] sm:$0xff] }
 0x1f0   : > { %v2126_v12 = vsel %vm2058_vm3, %v2024_v0, %v2092_v4  ;;  %v2026_v44 = vadd.f32 %v14269_v54, %v1936_v10  ;;  %13101 = vmatpush3.bf16.msra.mxu1 %v14295_v43  ;;  %13206 = vmatpush3.bf16.msra.mxu0 %v14295_v43  ;;  %v2143_v0 = vld [vmem:[%s16914_s3 + $0x58] sm:$0xff]  ;;  %v2146_v2 = vld [vmem:[%s16914_s3 + $0x70] sm:$0xff]  ;;  %v2149_v4 = vld [vmem:[%s16914_s3 + $0x88] sm:$0xff] }
 0x1f1   : > { %v14355_v45 = vpack.c.bf16 %v2127_v8, %v2126_v12  ;;  %vm2061_vm4 = vcmp.ge.f32.partialorder %v2027_v9, 0.0  ;;  %v2095_v47 = vmul.f32 0.2, %v2027_v9  ;;  %v2155_v8 = vld [vmem:[%s16914_s3 + $0xb8] sm:$0xff]  ;;  %v2161_v10 = vld [vmem:[%s16914_s3 + $0xe8] sm:$0xff]  ;;  %v2164_v12 = vld [vmem:[%s16914_s3 + $0x100] sm:$0xff] }
 0x1f2   : > { %vm2060_vm5 = vcmp.ge.f32.partialorder %v2026_v44, 0.0  ;;  %v2094_v50 = vmul.f32 0.2, %v2026_v44  ;;  %v11701_v3 = vpop.f32.mrb[32].mxu0 }
 0x1f3   : > { %v2129_v11 = vsel %vm2061_vm4, %v2027_v9, %v2095_v47  ;;  %v2029_v13 = vadd.f32 %v11701_v3, %v14269_v54  ;;  %v1946_v14 = vpop.f32.mrb[33].mxu0  ;;  %13103 = vmatprep.subr.bf16.mxu1 %v14355_v45  ;;  %13208 = vmatprep.subr.bf16.mxu0 %v14355_v45  ;;  %v2158_v9 = vld [vmem:[%s16914_s3 + $0xd0] sm:$0xff]  ;;  %v9921_v47 = vld [vmem:[%s16914_s3 + $0x108] sm:$0xff]  ;;  %v9924_v3 = vld [vmem:[%s16914_s3 + $0x120] sm:$0xff] }
 0x1f4   : > { %v2128_v15 = vsel %vm2060_vm5, %v2026_v44, %v2094_v50  ;;  %v2028_v17 = vadd.f32 %v14269_v54, %v1946_v14  ;;  %13105 = vmatpush3.bf16.msra.mxu1 %v14299_v59  ;;  %13210 = vmatpush3.bf16.msra.mxu0 %v14299_v59  ;;  %v2132_v54 = vld [vmem:[%s16914_s3] sm:$0xff]  ;;  %v9922_v44 = vld [vmem:[%s16914_s3 + $0x110] sm:$0xff]  ;;  %v9925_v50 = vld [vmem:[%s16914_s3 + $0x128] sm:$0xff]  ;;  %vm6061_vm5 = vcmask 261120  }
 0x1f5   : > { %v14363_v18 = vpack.c.bf16 %v2129_v11, %v2128_v15  ;;  %vm2063_vm6 = vcmp.ge.f32.partialorder %v2029_v13, 0.0  ;;  %v2097_v20 = vmul.f32 0.2, %v2029_v13  ;;  %v9928_v11 = vld [vmem:[%s16914_s3 + $0x140] sm:$0xff]  ;;  %v9931_v14 = vld [vmem:[%s16914_s3 + $0x158] sm:$0xff]  ;;  %v9934_v15 = vld [vmem:[%s16914_s3 + $0x170] sm:$0xff] }
 0x1f6   : > { %vm2062_vm7 = vcmp.ge.f32.partialorder %v2028_v17, 0.0  ;;  %v2096_v21 = vmul.f32 0.2, %v2028_v17 }
 0x1f7   : > { %v2131_v22 = vsel %vm2063_vm6, %v2029_v13, %v2097_v20  ;;  %13107 = vmatprep.subr.bf16.mxu1 %v14363_v18  ;;  %13212 = vmatprep.subr.bf16.mxu0 %v14363_v18  ;;  %v9927_v13 = vld [vmem:[%s16914_s3 + $0x138] sm:$0xff]  ;;  %v9937_v20 = vld [vmem:[%s16914_s3 + $0x188] sm:$0xff]  ;;  %vm8001_vm6 = vcmask 162816  }
 0x1f8   : > { %v2130_v23 = vsel %vm2062_vm7, %v2028_v17, %v2096_v21  ;;  %13109 = vmatpush3.bf16.msra.mxu1 %v14303_v6  ;;  %13214 = vmatpush3.bf16.msra.mxu0 %v14303_v6  ;;  %v9933_v17 = vld [vmem:[%s16914_s3 + $0x168] sm:$0xff]  ;;  %v9936_v21 = vld [vmem:[%s16914_s3 + $0x180] sm:$0xff] }
 0x1f9   : > { %v14372_v24 = vpack.c.bf16 %v2131_v22, %v2130_v23  ;;  %13110 = vmatprep.subr.bf16.mxu1 %v13758_v26  ;;  %13218 = vmatprep.subr.bf16.mxu0 %v13758_v26  ;;  %v9940_v22 = vld [vmem:[%s16914_s3 + $0x1a0] sm:$0xff]  ;;  %v9939_v23 = vld [vmem:[%s16914_s3 + $0x198] sm:$0xff] }
 0x1fb   : > { %2264 = vmatmul.mubr.f32.vlgmr.msra.gmra.mrb[0].mxu1 %v2132_v54  ;;  %v9943_v54 = vld [vmem:[%s16914_s3 + $0x1b8] sm:$0xff] }
 0x1fc   : > { %13112 = vmatpush3.bf16.msra.mxu1 %v14372_v24  ;;  %2268 = vmatprep.mubr.f32.mxu1 %v2136_v27  ;;  %v9942_v27 = vld [vmem:[%s16914_s3 + $0x1b0] sm:$0xff] }
 0x1fd   : > { %13114 = vmatprep.subr.bf16.mxu1 %v14307_v48 }
 0x1ff   : > { %2269 = vmatmul.mubr.f32.gmra.mrb[2].mxu1 %v2135_v29  ;;  %v9946_v29 = vld [vmem:[%s16914_s3 + $0x1d0] sm:$0xff] }
 0x200   : > { %2273 = vmatprep.mubr.f32.mxu1 %v2139_v30  ;;  %v9945_v30 = vld [vmem:[%s16914_s3 + $0x1c8] sm:$0xff] }
 0x203   : > { %2274 = vmatmul.mubr.f32.gmra.mrb[4].mxu1 %v2138_v31  ;;  %v9949_v31 = vld [vmem:[%s16914_s3 + $0x1e8] sm:$0xff] }
 0x204   : > { %2278 = vmatprep.mubr.f32.mxu1 %v2142_v32  ;;  %v9948_v32 = vld [vmem:[%s16914_s3 + $0x1e0] sm:$0xff] }
 0x207   : > { %2279 = vmatmul.mubr.f32.gmra.mrb[6].mxu1 %v2141_v33  ;;  %v9952_v33 = vld [vmem:[%s16914_s3 + $0x200] sm:$0xff] }
 0x208   : > { %2283 = vmatprep.mubr.f32.mxu1 %v2145_v35  ;;  %v9951_v35 = vld [vmem:[%s16914_s3 + $0x1f8] sm:$0xff] }
 0x20b   : > { %2284 = vmatmul.mubr.f32.gmra.mrb[8].mxu1 %v2144_v36  ;;  %v9923_v36 = vld [vmem:[%s16914_s3 + $0x118] sm:$0xff] }
 0x20c   : > { %2288 = vmatprep.mubr.f32.mxu1 %v2148_v37  ;;  %v10010_v37 = vld [vmem:[%s16914_s3 + $0x320] sm:$0xff] }
 0x20d   : > { %3219 = vmatprep.mubr.f32.mxu0 %v10010_v37  ;;  %v9970_v37 = vld [vmem:[%s16914_s3 + $0x238] sm:$0xff] }
 0x20f   : > { %2289 = vmatmul.mubr.f32.gmra.mrb[10].mxu1 %v2147_v39  ;;  %v10009_v39 = vld [vmem:[%s16914_s3 + $0x318] sm:$0xff] }
 0x210   : > { %2293 = vmatprep.mubr.f32.mxu1 %v2151_v40  ;;  %v9926_v40 = vld [vmem:[%s16914_s3 + $0x130] sm:$0xff]  ;;  %3220 = vmatmul.mubr.f32.vlgmr.msra.gmra.mrb[34].mxu0 %v10009_v39 }
 0x213   : > { %2294 = vmatmul.mubr.f32.gmra.mrb[12].mxu1 %v2150_v41  ;;  %v10013_v41 = vld [vmem:[%s16914_s3 + $0x338] sm:$0xff] }
 0x214   : > { %2298 = vmatprep.mubr.f32.mxu1 %v2154_v42  ;;  %3224 = vmatprep.mubr.f32.mxu0 %v10013_v41  ;;  %v10016_v42 = vld [vmem:[%s16914_s3 + $0x350] sm:$0xff] }
 0x215   : > { %v10053_v41 = vld [vmem:[%s16915_s4 + $0x10] sm:$0xff] }
 0x217   : > { %2299 = vmatmul.mubr.f32.gmra.mrb[14].mxu1 %v2153_v49  ;;  %v10019_v49 = vld [vmem:[%s16914_s3 + $0x368] sm:$0xff] }
 0x218   : > { %2303 = vmatprep.mubr.f32.mxu1 %v2157_v51  ;;  %v10022_v51 = vld [vmem:[%s16914_s3 + $0x380] sm:$0xff] }
 0x21b   : > { %2304 = vmatmul.mubr.f32.gmra.mrb[16].mxu1 %v2156_v52  ;;  %v10025_v52 = vld [vmem:[%s16914_s3 + $0x398] sm:$0xff] }
 0x21c   : > { %2308 = vmatprep.mubr.f32.mxu1 %v2160_v53  ;;  %v10028_v53 = vld [vmem:[%s16914_s3 + $0x3b0] sm:$0xff] }
 0x21f   : > { %2309 = vmatmul.mubr.f32.gmra.mrb[18].mxu1 %v2159_v56  ;;  %v10031_v56 = vld [vmem:[%s16914_s3 + $0x3c8] sm:$0xff] }
 0x220   : > { %2313 = vmatprep.mubr.f32.mxu1 %v2163_v57  ;;  %v10034_v57 = vld [vmem:[%s16914_s3 + $0x3e0] sm:$0xff] }
 0x223   : > { %2314 = vmatmul.mubr.f32.gmra.mrb[20].mxu1 %v2162_v58  ;;  %v9950_v58 = vld [vmem:[%s16914_s3 + $0x1f0] sm:$0xff] }
 0x224   : > { %11706 = vmatprep.mubr.msk.f32.mxu1 %vm13759_vm8, %v13760_v60 }
 0x227   : > { %11707 = vmatmul.mubr.msk.f32.vlgmr.msra.gmra.mrb[22].mxu1 %vm2165_vm9, %v2134_v61  ;;  %v10037_v61 = vld [vmem:[%s16914_s3 + $0x3f8] sm:$0xff] }
 0x228   : > { %13116 = vmatpush3.bf16.msra.mxu1 %v14275_v5  ;;  %11709 = vmatprep.mubr.msk.f32.mxu1 %vm13759_vm8, %v13760_v60 }
 0x229   : > { %13118 = vmatprep.subr.bf16.mxu1 %v14315_v19 }
 0x22b   : > { %11710 = vmatmul.mubr.msk.f32.gmra.mrb[24].mxu1 %vm2165_vm9, %v2137_v62  ;;  %v9953_v62 = vld [vmem:[%s16914_s3 + $0x208] sm:$0xff] }
 0x22c   : > { %13120 = vmatpush3.bf16.msra.mxu1 %v14279_v46  ;;  %11712 = vmatprep.mubr.msk.f32.mxu1 %vm13759_vm8, %v13760_v60 }
 0x22d   : > { %13122 = vmatprep.subr.bf16.mxu1 %v14323_v28 }
 0x22f   : > { %11713 = vmatmul.mubr.msk.f32.gmra.mrb[26].mxu1 %vm2165_vm9, %v2140_v63  ;;  %v10036_v63 = vld [vmem:[%s16914_s3 + $0x3f0] sm:$0xff] }
 0x230   : > { %13124 = vmatpush3.bf16.msra.mxu1 %v14283_v16  ;;  %11715 = vmatprep.mubr.msk.f32.mxu1 %vm13759_vm8, %v13760_v60 }
 0x231   : > { %13126 = vmatprep.subr.bf16.mxu1 %v14331_v38 }
 0x233   : > { %11716 = vmatmul.mubr.msk.f32.gmra.mrb[28].mxu1 %vm2165_vm9, %v2143_v0  ;;  %v9966_v0 = vld [vmem:[%s16914_s3 + $0x218] sm:$0xff] }
 0x234   : > { %13128 = vmatpush3.bf16.msra.mxu1 %v14287_v25  ;;  %11718 = vmatprep.mubr.msk.f32.mxu1 %vm13759_vm8, %v13760_v60 }
 0x235   : > { %13130 = vmatprep.subr.bf16.mxu1 %v14339_v55 }
 0x237   : > { %11719 = vmatmul.mubr.msk.f32.gmra.mrb[30].mxu1 %vm2165_vm9, %v2146_v2  ;;  %v9965_v2 = vld [vmem:[%s16914_s3 + $0x210] sm:$0xff] }
 0x238   : > { %13132 = vmatpush3.bf16.msra.mxu1 %v14291_v34  ;;  %11721 = vmatprep.mubr.msk.f32.mxu1 %vm13759_vm8, %v13760_v60 }
 0x239   : > { %13134 = vmatprep.subr.bf16.mxu1 %v14347_v1 }
 0x23b   : > { %11722 = vmatmul.mubr.msk.f32.gmra.mrb[32].mxu1 %vm2165_vm9, %v2149_v4  ;;  %v9969_v4 = vld [vmem:[%s16914_s3 + $0x230] sm:$0xff] }
 0x23c   : > { %13136 = vmatpush3.bf16.msra.mxu1 %v14295_v43  ;;  %11724 = vmatprep.mubr.msk.f32.mxu1 %vm13759_vm8, %v13760_v60 }
 0x23d   : > { %13138 = vmatprep.subr.bf16.mxu1 %v14355_v45 }
 0x23f   : > { %11725 = vmatmul.mubr.msk.f32.gmra.mrb[34].mxu1 %vm2165_vm9, %v2152_v7  ;;  %v9968_v7 = vld [vmem:[%s16914_s3 + $0x228] sm:$0xff] }
 0x240   : > { %13140 = vmatpush3.bf16.msra.mxu1 %v14299_v59  ;;  %11727 = vmatprep.mubr.msk.f32.mxu1 %vm13759_vm8, %v13760_v60 }
 0x241   : > { %13142 = vmatprep.subr.bf16.mxu1 %v14363_v18 }
 0x243   : > { %11728 = vmatmul.mubr.msk.f32.gmra.mrb[36].mxu1 %vm2165_vm9, %v2155_v8  ;;  %v9972_v8 = vld [vmem:[%s16914_s3 + $0x248] sm:$0xff] }
 0x244   : > { %13144 = vmatpush3.bf16.msra.mxu1 %v14303_v6  ;;  %11730 = vmatprep.mubr.msk.f32.mxu1 %vm13759_vm8, %v13760_v60 }
 0x245   : > { %13145 = vmatprep.subr.bf16.mxu1 %v13758_v26 }
 0x247   : > { %11731 = vmatmul.mubr.msk.f32.gmra.mrb[38].mxu1 %vm2165_vm9, %v2158_v9  ;;  %v9971_v9 = vld [vmem:[%s16914_s3 + $0x240] sm:$0xff] }
 0x248   : > { %11733 = vmatprep.mubr.msk.f32.mxu1 %vm13759_vm8, %v13760_v60 }
 0x24b   : > { %11734 = vmatmul.mubr.msk.f32.gmra.mrb[40].mxu1 %vm2165_vm9, %v2161_v10  ;;  %v9975_v10 = vld [vmem:[%s16914_s3 + $0x260] sm:$0xff] }
 0x24c   : > { %11736 = vmatprep.mubr.msk.f32.mxu1 %vm13759_vm8, %v13760_v60 }
 0x24f   : > { %11737 = vmatmul.mubr.msk.f32.gmra.mrb[42].mxu1 %vm2165_vm9, %v2164_v12  ;;  %v9974_v12 = vld [vmem:[%s16914_s3 + $0x258] sm:$0xff] }
 0x250   : > { %2581 = vmatprep.mubr.f32.mxu1 %v9922_v44  ;;  %v9978_v44 = vld [vmem:[%s16914_s3 + $0x278] sm:$0xff] }
 0x253   : > { %2582 = vmatmul.mubr.f32.vlgmr.msra.gmra.mrb[44].mxu1 %v9921_v47  ;;  %v9977_v47 = vld [vmem:[%s16914_s3 + $0x270] sm:$0xff] }
 0x254   : > { %13147 = vmatpush3.bf16.msra.mxu1 %v14372_v24  ;;  %2586 = vmatprep.mubr.f32.mxu1 %v9925_v50  ;;  %v9981_v50 = vld [vmem:[%s16914_s3 + $0x290] sm:$0xff] }
 0x255   : > { %13149 = vmatprep.subr.bf16.mxu1 %v14307_v48  ;;  %v9930_v48 = vld [vmem:[%s16914_s3 + $0x150] sm:$0xff] }
 0x257   : > { %2587 = vmatmul.mubr.f32.gmra.mrb[46].mxu1 %v9924_v3  ;;  %v9980_v3 = vld [vmem:[%s16914_s3 + $0x288] sm:$0xff] }
 0x258   : > { %2591 = vmatprep.mubr.f32.mxu1 %v9928_v11  ;;  %v9984_v11 = vld [vmem:[%s16914_s3 + $0x2a8] sm:$0xff] }
 0x25b   : > { %2592 = vmatmul.mubr.f32.gmra.mrb[48].mxu1 %v9927_v13  ;;  %v9983_v13 = vld [vmem:[%s16914_s3 + $0x2a0] sm:$0xff] }
 0x25c   : > { %2596 = vmatprep.mubr.f32.mxu1 %v9931_v14  ;;  %v9987_v14 = vld [vmem:[%s16914_s3 + $0x2c0] sm:$0xff] }
 0x25f   : > { %2597 = vmatmul.mubr.f32.gmra.mrb[50].mxu1 %v9930_v48  ;;  %v9986_v48 = vld [vmem:[%s16914_s3 + $0x2b8] sm:$0xff] }
 0x260   : > { %2601 = vmatprep.mubr.f32.mxu1 %v9934_v15  ;;  %v9990_v15 = vld [vmem:[%s16914_s3 + $0x2d8] sm:$0xff] }
 0x263   : > { %2602 = vmatmul.mubr.f32.gmra.mrb[52].mxu1 %v9933_v17  ;;  %v9989_v17 = vld [vmem:[%s16914_s3 + $0x2d0] sm:$0xff] }
 0x264   : > { %2606 = vmatprep.mubr.f32.mxu1 %v9937_v20  ;;  %v9993_v20 = vld [vmem:[%s16914_s3 + $0x2f0] sm:$0xff] }
 0x267   : > { %2607 = vmatmul.mubr.f32.gmra.mrb[54].mxu1 %v9936_v21  ;;  %v9992_v21 = vld [vmem:[%s16914_s3 + $0x2e8] sm:$0xff] }
 0x268   : > { %2611 = vmatprep.mubr.f32.mxu1 %v9940_v22  ;;  %v9996_v22 = vld [vmem:[%s16914_s3 + $0x308] sm:$0xff] }
 0x26b   : > { %2612 = vmatmul.mubr.f32.gmra.mrb[56].mxu1 %v9939_v23 }
 0x26c   : > { %2616 = vmatprep.mubr.f32.mxu1 %v9943_v54 }
 0x26f   : > { %2617 = vmatmul.mubr.f32.gmra.mrb[58].mxu1 %v9942_v27 }
 0x270   : > { %2621 = vmatprep.mubr.f32.mxu1 %v9946_v29  ;;  %v9995_v29 = vld [vmem:[%s16914_s3 + $0x300] sm:$0xff] }
 0x273   : > { %2622 = vmatmul.mubr.f32.gmra.mrb[60].mxu1 %v9945_v30 }
 0x274   : > { %2626 = vmatprep.mubr.f32.mxu1 %v9949_v31 }
 0x277   : > { %2627 = vmatmul.mubr.f32.gmra.mrb[62].mxu1 %v9948_v32 }
 0x278   : > { %2631 = vmatprep.mubr.f32.mxu1 %v9952_v33  ;;  %v9967_v33 = vld [vmem:[%s16914_s3 + $0x220] sm:$0xff] }
 0x27b   : > { %2632 = vmatmul.mubr.f32.gmra.mrb[64].mxu1 %v9951_v35 }
 0x27c   : > { %11743 = vmatprep.mubr.msk.f32.mxu1 %vm13759_vm8, %v13760_v60 }
 0x27f   : > { %11744 = vmatmul.mubr.msk.f32.vlgmr.msra.gmra.mrb[66].mxu1 %vm2165_vm9, %v9923_v36 }
 0x280   : > { %13151 = vmatpush3.bf16.msra.mxu1 %v14275_v5  ;;  %11746 = vmatprep.mubr.msk.f32.mxu1 %vm13759_vm8, %v13760_v60  ;;  %v10012_v5 = vld [vmem:[%s16914_s3 + $0x330] sm:$0xff] }
 0x281   : > { %13153 = vmatprep.subr.bf16.mxu1 %v14315_v19  ;;  %v9929_v19 = vld [vmem:[%s16914_s3 + $0x148] sm:$0xff]  ;;  %3225 = vmatmul.mubr.f32.gmra.mrb[36].mxu0 %v10012_v5  ;;  %v10054_v5 = vld [vmem:[%s16915_s4 + $0x18] sm:$0xff] }
 0x282   : > { %3229 = vmatprep.mubr.f32.mxu0 %v10016_v42 }
 0x283   : > { %11747 = vmatmul.mubr.msk.f32.gmra.mrb[68].mxu1 %vm2165_vm9, %v9926_v40  ;;  %v10040_v40 = vld [vmem:[%s16914_s3 + $0x410] sm:$0xff] }
 0x284   : > { %13155 = vmatpush3.bf16.msra.mxu1 %v14279_v46  ;;  %11749 = vmatprep.mubr.msk.f32.mxu1 %vm13759_vm8, %v13760_v60  ;;  %v10015_v46 = vld [vmem:[%s16914_s3 + $0x348] sm:$0xff] }
 0x285   : > { %13157 = vmatprep.subr.bf16.mxu1 %v14323_v28  ;;  %v9932_v28 = vld [vmem:[%s16914_s3 + $0x160] sm:$0xff]  ;;  %3230 = vmatmul.mubr.f32.gmra.mrb[38].mxu0 %v10015_v46 }
 0x286   : > { %3234 = vmatprep.mubr.f32.mxu0 %v10019_v49  ;;  %v9973_v49 = vld [vmem:[%s16914_s3 + $0x250] sm:$0xff] }
 0x287   : > { %11750 = vmatmul.mubr.msk.f32.gmra.mrb[70].mxu1 %vm2165_vm9, %v9929_v19  ;;  %v13219_v19 = vpack.c.bf16 %v10054_v5, %v10053_v41  ;;  %v10023_v41 = vld [vmem:[%s16914_s3 + $0x388] sm:$0xff] }
 0x288   : > { %13159 = vmatpush3.bf16.msra.mxu1 %v14283_v16  ;;  %11752 = vmatprep.mubr.msk.f32.mxu1 %vm13759_vm8, %v13760_v60  ;;  %v10018_v16 = vld [vmem:[%s16914_s3 + $0x360] sm:$0xff] }
 0x289   : > { %13161 = vmatprep.subr.bf16.mxu1 %v14331_v38  ;;  %v9935_v38 = vld [vmem:[%s16914_s3 + $0x178] sm:$0xff]  ;;  %3235 = vmatmul.mubr.f32.gmra.mrb[40].mxu0 %v10018_v16 }
 0x28a   : > { %3239 = vmatprep.mubr.f32.mxu0 %v10022_v51  ;;  %13220 = vmatpush3.bf16.msra.mxu0 %v13219_v19 }
 0x28b   : > { %11753 = vmatmul.mubr.msk.f32.gmra.mrb[72].mxu1 %vm2165_vm9, %v9932_v28  ;;  %13224 = vmatprep.subr.bf16.mxu0 %v13758_v26 }
 0x28c   : > { %13163 = vmatpush3.bf16.msra.mxu1 %v14287_v25  ;;  %11755 = vmatprep.mubr.msk.f32.mxu1 %vm13759_vm8, %v13760_v60  ;;  %v10021_v25 = vld [vmem:[%s16914_s3 + $0x378] sm:$0xff] }
 0x28d   : > { %13165 = vmatprep.subr.bf16.mxu1 %v14339_v55  ;;  %v9938_v55 = vld [vmem:[%s16914_s3 + $0x190] sm:$0xff]  ;;  %3240 = vmatmul.mubr.f32.gmra.mrb[42].mxu0 %v10021_v25  ;;  %v9976_v25 = vld [vmem:[%s16914_s3 + $0x268] sm:$0xff] }
 0x28e   : > { %3244 = vmatprep.mubr.f32.mxu0 %v10025_v52 }
 0x28f   : > { %11756 = vmatmul.mubr.msk.f32.gmra.mrb[74].mxu1 %vm2165_vm9, %v9935_v38 }
 0x290   : > { %13167 = vmatpush3.bf16.msra.mxu1 %v14291_v34  ;;  %11758 = vmatprep.mubr.msk.f32.mxu1 %vm13759_vm8, %v13760_v60  ;;  %v10024_v34 = vld [vmem:[%s16914_s3 + $0x390] sm:$0xff] }
 0x291   : > { %13169 = vmatprep.subr.bf16.mxu1 %v14347_v1  ;;  %v9941_v1 = vld [vmem:[%s16914_s3 + $0x1a8] sm:$0xff]  ;;  %3245 = vmatmul.mubr.f32.gmra.mrb[44].mxu0 %v10024_v34 }
 0x292   : > { %3249 = vmatprep.mubr.f32.mxu0 %v10028_v53 }
 0x293   : > { %11759 = vmatmul.mubr.msk.f32.gmra.mrb[76].mxu1 %vm2165_vm9, %v9938_v55 }
 0x294   : > { %13171 = vmatpush3.bf16.msra.mxu1 %v14295_v43  ;;  %11761 = vmatprep.mubr.msk.f32.mxu1 %vm13759_vm8, %v13760_v60  ;;  %v10027_v43 = vld [vmem:[%s16914_s3 + $0x3a8] sm:$0xff] }
 0x295   : > { %13173 = vmatprep.subr.bf16.mxu1 %v14355_v45  ;;  %v9944_v45 = vld [vmem:[%s16914_s3 + $0x1c0] sm:$0xff]  ;;  %3250 = vmatmul.mubr.f32.gmra.mrb[46].mxu0 %v10027_v43 }
 0x296   : > { %3254 = vmatprep.mubr.f32.mxu0 %v10031_v56  ;;  %v9982_v56 = vld [vmem:[%s16914_s3 + $0x298] sm:$0xff] }
 0x297   : > { %11762 = vmatmul.mubr.msk.f32.gmra.mrb[78].mxu1 %vm2165_vm9, %v9941_v1  ;;  %v9979_v1 = vld [vmem:[%s16914_s3 + $0x280] sm:$0xff] }
 0x298   : > { %13175 = vmatpush3.bf16.msra.mxu1 %v14299_v59  ;;  %11764 = vmatprep.mubr.msk.f32.mxu1 %vm13759_vm8, %v13760_v60  ;;  %v10030_v59 = vld [vmem:[%s16914_s3 + $0x3c0] sm:$0xff] }
 0x299   : > { %13177 = vmatprep.subr.bf16.mxu1 %v14363_v18  ;;  %v9947_v18 = vld [vmem:[%s16914_s3 + $0x1d8] sm:$0xff]  ;;  %3255 = vmatmul.mubr.f32.gmra.mrb[48].mxu0 %v10030_v59 }
 0x29a   : > { %3259 = vmatprep.mubr.f32.mxu0 %v10034_v57 }
 0x29b   : > { %11765 = vmatmul.mubr.msk.f32.gmra.mrb[80].mxu1 %vm2165_vm9, %v9944_v45 }
 0x29c   : > { %13179 = vmatpush3.bf16.msra.mxu1 %v14303_v6  ;;  %11767 = vmatprep.mubr.msk.f32.mxu1 %vm13759_vm8, %v13760_v60  ;;  %v10033_v6 = vld [vmem:[%s16914_s3 + $0x3d8] sm:$0xff] }
 0x29d   : > { %13180 = vmatprep.subr.bf16.mxu1 %v13758_v26  ;;  %3260 = vmatmul.mubr.f32.gmra.mrb[50].mxu0 %v10033_v6  ;;  %v9985_v6 = vld [vmem:[%s16914_s3 + $0x2b0] sm:$0xff] }
 0x29e   : > { %3264 = vmatprep.mubr.f32.mxu0 %v10037_v61 }
 0x29f   : > { %11768 = vmatmul.mubr.msk.f32.gmra.mrb[82].mxu1 %vm2165_vm9, %v9947_v18 }
 0x2a0   : > { %11770 = vmatprep.mubr.msk.f32.mxu1 %vm13759_vm8, %v13760_v60 }
 0x2a1   : > { %3265 = vmatmul.mubr.f32.gmra.mrb[52].mxu0 %v10036_v63  ;;  %v9988_v63 = vld [vmem:[%s16914_s3 + $0x2c8] sm:$0xff] }
 0x2a2   : > { %3269 = vmatprep.mubr.f32.mxu0 %v10040_v40 }
 0x2a3   : > { %11771 = vmatmul.mubr.msk.f32.gmra.mrb[84].mxu1 %vm2165_vm9, %v9950_v58 }
 0x2a4   : > { %11773 = vmatprep.mubr.msk.f32.mxu1 %vm13759_vm8, %v13760_v60 }
 0x2a7   : > { %11774 = vmatmul.mubr.msk.f32.gmra.mrb[86].mxu1 %vm2165_vm9, %v9953_v62 }
 0x2a8   : > { %2900 = vmatprep.mubr.f32.mxu1 %v9966_v0 }
 0x2ab   : > { %2901 = vmatmul.mubr.f32.vlgmr.msra.gmra.mrb[88].mxu1 %v9965_v2 }
 0x2ac   : > { %13182 = vmatpush3.bf16.msra.mxu1 %v14372_v24  ;;  %2905 = vmatprep.mubr.f32.mxu1 %v9969_v4 }
 0x2ad   : > { %13215 = vmatprep.subr.bf16.mxu1 %v13758_v26 }
 0x2af   : > { %2906 = vmatmul.mubr.f32.gmra.mrb[90].mxu1 %v9968_v7  ;;  %v9991_v7 = vld [vmem:[%s16914_s3 + $0x2e0] sm:$0xff] }
 0x2b0   : > { %2910 = vmatprep.mubr.f32.mxu1 %v9972_v8 }
 0x2b3   : > { %2911 = vmatmul.mubr.f32.gmra.mrb[92].mxu1 %v9971_v9 }
 0x2b4   : > { %2915 = vmatprep.mubr.f32.mxu1 %v9975_v10 }
 0x2b7   : > { %2916 = vmatmul.mubr.f32.gmra.mrb[94].mxu1 %v9974_v12  ;;  %v9994_v12 = vld [vmem:[%s16914_s3 + $0x2f8] sm:$0xff] }
 0x2b8   : > { %2920 = vmatprep.mubr.f32.mxu1 %v9978_v44 }
 0x2bb   : > { %2921 = vmatmul.mubr.f32.gmra.mrb[96].mxu1 %v9977_v47 }
 0x2bc   : > { %2925 = vmatprep.mubr.f32.mxu1 %v9981_v50 }
 0x2bf   : > { %2926 = vmatmul.mubr.f32.gmra.mrb[98].mxu1 %v9980_v3  ;;  %v9997_v3 = vld [vmem:[%s16914_s3 + $0x310] sm:$0xff] }
 0x2c0   : > { %2930 = vmatprep.mubr.f32.mxu1 %v9984_v11  ;;  %v3416_v11 = vld [vmem:[%s16915_s4] sm:$0xff] }
 0x2c3   : > { %2931 = vmatmul.mubr.f32.gmra.mrb[100].mxu1 %v9983_v13  ;;  %v3417_v13 = vld [vmem:[%s16915_s4 + $0x8] sm:$0xff] }
 0x2c4   : > { %2935 = vmatprep.mubr.f32.mxu1 %v9987_v14 }
 0x2c7   : > { %2936 = vmatmul.mubr.f32.gmra.mrb[102].mxu1 %v9986_v48 }
 0x2c8   : > { %2940 = vmatprep.mubr.f32.mxu1 %v9990_v15 }
 0x2cb   : > { %2941 = vmatmul.mubr.f32.gmra.mrb[104].mxu1 %v9989_v17  ;;  %v10011_v17 = vld [vmem:[%s16914_s3 + $0x328] sm:$0xff] }
 0x2cc   : > { %2945 = vmatprep.mubr.f32.mxu1 %v9993_v20  ;;  %v13222_v20 = vpack.c.bf16 %v3417_v13, %v3416_v11 }
 0x2ce   : > { %v10698_v23 = vpop.f32.mrb[0].mxu1 }
 0x2cf   : > { %v10699_v54 = vpop.f32.mrb[1].mxu1  ;;  %2946 = vmatmul.mubr.f32.gmra.mrb[106].mxu1 %v9992_v21 }
 0x2d0   : > { %v14795_v27 = vadd.f32 %v10699_v54, %v10698_v23  ;;  %2950 = vmatprep.mubr.f32.mxu1 %v9996_v22  ;;  %v10014_v54 = vld [vmem:[%s16914_s3 + $0x340] sm:$0xff] }
 0x2d2   : > { %v10701_v30 = vpop.f32.mrb[2].mxu1 }
 0x2d3   : > { %v10702_v31 = vpop.f32.mrb[3].mxu1  ;;  %2951 = vmatmul.mubr.f32.gmra.mrb[108].mxu1 %v9995_v29 }
 0x2d4   : > { %v14800_v32 = vadd.f32 %v10702_v31, %v10701_v30  ;;  %11780 = vmatprep.mubr.msk.f32.mxu1 %vm13759_vm8, %v13760_v60  ;;  %v10017_v31 = vld [vmem:[%s16914_s3 + $0x358] sm:$0xff] }
 0x2d6   : > { %v10704_v35 = vpop.f32.mrb[4].mxu1 }
 0x2d7   : > { %v10705_v36 = vpop.f32.mrb[5].mxu1  ;;  %11781 = vmatmul.mubr.msk.f32.vlgmr.msra.gmra.mrb[110].mxu1 %vm2165_vm9, %v9967_v33 }
 0x2d8   : > { %v14811_v39 = vadd.f32 %v10705_v36, %v10704_v35  ;;  %13217 = vmatpush3.bf16.msra.mxu1 %v14372_v24  ;;  %11783 = vmatprep.mubr.msk.f32.mxu1 %vm13759_vm8, %v13760_v60  ;;  %v10039_v24 = vld [vmem:[%s16914_s3 + $0x408] sm:$0xff]  ;;  %v10020_v36 = vld [vmem:[%s16914_s3 + $0x370] sm:$0xff] }
 0x2d9   : > { %13221 = vmatprep.subr.bf16.mxu1 %v13758_v26  ;;  %3270 = vmatmul.mubr.f32.gmra.mrb[54].mxu0 %v10039_v24 }
 0x2da   : > { %v10707_v42 = vpop.f32.mrb[6].mxu1  ;;  %11854 = vmatprep.mubr.msk.f32.mxu0 %vm13759_vm8, %v13760_v60 }
 0x2db   : > { %v10708_v46 = vpop.f32.mrb[7].mxu1  ;;  %11784 = vmatmul.mubr.msk.f32.gmra.mrb[112].mxu1 %vm2165_vm9, %v9970_v37 }
 0x2dc   : > { %v14830_v28 = vadd.f32 %v10708_v46, %v10707_v42  ;;  %11786 = vmatprep.mubr.msk.f32.mxu1 %vm13759_vm8, %v13760_v60  ;;  %v10026_v42 = vld [vmem:[%s16914_s3 + $0x3a0] sm:$0xff] }
 0x2de   : > { %v10710_v16 = vpop.f32.mrb[8].mxu1 }
 0x2df   : > { %v10711_v38 = vpop.f32.mrb[9].mxu1  ;;  %11787 = vmatmul.mubr.msk.f32.gmra.mrb[114].mxu1 %vm2165_vm9, %v9973_v49 }
 0x2e0   : > { %v14841_v51 = vadd.f32 %v10711_v38, %v10710_v16  ;;  %11789 = vmatprep.mubr.msk.f32.mxu1 %vm13759_vm8, %v13760_v60  ;;  %v10029_v16 = vld [vmem:[%s16914_s3 + $0x3b8] sm:$0xff] }
 0x2e2   : > { %v10713_v55 = vpop.f32.mrb[10].mxu1 }
 0x2e3   : > { %v10714_v52 = vpop.f32.mrb[11].mxu1  ;;  %11790 = vmatmul.mubr.msk.f32.gmra.mrb[116].mxu1 %vm2165_vm9, %v9976_v25 }
 0x2e4   : > { %v14849_v34 = vadd.f32 %v10714_v52, %v10713_v55  ;;  %11792 = vmatprep.mubr.msk.f32.mxu1 %vm13759_vm8, %v13760_v60  ;;  %v10032_v55 = vld [vmem:[%s16914_s3 + $0x3d0] sm:$0xff] }
 0x2e6   : > { %v10716_v53 = vpop.f32.mrb[12].mxu1 }
 0x2e7   : > { %v10717_v43 = vpop.f32.mrb[13].mxu1  ;;  %11793 = vmatmul.mubr.msk.f32.gmra.mrb[118].mxu1 %vm2165_vm9, %v9979_v1 }
 0x2e8   : > { %v14857_v45 = vadd.f32 %v10717_v43, %v10716_v53  ;;  %11795 = vmatprep.mubr.msk.f32.mxu1 %vm13759_vm8, %v13760_v60  ;;  %v10035_v53 = vld [vmem:[%s16914_s3 + $0x3e8] sm:$0xff] }
 0x2ea   : > { %v10719_v59 = vpop.f32.mrb[14].mxu1 }
 0x2eb   : > { %v10720_v18 = vpop.f32.mrb[15].mxu1  ;;  %11796 = vmatmul.mubr.msk.f32.gmra.mrb[120].mxu1 %vm2165_vm9, %v9982_v56 }
 0x2ec   : > { %v14865_v57 = vadd.f32 %v10720_v18, %v10719_v59  ;;  %11798 = vmatprep.mubr.msk.f32.mxu1 %vm13759_vm8, %v13760_v60  ;;  %v10038_v59 = vld [vmem:[%s16914_s3 + $0x400] sm:$0xff] }
 0x2ee   : > { %v10722_v58 = vpop.f32.mrb[16].mxu1 }
 0x2ef   : > { %v10723_v61 = vpop.f32.mrb[17].mxu1  ;;  %11799 = vmatmul.mubr.msk.f32.gmra.mrb[122].mxu1 %vm2165_vm9, %v9985_v6 }
 0x2f0   : > { %v14873_v62 = vadd.f32 %v10723_v61, %v10722_v58  ;;  %11801 = vmatprep.mubr.msk.f32.mxu1 %vm13759_vm8, %v13760_v60  ;;  %v10041_v58 = vld [vmem:[%s16914_s3 + $0x418] sm:$0xff] }
 0x2f2   : > { %v10725_v0 = vpop.f32.mrb[18].mxu1 }
 0x2f3   : > { %v10726_v2 = vpop.f32.mrb[19].mxu1  ;;  %11802 = vmatmul.mubr.msk.f32.gmra.mrb[124].mxu1 %vm2165_vm9, %v9988_v63 }
 0x2f4   : > { %v14881_v4 = vadd.f32 %v10726_v2, %v10725_v0  ;;  %11804 = vmatprep.mubr.msk.f32.mxu1 %vm13759_vm8, %v13760_v60 }
 0x2f6   : > { %v10728_v8 = vpop.f32.mrb[20].mxu1 }
 0x2f7   : > { %v10729_v9 = vpop.f32.mrb[21].mxu1  ;;  %11805 = vmatmul.mubr.msk.f32.gmra.mrb[126].mxu1 %vm2165_vm9, %v9991_v7 }
 0x2f8   : > { %v14889_v10 = vadd.f32 %v10729_v9, %v10728_v8  ;;  %11807 = vmatprep.mubr.msk.f32.mxu1 %vm13759_vm8, %v13760_v60 }
 0x2fa   : > { %v2385_v44 = vpop.f32.mrb[22].mxu1 }
 0x2fb   : > { %v2386_v47 = vadd.f32 %v14795_v27, %v2385_v44  ;;  %v11708_v50 = vpop.f32.mrb[23].mxu1  ;;  %11808 = vmatmul.mubr.msk.f32.gmra.mrb[128].mxu1 %vm2165_vm9, %v9994_v12 }
 0x2fc   : > { %11810 = vmatprep.mubr.msk.f32.mxu1 %vm13759_vm8, %v13760_v60 }
 0x2fd   : > { %2439 = vst.msk [vmem:[#allocation2] sm:$0xff] %vm2165_vm9, %v2386_v47 }
 0x2fe   : > { %v2390_v14 = vpop.f32.mrb[24].mxu1 }
 0x2ff   : > { %v2391_v48 = vadd.f32 %v14800_v32, %v2390_v14  ;;  %v11711_v15 = vpop.f32.mrb[25].mxu1  ;;  %11811 = vmatmul.mubr.msk.f32.gmra.mrb[130].mxu1 %vm2165_vm9, %v9997_v3 }
 0x300   : > { %11817 = vmatprep.mubr.msk.f32.mxu1 %vm13759_vm8, %v13760_v60 }
 0x301   : > { %2440 = vst.msk [vmem:[#allocation2 + $0x8] sm:$0xff] %vm2165_vm9, %v2391_v48 }
 0x302   : > { %v2395_v21 = vpop.f32.mrb[26].mxu1 }
 0x303   : > { %v2396_v22 = vadd.f32 %v14811_v39, %v2395_v21  ;;  %v11714_v23 = vpop.f32.mrb[27].mxu1  ;;  %11818 = vmatmul.mubr.msk.f32.vlgmr.msra.gmra.mrb[132].mxu1 %vm2165_vm9, %v10011_v17 }
 0x304   : > { %11820 = vmatprep.mubr.msk.f32.mxu1 %vm13759_vm8, %v13760_v60  ;;  %13223 = vmatpush3.bf16.msra.mxu1 %v13222_v20  ;;  %v3407_v2 = vld [vmem:[#allocation2] sm:$0xff] }
 0x305   : > { %2441 = vst.msk [vmem:[#allocation2 + $0x10] sm:$0xff] %vm2165_vm9, %v2396_v22  ;;  %13227 = vmatprep.subr.bf16.mxu1 %v13758_v26 }
 0x306   : > { %v2400_v27 = vpop.f32.mrb[28].mxu1 }
 0x307   : > { %v2401_v29 = vadd.f32 %v14830_v28, %v2400_v27  ;;  %v11717_v30 = vpop.f32.mrb[29].mxu1  ;;  %11821 = vmatmul.mubr.msk.f32.gmra.mrb[134].mxu1 %vm2165_vm9, %v10014_v54 }
 0x308   : > { %11823 = vmatprep.mubr.msk.f32.mxu1 %vm13759_vm8, %v13760_v60  ;;  %v3408_v9 = vld [vmem:[#allocation2 + $0x8] sm:$0xff]  ;;  %v10085_v30 = vld [vmem:[%s16915_s4 + $0x38] sm:$0xff] }
 0x309   : > { %2442 = vst.msk [vmem:[#allocation2 + $0x18] sm:$0xff] %vm2165_vm9, %v2401_v29  ;;  %v10084_v29 = vld [vmem:[%s16915_s4 + $0x30] sm:$0xff] }
 0x30a   : > { %v2405_v32 = vpop.f32.mrb[30].mxu1 }
 0x30b   : > { %v2406_v33 = vadd.f32 %v14841_v51, %v2405_v32  ;;  %v11720_v35 = vpop.f32.mrb[31].mxu1  ;;  %11824 = vmatmul.mubr.msk.f32.gmra.mrb[136].mxu1 %vm2165_vm9, %v10017_v31 }
 0x30c   : > { %11826 = vmatprep.mubr.msk.f32.mxu1 %vm13759_vm8, %v13760_v60  ;;  %v3409_v47 = vld [vmem:[#allocation2 + $0x10] sm:$0xff] }
 0x30d   : > { %2443 = vst.msk [vmem:[#allocation2 + $0x20] sm:$0xff] %vm2165_vm9, %v2406_v33  ;;  %v13228_v33 = vpack.c.bf16 %v10085_v30, %v10084_v29 }
 0x30e   : > { %v2410_v37 = vpop.f32.mrb[32].mxu1 }
 0x30f   : > { %v2411_v39 = vadd.f32 %v14849_v34, %v2410_v37  ;;  %v11723_v40 = vpop.f32.mrb[33].mxu1  ;;  %11827 = vmatmul.mubr.msk.f32.gmra.mrb[138].mxu1 %vm2165_vm9, %v10020_v36 }
 0x310   : > { %11829 = vmatprep.mubr.msk.f32.mxu1 %vm13759_vm8, %v13760_v60  ;;  %v3410_v13 = vld [vmem:[#allocation2 + $0x18] sm:$0xff] }
 0x311   : > { %2444 = vst.msk [vmem:[#allocation2 + $0x28] sm:$0xff] %vm2165_vm9, %v2411_v39 }
 0x312   : > { %v2415_v5 = vpop.f32.mrb[34].mxu1 }
 0x313   : > { %v2416_v24 = vadd.f32 %v14857_v45, %v2415_v5  ;;  %v11726_v19 = vpop.f32.mrb[35].mxu1  ;;  %11830 = vmatmul.mubr.msk.f32.gmra.mrb[140].mxu1 %vm2165_vm9, %v10023_v41 }
 0x314   : > { %11832 = vmatprep.mubr.msk.f32.mxu1 %vm13759_vm8, %v13760_v60  ;;  %v3411_v17 = vld [vmem:[#allocation2 + $0x20] sm:$0xff] }
 0x315   : > { %2445 = vst.msk [vmem:[#allocation2 + $0x30] sm:$0xff] %vm2165_vm9, %v2416_v24 }
 0x316   : > { %v2420_v46 = vpop.f32.mrb[36].mxu1 }
 0x317   : > { %v2421_v28 = vadd.f32 %v14865_v57, %v2420_v46  ;;  %v11729_v49 = vpop.f32.mrb[37].mxu1  ;;  %11833 = vmatmul.mubr.msk.f32.gmra.mrb[142].mxu1 %vm2165_vm9, %v10026_v42 }
 0x318   : > { %11835 = vmatprep.mubr.msk.f32.mxu1 %vm13759_vm8, %v13760_v60  ;;  %v3412_v23 = vld [vmem:[#allocation2 + $0x28] sm:$0xff] }
 0x319   : > { %2446 = vst.msk [vmem:[#allocation2 + $0x38] sm:$0xff] %vm2165_vm9, %v2421_v28 }
 0x31a   : > { %v2425_v38 = vpop.f32.mrb[38].mxu1 }
 0x31b   : > { %v2426_v51 = vadd.f32 %v14873_v62, %v2425_v38  ;;  %v11732_v25 = vpop.f32.mrb[39].mxu1  ;;  %11836 = vmatmul.mubr.msk.f32.gmra.mrb[144].mxu1 %vm2165_vm9, %v10029_v16  ;;  %v10932_v16 = vpop.f32.mrb[34].mxu0 }
 0x31c   : > { %11838 = vmatprep.mubr.msk.f32.mxu1 %vm13759_vm8, %v13760_v60  ;;  %v3413_v32 = vld [vmem:[#allocation2 + $0x30] sm:$0xff]  ;;  %v10933_v38 = vpop.f32.mrb[35].mxu0 }
 0x31d   : > { %2447 = vst.msk [vmem:[#allocation2 + $0x40] sm:$0xff] %vm2165_vm9, %v2426_v51  ;;  %v15058_v25 = vadd.f32 %v10933_v38, %v10932_v16 }
 0x31e   : > { %v2430_v52 = vpop.f32.mrb[40].mxu1 }
 0x31f   : > { %v2431_v34 = vadd.f32 %v14881_v4, %v2430_v52  ;;  %v11735_v1 = vpop.f32.mrb[41].mxu1  ;;  %11839 = vmatmul.mubr.msk.f32.gmra.mrb[146].mxu1 %vm2165_vm9, %v10032_v55 }
 0x320   : > { %11841 = vmatprep.mubr.msk.f32.mxu1 %vm13759_vm8, %v13760_v60  ;;  %v3414_v39 = vld [vmem:[#allocation2 + $0x38] sm:$0xff]  ;;  %v10074_v1 = vld [vmem:[%s16915_s4 + $0x28] sm:$0xff] }
 0x321   : > { %2448 = vst.msk [vmem:[#allocation2 + $0x48] sm:$0xff] %vm2165_vm9, %v2431_v34  ;;  %v10073_v34 = vld [vmem:[%s16915_s4 + $0x20] sm:$0xff] }
 0x322   : > { %v2435_v43 = vpop.f32.mrb[42].mxu1 }
 0x323   : > { %v2436_v45 = vadd.f32 %v14889_v10, %v2435_v43  ;;  %v11738_v56 = vpop.f32.mrb[43].mxu1  ;;  %11842 = vmatmul.mubr.msk.f32.gmra.mrb[148].mxu1 %vm2165_vm9, %v10035_v53 }
 0x324   : > { %11844 = vmatprep.mubr.msk.f32.mxu1 %vm13759_vm8, %v13760_v60  ;;  %v3415_v24 = vld [vmem:[#allocation2 + $0x40] sm:$0xff]  ;;  %v13225_v56 = vpack.c.bf16 %v10074_v1, %v10073_v34 }
 0x325   : > { %2449 = vst.msk [vmem:[#allocation2 + $0x50] sm:$0xff] %vm2165_vm9, %v2436_v45 }
 0x326   : > { %v10776_v18 = vpop.f32.mrb[44].mxu1 }
 0x327   : > { %v10777_v57 = vpop.f32.mrb[45].mxu1  ;;  %11845 = vmatmul.mubr.msk.f32.gmra.mrb[150].mxu1 %vm2165_vm9, %v10038_v59 }
 0x328   : > { %v14992_v6 = vadd.f32 %v10777_v57, %v10776_v18  ;;  %11847 = vmatprep.mubr.msk.f32.mxu1 %vm13759_vm8, %v13760_v60 }
 0x32a   : > { %v10779_v61 = vpop.f32.mrb[46].mxu1 }
 0x32b   : > { %v10780_v62 = vpop.f32.mrb[47].mxu1  ;;  %11848 = vmatmul.mubr.msk.f32.gmra.mrb[152].mxu1 %vm2165_vm9, %v10041_v58 }
 0x32c   : > { %v15000_v63 = vadd.f32 %v10780_v62, %v10779_v61  ;;  %11885 = vmatprep.mubr.msk.f32.mxu1 %vm13759_vm8, %v13760_v60 }
 0x32e   : > { %v10782_v0 = vpop.f32.mrb[48].mxu1 }
 0x32f   : > { %v10783_v4 = vpop.f32.mrb[49].mxu1  ;;  %11886 = vmatmul.mubr.msk.f32.vlgmr.msra.gmra.mrb[154].mxu1 %vm2165_vm9, %v3407_v2 }
 0x330   : > { %v15005_v7 = vadd.f32 %v10783_v4, %v10782_v0  ;;  %11888 = vmatprep.mubr.msk.f32.mxu1 %vm13759_vm8, %v13760_v60  ;;  %13229 = vmatpush3.bf16.msra.mxu1 %v13228_v33 }
 0x331   : > { %13233 = vmatprep.subr.bf16.mxu1 %v13758_v26 }
 0x332   : > { %v10785_v8 = vpop.f32.mrb[50].mxu1 }
 0x333   : > { %v10786_v10 = vpop.f32.mrb[51].mxu1  ;;  %11889 = vmatmul.mubr.msk.f32.gmra.mrb[156].mxu1 %vm2165_vm9, %v3408_v9 }
 0x334   : > { %v15010_v12 = vadd.f32 %v10786_v10, %v10785_v8  ;;  %11891 = vmatprep.mubr.msk.f32.mxu1 %vm13759_vm8, %v13760_v60 }
 0x336   : > { %v10788_v44 = vpop.f32.mrb[52].mxu1 }
 0x337   : > { %v10789_v50 = vpop.f32.mrb[53].mxu1  ;;  %11892 = vmatmul.mubr.msk.f32.gmra.mrb[158].mxu1 %vm2165_vm9, %v3409_v47 }
 0x338   : > { %v15015_v3 = vadd.f32 %v10789_v50, %v10788_v44  ;;  %11894 = vmatprep.mubr.msk.f32.mxu1 %vm13759_vm8, %v13760_v60 }
 0x33a   : > { %v10791_v11 = vpop.f32.mrb[54].mxu1 }
 0x33b   : > { %v10792_v14 = vpop.f32.mrb[55].mxu1  ;;  %11895 = vmatmul.mubr.msk.f32.gmra.mrb[160].mxu1 %vm2165_vm9, %v3410_v13 }
 0x33c   : > { %v15020_v48 = vadd.f32 %v10792_v14, %v10791_v11  ;;  %11897 = vmatprep.mubr.msk.f32.mxu1 %vm13759_vm8, %v13760_v60 }
 0x33e   : > { %v10794_v15 = vpop.f32.mrb[56].mxu1 }
 0x33f   : > { %v10795_v20 = vpop.f32.mrb[57].mxu1  ;;  %11898 = vmatmul.mubr.msk.f32.gmra.mrb[162].mxu1 %vm2165_vm9, %v3411_v17 }
 0x340   : > { %v15025_v21 = vadd.f32 %v10795_v20, %v10794_v15  ;;  %11900 = vmatprep.mubr.msk.f32.mxu1 %vm13759_vm8, %v13760_v60 }
 0x342   : > { %v10797_v22 = vpop.f32.mrb[58].mxu1 }
 0x343   : > { %v10798_v54 = vpop.f32.mrb[59].mxu1  ;;  %11901 = vmatmul.mubr.msk.f32.gmra.mrb[164].mxu1 %vm2165_vm9, %v3412_v23 }
 0x344   : > { %v15030_v27 = vadd.f32 %v10798_v54, %v10797_v22  ;;  %11903 = vmatprep.mubr.msk.f32.mxu1 %vm13759_vm8, %v13760_v60 }
 0x346   : > { %v10800_v31 = vpop.f32.mrb[60].mxu1 }
 0x347   : > { %v10801_v35 = vpop.f32.mrb[61].mxu1  ;;  %11904 = vmatmul.mubr.msk.f32.gmra.mrb[166].mxu1 %vm2165_vm9, %v3413_v32 }
 0x348   : > { %v15041_v36 = vadd.f32 %v10801_v35, %v10800_v31  ;;  %11906 = vmatprep.mubr.msk.f32.mxu1 %vm13759_vm8, %v13760_v60 }
 0x34a   : > { %v10803_v37 = vpop.f32.mrb[62].mxu1 }
 0x34b   : > { %v10804_v40 = vpop.f32.mrb[63].mxu1  ;;  %11907 = vmatmul.mubr.msk.f32.gmra.mrb[168].mxu1 %vm2165_vm9, %v3414_v39 }
 0x34c   : > { %v15047_v41 = vadd.f32 %v10804_v40, %v10803_v37  ;;  %11909 = vmatprep.mubr.msk.f32.mxu1 %vm13759_vm8, %v13760_v60 }
 0x34e   : > { %v10806_v5 = vpop.f32.mrb[64].mxu1 }
 0x34f   : > { %v10807_v19 = vpop.f32.mrb[65].mxu1  ;;  %11910 = vmatmul.mubr.msk.f32.gmra.mrb[170].mxu1 %vm2165_vm9, %v3415_v24 }
 0x350   : > { %v15052_v42 = vadd.f32 %v10807_v19, %v10806_v5  ;;  %11947 = vmatprep.mubr.msk.f32.mxu1 %vm13759_vm8, %v13760_v60 }
 0x352   : > { %v2703_v46 = vpop.f32.mrb[66].mxu1 }
 0x353   : > { %v2704_v28 = vadd.f32 %v14992_v6, %v2703_v46  ;;  %v11745_v49 = vpop.f32.mrb[67].mxu1 }
 0x354   : > { %v10935_v53 = vpop.f32.mrb[36].mxu0 }
 0x355   : > { %2758 = vst.msk [vmem:[#allocation2 + $0x58] sm:$0xff] %vm2165_vm9, %v2704_v28  ;;  %v10936_v43 = vpop.f32.mrb[37].mxu0 }
 0x356   : > { %v2708_v51 = vpop.f32.mrb[68].mxu1  ;;  %v15068_v59 = vadd.f32 %v10936_v43, %v10935_v53 }
 0x357   : > { %v2709_v55 = vadd.f32 %v15000_v63, %v2708_v51  ;;  %v11748_v52 = vpop.f32.mrb[69].mxu1 }
 0x358   : > { %v10938_v58 = vpop.f32.mrb[38].mxu0 }
 0x359   : > { %2759 = vst.msk [vmem:[#allocation2 + $0x60] sm:$0xff] %vm2165_vm9, %v2709_v55  ;;  %v10939_v61 = vpop.f32.mrb[39].mxu0 }
 0x35a   : > { %v2713_v45 = vpop.f32.mrb[70].mxu1  ;;  %v15075_v63 = vadd.f32 %v10939_v61, %v10938_v58 }
 0x35b   : > { %v2714_v18 = vadd.f32 %v15005_v7, %v2713_v45  ;;  %v11751_v57 = vpop.f32.mrb[71].mxu1 }
 0x35c   : > { %v3418_v6 = vld [vmem:[#allocation2 + $0x58] sm:$0xff]  ;;  %v10941_v7 = vpop.f32.mrb[40].mxu0 }
 0x35d   : > { %2760 = vst.msk [vmem:[#allocation2 + $0x68] sm:$0xff] %vm2165_vm9, %v2714_v18  ;;  %11855 = vmatmul.mubr.msk.f32.vlgmr.msra.gmra.mrb[56].mxu0 %vm2165_vm9, %v3418_v6  ;;  %v10942_v8 = vpop.f32.mrb[41].mxu0 }
 0x35e   : > { %v2718_v62 = vpop.f32.mrb[72].mxu1  ;;  %11857 = vmatprep.mubr.msk.f32.mxu0 %vm13759_vm8, %v13760_v60  ;;  %13226 = vmatpush3.bf16.msra.mxu0 %v13225_v56  ;;  %v15083_v10 = vadd.f32 %v10942_v8, %v10941_v7 }
 0x35f   : > { %v2719_v0 = vadd.f32 %v15010_v12, %v2718_v62  ;;  %v11754_v2 = vpop.f32.mrb[73].mxu1  ;;  %13230 = vmatprep.subr.bf16.mxu0 %v13758_v26 }
 0x360   : > { %v3419_v4 = vld [vmem:[#allocation2 + $0x60] sm:$0xff]  ;;  %v10944_v50 = vpop.f32.mrb[42].mxu0 }
 0x361   : > { %2761 = vst.msk [vmem:[#allocation2 + $0x70] sm:$0xff] %vm2165_vm9, %v2719_v0  ;;  %11858 = vmatmul.mubr.msk.f32.gmra.mrb[58].mxu0 %vm2165_vm9, %v3419_v4  ;;  %v10945_v11 = vpop.f32.mrb[43].mxu0 }
 0x362   : > { %v2723_v9 = vpop.f32.mrb[74].mxu1  ;;  %11860 = vmatprep.mubr.msk.f32.mxu0 %vm13759_vm8, %v13760_v60  ;;  %v15090_v14 = vadd.f32 %v10945_v11, %v10944_v50 }
 0x363   : > { %v2724_v44 = vadd.f32 %v15015_v3, %v2723_v9  ;;  %v11757_v47 = vpop.f32.mrb[75].mxu1 }
 0x364   : > { %v3420_v12 = vld [vmem:[#allocation2 + $0x68] sm:$0xff]  ;;  %v10947_v22 = vpop.f32.mrb[44].mxu0 }
 0x365   : > { %2762 = vst.msk [vmem:[#allocation2 + $0x78] sm:$0xff] %vm2165_vm9, %v2724_v44  ;;  %11861 = vmatmul.mubr.msk.f32.gmra.mrb[60].mxu0 %vm2165_vm9, %v3420_v12  ;;  %v10948_v3 = vpop.f32.mrb[45].mxu0 }
 0x366   : > { %v2728_v13 = vpop.f32.mrb[76].mxu1  ;;  %11863 = vmatprep.mubr.msk.f32.mxu0 %vm13759_vm8, %v13760_v60  ;;  %v15097_v54 = vadd.f32 %v10948_v3, %v10947_v22 }
 0x367   : > { %v2729_v15 = vadd.f32 %v15020_v48, %v2728_v13  ;;  %v11760_v17 = vpop.f32.mrb[77].mxu1 }
 0x368   : > { %v3421_v20 = vld [vmem:[#allocation2 + $0x70] sm:$0xff]  ;;  %v10950_v32 = vpop.f32.mrb[46].mxu0 }
 0x369   : > { %2763 = vst.msk [vmem:[#allocation2 + $0x80] sm:$0xff] %vm2165_vm9, %v2729_v15  ;;  %11864 = vmatmul.mubr.msk.f32.gmra.mrb[62].mxu0 %vm2165_vm9, %v3421_v20  ;;  %v10951_v48 = vpop.f32.mrb[47].mxu0 }
 0x36a   : > { %v2733_v23 = vpop.f32.mrb[78].mxu1  ;;  %11866 = vmatprep.mubr.msk.f32.mxu0 %vm13759_vm8, %v13760_v60  ;;  %v15104_v35 = vadd.f32 %v10951_v48, %v10950_v32 }
 0x36b   : > { %v2734_v29 = vadd.f32 %v15025_v21, %v2733_v23  ;;  %v11763_v30 = vpop.f32.mrb[79].mxu1 }
 0x36c   : > { %v3422_v31 = vld [vmem:[#allocation2 + $0x78] sm:$0xff]  ;;  %v10953_v5 = vpop.f32.mrb[48].mxu0 }
 0x36d   : > { %2764 = vst.msk [vmem:[#allocation2 + $0x88] sm:$0xff] %vm2165_vm9, %v2734_v29  ;;  %11867 = vmatmul.mubr.msk.f32.gmra.mrb[64].mxu0 %vm2165_vm9, %v3422_v31  ;;  %v10954_v21 = vpop.f32.mrb[49].mxu0 }
 0x36e   : > { %v2738_v33 = vpop.f32.mrb[80].mxu1  ;;  %11869 = vmatprep.mubr.msk.f32.mxu0 %vm13759_vm8, %v13760_v60  ;;  %v15111_v19 = vadd.f32 %v10954_v21, %v10953_v5 }
 0x36f   : > { %v2739_v37 = vadd.f32 %v15030_v27, %v2738_v33  ;;  %v11766_v39 = vpop.f32.mrb[81].mxu1 }
 0x370   : > { %v3423_v40 = vld [vmem:[#allocation2 + $0x80] sm:$0xff]  ;;  %v10956_v16 = vpop.f32.mrb[50].mxu0 }
 0x371   : > { %2765 = vst.msk [vmem:[#allocation2 + $0x90] sm:$0xff] %vm2165_vm9, %v2739_v37  ;;  %11870 = vmatmul.mubr.msk.f32.gmra.mrb[66].mxu0 %vm2165_vm9, %v3423_v40  ;;  %v10957_v27 = vpop.f32.mrb[51].mxu0 }
 0x372   : > { %v2743_v24 = vpop.f32.mrb[82].mxu1  ;;  %11872 = vmatprep.mubr.msk.f32.mxu0 %vm13759_vm8, %v13760_v60  ;;  %v15118_v51 = vadd.f32 %v10957_v27, %v10956_v16  ;;  %v10095_v27 = vld [vmem:[%s16915_s4 + $0x40] sm:$0xff] }
 0x373   : > { %v2744_v46 = vadd.f32 %v15041_v36, %v2743_v24  ;;  %v11769_v28 = vpop.f32.mrb[83].mxu1 }
 0x374   : > { %v3424_v49 = vld [vmem:[#allocation2 + $0x88] sm:$0xff]  ;;  %v10959_v1 = vpop.f32.mrb[52].mxu0 }
 0x375   : > { %2766 = vst.msk [vmem:[#allocation2 + $0x98] sm:$0xff] %vm2165_vm9, %v2744_v46  ;;  %11873 = vmatmul.mubr.msk.f32.gmra.mrb[68].mxu0 %vm2165_vm9, %v3424_v49  ;;  %v10960_v36 = vpop.f32.mrb[53].mxu0 }
 0x376   : > { %v2748_v38 = vpop.f32.mrb[84].mxu1  ;;  %11875 = vmatprep.mubr.msk.f32.mxu0 %vm13759_vm8, %v13760_v60  ;;  %v15125_v43 = vadd.f32 %v10960_v36, %v10959_v1 }
 0x377   : > { %v2749_v55 = vadd.f32 %v15047_v41, %v2748_v38  ;;  %v11772_v52 = vpop.f32.mrb[85].mxu1  ;;  %v10096_v38 = vld [vmem:[%s16915_s4 + $0x48] sm:$0xff] }
 0x378   : > { %v3425_v34 = vld [vmem:[#allocation2 + $0x90] sm:$0xff] }
 0x379   : > { %2767 = vst.msk [vmem:[#allocation2 + $0xa0] sm:$0xff] %vm2165_vm9, %v2749_v55  ;;  %11876 = vmatmul.mubr.msk.f32.gmra.mrb[70].mxu0 %vm2165_vm9, %v3425_v34  ;;  %v13231_v34 = vpack.c.bf16 %v10096_v38, %v10095_v27 }
 0x37a   : > { %v2753_v53 = vpop.f32.mrb[86].mxu1  ;;  %11878 = vmatprep.mubr.msk.f32.mxu0 %vm13759_vm8, %v13760_v60 }
 0x37b   : > { %v2754_v45 = vadd.f32 %v15052_v42, %v2753_v53  ;;  %v11775_v56 = vpop.f32.mrb[87].mxu1 }
 0x37c   : > { %v3426_v18 = vld [vmem:[#allocation2 + $0x98] sm:$0xff] }
 0x37d   : > { %2768 = vst.msk [vmem:[#allocation2 + $0xa8] sm:$0xff] %vm2165_vm9, %v2754_v45  ;;  %11879 = vmatmul.mubr.msk.f32.gmra.mrb[72].mxu0 %vm2165_vm9, %v3426_v18 }
 0x37e   : > { %v10854_v41 = vpop.f32.mrb[88].mxu1  ;;  %11916 = vmatprep.mubr.msk.f32.mxu0 %vm13759_vm8, %v13760_v60 }
 0x37f   : > { %v10855_v57 = vpop.f32.mrb[89].mxu1 }
 0x380   : > { %v10856_v6 = vadd.f32 %v10855_v57, %v10854_v41 }
 0x382   : > { %v10857_v58 = vpop.f32.mrb[90].mxu1 }
 0x383   : > { %v10858_v61 = vpop.f32.mrb[91].mxu1 }
 0x384   : > { %v10859_v62 = vadd.f32 %v10858_v61, %v10857_v58 }
 0x386   : > { %v10860_v0 = vpop.f32.mrb[92].mxu1 }
 0x387   : > { %v10861_v2 = vpop.f32.mrb[93].mxu1 }
 0x388   : > { %v10862_v4 = vadd.f32 %v10861_v2, %v10860_v0 }
 0x38a   : > { %v10863_v7 = vpop.f32.mrb[94].mxu1 }
 0x38b   : > { %v10864_v42 = vpop.f32.mrb[95].mxu1 }
 0x38c   : > { %v10865_v8 = vadd.f32 %v10864_v42, %v10863_v7 }
 0x38e   : > { %v10866_v9 = vpop.f32.mrb[96].mxu1 }
 0x38f   : > { %v10867_v44 = vpop.f32.mrb[97].mxu1 }
 0x390   : > { %v10868_v47 = vadd.f32 %v10867_v44, %v10866_v9 }
 0x392   : > { %v10869_v12 = vpop.f32.mrb[98].mxu1 }
 0x393   : > { %v10870_v50 = vpop.f32.mrb[99].mxu1 }
 0x394   : > { %v10871_v11 = vadd.f32 %v10870_v50, %v10869_v12 }
 0x396   : > { %v10872_v13 = vpop.f32.mrb[100].mxu1 }
 0x397   : > { %v10873_v15 = vpop.f32.mrb[101].mxu1 }
 0x398   : > { %v10874_v17 = vadd.f32 %v10873_v15, %v10872_v13 }
 0x39a   : > { %v10875_v20 = vpop.f32.mrb[102].mxu1 }
 0x39b   : > { %v10876_v22 = vpop.f32.mrb[103].mxu1 }
 0x39c   : > { %v10877_v3 = vadd.f32 %v10876_v22, %v10875_v20 }
 0x39e   : > { %v10878_v23 = vpop.f32.mrb[104].mxu1 }
 0x39f   : > { %v10879_v29 = vpop.f32.mrb[105].mxu1 }
 0x3a0   : > { %v15132_v30 = vadd.f32 %v10879_v29, %v10878_v23 }
 0x3a2   : > { %v10881_v31 = vpop.f32.mrb[106].mxu1 }
 0x3a3   : > { %v10882_v32 = vpop.f32.mrb[107].mxu1 }
 0x3a4   : > { %v15134_v48 = vadd.f32 %v10882_v32, %v10881_v31  ;;  %v10117_v32 = vld [vmem:[%s16915_s4 + $0x60] sm:$0xff] }
 0x3a6   : > { %v10884_v33 = vpop.f32.mrb[108].mxu1 }
 0x3a7   : > { %v10885_v37 = vpop.f32.mrb[109].mxu1 }
 0x3a8   : > { %v15136_v39 = vadd.f32 %v10885_v37, %v10884_v33 }
 0x3aa   : > { %v3022_v40 = vpop.f32.mrb[110].mxu1 }
 0x3ab   : > { %v3023_v5 = vadd.f32 %v10856_v6, %v3022_v40  ;;  %v11782_v21 = vpop.f32.mrb[111].mxu1 }
 0x3ac   : > { %v10962_v24 = vpop.f32.mrb[54].mxu0  ;;  %v4020_v21 = vld [vmem:[#allocation2 + $0x1] sm:$0xff] }
 0x3ad   : > { %3077 = vst.msk [vmem:[#allocation2 + $0xb0] sm:$0xff] %vm2165_vm9, %v3023_v5  ;;  %v10963_v28 = vpop.f32.mrb[55].mxu0 }
 0x3ae   : > { %v3027_v46 = vpop.f32.mrb[112].mxu1  ;;  %v15145_v55 = vadd.f32 %v10963_v28, %v10962_v24 }
 0x3af   : > { %v3028_v49 = vadd.f32 %v10859_v62, %v3027_v46  ;;  %v11785_v16 = vpop.f32.mrb[113].mxu1 }
 0x3b0   : > { %v10107_v16 = vld [vmem:[%s16915_s4 + $0x58] sm:$0xff] }
 0x3b1   : > { %3078 = vst.msk [vmem:[#allocation2 + $0xb8] sm:$0xff] %vm2165_vm9, %v3028_v49  ;;  %v15201_v49 = vld [vmem:[#allocation2 + $0x9] sm:$0xff] }
 0x3b2   : > { %v3032_v52 = vpop.f32.mrb[114].mxu1 }
 0x3b3   : > { %v3033_v1 = vadd.f32 %v10862_v4, %v3032_v52  ;;  %v11788_v36 = vpop.f32.mrb[115].mxu1 }
 0x3b4   : > { %v3704_v53 = vld [vmem:[#allocation2 + $0xb0] sm:$0xff] }
 0x3b5   : > { %3079 = vst.msk [vmem:[#allocation2 + $0xc0] sm:$0xff] %vm2165_vm9, %v3033_v1  ;;  %11917 = vmatmul.mubr.msk.f32.vlgmr.msra.gmra.mrb[74].mxu0 %vm2165_vm9, %v3704_v53  ;;  %v15215_v1 = vld [vmem:[#allocation2 + $0x11] sm:$0xff] }
 0x3b6   : > { %v3037_v45 = vpop.f32.mrb[116].mxu1  ;;  %11919 = vmatprep.mubr.msk.f32.mxu0 %vm13759_vm8, %v13760_v60  ;;  %13232 = vmatpush3.bf16.msra.mxu0 %v13231_v34 }
 0x3b7   : > { %v3038_v56 = vadd.f32 %v10865_v8, %v3037_v45  ;;  %v11791_v18 = vpop.f32.mrb[117].mxu1  ;;  %13236 = vmatprep.subr.bf16.mxu0 %v13758_v26 }
 0x3b8   : > { %v3705_v41 = vld [vmem:[#allocation2 + $0xb8] sm:$0xff] }
 0x3b9   : > { %3080 = vst.msk [vmem:[#allocation2 + $0xc8] sm:$0xff] %vm2165_vm9, %v3038_v56  ;;  %11920 = vmatmul.mubr.msk.f32.gmra.mrb[76].mxu0 %vm2165_vm9, %v3705_v41  ;;  %v15226_v56 = vld [vmem:[#allocation2 + $0x19] sm:$0xff] }
 0x3ba   : > { %v3042_v57 = vpop.f32.mrb[118].mxu1  ;;  %11922 = vmatprep.mubr.msk.f32.mxu0 %vm13759_vm8, %v13760_v60 }
 0x3bb   : > { %v3043_v6 = vadd.f32 %v10868_v47, %v3042_v57  ;;  %v11794_v58 = vpop.f32.mrb[119].mxu1 }
 0x3bc   : > { %v3706_v61 = vld [vmem:[#allocation2 + $0xc0] sm:$0xff] }
 0x3bd   : > { %3081 = vst.msk [vmem:[#allocation2 + $0xd0] sm:$0xff] %vm2165_vm9, %v3043_v6  ;;  %11923 = vmatmul.mubr.msk.f32.gmra.mrb[78].mxu0 %vm2165_vm9, %v3706_v61  ;;  %v15238_v6 = vld [vmem:[#allocation2 + $0x21] sm:$0xff] }
 0x3be   : > { %v3047_v62 = vpop.f32.mrb[120].mxu1  ;;  %11925 = vmatprep.mubr.msk.f32.mxu0 %vm13759_vm8, %v13760_v60 }
 0x3bf   : > { %v3048_v0 = vadd.f32 %v10871_v11, %v3047_v62  ;;  %v11797_v2 = vpop.f32.mrb[121].mxu1 }
 0x3c0   : > { %v3707_v4 = vld [vmem:[#allocation2 + $0xc8] sm:$0xff] }
 0x3c1   : > { %3082 = vst.msk [vmem:[#allocation2 + $0xd8] sm:$0xff] %vm2165_vm9, %v3048_v0  ;;  %11926 = vmatmul.mubr.msk.f32.gmra.mrb[80].mxu0 %vm2165_vm9, %v3707_v4  ;;  %v15249_v0 = vld [vmem:[#allocation2 + $0x29] sm:$0xff] }
 0x3c2   : > { %v3052_v7 = vpop.f32.mrb[122].mxu1  ;;  %11928 = vmatprep.mubr.msk.f32.mxu0 %vm13759_vm8, %v13760_v60 }
 0x3c3   : > { %v3053_v42 = vadd.f32 %v10874_v17, %v3052_v7  ;;  %v11800_v8 = vpop.f32.mrb[123].mxu1 }
 0x3c4   : > { %v3708_v9 = vld [vmem:[#allocation2 + $0xd0] sm:$0xff] }
 0x3c5   : > { %3083 = vst.msk [vmem:[#allocation2 + $0xe0] sm:$0xff] %vm2165_vm9, %v3053_v42  ;;  %11929 = vmatmul.mubr.msk.f32.gmra.mrb[82].mxu0 %vm2165_vm9, %v3708_v9  ;;  %v15260_v42 = vld [vmem:[#allocation2 + $0x31] sm:$0xff] }
 0x3c6   : > { %v3057_v44 = vpop.f32.mrb[124].mxu1  ;;  %11931 = vmatprep.mubr.msk.f32.mxu0 %vm13759_vm8, %v13760_v60 }
 0x3c7   : > { %v3058_v47 = vadd.f32 %v10877_v3, %v3057_v44  ;;  %v11803_v12 = vpop.f32.mrb[125].mxu1 }
 0x3c8   : > { %v3709_v50 = vld [vmem:[#allocation2 + $0xd8] sm:$0xff] }
 0x3c9   : > { %3084 = vst.msk [vmem:[#allocation2 + $0xe8] sm:$0xff] %vm2165_vm9, %v3058_v47  ;;  %11932 = vmatmul.mubr.msk.f32.gmra.mrb[84].mxu0 %vm2165_vm9, %v3709_v50  ;;  %v15271_v47 = vld [vmem:[#allocation2 + $0x39] sm:$0xff] }
 0x3ca   : > { %v3062_v11 = vpop.f32.mrb[126].mxu1  ;;  %11934 = vmatprep.mubr.msk.f32.mxu0 %vm13759_vm8, %v13760_v60 }
 0x3cb   : > { %v3063_v13 = vadd.f32 %v15132_v30, %v3062_v11  ;;  %v11806_v15 = vpop.f32.mrb[127].mxu1  ;;  %v15282_v11 = vld [vmem:[#allocation2 + $0x41] sm:$0xff] }
 0x3cc   : > { %v3710_v17 = vld [vmem:[#allocation2 + $0xe0] sm:$0xff] }
 0x3cd   : > { %3085 = vst.msk [vmem:[#allocation2 + $0xf0] sm:$0xff] %vm2165_vm9, %v3063_v13  ;;  %11935 = vmatmul.mubr.msk.f32.gmra.mrb[86].mxu0 %vm2165_vm9, %v3710_v17  ;;  %v10139_v15 = vld [vmem:[%s16915_s4 + $0x80] sm:$0xff]  ;;  %v10140_v17 = vld [vmem:[%s16915_s4 + $0x88] sm:$0xff] }
 0x3ce   : > { %v3067_v20 = vpop.f32.mrb[128].mxu1  ;;  %11937 = vmatprep.mubr.msk.f32.mxu0 %vm13759_vm8, %v13760_v60 }
 0x3cf   : > { %v3068_v22 = vadd.f32 %v15134_v48, %v3067_v20  ;;  %v11809_v3 = vpop.f32.mrb[129].mxu1  ;;  %v10118_v48 = vld [vmem:[%s16915_s4 + $0x68] sm:$0xff] }
 0x3d0   : > { %v3711_v23 = vld [vmem:[#allocation2 + $0xe8] sm:$0xff]  ;;  %v13237_v40 = vpack.c.bf16 %v10118_v48, %v10117_v32  ;;  %v13243_v3 = vpack.c.bf16 %v10140_v17, %v10139_v15 }
 0x3d1   : > { %3086 = vst.msk [vmem:[#allocation2 + $0xf8] sm:$0xff] %vm2165_vm9, %v3068_v22  ;;  %11938 = vmatmul.mubr.msk.f32.gmra.mrb[88].mxu0 %vm2165_vm9, %v3711_v23 }
 0x3d2   : > { %v3072_v29 = vpop.f32.mrb[130].mxu1  ;;  %11940 = vmatprep.mubr.msk.f32.mxu0 %vm13759_vm8, %v13760_v60 }
 0x3d3   : > { %v3073_v30 = vadd.f32 %v15136_v39, %v3072_v29  ;;  %v11812_v31 = vpop.f32.mrb[131].mxu1  ;;  %v4336_v29 = vld [vmem:[#allocation2 + $0xb1] sm:$0xff] }
 0x3d4   : > { %v3712_v33 = vld [vmem:[#allocation2 + $0xf0] sm:$0xff] }
 0x3d5   : > { %3087 = vst.msk [vmem:[#allocation2 + $0x100] sm:$0xff] %vm2165_vm9, %v3073_v30  ;;  %11941 = vmatmul.mubr.msk.f32.gmra.mrb[90].mxu0 %vm2165_vm9, %v3712_v33  ;;  %v15310_v33 = vld [vmem:[#allocation2 + $0xb9] sm:$0xff] }
 0x3d6   : > { %v3341_v37 = vpop.f32.mrb[132].mxu1  ;;  %11978 = vmatprep.mubr.msk.f32.mxu0 %vm13759_vm8, %v13760_v60 }
 0x3d7   : > { %v3342_v39 = vadd.f32 %v15058_v25, %v3341_v37  ;;  %v11819_v5 = vpop.f32.mrb[133].mxu1  ;;  %v10106_v25 = vld [vmem:[%s16915_s4 + $0x50] sm:$0xff]  ;;  %v10129_v37 = vld [vmem:[%s16915_s4 + $0x78] sm:$0xff] }
 0x3d8   : > { %v13234_v52 = vpack.c.bf16 %v10107_v16, %v10106_v25  ;;  %v4178_v5 = vld [vmem:[#allocation2 + $0x59] sm:$0xff]  ;;  %v15339_v25 = vld [vmem:[#allocation2 + $0xc9] sm:$0xff] }
 0x3d9   : > { %3396 = vst.msk [vmem:[#allocation2 + $0x108] sm:$0xff] %vm2165_vm9, %v3342_v39  ;;  %11979 = vmatmul.mubr.msk.f32.vlgmr.msra.gmra.mrb[92].mxu0 %vm2165_vm9, %v4020_v21  ;;  %v15326_v21 = vld [vmem:[#allocation2 + $0xc1] sm:$0xff] }
 0x3da   : > { %v3346_v24 = vpop.f32.mrb[134].mxu1  ;;  %11981 = vmatprep.mubr.msk.f32.mxu0 %vm13759_vm8, %v13760_v60  ;;  %13238 = vmatpush3.bf16.msra.mxu0 %v13237_v40 }
 0x3db   : > { %v3347_v46 = vadd.f32 %v15068_v59, %v3346_v24  ;;  %v11822_v28 = vpop.f32.mrb[135].mxu1  ;;  %13242 = vmatprep.subr.bf16.mxu0 %v13758_v26 }
 0x3dc   : > { %v15337_v28 = vld [vmem:[#allocation2 + $0x61] sm:$0xff] }
 0x3dd   : > { %3397 = vst.msk [vmem:[#allocation2 + $0x110] sm:$0xff] %vm2165_vm9, %v3347_v46  ;;  %11982 = vmatmul.mubr.msk.f32.gmra.mrb[94].mxu0 %vm2165_vm9, %v15201_v49 }
 0x3de   : > { %v3351_v27 = vpop.f32.mrb[136].mxu1  ;;  %11984 = vmatprep.mubr.msk.f32.mxu0 %vm13759_vm8, %v13760_v60 }
 0x3df   : > { %v3352_v59 = vadd.f32 %v15075_v63, %v3351_v27  ;;  %v11825_v38 = vpop.f32.mrb[137].mxu1 }
 0x3e0   : > { %v3862_v34 = vld [vmem:[#allocation2 + $0x108] sm:$0xff]  ;;  %v15354_v38 = vld [vmem:[#allocation2 + $0xd1] sm:$0xff] }
 0x3e1   : > { %3398 = vst.msk [vmem:[#allocation2 + $0x118] sm:$0xff] %vm2165_vm9, %v3352_v59  ;;  %11948 = vmatmul.mubr.msk.f32.vlgmr.msra.gmra.mrb[172].mxu1 %vm2165_vm9, %v3862_v34  ;;  %11985 = vmatmul.mubr.msk.f32.gmra.mrb[96].mxu0 %vm2165_vm9, %v15215_v1  ;;  %v15352_v59 = vld [vmem:[#allocation2 + $0x69] sm:$0xff] }
 0x3e2   : > { %v3356_v36 = vpop.f32.mrb[138].mxu1  ;;  %11950 = vmatprep.mubr.msk.f32.mxu1 %vm13759_vm8, %v13760_v60  ;;  %11987 = vmatprep.mubr.msk.f32.mxu0 %vm13759_vm8, %v13760_v60 }
 0x3e3   : > { %v3357_v63 = vadd.f32 %v15083_v10, %v3356_v36  ;;  %v11828_v53 = vpop.f32.mrb[139].mxu1  ;;  %13235 = vmatpush3.bf16.msra.mxu1 %v13234_v52  ;;  %v15366_v36 = vld [vmem:[#allocation2 + $0x71] sm:$0xff] }
 0x3e4   : > { %v3863_v45 = vld [vmem:[#allocation2 + $0x110] sm:$0xff]  ;;  %13239 = vmatprep.subr.bf16.mxu1 %v13758_v26 }
 0x3e5   : > { %3399 = vst.msk [vmem:[#allocation2 + $0x120] sm:$0xff] %vm2165_vm9, %v3357_v63  ;;  %11951 = vmatmul.mubr.msk.f32.gmra.mrb[174].mxu1 %vm2165_vm9, %v3863_v45  ;;  %11988 = vmatmul.mubr.msk.f32.gmra.mrb[98].mxu0 %vm2165_vm9, %v15226_v56  ;;  %v15368_v63 = vld [vmem:[#allocation2 + $0xd9] sm:$0xff]  ;;  %v4494_v17 = vld [vmem:[#allocation2 + $0x109] sm:$0xff] }
 0x3e6   : > { %v3361_v18 = vpop.f32.mrb[140].mxu1  ;;  %11953 = vmatprep.mubr.msk.f32.mxu1 %vm13759_vm8, %v13760_v60  ;;  %11990 = vmatprep.mubr.msk.f32.mxu0 %vm13759_vm8, %v13760_v60 }
 0x3e7   : > { %v3362_v10 = vadd.f32 %v15090_v14, %v3361_v18  ;;  %v11831_v41 = vpop.f32.mrb[141].mxu1  ;;  %v15380_v18 = vld [vmem:[#allocation2 + $0x79] sm:$0xff] }
 0x3e8   : > { %v3864_v57 = vld [vmem:[#allocation2 + $0x118] sm:$0xff] }
 0x3e9   : > { %3400 = vst.msk [vmem:[#allocation2 + $0x128] sm:$0xff] %vm2165_vm9, %v3362_v10  ;;  %11954 = vmatmul.mubr.msk.f32.gmra.mrb[176].mxu1 %vm2165_vm9, %v3864_v57  ;;  %11991 = vmatmul.mubr.msk.f32.gmra.mrb[100].mxu0 %vm2165_vm9, %v15238_v6  ;;  %v15382_v10 = vld [vmem:[#allocation2 + $0xe1] sm:$0xff] }
 0x3ea   : > { %v3366_v58 = vpop.f32.mrb[142].mxu1  ;;  %11956 = vmatprep.mubr.msk.f32.mxu1 %vm13759_vm8, %v13760_v60  ;;  %11993 = vmatprep.mubr.msk.f32.mxu0 %vm13759_vm8, %v13760_v60 }
 0x3eb   : > { %v3367_v14 = vadd.f32 %v15097_v54, %v3366_v58  ;;  %v11834_v61 = vpop.f32.mrb[143].mxu1  ;;  %v15394_v58 = vld [vmem:[#allocation2 + $0x81] sm:$0xff] }
 0x3ec   : > { %v3865_v62 = vld [vmem:[#allocation2 + $0x120] sm:$0xff] }
 0x3ed   : > { %3401 = vst.msk [vmem:[#allocation2 + $0x130] sm:$0xff] %vm2165_vm9, %v3367_v14  ;;  %11957 = vmatmul.mubr.msk.f32.gmra.mrb[178].mxu1 %vm2165_vm9, %v3865_v62  ;;  %11994 = vmatmul.mubr.msk.f32.gmra.mrb[102].mxu0 %vm2165_vm9, %v15249_v0  ;;  %v15396_v14 = vld [vmem:[#allocation2 + $0xe9] sm:$0xff] }
 0x3ee   : > { %v3371_v2 = vpop.f32.mrb[144].mxu1  ;;  %11959 = vmatprep.mubr.msk.f32.mxu1 %vm13759_vm8, %v13760_v60  ;;  %11996 = vmatprep.mubr.msk.f32.mxu0 %vm13759_vm8, %v13760_v60 }
 0x3ef   : > { %v3372_v54 = vadd.f32 %v15104_v35, %v3371_v2  ;;  %v11837_v4 = vpop.f32.mrb[145].mxu1  ;;  %v15408_v2 = vld [vmem:[#allocation2 + $0x89] sm:$0xff] }
 0x3f0   : > { %v3866_v7 = vld [vmem:[#allocation2 + $0x128] sm:$0xff]  ;;  %v10161_v4 = vld [vmem:[%s16915_s4 + $0xa0] sm:$0xff] }
 0x3f1   : > { %3402 = vst.msk [vmem:[#allocation2 + $0x138] sm:$0xff] %vm2165_vm9, %v3372_v54  ;;  %11960 = vmatmul.mubr.msk.f32.gmra.mrb[180].mxu1 %vm2165_vm9, %v3866_v7  ;;  %11997 = vmatmul.mubr.msk.f32.gmra.mrb[104].mxu0 %vm2165_vm9, %v15260_v42  ;;  %v15410_v54 = vld [vmem:[#allocation2 + $0xf1] sm:$0xff]  ;;  %v10162_v7 = vld [vmem:[%s16915_s4 + $0xa8] sm:$0xff] }
 0x3f2   : > { %v3376_v8 = vpop.f32.mrb[146].mxu1  ;;  %11962 = vmatprep.mubr.msk.f32.mxu1 %vm13759_vm8, %v13760_v60  ;;  %11999 = vmatprep.mubr.msk.f32.mxu0 %vm13759_vm8, %v13760_v60 }
 0x3f3   : > { %v3377_v35 = vadd.f32 %v15111_v19, %v3376_v8  ;;  %v11840_v9 = vpop.f32.mrb[147].mxu1 }
 0x3f4   : > { %v3867_v44 = vld [vmem:[#allocation2 + $0x130] sm:$0xff]  ;;  %v13249_v9 = vpack.c.bf16 %v10162_v7, %v10161_v4 }
 0x3f5   : > { %3403 = vst.msk [vmem:[#allocation2 + $0x140] sm:$0xff] %vm2165_vm9, %v3377_v35  ;;  %11963 = vmatmul.mubr.msk.f32.gmra.mrb[182].mxu1 %vm2165_vm9, %v3867_v44  ;;  %12000 = vmatmul.mubr.msk.f32.gmra.mrb[106].mxu0 %vm2165_vm9, %v15271_v47  ;;  %v15428_v44 = vld [vmem:[#allocation2 + $0x91] sm:$0xff] }
 0x3f6   : > { %v3381_v12 = vpop.f32.mrb[148].mxu1  ;;  %11965 = vmatprep.mubr.msk.f32.mxu1 %vm13759_vm8, %v13760_v60  ;;  %12002 = vmatprep.mubr.msk.f32.mxu0 %vm13759_vm8, %v13760_v60 }
 0x3f7   : > { %v3382_v19 = vadd.f32 %v15118_v51, %v3381_v12  ;;  %v11843_v50 = vpop.f32.mrb[149].mxu1 }
 0x3f8   : > { %v3868_v13 = vld [vmem:[#allocation2 + $0x138] sm:$0xff] }
 0x3f9   : > { %3404 = vst.msk [vmem:[#allocation2 + $0x148] sm:$0xff] %vm2165_vm9, %v3382_v19  ;;  %11966 = vmatmul.mubr.msk.f32.gmra.mrb[184].mxu1 %vm2165_vm9, %v3868_v13  ;;  %12003 = vmatmul.mubr.msk.f32.gmra.mrb[108].mxu0 %vm2165_vm9, %v15282_v11  ;;  %v15440_v50 = vld [vmem:[#allocation2 + $0x99] sm:$0xff]  ;;  %v10150_v13 = vld [vmem:[%s16915_s4 + $0x90] sm:$0xff] }
 0x3fa   : > { %v3386_v51 = vpop.f32.mrb[150].mxu1  ;;  %11968 = vmatprep.mubr.msk.f32.mxu1 %vm13759_vm8, %v13760_v60  ;;  %12040 = vmatprep.mubr.msk.f32.mxu0 %vm13759_vm8, %v13760_v60 }
 0x3fb   : > { %v3387_v20 = vadd.f32 %v15125_v43, %v3386_v51  ;;  %v11846_v22 = vpop.f32.mrb[151].mxu1  ;;  %v10128_v43 = vld [vmem:[%s16915_s4 + $0x70] sm:$0xff]  ;;  %v15475_v51 = vld [vmem:[#allocation2 + $0x119] sm:$0xff] }
 0x3fc   : > { %v3869_v23 = vld [vmem:[#allocation2 + $0x140] sm:$0xff]  ;;  %v13240_v39 = vpack.c.bf16 %v10129_v37, %v10128_v43 }
 0x3fd   : > { %3405 = vst.msk [vmem:[#allocation2 + $0x150] sm:$0xff] %vm2165_vm9, %v3387_v20  ;;  %11969 = vmatmul.mubr.msk.f32.gmra.mrb[186].mxu1 %vm2165_vm9, %v3869_v23  ;;  %12041 = vmatmul.mubr.msk.f32.vlgmr.msra.gmra.mrb[110].mxu0 %vm2165_vm9, %v4336_v29 }
 0x3fe   : > { %v3391_v30 = vpop.f32.mrb[152].mxu1  ;;  %11971 = vmatprep.mubr.msk.f32.mxu1 %vm13759_vm8, %v13760_v60  ;;  %12043 = vmatprep.mubr.msk.f32.mxu0 %vm13759_vm8, %v13760_v60 }
 0x3ff   : > { %v11849_v31 = vpop.f32.mrb[153].mxu1  ;;  %13244 = vmatpush3.bf16.msra.mxu0 %v13243_v3  ;;  %v3392_v32 = vadd.f32 %v15145_v55, %v3391_v30  ;;  %v15488_v3 = vld [vmem:[#allocation2 + $0x121] sm:$0xff]  ;;  %v15501_v30 = vld [vmem:[#allocation2 + $0x129] sm:$0xff] }
 0x400   : > { %v3870_v48 = vld [vmem:[#allocation2 + $0x148] sm:$0xff]  ;;  %13248 = vmatprep.subr.bf16.mxu0 %v13758_v26 }
 0x401   : > { %11972 = vmatmul.mubr.msk.f32.gmra.mrb[188].mxu1 %vm2165_vm9, %v3870_v48  ;;  %12044 = vmatmul.mubr.msk.f32.gmra.mrb[112].mxu0 %vm2165_vm9, %v15310_v33  ;;  %3406 = vst.msk [vmem:[#allocation2 + $0x158] sm:$0xff] %vm2165_vm9, %v3392_v32  ;;  %v15514_v32 = vld [vmem:[#allocation2 + $0x131] sm:$0xff] }
 0x402   : > { %v15320_v40 = vpop.f32.mrb[154].mxu1  ;;  %12009 = vmatprep.mubr.msk.f32.mxu1 %vm13759_vm8, %v13760_v60  ;;  %12046 = vmatprep.mubr.msk.f32.mxu0 %vm13759_vm8, %v13760_v60 }
 0x403   : > { %v11887_v55 = vpop.f32.mrb[155].mxu1 }
 0x404   : > { %v15527_v55 = vld [vmem:[#allocation2 + $0x139] sm:$0xff] }
 0x405   : > { %12010 = vmatmul.mubr.msk.f32.vlgmr.msra.gmra.mrb[190].mxu1 %vm2165_vm9, %v4178_v5  ;;  %12047 = vmatmul.mubr.msk.f32.gmra.mrb[114].mxu0 %vm2165_vm9, %v15326_v21  ;;  %v10184_v5 = vld [vmem:[%s16915_s4 + $0xc8] sm:$0xff] }
 0x406   : > { %v15331_v24 = vpop.f32.mrb[156].mxu1  ;;  %12012 = vmatprep.mubr.msk.f32.mxu1 %vm13759_vm8, %v13760_v60  ;;  %12049 = vmatprep.mubr.msk.f32.mxu0 %vm13759_vm8, %v13760_v60 }
 0x407   : > { %v11890_v46 = vpop.f32.mrb[157].mxu1  ;;  %13241 = vmatpush3.bf16.msra.mxu1 %v13240_v39  ;;  %v10183_v39 = vld [vmem:[%s16915_s4 + $0xc0] sm:$0xff] }
 0x408   : > { %13245 = vmatprep.subr.bf16.mxu1 %v13758_v26  ;;  %v13255_v46 = vpack.c.bf16 %v10184_v5, %v10183_v39  ;;  %v5603_v39 = vld [vmem:[#allocation2 + $0xd2] sm:$0xff] }
 0x409   : > { %12013 = vmatmul.mubr.msk.f32.gmra.mrb[192].mxu1 %vm2165_vm9, %v15337_v28  ;;  %12050 = vmatmul.mubr.msk.f32.gmra.mrb[116].mxu0 %vm2165_vm9, %v15339_v25 }
 0x40a   : > { %v15346_v16 = vpop.f32.mrb[158].mxu1  ;;  %12015 = vmatprep.mubr.msk.f32.mxu1 %vm13759_vm8, %v13760_v60  ;;  %12052 = vmatprep.mubr.msk.f32.mxu0 %vm13759_vm8, %v13760_v60 }
 0x40b   : > { %v11893_v27 = vpop.f32.mrb[159].mxu1 }
 0x40c   : > { %v15545_v27 = vld [vmem:[#allocation2 + $0x141] sm:$0xff] }
 0x40d   : > { %12016 = vmatmul.mubr.msk.f32.gmra.mrb[194].mxu1 %vm2165_vm9, %v15352_v59  ;;  %12053 = vmatmul.mubr.msk.f32.gmra.mrb[118].mxu0 %vm2165_vm9, %v15354_v38 }
 0x40e   : > { %v15360_v52 = vpop.f32.mrb[160].mxu1  ;;  %12018 = vmatprep.mubr.msk.f32.mxu1 %vm13759_vm8, %v13760_v60  ;;  %12055 = vmatprep.mubr.msk.f32.mxu0 %vm13759_vm8, %v13760_v60 }
 0x40f   : > { %v11896_v34 = vpop.f32.mrb[161].mxu1 }
 0x411   : > { %12019 = vmatmul.mubr.msk.f32.gmra.mrb[196].mxu1 %vm2165_vm9, %v15366_v36  ;;  %12056 = vmatmul.mubr.msk.f32.gmra.mrb[120].mxu0 %vm2165_vm9, %v15368_v63 }
 0x412   : > { %v15374_v53 = vpop.f32.mrb[162].mxu1  ;;  %12021 = vmatprep.mubr.msk.f32.mxu1 %vm13759_vm8, %v13760_v60  ;;  %12058 = vmatprep.mubr.msk.f32.mxu0 %vm13759_vm8, %v13760_v60 }
 0x413   : > { %v11899_v45 = vpop.f32.mrb[163].mxu1 }
 0x414   : > { %v15558_v45 = vld [vmem:[#allocation2 + $0x149] sm:$0xff] }
 0x415   : > { %12022 = vmatmul.mubr.msk.f32.gmra.mrb[198].mxu1 %vm2165_vm9, %v15380_v18  ;;  %12059 = vmatmul.mubr.msk.f32.gmra.mrb[122].mxu0 %vm2165_vm9, %v15382_v10 }
 0x416   : > { %v15388_v41 = vpop.f32.mrb[164].mxu1  ;;  %12024 = vmatprep.mubr.msk.f32.mxu1 %vm13759_vm8, %v13760_v60  ;;  %12061 = vmatprep.mubr.msk.f32.mxu0 %vm13759_vm8, %v13760_v60 }
 0x417   : > { %v11902_v57 = vpop.f32.mrb[165].mxu1 }
 0x418   : > { %v10173_v57 = vld [vmem:[%s16915_s4 + $0xb8] sm:$0xff] }
 0x419   : > { %12025 = vmatmul.mubr.msk.f32.gmra.mrb[200].mxu1 %vm2165_vm9, %v15394_v58  ;;  %12062 = vmatmul.mubr.msk.f32.gmra.mrb[124].mxu0 %vm2165_vm9, %v15396_v14 }
 0x41a   : > { %v15402_v61 = vpop.f32.mrb[166].mxu1  ;;  %12027 = vmatprep.mubr.msk.f32.mxu1 %vm13759_vm8, %v13760_v60  ;;  %12064 = vmatprep.mubr.msk.f32.mxu0 %vm13759_vm8, %v13760_v60 }
 0x41b   : > { %v11905_v62 = vpop.f32.mrb[167].mxu1 }
 0x41d   : > { %12028 = vmatmul.mubr.msk.f32.gmra.mrb[202].mxu1 %vm2165_vm9, %v15408_v2  ;;  %12065 = vmatmul.mubr.msk.f32.gmra.mrb[126].mxu0 %vm2165_vm9, %v15410_v54 }
 0x41e   : > { %v15422_v8 = vpop.f32.mrb[168].mxu1  ;;  %12030 = vmatprep.mubr.msk.f32.mxu1 %vm13759_vm8, %v13760_v60  ;;  %12102 = vmatprep.mubr.msk.f32.mxu0 %vm13759_vm8, %v13760_v60 }
 0x41f   : > { %v11908_v35 = vpop.f32.mrb[169].mxu1 }
 0x421   : > { %12031 = vmatmul.mubr.msk.f32.gmra.mrb[204].mxu1 %vm2165_vm9, %v15428_v44  ;;  %12103 = vmatmul.mubr.msk.f32.vlgmr.msra.gmra.mrb[128].mxu0 %vm2165_vm9, %v15201_v49  ;;  %v10151_v49 = vld [vmem:[%s16915_s4 + $0x98] sm:$0xff] }
 0x422   : > { %v15434_v12 = vpop.f32.mrb[170].mxu1  ;;  %12033 = vmatprep.mubr.msk.f32.mxu1 %vm13759_vm8, %v13760_v60  ;;  %12105 = vmatprep.mubr.msk.f32.mxu0 %vm13759_vm8, %v13760_v60  ;;  %v13246_v15 = vpack.c.bf16 %v10151_v49, %v10150_v13  ;;  %v5292_v49 = vld [vmem:[#allocation2 + $0x4a] sm:$0xff] }
 0x423   : > { %v11911_v19 = vpop.f32.mrb[171].mxu1  ;;  %13250 = vmatpush3.bf16.msra.mxu0 %v13249_v9 }
 0x424   : > { %13254 = vmatprep.subr.bf16.mxu0 %v13758_v26  ;;  %v5290_v19 = vld [vmem:[#allocation2 + $0x3a] sm:$0xff] }
 0x425   : > { %12034 = vmatmul.mubr.msk.f32.gmra.mrb[206].mxu1 %vm2165_vm9, %v15440_v50  ;;  %12106 = vmatmul.mubr.msk.f32.gmra.mrb[130].mxu0 %vm2165_vm9, %v15215_v1  ;;  %v15464_v1 = vld [vmem:[#allocation2 + $0x111] sm:$0xff] }
 0x426   : > { %12071 = vmatprep.mubr.msk.f32.mxu1 %vm13759_vm8, %v13760_v60  ;;  %12108 = vmatprep.mubr.msk.f32.mxu0 %vm13759_vm8, %v13760_v60 }
 0x429   : > { %12072 = vmatmul.mubr.msk.f32.vlgmr.msra.gmra.mrb[208].mxu1 %vm2165_vm9, %v4494_v17  ;;  %12109 = vmatmul.mubr.msk.f32.gmra.mrb[132].mxu0 %vm2165_vm9, %v15226_v56 }
 0x42a   : > { %12074 = vmatprep.mubr.msk.f32.mxu1 %vm13759_vm8, %v13760_v60  ;;  %12111 = vmatprep.mubr.msk.f32.mxu0 %vm13759_vm8, %v13760_v60 }
 0x42b   : > { %13247 = vmatpush3.bf16.msra.mxu1 %v13246_v15 }
 0x42c   : > { %13251 = vmatprep.subr.bf16.mxu1 %v13758_v26 }
 0x42d   : > { %12075 = vmatmul.mubr.msk.f32.gmra.mrb[210].mxu1 %vm2165_vm9, %v15464_v1  ;;  %12112 = vmatmul.mubr.msk.f32.gmra.mrb[134].mxu0 %vm2165_vm9, %v15238_v6 }
 0x42e   : > { %12077 = vmatprep.mubr.msk.f32.mxu1 %vm13759_vm8, %v13760_v60  ;;  %12114 = vmatprep.mubr.msk.f32.mxu0 %vm13759_vm8, %v13760_v60 }
 0x430   : > { %v3523_v56 = vpop.f32.mrb[56].mxu0 }
 0x431   : > { %v15478_v20 = vadd.f32 %v15320_v40, %v3523_v56  ;;  %v11856_v22 = vpop.f32.mrb[57].mxu0  ;;  %12078 = vmatmul.mubr.msk.f32.gmra.mrb[212].mxu1 %vm2165_vm9, %v15475_v51  ;;  %12115 = vmatmul.mubr.msk.f32.gmra.mrb[136].mxu0 %vm2165_vm9, %v15249_v0  ;;  %v5600_v56 = vld [vmem:[#allocation2 + $0xba] sm:$0xff] }
 0x432   : > { %12080 = vmatprep.mubr.msk.f32.mxu1 %vm13759_vm8, %v13760_v60  ;;  %12117 = vmatprep.mubr.msk.f32.mxu0 %vm13759_vm8, %v13760_v60 }
 0x434   : > { %v3528_v6 = vpop.f32.mrb[58].mxu0 }
 0x435   : > { %v15491_v23 = vadd.f32 %v15331_v24, %v3528_v6  ;;  %v11859_v29 = vpop.f32.mrb[59].mxu0  ;;  %12081 = vmatmul.mubr.msk.f32.gmra.mrb[214].mxu1 %vm2165_vm9, %v15488_v3  ;;  %12118 = vmatmul.mubr.msk.f32.gmra.mrb[138].mxu0 %vm2165_vm9, %v15260_v42 }
 0x436   : > { %12083 = vmatprep.mubr.msk.f32.mxu1 %vm13759_vm8, %v13760_v60  ;;  %12120 = vmatprep.mubr.msk.f32.mxu0 %vm13759_vm8, %v13760_v60  ;;  %v10217_v29 = vld [vmem:[%s16915_s4 + $0xf8] sm:$0xff] }
 0x438   : > { %v3533_v0 = vpop.f32.mrb[60].mxu0 }
 0x439   : > { %v15504_v31 = vadd.f32 %v15346_v16, %v3533_v0  ;;  %v11862_v43 = vpop.f32.mrb[61].mxu0  ;;  %12084 = vmatmul.mubr.msk.f32.gmra.mrb[216].mxu1 %vm2165_vm9, %v15501_v30  ;;  %12121 = vmatmul.mubr.msk.f32.gmra.mrb[140].mxu0 %vm2165_vm9, %v15271_v47  ;;  %v4660_v47 = vld [vmem:[#allocation2 + $0x49] sm:$0xff] }
 0x43a   : > { %12086 = vmatprep.mubr.msk.f32.mxu1 %vm13759_vm8, %v13760_v60  ;;  %12123 = vmatprep.mubr.msk.f32.mxu0 %vm13759_vm8, %v13760_v60 }
 0x43c   : > { %v3538_v42 = vpop.f32.mrb[62].mxu0 }
 0x43d   : > { %v15517_v48 = vadd.f32 %v15360_v52, %v3538_v42  ;;  %v11865_v37 = vpop.f32.mrb[63].mxu0  ;;  %12087 = vmatmul.mubr.msk.f32.gmra.mrb[218].mxu1 %vm2165_vm9, %v15514_v32  ;;  %12124 = vmatmul.mubr.msk.f32.gmra.mrb[142].mxu0 %vm2165_vm9, %v15282_v11 }
 0x43e   : > { %12089 = vmatprep.mubr.msk.f32.mxu1 %vm13759_vm8, %v13760_v60  ;;  %12126 = vmatprep.mubr.msk.f32.mxu0 %vm13759_vm8, %v13760_v60  ;;  %v5602_v37 = vld [vmem:[#allocation2 + $0xca] sm:$0xff] }
 0x440   : > { %v3543_v40 = vpop.f32.mrb[64].mxu0 }
 0x441   : > { %v15536_v11 = vadd.f32 %v15374_v53, %v3543_v40  ;;  %v11868_v24 = vpop.f32.mrb[65].mxu0  ;;  %12090 = vmatmul.mubr.msk.f32.gmra.mrb[220].mxu1 %vm2165_vm9, %v15527_v55  ;;  %12127 = vmatmul.mubr.msk.f32.gmra.mrb[144].mxu0 %vm2165_vm9, %v4660_v47 }
 0x442   : > { %12092 = vmatprep.mubr.msk.f32.mxu1 %vm13759_vm8, %v13760_v60  ;;  %12164 = vmatprep.mubr.msk.f32.mxu0 %vm13759_vm8, %v13760_v60 }
 0x444   : > { %v3548_v16 = vpop.f32.mrb[66].mxu0 }
 0x445   : > { %v15548_v52 = vadd.f32 %v15388_v41, %v3548_v16  ;;  %v11871_v34 = vpop.f32.mrb[67].mxu0  ;;  %12093 = vmatmul.mubr.msk.f32.gmra.mrb[222].mxu1 %vm2165_vm9, %v15545_v27  ;;  %12165 = vmatmul.mubr.msk.f32.vlgmr.msra.gmra.mrb[146].mxu0 %vm2165_vm9, %v15310_v33  ;;  %v10172_v41 = vld [vmem:[%s16915_s4 + $0xb0] sm:$0xff]  ;;  %v5604_v16 = vld [vmem:[#allocation2 + $0xda] sm:$0xff] }
 0x446   : > { %12095 = vmatprep.mubr.msk.f32.mxu1 %vm13759_vm8, %v13760_v60  ;;  %12167 = vmatprep.mubr.msk.f32.mxu0 %vm13759_vm8, %v13760_v60  ;;  %v13252_v4 = vpack.c.bf16 %v10173_v57, %v10172_v41 }
 0x447   : > { %13256 = vmatpush3.bf16.msra.mxu0 %v13255_v46  ;;  %v5444_v46 = vld [vmem:[#allocation2 + $0x72] sm:$0xff] }
 0x448   : > { %v3553_v53 = vpop.f32.mrb[68].mxu0  ;;  %13260 = vmatprep.subr.bf16.mxu0 %v13758_v26 }
 0x449   : > { %v15568_v33 = vadd.f32 %v15402_v61, %v3553_v53  ;;  %v11874_v62 = vpop.f32.mrb[69].mxu0  ;;  %12096 = vmatmul.mubr.msk.f32.gmra.mrb[224].mxu1 %vm2165_vm9, %v15558_v45  ;;  %12168 = vmatmul.mubr.msk.f32.gmra.mrb[148].mxu0 %vm2165_vm9, %v15326_v21  ;;  %v5445_v53 = vld [vmem:[#allocation2 + $0x7a] sm:$0xff] }
 0x44a   : > { %12133 = vmatprep.mubr.msk.f32.mxu1 %vm13759_vm8, %v13760_v60  ;;  %12170 = vmatprep.mubr.msk.f32.mxu0 %vm13759_vm8, %v13760_v60  ;;  %v5446_v62 = vld [vmem:[#allocation2 + $0x82] sm:$0xff] }
 0x44c   : > { %v3558_v7 = vpop.f32.mrb[70].mxu0 }
 0x44d   : > { %v15579_v35 = vadd.f32 %v15422_v8, %v3558_v7  ;;  %v11877_v61 = vpop.f32.mrb[71].mxu0  ;;  %12134 = vmatmul.mubr.msk.f32.vlgmr.msra.gmra.mrb[226].mxu1 %vm2165_vm9, %v15337_v28  ;;  %12171 = vmatmul.mubr.msk.f32.gmra.mrb[150].mxu0 %vm2165_vm9, %v15339_v25  ;;  %v4976_v28 = vld [vmem:[#allocation2 + $0xf9] sm:$0xff] }
 0x44e   : > { %12136 = vmatprep.mubr.msk.f32.mxu1 %vm13759_vm8, %v13760_v60  ;;  %12173 = vmatprep.mubr.msk.f32.mxu0 %vm13759_vm8, %v13760_v60  ;;  %v10205_v25 = vld [vmem:[%s16915_s4 + $0xe0] sm:$0xff] }
 0x44f   : > { %13253 = vmatpush3.bf16.msra.mxu1 %v13252_v4  ;;  %v5606_v4 = vld [vmem:[#allocation2 + $0xea] sm:$0xff] }
 0x450   : > { %v3563_v21 = vpop.f32.mrb[72].mxu0  ;;  %13257 = vmatprep.subr.bf16.mxu1 %v13758_v26 }
 0x451   : > { %v15591_v8 = vadd.f32 %v15434_v12, %v3563_v21  ;;  %v11880_v9 = vpop.f32.mrb[73].mxu0  ;;  %12137 = vmatmul.mubr.msk.f32.gmra.mrb[228].mxu1 %vm2165_vm9, %v15352_v59  ;;  %12174 = vmatmul.mubr.msk.f32.gmra.mrb[152].mxu0 %vm2165_vm9, %v15354_v38  ;;  %v10206_v59 = vld [vmem:[%s16915_s4 + $0xe8] sm:$0xff]  ;;  %v5289_v12 = vld [vmem:[#allocation2 + $0x32] sm:$0xff] }
 0x452   : > { %12139 = vmatprep.mubr.msk.f32.mxu1 %vm13759_vm8, %v13760_v60  ;;  %12176 = vmatprep.mubr.msk.f32.mxu0 %vm13759_vm8, %v13760_v60  ;;  %v13261_v38 = vpack.c.bf16 %v10206_v59, %v10205_v25  ;;  %v5447_v21 = vld [vmem:[#allocation2 + $0x8a] sm:$0xff]  ;;  %v5607_v9 = vld [vmem:[#allocation2 + $0xf2] sm:$0xff] }
 0x453   : > { %v5448_v59 = vld [vmem:[#allocation2 + $0x92] sm:$0xff] }
 0x455   : > { %12140 = vmatmul.mubr.msk.f32.gmra.mrb[230].mxu1 %vm2165_vm9, %v15366_v36  ;;  %12177 = vmatmul.mubr.msk.f32.gmra.mrb[154].mxu0 %vm2165_vm9, %v15368_v63  ;;  %v5284_v36 = vld [vmem:[#allocation2 + $0xa] sm:$0xff]  ;;  %v5285_v63 = vld [vmem:[#allocation2 + $0x12] sm:$0xff] }
 0x456   : > { %12142 = vmatprep.mubr.msk.f32.mxu1 %vm13759_vm8, %v13760_v60  ;;  %12179 = vmatprep.mubr.msk.f32.mxu0 %vm13759_vm8, %v13760_v60 }
 0x459   : > { %12143 = vmatmul.mubr.msk.f32.gmra.mrb[232].mxu1 %vm2165_vm9, %v15380_v18  ;;  %12180 = vmatmul.mubr.msk.f32.gmra.mrb[156].mxu0 %vm2165_vm9, %v15382_v10  ;;  %v4818_v18 = vld [vmem:[#allocation2 + $0xa1] sm:$0xff]  ;;  %v10194_v10 = vld [vmem:[%s16915_s4 + $0xd0] sm:$0xff] }
 0x45a   : > { %12145 = vmatprep.mubr.msk.f32.mxu1 %vm13759_vm8, %v13760_v60  ;;  %12182 = vmatprep.mubr.msk.f32.mxu0 %vm13759_vm8, %v13760_v60 }
 0x45d   : > { %12146 = vmatmul.mubr.msk.f32.gmra.mrb[234].mxu1 %vm2165_vm9, %v15394_v58  ;;  %12183 = vmatmul.mubr.msk.f32.gmra.mrb[158].mxu0 %vm2165_vm9, %v15396_v14  ;;  %v10195_v58 = vld [vmem:[%s16915_s4 + $0xd8] sm:$0xff] }
 0x45e   : > { %12148 = vmatprep.mubr.msk.f32.mxu1 %vm13759_vm8, %v13760_v60  ;;  %12185 = vmatprep.mubr.msk.f32.mxu0 %vm13759_vm8, %v13760_v60  ;;  %v13258_v14 = vpack.c.bf16 %v10195_v58, %v10194_v10 }
 0x461   : > { %12149 = vmatmul.mubr.msk.f32.gmra.mrb[236].mxu1 %vm2165_vm9, %v15408_v2  ;;  %12186 = vmatmul.mubr.msk.f32.gmra.mrb[160].mxu0 %vm2165_vm9, %v15410_v54  ;;  %v5286_v2 = vld [vmem:[#allocation2 + $0x1a] sm:$0xff]  ;;  %v5287_v54 = vld [vmem:[#allocation2 + $0x22] sm:$0xff] }
 0x462   : > { %12151 = vmatprep.mubr.msk.f32.mxu1 %vm13759_vm8, %v13760_v60  ;;  %12188 = vmatprep.mubr.msk.f32.mxu0 %vm13759_vm8, %v13760_v60 }
 0x465   : > { %12152 = vmatmul.mubr.msk.f32.gmra.mrb[238].mxu1 %vm2165_vm9, %v15428_v44  ;;  %12189 = vmatmul.mubr.msk.f32.gmra.mrb[162].mxu0 %vm2165_vm9, %v4976_v28  ;;  %v5288_v44 = vld [vmem:[#allocation2 + $0x2a] sm:$0xff] }
 0x466   : > { %12154 = vmatprep.mubr.msk.f32.mxu1 %vm13759_vm8, %v13760_v60  ;;  %12226 = vmatprep.mubr.msk.f32.mxu0 %vm13759_vm8, %v13760_v60 }
 0x469   : > { %12155 = vmatmul.mubr.msk.f32.gmra.mrb[240].mxu1 %vm2165_vm9, %v15440_v50  ;;  %12227 = vmatmul.mubr.msk.f32.vlgmr.msra.gmra.mrb[164].mxu0 %vm2165_vm9, %v5284_v36  ;;  %v5291_v50 = vld [vmem:[#allocation2 + $0x42] sm:$0xff] }
 0x46a   : > { %12157 = vmatprep.mubr.msk.f32.mxu1 %vm13759_vm8, %v13760_v60  ;;  %12229 = vmatprep.mubr.msk.f32.mxu0 %vm13759_vm8, %v13760_v60 }
 0x46b   : > { %13262 = vmatpush3.bf16.msra.mxu0 %v13261_v38  ;;  %v5608_v38 = vld [vmem:[#allocation2 + $0xfa] sm:$0xff] }
 0x46d   : > { %12158 = vmatmul.mubr.msk.f32.gmra.mrb[242].mxu1 %vm2165_vm9, %v4818_v18  ;;  %12230 = vmatmul.mubr.msk.f32.gmra.mrb[166].mxu0 %vm2165_vm9, %v5285_v63  ;;  %v5449_v63 = vld [vmem:[#allocation2 + $0x9a] sm:$0xff] }
 0x46e   : > { %12195 = vmatprep.mubr.msk.f32.mxu1 %vm13759_vm8, %v13760_v60  ;;  %12232 = vmatprep.mubr.msk.f32.mxu0 %vm13759_vm8, %v13760_v60 }
 0x471   : > { %12196 = vmatmul.mubr.msk.f32.vlgmr.msra.gmra.mrb[244].mxu1 %vm2165_vm9, %v15464_v1  ;;  %12233 = vmatmul.mubr.msk.f32.gmra.mrb[168].mxu0 %vm2165_vm9, %v5286_v2 }
 0x472   : > { %12198 = vmatprep.mubr.msk.f32.mxu1 %vm13759_vm8, %v13760_v60  ;;  %12235 = vmatprep.mubr.msk.f32.mxu0 %vm13759_vm8, %v13760_v60 }
 0x473   : > { %13259 = vmatpush3.bf16.msra.mxu1 %v13258_v14  ;;  %v5450_v14 = vld [vmem:[#allocation2 + $0xa2] sm:$0xff] }
 0x474   : > { %13263 = vmatprep.subr.bf16.mxu1 %v13758_v26 }
 0x475   : > { %12199 = vmatmul.mubr.msk.f32.gmra.mrb[246].mxu1 %vm2165_vm9, %v15475_v51  ;;  %12236 = vmatmul.mubr.msk.f32.gmra.mrb[170].mxu0 %vm2165_vm9, %v5287_v54 }
 0x476   : > { %12201 = vmatprep.mubr.msk.f32.mxu1 %vm13759_vm8, %v13760_v60  ;;  %12238 = vmatprep.mubr.msk.f32.mxu0 %vm13759_vm8, %v13760_v60 }
 0x479   : > { %12202 = vmatmul.mubr.msk.f32.gmra.mrb[248].mxu1 %vm2165_vm9, %v15488_v3  ;;  %12239 = vmatmul.mubr.msk.f32.gmra.mrb[172].mxu0 %vm2165_vm9, %v5288_v44  ;;  %v5134_v3 = vld [vmem:[#allocation2 + $0x151] sm:$0xff] }
 0x47a   : > { %12204 = vmatprep.mubr.msk.f32.mxu1 %vm13759_vm8, %v13760_v60  ;;  %12241 = vmatprep.mubr.msk.f32.mxu0 %vm13759_vm8, %v13760_v60 }
 0x47d   : > { %12205 = vmatmul.mubr.msk.f32.gmra.mrb[250].mxu1 %vm2165_vm9, %v15501_v30  ;;  %12242 = vmatmul.mubr.msk.f32.gmra.mrb[174].mxu0 %vm2165_vm9, %v5289_v12 }
 0x47e   : > { %12207 = vmatprep.mubr.msk.f32.mxu1 %vm13759_vm8, %v13760_v60  ;;  %12244 = vmatprep.mubr.msk.f32.mxu0 %vm13759_vm8, %v13760_v60 }
 0x481   : > { %12208 = vmatmul.mubr.msk.f32.gmra.mrb[252].mxu1 %vm2165_vm9, %v15514_v32  ;;  %12245 = vmatmul.mubr.msk.f32.gmra.mrb[176].mxu0 %vm2165_vm9, %v5290_v19  ;;  %v5442_v32 = vld [vmem:[#allocation2 + $0x62] sm:$0xff] }
 0x482   : > { %12210 = vmatprep.mubr.msk.f32.mxu1 %vm13759_vm8, %v13760_v60  ;;  %12247 = vmatprep.mubr.msk.f32.mxu0 %vm13759_vm8, %v13760_v60 }
 0x485   : > { %12211 = vmatmul.mubr.msk.f32.gmra.mrb[254].mxu1 %vm2165_vm9, %v15527_v55  ;;  %12248 = vmatmul.mubr.msk.f32.gmra.mrb[178].mxu0 %vm2165_vm9, %v5291_v50  ;;  %v5443_v55 = vld [vmem:[#allocation2 + $0x6a] sm:$0xff] }
 0x486   : > { %12213 = vmatprep.mubr.msk.f32.mxu1 %vm13759_vm8, %v13760_v60  ;;  %12250 = vmatprep.mubr.msk.f32.mxu0 %vm13759_vm8, %v13760_v60 }
 0x488   : > { %v3809_v13 = vpop.f32.mrb[74].mxu0 }
 0x489   : > { %v15709_v15 = vadd.f32 %v3809_v13, %v15478_v20  ;;  %v11918_v17 = vpop.f32.mrb[75].mxu0  ;;  %12214 = vmatmul.mubr.msk.f32.gmra.mrb[0].mxu1 %vm2165_vm9, %v15545_v27  ;;  %12251 = vmatmul.mubr.msk.f32.gmra.mrb[180].mxu0 %vm2165_vm9, %v5292_v49  ;;  %v5601_v20 = vld [vmem:[#allocation2 + $0xc2] sm:$0xff]  ;;  %v5758_v13 = vld [vmem:[#allocation2 + $0x112] sm:$0xff] }
 0x48a   : > { %12216 = vmatprep.mubr.msk.f32.mxu1 %vm13759_vm8, %v13760_v60  ;;  %12288 = vmatprep.mubr.msk.f32.mxu0 %vm13759_vm8, %v13760_v60 }
 0x48c   : > { %v3814_v1 = vpop.f32.mrb[76].mxu0 }
 0x48d   : > { %v15719_v51 = vadd.f32 %v3814_v1, %v15491_v23  ;;  %v11921_v22 = vpop.f32.mrb[77].mxu0  ;;  %12217 = vmatmul.mubr.msk.f32.gmra.mrb[2].mxu1 %vm2165_vm9, %v15558_v45  ;;  %12289 = vmatmul.mubr.msk.f32.vlgmr.msra.gmra.mrb[182].mxu0 %vm2165_vm9, %v5600_v56  ;;  %v10216_v23 = vld [vmem:[%s16915_s4 + $0xf0] sm:$0xff]  ;;  %v5605_v45 = vld [vmem:[#allocation2 + $0xe2] sm:$0xff] }
 0x48e   : > { %12219 = vmatprep.mubr.msk.f32.mxu1 %vm13759_vm8, %v13760_v60  ;;  %12291 = vmatprep.mubr.msk.f32.mxu0 %vm13759_vm8, %v13760_v60  ;;  %v13264_v43 = vpack.c.bf16 %v10217_v29, %v10216_v23 }
 0x490   : > { %v3819_v6 = vpop.f32.mrb[78].mxu0 }
 0x491   : > { %v15735_v0 = vadd.f32 %v3819_v6, %v15504_v31  ;;  %v11924_v30 = vpop.f32.mrb[79].mxu0  ;;  %12220 = vmatmul.mubr.msk.f32.gmra.mrb[4].mxu1 %vm2165_vm9, %v5134_v3  ;;  %12292 = vmatmul.mubr.msk.f32.gmra.mrb[184].mxu0 %vm2165_vm9, %v5601_v20  ;;  %v5759_v20 = vld [vmem:[#allocation2 + $0x11a] sm:$0xff] }
 0x492   : > { %12257 = vmatprep.mubr.msk.f32.mxu1 %vm13759_vm8, %v13760_v60  ;;  %12294 = vmatprep.mubr.msk.f32.mxu0 %vm13759_vm8, %v13760_v60 }
 0x494   : > { %v3824_v42 = vpop.f32.mrb[80].mxu0 }
 0x495   : > { %v15744_v47 = vadd.f32 %v3824_v42, %v15517_v48  ;;  %v11927_v31 = vpop.f32.mrb[81].mxu0  ;;  %12258 = vmatmul.mubr.msk.f32.vlgmr.msra.gmra.mrb[6].mxu1 %vm2165_vm9, %v5442_v32  ;;  %12295 = vmatmul.mubr.msk.f32.gmra.mrb[186].mxu0 %vm2165_vm9, %v5602_v37 }
 0x496   : > { %12260 = vmatprep.mubr.msk.f32.mxu1 %vm13759_vm8, %v13760_v60  ;;  %12297 = vmatprep.mubr.msk.f32.mxu0 %vm13759_vm8, %v13760_v60 }
 0x497   : > { %13265 = vmatpush3.bf16.msra.mxu1 %v13264_v43  ;;  %v5760_v43 = vld [vmem:[#allocation2 + $0x122] sm:$0xff] }
 0x498   : > { %v3829_v40 = vpop.f32.mrb[82].mxu0 }
 0x499   : > { %v15753_v5 = vadd.f32 %v3829_v40, %v15536_v11  ;;  %v11930_v48 = vpop.f32.mrb[83].mxu0  ;;  %12261 = vmatmul.mubr.msk.f32.gmra.mrb[8].mxu1 %vm2165_vm9, %v5443_v55  ;;  %12298 = vmatmul.mubr.msk.f32.gmra.mrb[188].mxu0 %vm2165_vm9, %v5603_v39  ;;  %v5761_v55 = vld [vmem:[#allocation2 + $0x12a] sm:$0xff] }
 0x49a   : > { %12263 = vmatprep.mubr.msk.f32.mxu1 %vm13759_vm8, %v13760_v60  ;;  %12300 = vmatprep.mubr.msk.f32.mxu0 %vm13759_vm8, %v13760_v60 }
 0x49c   : > { %v3834_v24 = vpop.f32.mrb[84].mxu0 }
 0x49d   : > { %v15762_v27 = vadd.f32 %v3834_v24, %v15548_v52  ;;  %v11933_v34 = vpop.f32.mrb[85].mxu0  ;;  %12264 = vmatmul.mubr.msk.f32.gmra.mrb[10].mxu1 %vm2165_vm9, %v5444_v46  ;;  %12301 = vmatmul.mubr.msk.f32.gmra.mrb[190].mxu0 %vm2165_vm9, %v5604_v16 }
 0x49e   : > { %12266 = vmatprep.mubr.msk.f32.mxu1 %vm13759_vm8, %v13760_v60  ;;  %12303 = vmatprep.mubr.msk.f32.mxu0 %vm13759_vm8, %v13760_v60  ;;  %v5762_v34 = vld [vmem:[#allocation2 + $0x132] sm:$0xff] }
 0x4a0   : > { %v3839_v11 = vpop.f32.mrb[86].mxu0 }
 0x4a1   : > { %v15771_v41 = vadd.f32 %v3839_v11, %v15568_v33  ;;  %v11936_v57 = vpop.f32.mrb[87].mxu0  ;;  %12267 = vmatmul.mubr.msk.f32.gmra.mrb[12].mxu1 %vm2165_vm9, %v5445_v53  ;;  %12304 = vmatmul.mubr.msk.f32.gmra.mrb[192].mxu0 %vm2165_vm9, %v5605_v45 }
 0x4a2   : > { %12269 = vmatprep.mubr.msk.f32.mxu1 %vm13759_vm8, %v13760_v60  ;;  %12306 = vmatprep.mubr.msk.f32.mxu0 %vm13759_vm8, %v13760_v60 }
 0x4a4   : > { %v3844_v52 = vpop.f32.mrb[88].mxu0 }
 0x4a5   : > { %v15780_v7 = vadd.f32 %v3844_v52, %v15579_v35  ;;  %v11939_v61 = vpop.f32.mrb[89].mxu0  ;;  %12270 = vmatmul.mubr.msk.f32.gmra.mrb[14].mxu1 %vm2165_vm9, %v5446_v62  ;;  %12307 = vmatmul.mubr.msk.f32.gmra.mrb[194].mxu0 %vm2165_vm9, %v5606_v4  ;;  %v5763_v62 = vld [vmem:[#allocation2 + $0x13a] sm:$0xff] }
 0x4a6   : > { %12272 = vmatprep.mubr.msk.f32.mxu1 %vm13759_vm8, %v13760_v60  ;;  %12309 = vmatprep.mubr.msk.f32.mxu0 %vm13759_vm8, %v13760_v60 }
 0x4a8   : > { %v3849_v33 = vpop.f32.mrb[90].mxu0 }
 0x4a9   : > { %v15789_v28 = vadd.f32 %v3849_v33, %v15591_v8  ;;  %v11942_v25 = vpop.f32.mrb[91].mxu0  ;;  %12273 = vmatmul.mubr.msk.f32.gmra.mrb[16].mxu1 %vm2165_vm9, %v5447_v21  ;;  %12310 = vmatmul.mubr.msk.f32.gmra.mrb[196].mxu0 %vm2165_vm9, %v5607_v9 }
 0x4aa   : > { %12275 = vmatprep.mubr.msk.f32.mxu1 %vm13759_vm8, %v13760_v60  ;;  %12312 = vmatprep.mubr.msk.f32.mxu0 %vm13759_vm8, %v13760_v60  ;;  %v5764_v25 = vld [vmem:[#allocation2 + $0x142] sm:$0xff] }
 0x4ac   : > { %v4125_v35 = vpop.f32.mrb[92].mxu0 }
 0x4ad   : > { %v11980_v36 = vpop.f32.mrb[93].mxu0  ;;  %12276 = vmatmul.mubr.msk.f32.gmra.mrb[18].mxu1 %vm2165_vm9, %v5448_v59  ;;  %12313 = vmatmul.mubr.msk.f32.gmra.mrb[198].mxu0 %vm2165_vm9, %v5608_v38 }
 0x4ae   : > { %12278 = vmatprep.mubr.msk.f32.mxu1 %vm13759_vm8, %v13760_v60 }
 0x4b0   : > { %v4130_v8 = vpop.f32.mrb[94].mxu0 }
 0x4b1   : > { %v11983_v18 = vpop.f32.mrb[95].mxu0  ;;  %12279 = vmatmul.mubr.msk.f32.gmra.mrb[20].mxu1 %vm2165_vm9, %v5449_v63  ;;  %v5765_v63 = vld [vmem:[#allocation2 + $0x14a] sm:$0xff] }
 0x4b2   : > { %12281 = vmatprep.mubr.msk.f32.mxu1 %vm13759_vm8, %v13760_v60 }
 0x4b4   : > { %v3967_v10 = vpop.f32.mrb[172].mxu1  ;;  %v4135_v58 = vpop.f32.mrb[96].mxu0 }
 0x4b5   : > { %v4011_v2 = vadd.f32 %v3967_v10, %v15709_v15  ;;  %v11949_v54 = vpop.f32.mrb[173].mxu1  ;;  %v11986_v44 = vpop.f32.mrb[97].mxu0  ;;  %12282 = vmatmul.mubr.msk.f32.gmra.mrb[22].mxu1 %vm2165_vm9, %v5450_v14 }
 0x4b6   : > { %12319 = vmatprep.mubr.msk.f32.mxu1 %vm13759_vm8, %v13760_v60  ;;  %v5766_v54 = vld [vmem:[#allocation2 + $0x152] sm:$0xff] }
 0x4b7   : > { %v15808_v12 = vadd.f32 %v4125_v35, %v4011_v2 }
 0x4b8   : > { %v3972_v19 = vpop.f32.mrb[174].mxu1  ;;  %v4140_v50 = vpop.f32.mrb[98].mxu0 }
 0x4b9   : > { %v4012_v49 = vadd.f32 %v3972_v19, %v15719_v51  ;;  %v11952_v17 = vpop.f32.mrb[175].mxu1  ;;  %v11989_v1 = vpop.f32.mrb[99].mxu0  ;;  %12320 = vmatmul.mubr.msk.f32.vlgmr.msra.gmra.mrb[24].mxu1 %vm2165_vm9, %v5758_v13 }
 0x4ba   : > { %12322 = vmatprep.mubr.msk.f32.mxu1 %vm13759_vm8, %v13760_v60 }
 0x4bb   : > { %v15814_v15 = vadd.f32 %v4130_v8, %v4012_v49 }
 0x4bc   : > { %v3977_v56 = vpop.f32.mrb[176].mxu1  ;;  %v4145_v22 = vpop.f32.mrb[100].mxu0 }
 0x4bd   : > { %v4013_v6 = vadd.f32 %v3977_v56, %v15735_v0  ;;  %v11955_v3 = vpop.f32.mrb[177].mxu1  ;;  %v11992_v23 = vpop.f32.mrb[101].mxu0  ;;  %12323 = vmatmul.mubr.msk.f32.gmra.mrb[26].mxu1 %vm2165_vm9, %v5759_v20 }
 0x4be   : > { %12325 = vmatprep.mubr.msk.f32.mxu1 %vm13759_vm8, %v13760_v60 }
 0x4bf   : > { %v15820_v51 = vadd.f32 %v4135_v58, %v4013_v6 }
 0x4c0   : > { %v3982_v29 = vpop.f32.mrb[178].mxu1  ;;  %v4150_v30 = vpop.f32.mrb[102].mxu0 }
 0x4c1   : > { %v4014_v42 = vadd.f32 %v3982_v29, %v15744_v47  ;;  %v11958_v32 = vpop.f32.mrb[179].mxu1  ;;  %v11995_v37 = vpop.f32.mrb[103].mxu0  ;;  %12326 = vmatmul.mubr.msk.f32.gmra.mrb[28].mxu1 %vm2165_vm9, %v5760_v43 }
 0x4c2   : > { %12328 = vmatprep.mubr.msk.f32.mxu1 %vm13759_vm8, %v13760_v60 }
 0x4c3   : > { %v15826_v0 = vadd.f32 %v4140_v50, %v4014_v42 }
 0x4c4   : > { %v3987_v31 = vpop.f32.mrb[180].mxu1  ;;  %v4155_v40 = vpop.f32.mrb[104].mxu0 }
 0x4c5   : > { %v4015_v39 = vadd.f32 %v3987_v31, %v15753_v5  ;;  %v11961_v48 = vpop.f32.mrb[181].mxu1  ;;  %v11998_v24 = vpop.f32.mrb[105].mxu0  ;;  %12329 = vmatmul.mubr.msk.f32.gmra.mrb[30].mxu1 %vm2165_vm9, %v5761_v55 }
 0x4c6   : > { %12331 = vmatprep.mubr.msk.f32.mxu1 %vm13759_vm8, %v13760_v60 }
 0x4c7   : > { %v15832_v47 = vadd.f32 %v4145_v22, %v4015_v39 }
 0x4c8   : > { %v3992_v46 = vpop.f32.mrb[182].mxu1  ;;  %v4160_v16 = vpop.f32.mrb[106].mxu0 }
 0x4c9   : > { %v4016_v11 = vadd.f32 %v3992_v46, %v15762_v27  ;;  %v11964_v53 = vpop.f32.mrb[183].mxu1  ;;  %v12001_v45 = vpop.f32.mrb[107].mxu0  ;;  %12332 = vmatmul.mubr.msk.f32.gmra.mrb[32].mxu1 %vm2165_vm9, %v5762_v34 }
 0x4ca   : > { %12334 = vmatprep.mubr.msk.f32.mxu1 %vm13759_vm8, %v13760_v60 }
 0x4cb   : > { %v4174_v5 = vadd.f32 %v4150_v30, %v4016_v11 }
 0x4cc   : > { %v3997_v57 = vpop.f32.mrb[184].mxu1  ;;  %v4165_v52 = vpop.f32.mrb[108].mxu0 }
 0x4cd   : > { %v4017_v4 = vadd.f32 %v3997_v57, %v15771_v41  ;;  %v11967_v61 = vpop.f32.mrb[185].mxu1  ;;  %v12004_v33 = vpop.f32.mrb[109].mxu0  ;;  %12335 = vmatmul.mubr.msk.f32.gmra.mrb[34].mxu1 %vm2165_vm9, %v5763_v62 }
 0x4ce   : > { %12337 = vmatprep.mubr.msk.f32.mxu1 %vm13759_vm8, %v13760_v60 }
 0x4cf   : > { %v4175_v27 = vadd.f32 %v4155_v40, %v4017_v4 }
 0x4d0   : > { %v4002_v21 = vpop.f32.mrb[186].mxu1  ;;  %v4441_v9 = vpop.f32.mrb[110].mxu0 }
 0x4d1   : > { %v4018_v35 = vadd.f32 %v4002_v21, %v15780_v7  ;;  %v11970_v59 = vpop.f32.mrb[187].mxu1  ;;  %v12042_v38 = vpop.f32.mrb[111].mxu0  ;;  %12338 = vmatmul.mubr.msk.f32.gmra.mrb[36].mxu1 %vm2165_vm9, %v5764_v25 }
 0x4d2   : > { %12340 = vmatprep.mubr.msk.f32.mxu1 %vm13759_vm8, %v13760_v60 }
 0x4d3   : > { %v4176_v41 = vadd.f32 %v4160_v16, %v4018_v35 }
 0x4d4   : > { %v4007_v36 = vpop.f32.mrb[188].mxu1  ;;  %v4446_v8 = vpop.f32.mrb[112].mxu0 }
 0x4d5   : > { %v4019_v18 = vadd.f32 %v4007_v36, %v15789_v28  ;;  %v11973_v10 = vpop.f32.mrb[189].mxu1  ;;  %v12045_v58 = vpop.f32.mrb[113].mxu0  ;;  %12341 = vmatmul.mubr.msk.f32.gmra.mrb[38].mxu1 %vm2165_vm9, %v5765_v63 }
 0x4d6   : > { %12343 = vmatprep.mubr.msk.f32.mxu1 %vm13759_vm8, %v13760_v60 }
 0x4d7   : > { %v4177_v7 = vadd.f32 %v4165_v52, %v4019_v18 }
 0x4d8   : > { %v4283_v14 = vpop.f32.mrb[190].mxu1  ;;  %v4451_v2 = vpop.f32.mrb[114].mxu0 }
 0x4d9   : > { %v4327_v44 = vadd.f32 %v4283_v14, %v15808_v12  ;;  %v12011_v19 = vpop.f32.mrb[191].mxu1  ;;  %v12048_v50 = vpop.f32.mrb[115].mxu0  ;;  %12344 = vmatmul.mubr.msk.f32.gmra.mrb[40].mxu1 %vm2165_vm9, %v5766_v54 }
 0x4db   : > { %v4485_v13 = vadd.f32 %v4441_v9, %v4327_v44 }
 0x4dc   : > { %v4288_v49 = vpop.f32.mrb[192].mxu1  ;;  %v4456_v28 = vpop.f32.mrb[116].mxu0 }
 0x4dd   : > { %v4328_v17 = vadd.f32 %v4288_v49, %v15814_v15  ;;  %v12014_v1 = vpop.f32.mrb[193].mxu1  ;;  %v12051_v56 = vpop.f32.mrb[117].mxu0 }
 0x4df   : > { %v4486_v22 = vadd.f32 %v4446_v8, %v4328_v17 }
 0x4e0   : > { %v4293_v20 = vpop.f32.mrb[194].mxu1  ;;  %v4461_v6 = vpop.f32.mrb[118].mxu0 }
 0x4e1   : > { %v4329_v3 = vadd.f32 %v4293_v20, %v15820_v51  ;;  %v12017_v23 = vpop.f32.mrb[195].mxu1  ;;  %v12054_v29 = vpop.f32.mrb[119].mxu0 }
 0x4e3   : > { %v4487_v30 = vadd.f32 %v4451_v2, %v4329_v3 }
 0x4e4   : > { %v4298_v12 = vpop.f32.mrb[196].mxu1  ;;  %v4466_v43 = vpop.f32.mrb[120].mxu0 }
 0x4e5   : > { %v4330_v42 = vadd.f32 %v4298_v12, %v15826_v0  ;;  %v12020_v32 = vpop.f32.mrb[197].mxu1  ;;  %v12057_v37 = vpop.f32.mrb[121].mxu0 }
 0x4e7   : > { %v4488_v31 = vadd.f32 %v4456_v28, %v4330_v42 }
 0x4e8   : > { %v4303_v40 = vpop.f32.mrb[198].mxu1  ;;  %v4471_v55 = vpop.f32.mrb[122].mxu0 }
 0x4e9   : > { %v4331_v15 = vadd.f32 %v4303_v40, %v15832_v47  ;;  %v12023_v39 = vpop.f32.mrb[199].mxu1  ;;  %v12060_v48 = vpop.f32.mrb[123].mxu0 }
 0x4eb   : > { %v4489_v24 = vadd.f32 %v4461_v6, %v4331_v15 }
 0x4ec   : > { %v4308_v46 = vpop.f32.mrb[200].mxu1  ;;  %v4476_v16 = vpop.f32.mrb[124].mxu0 }
 0x4ed   : > { %v4332_v51 = vadd.f32 %v4308_v46, %v4174_v5  ;;  %v12026_v34 = vpop.f32.mrb[201].mxu1  ;;  %v12063_v11 = vpop.f32.mrb[125].mxu0 }
 0x4ef   : > { %v4490_v53 = vadd.f32 %v4466_v43, %v4332_v51 }
 0x4f0   : > { %v4313_v45 = vpop.f32.mrb[202].mxu1  ;;  %v4481_v57 = vpop.f32.mrb[126].mxu0 }
 0x4f1   : > { %v4333_v52 = vadd.f32 %v4313_v45, %v4175_v27  ;;  %v12029_v0 = vpop.f32.mrb[203].mxu1  ;;  %v12066_v62 = vpop.f32.mrb[127].mxu0 }
 0x4f3   : > { %v4491_v4 = vadd.f32 %v4471_v55, %v4333_v52 }
 0x4f4   : > { %v4318_v61 = vpop.f32.mrb[204].mxu1  ;;  %v4757_v33 = vpop.f32.mrb[128].mxu0 }
 0x4f5   : > { %v4334_v21 = vadd.f32 %v4318_v61, %v4176_v41  ;;  %v12032_v9 = vpop.f32.mrb[205].mxu1  ;;  %v12104_v47 = vpop.f32.mrb[129].mxu0 }
 0x4f7   : > { %v4492_v25 = vadd.f32 %v4476_v16, %v4334_v21 }
 0x4f8   : > { %v4323_v35 = vpop.f32.mrb[206].mxu1  ;;  %v4762_v59 = vpop.f32.mrb[130].mxu0 }
 0x4f9   : > { %v4335_v38 = vadd.f32 %v4323_v35, %v4177_v7  ;;  %v12035_v36 = vpop.f32.mrb[207].mxu1  ;;  %v12107_v5 = vpop.f32.mrb[131].mxu0 }
 0x4fb   : > { %v4493_v8 = vadd.f32 %v4481_v57, %v4335_v38 }
 0x4fc   : > { %v4599_v63 = vpop.f32.mrb[208].mxu1  ;;  %v4767_v18 = vpop.f32.mrb[132].mxu0 }
 0x4fd   : > { %v4643_v10 = vadd.f32 %v4599_v63, %v4485_v13  ;;  %v12073_v58 = vpop.f32.mrb[209].mxu1  ;;  %v12110_v27 = vpop.f32.mrb[133].mxu0 }
 0x4ff   : > { %v4801_v14 = vadd.f32 %v4757_v33, %v4643_v10 }
 0x500   : > { %v4604_v2 = vpop.f32.mrb[210].mxu1  ;;  %v4772_v54 = vpop.f32.mrb[134].mxu0 }
 0x501   : > { %v4644_v44 = vadd.f32 %v4604_v2, %v4486_v22  ;;  %v12076_v19 = vpop.f32.mrb[211].mxu1  ;;  %v12113_v41 = vpop.f32.mrb[135].mxu0 }
 0x503   : > { %v4802_v50 = vadd.f32 %v4762_v59, %v4644_v44 }
 0x504   : > { %v4609_v49 = vpop.f32.mrb[212].mxu1  ;;  %v4777_v28 = vpop.f32.mrb[136].mxu0 }
 0x505   : > { %v4645_v17 = vadd.f32 %v4609_v49, %v4487_v30  ;;  %v12079_v1 = vpop.f32.mrb[213].mxu1  ;;  %v12116_v7 = vpop.f32.mrb[137].mxu0 }
 0x507   : > { %v4803_v56 = vadd.f32 %v4767_v18, %v4645_v17 }
 0x508   : > { %v4614_v20 = vpop.f32.mrb[214].mxu1  ;;  %v4782_v6 = vpop.f32.mrb[138].mxu0 }
 0x509   : > { %v4646_v3 = vadd.f32 %v4614_v20, %v4488_v31  ;;  %v12082_v23 = vpop.f32.mrb[215].mxu1  ;;  %v12119_v13 = vpop.f32.mrb[139].mxu0 }
 0x50b   : > { %v4804_v29 = vadd.f32 %v4772_v54, %v4646_v3 }
 0x50c   : > { %v4619_v12 = vpop.f32.mrb[216].mxu1  ;;  %v4787_v43 = vpop.f32.mrb[140].mxu0 }
 0x50d   : > { %v4647_v42 = vadd.f32 %v4619_v12, %v4489_v24  ;;  %v12085_v32 = vpop.f32.mrb[217].mxu1  ;;  %v12122_v22 = vpop.f32.mrb[141].mxu0 }
 0x50f   : > { %v4805_v37 = vadd.f32 %v4777_v28, %v4647_v42 }
 0x510   : > { %v4624_v40 = vpop.f32.mrb[218].mxu1  ;;  %v4792_v55 = vpop.f32.mrb[142].mxu0 }
 0x511   : > { %v4648_v15 = vadd.f32 %v4624_v40, %v4490_v53  ;;  %v12088_v39 = vpop.f32.mrb[219].mxu1  ;;  %v12125_v30 = vpop.f32.mrb[143].mxu0  ;;  %v5959_v40 = vld [vmem:[%s16917_s6] sm:$0xff] }
 0x512   : > { %12364 = vmatprep.mubr.msk.f32.mxu0 %vm5963_vm10, %v5959_v40 }
 0x513   : > { %v4806_v48 = vadd.f32 %v4782_v6, %v4648_v15 }
 0x514   : > { %v4629_v46 = vpop.f32.mrb[220].mxu1  ;;  %v4797_v16 = vpop.f32.mrb[144].mxu0 }
 0x515   : > { %v4649_v51 = vadd.f32 %v4629_v46, %v4491_v4  ;;  %v12091_v34 = vpop.f32.mrb[221].mxu1  ;;  %v12128_v31 = vpop.f32.mrb[145].mxu0 }
 0x517   : > { %v4807_v11 = vadd.f32 %v4787_v43, %v4649_v51 }
 0x518   : > { %v4634_v45 = vpop.f32.mrb[222].mxu1  ;;  %v5073_v57 = vpop.f32.mrb[146].mxu0 }
 0x519   : > { %v4650_v52 = vadd.f32 %v4634_v45, %v4492_v25  ;;  %v12094_v0 = vpop.f32.mrb[223].mxu1  ;;  %v12166_v24 = vpop.f32.mrb[147].mxu0 }
 0x51b   : > { %v4808_v62 = vadd.f32 %v4792_v55, %v4650_v52 }
 0x51c   : > { %v4639_v61 = vpop.f32.mrb[224].mxu1  ;;  %v5078_v33 = vpop.f32.mrb[148].mxu0 }
 0x51d   : > { %v4651_v21 = vadd.f32 %v4639_v61, %v4493_v8  ;;  %v12097_v9 = vpop.f32.mrb[225].mxu1  ;;  %v12169_v53 = vpop.f32.mrb[149].mxu0 }
 0x51f   : > { %v4809_v47 = vadd.f32 %v4797_v16, %v4651_v21 }
 0x520   : > { %v4915_v35 = vpop.f32.mrb[226].mxu1  ;;  %v5083_v59 = vpop.f32.mrb[150].mxu0 }
 0x521   : > { %v4959_v38 = vadd.f32 %v4915_v35, %v4801_v14  ;;  %v12135_v36 = vpop.f32.mrb[227].mxu1  ;;  %v12172_v4 = vpop.f32.mrb[151].mxu0 }
 0x523   : > { %v5117_v5 = vadd.f32 %v5073_v57, %v4959_v38 }
 0x524   : > { %v4920_v63 = vpop.f32.mrb[228].mxu1  ;;  %v5088_v18 = vpop.f32.mrb[152].mxu0 }
 0x525   : > { %v4960_v10 = vadd.f32 %v4920_v63, %v4802_v50  ;;  %v12138_v58 = vpop.f32.mrb[229].mxu1  ;;  %v12175_v25 = vpop.f32.mrb[153].mxu0 }
 0x527   : > { %v5118_v27 = vadd.f32 %v5078_v33, %v4960_v10 }
 0x528   : > { %v4925_v2 = vpop.f32.mrb[230].mxu1  ;;  %v5093_v54 = vpop.f32.mrb[154].mxu0 }
 0x529   : > { %v4961_v44 = vadd.f32 %v4925_v2, %v4803_v56  ;;  %v12141_v19 = vpop.f32.mrb[231].mxu1  ;;  %v12178_v8 = vpop.f32.mrb[155].mxu0 }
 0x52b   : > { %v5119_v41 = vadd.f32 %v5083_v59, %v4961_v44 }
 0x52c   : > { %v4930_v49 = vpop.f32.mrb[232].mxu1  ;;  %v5098_v28 = vpop.f32.mrb[156].mxu0 }
 0x52d   : > { %v4962_v17 = vadd.f32 %v4930_v49, %v4804_v29  ;;  %v12144_v1 = vpop.f32.mrb[233].mxu1  ;;  %v12181_v14 = vpop.f32.mrb[157].mxu0  ;;  %v10240_v29 = vld [vmem:[%s16917_s6 + $0x40] sm:$0xff] }
 0x52e   : > { %12412 = vmatprep.mubr.msk.f32.mxu1 %vm5963_vm10, %v10240_v29 }
 0x52f   : > { %v5120_v7 = vadd.f32 %v5088_v18, %v4962_v17 }
 0x530   : > { %v4935_v20 = vpop.f32.mrb[234].mxu1  ;;  %v5103_v6 = vpop.f32.mrb[158].mxu0 }
 0x531   : > { %v4963_v3 = vadd.f32 %v4935_v20, %v4805_v37  ;;  %v12147_v23 = vpop.f32.mrb[235].mxu1  ;;  %v12184_v50 = vpop.f32.mrb[159].mxu0 }
 0x533   : > { %v5121_v13 = vadd.f32 %v5093_v54, %v4963_v3 }
 0x534   : > { %v4940_v12 = vpop.f32.mrb[236].mxu1  ;;  %v5108_v43 = vpop.f32.mrb[160].mxu0 }
 0x535   : > { %v4964_v42 = vadd.f32 %v4940_v12, %v4806_v48  ;;  %v12150_v32 = vpop.f32.mrb[237].mxu1  ;;  %v12187_v56 = vpop.f32.mrb[161].mxu0 }
 0x537   : > { %v5122_v22 = vadd.f32 %v5098_v28, %v4964_v42 }
 0x538   : > { %v4945_v55 = vpop.f32.mrb[238].mxu1  ;;  %v5113_v37 = vpop.f32.mrb[162].mxu0 }
 0x539   : > { %v4965_v15 = vadd.f32 %v4945_v55, %v4807_v11  ;;  %v12153_v39 = vpop.f32.mrb[239].mxu1  ;;  %v12190_v30 = vpop.f32.mrb[163].mxu0 }
 0x53b   : > { %v5123_v48 = vadd.f32 %v5103_v6, %v4965_v15 }
 0x53c   : > { %v4950_v46 = vpop.f32.mrb[240].mxu1  ;;  %v5389_v16 = vpop.f32.mrb[164].mxu0 }
 0x53d   : > { %v4966_v51 = vadd.f32 %v4950_v46, %v4808_v62  ;;  %v12156_v34 = vpop.f32.mrb[241].mxu1  ;;  %v12228_v31 = vpop.f32.mrb[165].mxu0 }
 0x53f   : > { %v5124_v45 = vadd.f32 %v5108_v43, %v4966_v51 }
 0x540   : > { %v4955_v57 = vpop.f32.mrb[242].mxu1  ;;  %v5394_v52 = vpop.f32.mrb[166].mxu0 }
 0x541   : > { %v4967_v0 = vadd.f32 %v4955_v57, %v4809_v47  ;;  %v12159_v24 = vpop.f32.mrb[243].mxu1  ;;  %v12231_v61 = vpop.f32.mrb[167].mxu0 }
 0x543   : > { %v5125_v33 = vadd.f32 %v5113_v37, %v4967_v0 }
 0x544   : > { %v5231_v21 = vpop.f32.mrb[244].mxu1  ;;  %v5399_v9 = vpop.f32.mrb[168].mxu0 }
 0x545   : > { %v5275_v53 = vadd.f32 %v5231_v21, %v5117_v5  ;;  %v12197_v35 = vpop.f32.mrb[245].mxu1  ;;  %v12234_v11 = vpop.f32.mrb[169].mxu0 }
 0x547   : > { %v5433_v59 = vadd.f32 %v5389_v16, %v5275_v53 }
 0x548   : > { %v5236_v38 = vpop.f32.mrb[246].mxu1  ;;  %v5404_v36 = vpop.f32.mrb[170].mxu0 }
 0x549   : > { %v5276_v4 = vadd.f32 %v5236_v38, %v5118_v27  ;;  %v12200_v63 = vpop.f32.mrb[247].mxu1  ;;  %v12237_v62 = vpop.f32.mrb[171].mxu0 }
 0x54b   : > { %v5434_v18 = vadd.f32 %v5394_v52, %v5276_v4 }
 0x54c   : > { %v5241_v10 = vpop.f32.mrb[248].mxu1  ;;  %v5409_v58 = vpop.f32.mrb[172].mxu0 }
 0x54d   : > { %v5277_v25 = vadd.f32 %v5241_v10, %v5119_v41  ;;  %v12203_v2 = vpop.f32.mrb[249].mxu1  ;;  %v12240_v47 = vpop.f32.mrb[173].mxu0 }
 0x54f   : > { %v5435_v54 = vadd.f32 %v5399_v9, %v5277_v25 }
 0x550   : > { %v5246_v44 = vpop.f32.mrb[250].mxu1  ;;  %v5414_v19 = vpop.f32.mrb[174].mxu0 }
 0x551   : > { %v5278_v8 = vadd.f32 %v5246_v44, %v5120_v7  ;;  %v12206_v49 = vpop.f32.mrb[251].mxu1  ;;  %v12243_v5 = vpop.f32.mrb[175].mxu0 }
 0x553   : > { %v5436_v28 = vadd.f32 %v5404_v36, %v5278_v8 }
 0x554   : > { %v5251_v17 = vpop.f32.mrb[252].mxu1  ;;  %v5419_v1 = vpop.f32.mrb[176].mxu0 }
 0x555   : > { %v5279_v14 = vadd.f32 %v5251_v17, %v5121_v13  ;;  %v12209_v20 = vpop.f32.mrb[253].mxu1  ;;  %v12246_v27 = vpop.f32.mrb[177].mxu0 }
 0x557   : > { %v5437_v6 = vadd.f32 %v5409_v58, %v5279_v14 }
 0x558   : > { %v5256_v3 = vpop.f32.mrb[254].mxu1  ;;  %v5424_v23 = vpop.f32.mrb[178].mxu0 }
 0x559   : > { %v5280_v50 = vadd.f32 %v5256_v3, %v5122_v22  ;;  %v12212_v12 = vpop.f32.mrb[255].mxu1  ;;  %v12249_v41 = vpop.f32.mrb[179].mxu0 }
 0x55b   : > { %v5438_v43 = vadd.f32 %v5414_v19, %v5280_v50 }
 0x55c   : > { %v5261_v42 = vpop.f32.mrb[0].mxu1  ;;  %v5429_v32 = vpop.f32.mrb[180].mxu0 }
 0x55d   : > { %v5281_v56 = vadd.f32 %v5261_v42, %v5123_v48  ;;  %v12215_v40 = vpop.f32.mrb[1].mxu1  ;;  %v12252_v7 = vpop.f32.mrb[181].mxu0 }
 0x55f   : > { %v5439_v29 = vadd.f32 %v5419_v1, %v5281_v56 }
 0x560   : > { %v5266_v55 = vpop.f32.mrb[2].mxu1  ;;  %v5705_v37 = vpop.f32.mrb[182].mxu0 }
 0x561   : > { %v5282_v15 = vadd.f32 %v5266_v55, %v5124_v45  ;;  %v12218_v39 = vpop.f32.mrb[3].mxu1  ;;  %v12290_v13 = vpop.f32.mrb[183].mxu0 }
 0x563   : > { %v5440_v30 = vadd.f32 %v5424_v23, %v5282_v15  ;;  %v15871_v15 = vld [vmem:[%s16916_s5] ss:$0 sm:$0xff] }
 0x564   : > { %v5271_v46 = vpop.f32.mrb[4].mxu1  ;;  %v5710_v16 = vpop.f32.mrb[184].mxu0 }
 0x565   : > { %v5283_v51 = vadd.f32 %v5271_v46, %v5125_v33  ;;  %v12221_v34 = vpop.f32.mrb[5].mxu1  ;;  %v12293_v22 = vpop.f32.mrb[185].mxu0 }
 0x567   : > { %v5441_v31 = vadd.f32 %v5429_v32, %v5283_v51 }
 0x568   : > { %v5547_v57 = vpop.f32.mrb[6].mxu1  ;;  %v5715_v52 = vpop.f32.mrb[186].mxu0 }
 0x569   : > { %v5591_v0 = vadd.f32 %v5547_v57, %v5433_v59  ;;  %v12259_v24 = vpop.f32.mrb[7].mxu1  ;;  %v12296_v48 = vpop.f32.mrb[187].mxu0 }
 0x56b   : > { %v5749_v61 = vadd.f32 %v5705_v37, %v5591_v0 }
 0x56c   : > { %v5552_v21 = vpop.f32.mrb[8].mxu1  ;;  %v5720_v9 = vpop.f32.mrb[188].mxu0 }
 0x56d   : > { %v5592_v53 = vadd.f32 %v5552_v21, %v5434_v18  ;;  %v12262_v35 = vpop.f32.mrb[9].mxu1  ;;  %v12299_v45 = vpop.f32.mrb[189].mxu0 }
 0x56f   : > { %v5750_v11 = vadd.f32 %v5710_v16, %v5592_v53 }
 0x570   : > { %v5557_v38 = vpop.f32.mrb[10].mxu1  ;;  %v5725_v36 = vpop.f32.mrb[190].mxu0 }
 0x571   : > { %v5593_v4 = vadd.f32 %v5557_v38, %v5435_v54  ;;  %v12265_v63 = vpop.f32.mrb[11].mxu1  ;;  %v12302_v33 = vpop.f32.mrb[191].mxu0 }
 0x573   : > { %v5751_v62 = vadd.f32 %v5715_v52, %v5593_v4 }
 0x574   : > { %v5562_v10 = vpop.f32.mrb[12].mxu1  ;;  %v5730_v58 = vpop.f32.mrb[192].mxu0 }
 0x575   : > { %v5594_v25 = vadd.f32 %v5562_v10, %v5436_v28  ;;  %v12268_v2 = vpop.f32.mrb[13].mxu1  ;;  %v12305_v59 = vpop.f32.mrb[193].mxu0 }
 0x577   : > { %v5752_v47 = vadd.f32 %v5720_v9, %v5594_v25 }
 0x578   : > { %v5567_v44 = vpop.f32.mrb[14].mxu1  ;;  %v5735_v19 = vpop.f32.mrb[194].mxu0 }
 0x579   : > { %v5595_v8 = vadd.f32 %v5567_v44, %v5437_v6  ;;  %v12271_v49 = vpop.f32.mrb[15].mxu1  ;;  %v12308_v18 = vpop.f32.mrb[195].mxu0 }
 0x57b   : > { %v5753_v5 = vadd.f32 %v5725_v36, %v5595_v8 }
 0x57c   : > { %v5572_v17 = vpop.f32.mrb[16].mxu1  ;;  %v5740_v1 = vpop.f32.mrb[196].mxu0 }
 0x57d   : > { %v5596_v14 = vadd.f32 %v5572_v17, %v5438_v43  ;;  %v12274_v20 = vpop.f32.mrb[17].mxu1  ;;  %v12311_v54 = vpop.f32.mrb[197].mxu0 }
 0x57f   : > { %v5754_v27 = vadd.f32 %v5730_v58, %v5596_v14 }
 0x580   : > { %v5577_v3 = vpop.f32.mrb[18].mxu1  ;;  %v5745_v23 = vpop.f32.mrb[198].mxu0 }
 0x581   : > { %v5597_v50 = vadd.f32 %v5577_v3, %v5439_v29  ;;  %v12277_v12 = vpop.f32.mrb[19].mxu1  ;;  %v12314_v28 = vpop.f32.mrb[199].mxu0 }
 0x583   : > { %v5755_v41 = vadd.f32 %v5735_v19, %v5597_v50 }
 0x584   : > { %v5582_v42 = vpop.f32.mrb[20].mxu1 }
 0x585   : > { %v5598_v32 = vadd.f32 %v5582_v42, %v5440_v30  ;;  %v12280_v56 = vpop.f32.mrb[21].mxu1 }
 0x587   : > { %v15864_v40 = vadd.f32 %v5740_v1, %v5598_v32 }
 0x588   : > { %v5587_v6 = vpop.f32.mrb[22].mxu1 }
 0x589   : > { %v5599_v7 = vadd.f32 %v5587_v6, %v5441_v31  ;;  %v12283_v55 = vpop.f32.mrb[23].mxu1 }
 0x58a   : > { %v10241_v55 = vld [vmem:[%s16917_s6 + $0x48] sm:$0xff] }
 0x58b   : > { %v15866_v37 = vadd.f32 %v5745_v23, %v5599_v7  ;;  %v5960_v7 = vld [vmem:[%s16917_s6 + $0x8] sm:$0xff] }
 0x58c   : > { %v5863_v43 = vpop.f32.mrb[24].mxu1 }
 0x58d   : > { %v5907_v29 = vadd.f32 %v5863_v43, %v5749_v61  ;;  %v12321_v39 = vpop.f32.mrb[25].mxu1  ;;  %v10242_v43 = vld [vmem:[%s16917_s6 + $0x50] sm:$0xff] }
 0x58e   : > { %v10232_v39 = vld [vmem:[%s16917_s6 + $0x20] sm:$0xff] }
 0x58f   : > { %v5923_v13 = vadd.f32 %v15871_v15, %v5907_v29  ;;  %v10243_v29 = vld [vmem:[%s16917_s6 + $0x58] sm:$0xff] }
 0x590   : > { %v5868_v46 = vpop.f32.mrb[26].mxu1 }
 0x591   : > { %v5908_v30 = vadd.f32 %v5868_v46, %v5750_v11  ;;  %v12324_v16 = vpop.f32.mrb[27].mxu1  ;;  %v5941_v51 = vmul.f32 0.2, %v5923_v13  ;;  %vm5932_vm11 = vcmp.ge.f32.partialorder %v5923_v13, 0.0  ;;  %v10234_v46 = vld [vmem:[%s16917_s6 + $0x30] sm:$0xff] }
 0x592   : > { %v10248_v16 = vld [vmem:[%s16917_s6 + $0x60] sm:$0xff] }
 0x593   : > { %v5924_v34 = vadd.f32 %v15871_v15, %v5908_v30  ;;  %v5950_v0 = vsel %vm5932_vm11, %v5923_v13, %v5941_v51  ;;  %v10233_v13 = vld [vmem:[%s16917_s6 + $0x28] sm:$0xff]  ;;  %v10235_v30 = vld [vmem:[%s16917_s6 + $0x38] sm:$0xff] }
 0x594   : > { %v5873_v22 = vpop.f32.mrb[28].mxu1  ;;  %v10249_v51 = vld [vmem:[%s16917_s6 + $0x68] sm:$0xff] }
 0x595   : > { %vm5933_vm12 = vcmp.ge.f32.partialorder %v5924_v34, 0.0  ;;  %v5942_v31 = vmul.f32 0.2, %v5924_v34  ;;  %v5909_v57 = vadd.f32 %v5873_v22, %v5751_v62  ;;  %v12327_v52 = vpop.f32.mrb[29].mxu1  ;;  %v10251_v22 = vld [vmem:[%s16917_s6 + $0x78] sm:$0xff] }
 0x597   : > { %v5951_v24 = vsel %vm5933_vm12, %v5924_v34, %v5942_v31  ;;  %v5925_v48 = vadd.f32 %v15871_v15, %v5909_v57  ;;  %v10250_v34 = vld [vmem:[%s16917_s6 + $0x70] sm:$0xff]  ;;  %v10266_v31 = vld [vmem:[%s16918_s7 + $0x40] sm:$0xff]  ;;  %v10267_v57 = vld [vmem:[%s16918_s7 + $0x48] sm:$0xff] }
 0x598   : > { %v15876_v61 = vpack.c.bf16 %v5951_v24, %v5950_v0  ;;  %v5878_v21 = vpop.f32.mrb[30].mxu1  ;;  %v13343_v52 = vpack.c.bf16 %v10267_v57, %v10266_v31  ;;  %v10268_v0 = vld [vmem:[%s16918_s7 + $0x50] sm:$0xff]  ;;  %v10269_v24 = vld [vmem:[%s16918_s7 + $0x58] sm:$0xff] }
 0x599   : > { %v5910_v9 = vadd.f32 %v5878_v21, %v5752_v47  ;;  %v12330_v53 = vpop.f32.mrb[31].mxu1  ;;  %v5943_v35 = vmul.f32 0.2, %v5925_v48  ;;  %vm5934_vm13 = vcmp.ge.f32.partialorder %v5925_v48, 0.0  ;;  %v10257_v21 = vld [vmem:[%s16918_s7 + $0x28] sm:$0xff] }
 0x59a   : > { %13267 = vmatprep.subr.bf16.mxu0 %v15876_v61  ;;  %13299 = vmatprep.subr.bf16.mxu1 %v15876_v61  ;;  %v10258_v53 = vld [vmem:[%s16918_s7 + $0x30] sm:$0xff] }
 0x59b   : > { %v5926_v45 = vadd.f32 %v15871_v15, %v5910_v9  ;;  %13269 = vmatpush3.bf16.msra.mxu0 %v15876_v61  ;;  %13301 = vmatpush3.bf16.msra.mxu1 %v15876_v61  ;;  %v5952_v63 = vsel %vm5934_vm13, %v5925_v48, %v5943_v35  ;;  %v13346_v48 = vpack.c.bf16 %v10269_v24, %v10268_v0  ;;  %v10259_v35 = vld [vmem:[%s16918_s7 + $0x38] sm:$0xff]  ;;  %v10275_v0 = vld [vmem:[%s16918_s7 + $0x70] sm:$0xff] }
 0x59c   : > { %v5883_v11 = vpop.f32.mrb[32].mxu1  ;;  %v10276_v24 = vld [vmem:[%s16918_s7 + $0x78] sm:$0xff] }
 0x59d   : > { %vm5935_vm14 = vcmp.ge.f32.partialorder %v5926_v45, 0.0  ;;  %v5944_v38 = vmul.f32 0.2, %v5926_v45  ;;  %v5911_v36 = vadd.f32 %v5883_v11, %v5753_v5  ;;  %v12333_v4 = vpop.f32.mrb[33].mxu1 }
 0x59f   : > { %v5953_v33 = vsel %vm5935_vm14, %v5926_v45, %v5944_v38  ;;  %v5927_v62 = vadd.f32 %v15871_v15, %v5911_v36  ;;  %v13334_v45 = vpack.c.bf16 %v10259_v35, %v10258_v53  ;;  %v10322_v53 = vld [vmem:[%s16918_s7 + $0x140] sm:$0xff]  ;;  %v10323_v35 = vld [vmem:[%s16918_s7 + $0x148] sm:$0xff] }
 0x5a0   : > { %v15884_v10 = vpack.c.bf16 %v5953_v33, %v5952_v63  ;;  %v5888_v58 = vpop.f32.mrb[34].mxu1 }
 0x5a1   : > { %v5912_v25 = vadd.f32 %v5888_v58, %v5754_v27  ;;  %v12336_v2 = vpop.f32.mrb[35].mxu1  ;;  %v5945_v59 = vmul.f32 0.2, %v5927_v62  ;;  %vm5936_vm15 = vcmp.ge.f32.partialorder %v5927_v62, 0.0  ;;  %v10281_v58 = vld [vmem:[%s16918_s7 + $0x88] sm:$0xff] }
 0x5a2   : > { %13271 = vmatprep.subr.bf16.mxu0 %v15884_v10  ;;  %13303 = vmatprep.subr.bf16.mxu1 %v15884_v10 }
 0x5a3   : > { %v5928_v47 = vadd.f32 %v15871_v15, %v5912_v25  ;;  %13273 = vmatpush3.bf16.msra.mxu0 %v15884_v10  ;;  %13305 = vmatpush3.bf16.msra.mxu1 %v15884_v10  ;;  %v5954_v18 = vsel %vm5936_vm15, %v5927_v62, %v5945_v59  ;;  %v10282_v59 = vld [vmem:[%s16918_s7 + $0x90] sm:$0xff] }
 0x5a4   : > { %v5893_v44 = vpop.f32.mrb[36].mxu1 }
 0x5a5   : > { %vm5937_vm1 = vcmp.ge.f32.partialorder %v5928_v47, 0.0  ;;  %v5946_v19 = vmul.f32 0.2, %v5928_v47  ;;  %v5913_v8 = vadd.f32 %v5893_v44, %v5755_v41  ;;  %v12339_v49 = vpop.f32.mrb[37].mxu1 }
 0x5a7   : > { %v5955_v5 = vsel %vm5937_vm1, %v5928_v47, %v5946_v19  ;;  %v5929_v17 = vadd.f32 %v15871_v15, %v5913_v8  ;;  %v10283_v47 = vld [vmem:[%s16918_s7 + $0x98] sm:$0xff] }
 0x5a8   : > { %v15892_v1 = vpack.c.bf16 %v5955_v5, %v5954_v18  ;;  %v5898_v14 = vpop.f32.mrb[38].mxu1  ;;  %v13358_v8 = vpack.c.bf16 %v10283_v47, %v10282_v59  ;;  %v10294_v18 = vld [vmem:[%s16918_s7 + $0xc0] sm:$0xff]  ;;  %v10295_v5 = vld [vmem:[%s16918_s7 + $0xc8] sm:$0xff]  ;;  %v10289_v59 = vld [vmem:[%s16918_s7 + $0xb0] sm:$0xff] }
 0x5a9   : > { %v5914_v20 = vadd.f32 %v5898_v14, %v15864_v40  ;;  %v12342_v54 = vpop.f32.mrb[39].mxu1  ;;  %v5947_v27 = vmul.f32 0.2, %v5929_v17  ;;  %vm5938_vm2 = vcmp.ge.f32.partialorder %v5929_v17, 0.0  ;;  %v13367_v14 = vpack.c.bf16 %v10295_v5, %v10294_v18  ;;  %v10290_v47 = vld [vmem:[%s16918_s7 + $0xb8] sm:$0xff] }
 0x5aa   : > { %13275 = vmatprep.subr.bf16.mxu0 %v15892_v1  ;;  %13307 = vmatprep.subr.bf16.mxu1 %v15892_v1 }
 0x5ab   : > { %v5930_v3 = vadd.f32 %v15871_v15, %v5914_v20  ;;  %13277 = vmatpush3.bf16.msra.mxu0 %v15892_v1  ;;  %13309 = vmatpush3.bf16.msra.mxu1 %v15892_v1  ;;  %v5956_v41 = vsel %vm5938_vm2, %v5929_v17, %v5947_v27  ;;  %v10296_v27 = vld [vmem:[%s16918_s7 + $0xd0] sm:$0xff] }
 0x5ac   : > { %v5903_v23 = vpop.f32.mrb[40].mxu1 }
 0x5ad   : > { %vm5939_vm3 = vcmp.ge.f32.partialorder %v5930_v3, 0.0  ;;  %v5948_v50 = vmul.f32 0.2, %v5930_v3  ;;  %v5915_v12 = vadd.f32 %v5903_v23, %v15866_v37  ;;  %v12345_v28 = vpop.f32.mrb[41].mxu1  ;;  %v5961_v37 = vld [vmem:[%s16917_s6 + $0x10] sm:$0xff] }
 0x5af   : > { %v5957_v42 = vsel %vm5939_vm3, %v5930_v3, %v5948_v50  ;;  %v5931_v32 = vadd.f32 %v15871_v15, %v5915_v12  ;;  %v5962_v15 = vld [vmem:[%s16917_s6 + $0x18] sm:$0xff]  ;;  %v6390_v50 = vld [vmem:[%s16918_s7] sm:$0xff]  ;;  %v6391_v12 = vld [vmem:[%s16918_s7 + $0x8] sm:$0xff] }
 0x5b0   : > { %v13278_v56 = vpack.c.bf16 %v5957_v42, %v5956_v41  ;;  %v10297_v3 = vld [vmem:[%s16918_s7 + $0xd8] sm:$0xff]  ;;  %v13337_v42 = vpack.c.bf16 %v6391_v12, %v6390_v50 }
 0x5b1   : > { %vm5940_vm4 = vcmp.ge.f32.partialorder %v5931_v32, 0.0  ;;  %v5949_v40 = vmul.f32 0.2, %v5931_v32  ;;  %v13370_v28 = vpack.c.bf16 %v10297_v3, %v10296_v27  ;;  %v10302_v27 = vld [vmem:[%s16918_s7 + $0xe8] sm:$0xff] }
 0x5b2   : > { %13279 = vmatprep.subr.bf16.mxu0 %v13278_v56  ;;  %13311 = vmatprep.subr.bf16.mxu1 %v13278_v56 }
 0x5b3   : > { %v5958_v6 = vsel %vm5940_vm4, %v5931_v32, %v5949_v40  ;;  %13281 = vmatpush3.bf16.msra.mxu0 %v13278_v56  ;;  %13313 = vmatpush3.bf16.msra.mxu1 %v13278_v56  ;;  %v6393_v40 = vld [vmem:[%s16918_s7 + $0x18] sm:$0xff] }
 0x5b4   : > { %12362 = vmatprep.subr.mxu0 %v5958_v6  ;;  %12410 = vmatprep.subr.mxu1 %v5958_v6 }
 0x5b7   : > { %12363 = vmatpush3.msra.mxu0 %v5958_v6  ;;  %12411 = vmatpush3.msra.mxu1 %v5958_v6 }
 0x5b8   : > { %12365 = vmatmul.mubr.msk.f32.vlgmr.msra.gmra.mrb[200].mxu0 %vm5963_vm10, %v5960_v7  ;;  %13283 = vmatprep.subr.bf16.mxu0 %v15876_v61 }
 0x5b9   : > { %12413 = vmatmul.mubr.msk.f32.vlgmr.msra.gmra.mrb[42].mxu1 %vm5963_vm10, %v10241_v55  ;;  %13285 = vmatpush3.bf16.msra.mxu0 %v15876_v61  ;;  %v10308_v55 = vld [vmem:[%s16918_s7 + $0x100] sm:$0xff] }
 0x5ba   : > { %13287 = vmatprep.subr.bf16.mxu0 %v15884_v10  ;;  %12367 = vmatprep.mubr.msk.f32.mxu0 %vm5963_vm10, %v5961_v37  ;;  %v10309_v37 = vld [vmem:[%s16918_s7 + $0x108] sm:$0xff] }
 0x5bb   : > { %12415 = vmatprep.mubr.msk.f32.mxu1 %vm5963_vm10, %v10242_v43  ;;  %13330 = vmatprep.subr.bf16.mxu1 %v13758_v26 }
 0x5bc   : > { %12368 = vmatmul.mubr.msk.f32.gmra.mrb[202].mxu0 %vm5963_vm10, %v5962_v15 }
 0x5bd   : > { %13289 = vmatpush3.bf16.msra.mxu0 %v15884_v10  ;;  %12416 = vmatmul.mubr.msk.f32.gmra.mrb[44].mxu1 %vm5963_vm10, %v10243_v29 }
 0x5be   : > { %13291 = vmatprep.subr.bf16.mxu0 %v15892_v1  ;;  %12388 = vmatprep.mubr.msk.f32.mxu0 %vm5963_vm10, %v10232_v39  ;;  %v13379_v39 = vpack.c.bf16 %v10309_v37, %v10308_v55  ;;  %v10352_v37 = vld [vmem:[%s16918_s7 + $0x1d0] sm:$0xff] }
 0x5bf   : > { %12450 = vmatprep.mubr.msk.f32.mxu1 %vm13759_vm8, %v13760_v60 }
 0x5c1   : > { %13293 = vmatpush3.bf16.msra.mxu0 %v15892_v1 }
 0x5c2   : > { %13295 = vmatprep.subr.bf16.mxu0 %v13278_v56 }
 0x5c5   : > { %13297 = vmatpush3.bf16.msra.mxu0 %v13278_v56 }
 0x5c6   : > { %12386 = vmatprep.subr.mxu0 %v5958_v6 }
 0x5c9   : > { %12387 = vmatpush3.msra.mxu0 %v5958_v6 }
 0x5ca   : > { %12389 = vmatmul.mubr.msk.f32.vlgmr.msra.gmra.mrb[204].mxu0 %vm5963_vm10, %v10233_v13  ;;  %13315 = vmatprep.subr.bf16.mxu0 %v15876_v61  ;;  %v10310_v13 = vld [vmem:[%s16918_s7 + $0x110] sm:$0xff] }
 0x5cb   : > { %13317 = vmatpush3.bf16.msra.mxu0 %v15876_v61  ;;  %12391 = vmatprep.mubr.msk.f32.mxu0 %vm5963_vm10, %v10234_v46  ;;  %v10256_v61 = vld [vmem:[%s16918_s7 + $0x20] sm:$0xff]  ;;  %v10311_v46 = vld [vmem:[%s16918_s7 + $0x118] sm:$0xff] }
 0x5cc   : > { %13319 = vmatprep.subr.bf16.mxu0 %v15884_v10  ;;  %v13331_v9 = vpack.c.bf16 %v10257_v21, %v10256_v61  ;;  %v13382_v31 = vpack.c.bf16 %v10311_v46, %v10310_v13 }
 0x5ce   : > { %12392 = vmatmul.mubr.msk.f32.gmra.mrb[206].mxu0 %vm5963_vm10, %v10235_v30  ;;  %13332 = vmatpush3.bf16.msra.mxu1 %v13331_v9  ;;  %v10273_v30 = vld [vmem:[%s16918_s7 + $0x60] sm:$0xff]  ;;  %v13352_v9 = vpack.c.bf16 %v10276_v24, %v10275_v0  ;;  %v10330_v24 = vld [vmem:[%s16918_s7 + $0x168] sm:$0xff] }
 0x5cf   : > { %13321 = vmatpush3.bf16.msra.mxu0 %v15884_v10  ;;  %12436 = vmatprep.mubr.msk.f32.mxu0 %vm5963_vm10, %v10248_v16  ;;  %v10280_v10 = vld [vmem:[%s16918_s7 + $0x80] sm:$0xff]  ;;  %v10274_v16 = vld [vmem:[%s16918_s7 + $0x68] sm:$0xff] }
 0x5d0   : > { %13323 = vmatprep.subr.bf16.mxu0 %v15892_v1  ;;  %13333 = vmatprep.subr.bf16.mxu1 %v13758_v26  ;;  %v13355_v2 = vpack.c.bf16 %v10281_v58, %v10280_v10  ;;  %v13349_v57 = vpack.c.bf16 %v10274_v16, %v10273_v30  ;;  %v10329_v0 = vld [vmem:[%s16918_s7 + $0x160] sm:$0xff] }
 0x5d2   : > { %13335 = vmatpush3.bf16.msra.mxu1 %v13334_v45 }
 0x5d3   : > { %13325 = vmatpush3.bf16.msra.mxu0 %v15892_v1  ;;  %13336 = vmatprep.subr.bf16.mxu1 %v13758_v26 }
 0x5d4   : > { %13327 = vmatprep.subr.bf16.mxu0 %v13278_v56 }
 0x5d7   : > { %13329 = vmatpush3.bf16.msra.mxu0 %v13278_v56  ;;  %v6392_v56 = vld [vmem:[%s16918_s7 + $0x10] sm:$0xff] }
 0x5d8   : > { %12434 = vmatprep.subr.mxu0 %v5958_v6  ;;  %v13340_v7 = vpack.c.bf16 %v6393_v40, %v6392_v56  ;;  %v10350_v56 = vld [vmem:[%s16918_s7 + $0x1c0] sm:$0xff]  ;;  %v10351_v40 = vld [vmem:[%s16918_s7 + $0x1c8] sm:$0xff] }
 0x5db   : > { %12435 = vmatpush3.msra.mxu0 %v5958_v6 }
 0x5dc   : > { %12437 = vmatmul.mubr.msk.f32.vlgmr.msra.gmra.mrb[208].mxu0 %vm5963_vm10, %v10249_v51  ;;  %13342 = vmatprep.subr.bf16.mxu0 %v13758_v26 }
 0x5dd   : > { %12439 = vmatprep.mubr.msk.f32.mxu0 %vm5963_vm10, %v10250_v34  ;;  %13344 = vmatpush3.bf16.msra.mxu0 %v13343_v52 }
 0x5de   : > { %13345 = vmatprep.subr.bf16.mxu0 %v13758_v26 }
 0x5e0   : > { %12440 = vmatmul.mubr.msk.f32.gmra.mrb[210].mxu0 %vm5963_vm10, %v10251_v22 }
 0x5e1   : > { %12484 = vmatprep.mubr.msk.f32.mxu0 %vm13759_vm8, %v13760_v60  ;;  %13347 = vmatpush3.bf16.msra.mxu0 %v13346_v48 }
 0x5e2   : > { %13354 = vmatprep.subr.bf16.mxu0 %v13758_v26 }
 0x68b   : > { %v12366_v11 = vpop.f32.mrb[200].mxu0 }
 0x68c   : > { %v12414_v38 = vpop.f32.mrb[42].mxu1  ;;  %6063 = vst.msk [vmem:[#allocation3 + $0x8] sm:$0xff] %vm6061_vm5, %v12366_v11  ;;  %v6042_v36 = vpop.f32.mrb[201].mxu0  ;;  %v13391_v11 = vpack.c.bf16 %v10323_v35, %v10322_v53  ;;  %v10332_v53 = vld [vmem:[%s16918_s7 + $0x178] sm:$0xff] }
 0x68d   : > { %6277 = vst.msk [vmem:[#allocation3 + $0x48] sm:$0xff] %vm6061_vm5, %v12414_v38  ;;  %v6256_v4 = vpop.f32.mrb[43].mxu1  ;;  %6062 = vst.msk [vmem:[#allocation3] sm:$0xff] %vm6061_vm5, %v6042_v36  ;;  %v10324_v36 = vld [vmem:[%s16918_s7 + $0x150] sm:$0xff] }
 0x68e   : > { %6276 = vst.msk [vmem:[#allocation3 + $0x40] sm:$0xff] %vm6061_vm5, %v6256_v4  ;;  %v10325_v4 = vld [vmem:[%s16918_s7 + $0x158] sm:$0xff] }
 0x68f   : > { %v12369_v63 = vpop.f32.mrb[202].mxu0  ;;  %v13394_v58 = vpack.c.bf16 %v10325_v4, %v10324_v36  ;;  %v10343_v36 = vld [vmem:[%s16918_s7 + $0x1a0] sm:$0xff]  ;;  %v10344_v4 = vld [vmem:[%s16918_s7 + $0x1a8] sm:$0xff] }
 0x690   : > { %6065 = vst.msk [vmem:[#allocation3 + $0x18] sm:$0xff] %vm6061_vm5, %v12369_v63  ;;  %v6052_v33 = vpop.f32.mrb[203].mxu0  ;;  %v12417_v62 = vpop.f32.mrb[44].mxu1 }
 0x691   : > { %6064 = vst.msk [vmem:[#allocation3 + $0x10] sm:$0xff] %vm6061_vm5, %v6052_v33  ;;  %6279 = vst.msk [vmem:[#allocation3 + $0x58] sm:$0xff] %vm6061_vm5, %v12417_v62  ;;  %v6266_v25 = vpop.f32.mrb[45].mxu1  ;;  %v10287_v33 = vld [vmem:[%s16918_s7 + $0xa0] sm:$0xff]  ;;  %v10288_v62 = vld [vmem:[%s16918_s7 + $0xa8] sm:$0xff] }
 0x692   : > { %6278 = vst.msk [vmem:[#allocation3 + $0x50] sm:$0xff] %vm6061_vm5, %v6266_v25 }
 0x693   : > { %v6388_v45 = vld [vmem:[#allocation3 + $0x8] sm:$0xff] }
 0x694   : > { %v6581_v19 = vld [vmem:[#allocation3 + $0x48] sm:$0xff]  ;;  %v6387_v52 = vld [vmem:[#allocation3] sm:$0xff] }
 0x695   : > { %v6580_v44 = vld [vmem:[#allocation3 + $0x40] sm:$0xff] }
 0x696   : > { %12485 = vmatmul.mubr.msk.f32.vlgmr.msra.gmra.mrb[212].mxu0 %vm6061_vm5, %v6580_v44  ;;  %v6780_v54 = vld [vmem:[#allocation3 + $0x1] sm:$0xff] }
 0x697   : > { %12487 = vmatprep.mubr.msk.f32.mxu0 %vm13759_vm8, %v13760_v60  ;;  %13356 = vmatpush3.bf16.msra.mxu0 %v13355_v2  ;;  %v6980_v15 = vld [vmem:[#allocation3 + $0x41] sm:$0xff]  ;;  %v13361_v2 = vpack.c.bf16 %v10288_v62, %v10287_v33  ;;  %v13409_v33 = vpack.c.bf16 %v10344_v4, %v10343_v36  ;;  %v10345_v62 = vld [vmem:[%s16918_s7 + $0x1b0] sm:$0xff] }
 0x698   : > { %13357 = vmatprep.subr.bf16.mxu0 %v13758_v26  ;;  %v6781_v41 = vld [vmem:[#allocation3 + $0x9] sm:$0xff]  ;;  %v6782_v6 = vld [vmem:[#allocation3 + $0x11] sm:$0xf]  ;;  %v7182_v44 = vld [vmem:[#allocation3 + $0x15] sm:$0xf] }
 0x699   : > { %v6582_v49 = vld [vmem:[#allocation3 + $0x50] sm:$0xf]  ;;  %v7180_v38 = vld [vmem:[#allocation3 + $0x5] sm:$0xff] }
 0x69a   : > { %12488 = vmatmul.mubr.msk.f32.gmra.mrb[214].mxu0 %vm6061_vm5, %v6581_v19  ;;  %v6981_v51 = vld [vmem:[#allocation3 + $0x49] sm:$0xff]  ;;  %v6982_v48 = vld [vmem:[#allocation3 + $0x51] sm:$0xf]  ;;  %v13364_v19 = vpack.c.bf16 %v10290_v47, %v10289_v59  ;;  %v10357_v59 = vld [vmem:[%s16918_s7 + $0x1e0] sm:$0xff] }
 0x69b   : > { %12490 = vmatprep.mubr.msk.f32.mxu0 %vm13759_vm8, %v13760_v60  ;;  %13359 = vmatpush3.bf16.msra.mxu0 %v13358_v8  ;;  %v6389_v63 = vld [vmem:[#allocation3 + $0x10] sm:$0xf]  ;;  %v10336_v8 = vld [vmem:[%s16918_s7 + $0x180] sm:$0xff]  ;;  %v10358_v47 = vld [vmem:[%s16918_s7 + $0x1e8] sm:$0xff] }
 0x69c   : > { %13366 = vmatprep.subr.bf16.mxu0 %v13758_v26  ;;  %v7181_v25 = vld [vmem:[#allocation3 + $0xd] sm:$0xff] }
 0x69d   : > { %v12390_v17 = vpop.f32.mrb[204].mxu0  ;;  %v7580_v55 = vld [vmem:[#allocation3 + $0x6] sm:$0xff]  ;;  %v7581_v46 = vld [vmem:[#allocation3 + $0xe] sm:$0xff] }
 0x69e   : > { %6170 = vst.msk [vmem:[#allocation3 + $0x28] sm:$0xff] %vm6061_vm5, %v12390_v17  ;;  %12491 = vmatmul.mubr.msk.f32.gmra.mrb[216].mxu0 %vm6061_vm5, %v6582_v49  ;;  %v6149_v1 = vpop.f32.mrb[205].mxu0  ;;  %v10337_v49 = vld [vmem:[%s16918_s7 + $0x188] sm:$0xff] }
 0x69f   : > { %6169 = vst.msk [vmem:[#allocation3 + $0x20] sm:$0xff] %vm6061_vm5, %v6149_v1  ;;  %12518 = vmatprep.mubr.msk.f32.mxu0 %vm13759_vm8, %v13760_v60  ;;  %v13403_v17 = vpack.c.bf16 %v10337_v49, %v10336_v8  ;;  %v7380_v1 = vld [vmem:[#allocation3 + $0x45] sm:$0xff]  ;;  %v10359_v8 = vld [vmem:[%s16918_s7 + $0x1f0] sm:$0xff]  ;;  %v10360_v49 = vld [vmem:[%s16918_s7 + $0x1f8] sm:$0xff] }
 0x6a1   : > { %v12393_v20 = vpop.f32.mrb[206].mxu0 }
 0x6a2   : > { %6172 = vst.msk [vmem:[#allocation3 + $0x38] sm:$0xff] %vm6061_vm5, %v12393_v20  ;;  %12519 = vmatmul.mubr.msk.f32.vlgmr.msra.gmra.mrb[218].mxu0 %vm6061_vm5, %v6780_v54  ;;  %v6159_v23 = vpop.f32.mrb[207].mxu0  ;;  %v10339_v20 = vld [vmem:[%s16918_s7 + $0x198] sm:$0xff]  ;;  %v10301_v54 = vld [vmem:[%s16918_s7 + $0xe0] sm:$0xff] }
 0x6a3   : > { %6171 = vst.msk [vmem:[#allocation3 + $0x30] sm:$0xff] %vm6061_vm5, %v6159_v23  ;;  %12521 = vmatprep.mubr.msk.f32.mxu0 %vm13759_vm8, %v13760_v60  ;;  %13368 = vmatpush3.bf16.msra.mxu0 %v13367_v14  ;;  %v10338_v14 = vld [vmem:[%s16918_s7 + $0x190] sm:$0xff]  ;;  %v13373_v50 = vpack.c.bf16 %v10302_v27, %v10301_v54 }
 0x6a4   : > { %13369 = vmatprep.subr.bf16.mxu0 %v13758_v26  ;;  %v13406_v3 = vpack.c.bf16 %v10339_v20, %v10338_v14  ;;  %v7381_v23 = vld [vmem:[#allocation3 + $0x4d] sm:$0xff] }
 0x6a5   : > { %v6395_v43 = vld [vmem:[#allocation3 + $0x28] sm:$0xff] }
 0x6a6   : > { %12522 = vmatmul.mubr.msk.f32.gmra.mrb[220].mxu0 %vm6061_vm5, %v6781_v41  ;;  %v6394_v32 = vld [vmem:[#allocation3 + $0x20] sm:$0xff]  ;;  %v10304_v41 = vld [vmem:[%s16918_s7 + $0xf8] sm:$0xff] }
 0x6a7   : > { %12451 = vmatmul.mubr.msk.f32.vlgmr.msra.gmra.mrb[46].mxu1 %vm6061_vm5, %v6394_v32  ;;  %12524 = vmatprep.mubr.msk.f32.mxu0 %vm13759_vm8, %v13760_v60  ;;  %v6880_v12 = vld [vmem:[#allocation3 + $0x21] sm:$0xff] }
 0x6a8   : > { %12453 = vmatprep.mubr.msk.f32.mxu1 %vm13759_vm8, %v13760_v60  ;;  %13371 = vmatpush3.bf16.msra.mxu0 %v13370_v28  ;;  %v10303_v28 = vld [vmem:[%s16918_s7 + $0xf0] sm:$0xff]  ;;  %v7280_v35 = vld [vmem:[#allocation3 + $0x25] sm:$0xff] }
 0x6a9   : > { %13338 = vmatpush3.bf16.msra.mxu1 %v13337_v42  ;;  %13378 = vmatprep.subr.bf16.mxu0 %v13758_v26  ;;  %v7382_v42 = vld [vmem:[#allocation3 + $0x55] sm:$0xf]  ;;  %v13376_v32 = vpack.c.bf16 %v10304_v41, %v10303_v28 }
 0x6aa   : > { %12525 = vmatmul.mubr.msk.f32.gmra.mrb[222].mxu0 %vm6061_vm5, %v6782_v6  ;;  %13339 = vmatprep.subr.bf16.mxu1 %v13758_v26  ;;  %v6396_v29 = vld [vmem:[#allocation3 + $0x30] sm:$0xf] }
 0x6ab   : > { %12454 = vmatmul.mubr.msk.f32.gmra.mrb[48].mxu1 %vm6061_vm5, %v6395_v43  ;;  %12552 = vmatprep.mubr.msk.f32.mxu0 %vm13759_vm8, %v13760_v60  ;;  %v6881_v6 = vld [vmem:[#allocation3 + $0x29] sm:$0xff]  ;;  %v10353_v43 = vld [vmem:[%s16918_s7 + $0x1d8] sm:$0xff] }
 0x6ac   : > { %12456 = vmatprep.mubr.msk.f32.mxu1 %vm13759_vm8, %v13760_v60  ;;  %v13418_v13 = vpack.c.bf16 %v10353_v43, %v10352_v37 }
 0x6ad   : > { %13341 = vmatpush3.bf16.msra.mxu1 %v13340_v7  ;;  %v13415_v7 = vpack.c.bf16 %v10351_v40, %v10350_v56 }
 0x6ae   : > { %12553 = vmatmul.mubr.msk.f32.vlgmr.msra.gmra.mrb[224].mxu0 %vm6061_vm5, %v6980_v15  ;;  %13348 = vmatprep.subr.bf16.mxu1 %v13758_v26  ;;  %v6882_v15 = vld [vmem:[#allocation3 + $0x31] sm:$0xf] }
 0x6af   : > { %12457 = vmatmul.mubr.msk.f32.gmra.mrb[50].mxu1 %vm6061_vm5, %v6396_v29  ;;  %12555 = vmatprep.mubr.msk.f32.mxu0 %vm13759_vm8, %v13760_v60  ;;  %v12438_v34 = vpop.f32.mrb[208].mxu0  ;;  %v10315_v29 = vld [vmem:[%s16918_s7 + $0x120] sm:$0xff] }
 0x6b0   : > { %12467 = vmatprep.mubr.msk.f32.mxu1 %vm13759_vm8, %v13760_v60  ;;  %13380 = vmatpush3.bf16.msra.mxu0 %v13379_v39  ;;  %6384 = vst.msk [vmem:[#allocation3 + $0x68] sm:$0xff] %vm6061_vm5, %v12438_v34  ;;  %v6363_v22 = vpop.f32.mrb[209].mxu0  ;;  %v10316_v39 = vld [vmem:[%s16918_s7 + $0x128] sm:$0xff]  ;;  %v10318_v34 = vld [vmem:[%s16918_s7 + $0x138] sm:$0xff] }
 0x6b1   : > { %6383 = vst.msk [vmem:[#allocation3 + $0x60] sm:$0xff] %vm6061_vm5, %v6363_v22  ;;  %13381 = vmatprep.subr.bf16.mxu0 %v13758_v26  ;;  %v13385_v30 = vpack.c.bf16 %v10316_v39, %v10315_v29  ;;  %v7582_v22 = vld [vmem:[#allocation3 + $0x16] sm:$0xf] }
 0x6b2   : > { %12556 = vmatmul.mubr.msk.f32.gmra.mrb[226].mxu0 %vm6061_vm5, %v6981_v51  ;;  %v10317_v51 = vld [vmem:[%s16918_s7 + $0x130] sm:$0xff] }
 0x6b3   : > { %12468 = vmatmul.mubr.msk.f32.vlgmr.msra.gmra.mrb[52].mxu1 %vm6061_vm5, %v6387_v52  ;;  %12558 = vmatprep.mubr.msk.f32.mxu0 %vm13759_vm8, %v13760_v60  ;;  %v12441_v61 = vpop.f32.mrb[210].mxu0  ;;  %v7780_v52 = vld [vmem:[#allocation3 + $0x46] sm:$0xff] }
 0x6b4   : > { %6386 = vst.msk [vmem:[#allocation3 + $0x78] sm:$0xff] %vm6061_vm5, %v12441_v61  ;;  %12470 = vmatprep.mubr.msk.f32.mxu1 %vm13759_vm8, %v13760_v60  ;;  %13383 = vmatpush3.bf16.msra.mxu0 %v13382_v31  ;;  %v6373_v21 = vpop.f32.mrb[211].mxu0  ;;  %v13388_v31 = vpack.c.bf16 %v10318_v34, %v10317_v51  ;;  %v13397_v61 = vpack.c.bf16 %v10330_v24, %v10329_v0 }
 0x6b5   : > { %6385 = vst.msk [vmem:[#allocation3 + $0x70] sm:$0xff] %vm6061_vm5, %v6373_v21  ;;  %13350 = vmatpush3.bf16.msra.mxu1 %v13349_v57  ;;  %13390 = vmatprep.subr.bf16.mxu0 %v13758_v26  ;;  %v7781_v21 = vld [vmem:[#allocation3 + $0x4e] sm:$0xff] }
 0x6b6   : > { %12559 = vmatmul.mubr.msk.f32.gmra.mrb[228].mxu0 %vm6061_vm5, %v6982_v48  ;;  %13351 = vmatprep.subr.bf16.mxu1 %v13758_v26 }
 0x6b7   : > { %12471 = vmatmul.mubr.msk.f32.gmra.mrb[54].mxu1 %vm6061_vm5, %v6388_v45  ;;  %12586 = vmatprep.mubr.msk.f32.mxu0 %vm13759_vm8, %v13760_v60  ;;  %v6681_v18 = vld [vmem:[#allocation3 + $0x68] sm:$0xff] }
 0x6b8   : > { %12473 = vmatprep.mubr.msk.f32.mxu1 %vm13759_vm8, %v13760_v60  ;;  %v6680_v10 = vld [vmem:[#allocation3 + $0x60] sm:$0xff] }
 0x6b9   : > { %13353 = vmatpush3.bf16.msra.mxu1 %v13352_v9  ;;  %v7080_v16 = vld [vmem:[#allocation3 + $0x61] sm:$0xff]  ;;  %v10331_v9 = vld [vmem:[%s16918_s7 + $0x170] sm:$0xff] }
 0x6ba   : > { %12587 = vmatmul.mubr.msk.f32.vlgmr.msra.gmra.mrb[230].mxu0 %vm6061_vm5, %v7180_v38  ;;  %13360 = vmatprep.subr.bf16.mxu1 %v13758_v26  ;;  %v13400_v45 = vpack.c.bf16 %v10332_v53, %v10331_v9  ;;  %v7281_v38 = vld [vmem:[#allocation3 + $0x2d] sm:$0xff] }
 0x6bb   : > { %12474 = vmatmul.mubr.msk.f32.gmra.mrb[56].mxu1 %vm6061_vm5, %v6389_v63  ;;  %12589 = vmatprep.mubr.msk.f32.mxu0 %vm13759_vm8, %v13760_v60  ;;  %v7282_v63 = vld [vmem:[#allocation3 + $0x35] sm:$0xf]  ;;  %v7880_v14 = vld [vmem:[#allocation3 + $0x66] sm:$0xff] }
 0x6bc   : > { %12501 = vmatprep.mubr.msk.f32.mxu1 %vm13759_vm8, %v13760_v60  ;;  %13392 = vmatpush3.bf16.msra.mxu0 %v13391_v11  ;;  %v6682_v5 = vld [vmem:[#allocation3 + $0x70] sm:$0xf]  ;;  %v7782_v11 = vld [vmem:[#allocation3 + $0x56] sm:$0xf] }
 0x6bd   : > { %13393 = vmatprep.subr.bf16.mxu0 %v13758_v26  ;;  %v7081_v57 = vld [vmem:[#allocation3 + $0x69] sm:$0xff]  ;;  %v7082_v48 = vld [vmem:[#allocation3 + $0x71] sm:$0xf]  ;;  %v7882_v54 = vld [vmem:[#allocation3 + $0x76] sm:$0xf] }
 0x6be   : > { %12590 = vmatmul.mubr.msk.f32.gmra.mrb[232].mxu0 %vm6061_vm5, %v7181_v25  ;;  %v7881_v20 = vld [vmem:[#allocation3 + $0x6e] sm:$0xff] }
 0x6bf   : > { %12502 = vmatmul.mubr.msk.f32.vlgmr.msra.gmra.mrb[58].mxu1 %vm6061_vm5, %v6680_v10  ;;  %12592 = vmatprep.mubr.msk.f32.mxu0 %vm13759_vm8, %v13760_v60  ;;  %v10346_v10 = vld [vmem:[%s16918_s7 + $0x1b8] sm:$0xff] }
 0x6c0   : > { %12504 = vmatprep.mubr.msk.f32.mxu1 %vm13759_vm8, %v13760_v60  ;;  %13395 = vmatpush3.bf16.msra.mxu0 %v13394_v58  ;;  %v7480_v58 = vld [vmem:[#allocation3 + $0x65] sm:$0xff]  ;;  %v13412_v25 = vpack.c.bf16 %v10346_v10, %v10345_v62 }
 0x6c1   : > { %13362 = vmatpush3.bf16.msra.mxu1 %v13361_v2  ;;  %13402 = vmatprep.subr.bf16.mxu0 %v13758_v26  ;;  %v7481_v2 = vld [vmem:[#allocation3 + $0x6d] sm:$0xff] }
 0x6c2   : > { %12593 = vmatmul.mubr.msk.f32.gmra.mrb[234].mxu0 %vm6061_vm5, %v7182_v44  ;;  %13363 = vmatprep.subr.bf16.mxu1 %v13758_v26  ;;  %v7482_v44 = vld [vmem:[#allocation3 + $0x75] sm:$0xf] }
 0x6c3   : > { %12505 = vmatmul.mubr.msk.f32.gmra.mrb[60].mxu1 %vm6061_vm5, %v6681_v18  ;;  %12620 = vmatprep.mubr.msk.f32.mxu0 %vm13759_vm8, %v13760_v60  ;;  %v7680_v18 = vld [vmem:[#allocation3 + $0x26] sm:$0xff] }
 0x6c4   : > { %12507 = vmatprep.mubr.msk.f32.mxu1 %vm13759_vm8, %v13760_v60 }
 0x6c5   : > { %13365 = vmatpush3.bf16.msra.mxu1 %v13364_v19  ;;  %v13421_v19 = vpack.c.bf16 %v10358_v47, %v10357_v59 }
 0x6c6   : > { %12621 = vmatmul.mubr.msk.f32.vlgmr.msra.gmra.mrb[236].mxu0 %vm6061_vm5, %v7380_v1  ;;  %13372 = vmatprep.subr.bf16.mxu1 %v13758_v26  ;;  %v7682_v1 = vld [vmem:[#allocation3 + $0x36] sm:$0xf] }
 0x6c7   : > { %12508 = vmatmul.mubr.msk.f32.gmra.mrb[62].mxu1 %vm6061_vm5, %v6682_v5  ;;  %12623 = vmatprep.mubr.msk.f32.mxu0 %vm13759_vm8, %v13760_v60  ;;  %v13424_v5 = vpack.c.bf16 %v10360_v49, %v10359_v8 }
 0x6c8   : > { %12535 = vmatprep.mubr.msk.f32.mxu1 %vm13759_vm8, %v13760_v60  ;;  %13404 = vmatpush3.bf16.msra.mxu0 %v13403_v17  ;;  %v7681_v17 = vld [vmem:[#allocation3 + $0x2e] sm:$0xff] }
 0x6c9   : > { %13405 = vmatprep.subr.bf16.mxu0 %v13758_v26 }
 0x6ca   : > { %12624 = vmatmul.mubr.msk.f32.gmra.mrb[238].mxu0 %vm6061_vm5, %v7381_v23 }
 0x6cb   : > { %12536 = vmatmul.mubr.msk.f32.vlgmr.msra.gmra.mrb[64].mxu1 %vm6061_vm5, %v6880_v12  ;;  %12626 = vmatprep.mubr.msk.f32.mxu0 %vm13759_vm8, %v13760_v60 }
 0x6cc   : > { %12538 = vmatprep.mubr.msk.f32.mxu1 %vm13759_vm8, %v13760_v60  ;;  %13407 = vmatpush3.bf16.msra.mxu0 %v13406_v3 }
 0x6cd   : > { %13374 = vmatpush3.bf16.msra.mxu1 %v13373_v50  ;;  %13414 = vmatprep.subr.bf16.mxu0 %v13758_v26  ;;  %v7999_v50 = vld [vmem:[%s16920_s9] sm:$0xff] }
 0x6ce   : > { %12627 = vmatmul.mubr.msk.f32.gmra.mrb[240].mxu0 %vm6061_vm5, %v7382_v42  ;;  %13375 = vmatprep.subr.bf16.mxu1 %v13758_v26 }
 0x6cf   : > { %12539 = vmatmul.mubr.msk.f32.gmra.mrb[66].mxu1 %vm6061_vm5, %v6881_v6  ;;  %12654 = vmatprep.mubr.msk.f32.mxu0 %vm13759_vm8, %v13760_v60 }
 0x6d0   : > { %12541 = vmatprep.mubr.msk.f32.mxu1 %vm13759_vm8, %v13760_v60 }
 0x6d1   : > { %13377 = vmatpush3.bf16.msra.mxu1 %v13376_v32 }
 0x6d2   : > { %12655 = vmatmul.mubr.msk.f32.vlgmr.msra.gmra.mrb[242].mxu0 %vm6061_vm5, %v7580_v55  ;;  %13384 = vmatprep.subr.bf16.mxu1 %v13758_v26 }
 0x6d3   : > { %12542 = vmatmul.mubr.msk.f32.gmra.mrb[68].mxu1 %vm6061_vm5, %v6882_v15  ;;  %12657 = vmatprep.mubr.msk.f32.mxu0 %vm13759_vm8, %v13760_v60 }
 0x6d4   : > { %12569 = vmatprep.mubr.msk.f32.mxu1 %vm13759_vm8, %v13760_v60  ;;  %13416 = vmatpush3.bf16.msra.mxu0 %v13415_v7  ;;  %v10373_v7 = vld [vmem:[%s16920_s9 + $0x20] sm:$0xff] }
 0x6d5   : > { %13417 = vmatprep.subr.bf16.mxu0 %v13758_v26 }
 0x6d6   : > { %12658 = vmatmul.mubr.msk.f32.gmra.mrb[244].mxu0 %vm6061_vm5, %v7581_v46 }
 0x6d7   : > { %12570 = vmatmul.mubr.msk.f32.vlgmr.msra.gmra.mrb[70].mxu1 %vm6061_vm5, %v7080_v16  ;;  %12660 = vmatprep.mubr.msk.f32.mxu0 %vm13759_vm8, %v13760_v60 }
 0x6d8   : > { %12572 = vmatprep.mubr.msk.f32.mxu1 %vm13759_vm8, %v13760_v60  ;;  %13419 = vmatpush3.bf16.msra.mxu0 %v13418_v13 }
 0x6d9   : > { %13386 = vmatpush3.bf16.msra.mxu1 %v13385_v30 }
 0x6da   : > { %12661 = vmatmul.mubr.msk.f32.gmra.mrb[246].mxu0 %vm6061_vm5, %v7582_v22  ;;  %13387 = vmatprep.subr.bf16.mxu1 %v13758_v26 }
 0x6db   : > { %12573 = vmatmul.mubr.msk.f32.gmra.mrb[72].mxu1 %vm6061_vm5, %v7081_v57  ;;  %12688 = vmatprep.mubr.msk.f32.mxu0 %vm13759_vm8, %v13760_v60 }
 0x6dc   : > { %12575 = vmatprep.mubr.msk.f32.mxu1 %vm13759_vm8, %v13760_v60 }
 0x6dd   : > { %13389 = vmatpush3.bf16.msra.mxu1 %v13388_v31 }
 0x6de   : > { %12689 = vmatmul.mubr.msk.f32.vlgmr.msra.gmra.mrb[248].mxu0 %vm6061_vm5, %v7780_v52  ;;  %13396 = vmatprep.subr.bf16.mxu1 %v13758_v26 }
 0x6df   : > { %12576 = vmatmul.mubr.msk.f32.gmra.mrb[74].mxu1 %vm6061_vm5, %v7082_v48  ;;  %12691 = vmatprep.mubr.msk.f32.mxu0 %vm13759_vm8, %v13760_v60 }
 0x6e0   : > { %12603 = vmatprep.mubr.msk.f32.mxu1 %vm13759_vm8, %v13760_v60 }
 0x6e2   : > { %12692 = vmatmul.mubr.msk.f32.gmra.mrb[250].mxu0 %vm6061_vm5, %v7781_v21 }
 0x6e3   : > { %12604 = vmatmul.mubr.msk.f32.vlgmr.msra.gmra.mrb[76].mxu1 %vm6061_vm5, %v7280_v35  ;;  %12694 = vmatprep.mubr.msk.f32.mxu0 %vm13759_vm8, %v13760_v60 }
 0x6e4   : > { %12606 = vmatprep.mubr.msk.f32.mxu1 %vm13759_vm8, %v13760_v60  ;;  %13398 = vmatpush3.bf16.msra.mxu1 %v13397_v61 }
 0x6e5   : > { %13399 = vmatprep.subr.bf16.mxu1 %v13758_v26 }
 0x6e6   : > { %12695 = vmatmul.mubr.msk.f32.gmra.mrb[252].mxu0 %vm6061_vm5, %v7782_v11 }
 0x6e7   : > { %12607 = vmatmul.mubr.msk.f32.gmra.mrb[78].mxu1 %vm6061_vm5, %v7281_v38  ;;  %12720 = vmatprep.mubr.msk.f32.mxu0 %vm8001_vm6, %v7999_v50 }
 0x6e8   : > { %12609 = vmatprep.mubr.msk.f32.mxu1 %vm13759_vm8, %v13760_v60  ;;  %13401 = vmatpush3.bf16.msra.mxu1 %v13400_v45 }
 0x6e9   : > { %13408 = vmatprep.subr.bf16.mxu1 %v13758_v26 }
 0x6eb   : > { %12610 = vmatmul.mubr.msk.f32.gmra.mrb[80].mxu1 %vm6061_vm5, %v7282_v63 }
 0x6ec   : > { %12637 = vmatprep.mubr.msk.f32.mxu1 %vm13759_vm8, %v13760_v60 }
 0x6ef   : > { %12638 = vmatmul.mubr.msk.f32.vlgmr.msra.gmra.mrb[82].mxu1 %vm6061_vm5, %v7480_v58 }
 0x6f0   : > { %12640 = vmatprep.mubr.msk.f32.mxu1 %vm13759_vm8, %v13760_v60  ;;  %13410 = vmatpush3.bf16.msra.mxu1 %v13409_v33 }
 0x6f1   : > { %13411 = vmatprep.subr.bf16.mxu1 %v13758_v26 }
 0x6f3   : > { %12641 = vmatmul.mubr.msk.f32.gmra.mrb[84].mxu1 %vm6061_vm5, %v7481_v2 }
 0x6f4   : > { %12643 = vmatprep.mubr.msk.f32.mxu1 %vm13759_vm8, %v13760_v60  ;;  %13413 = vmatpush3.bf16.msra.mxu1 %v13412_v25 }
 0x6f5   : > { %13420 = vmatprep.subr.bf16.mxu1 %v13758_v26 }
 0x6f7   : > { %12644 = vmatmul.mubr.msk.f32.gmra.mrb[86].mxu1 %vm6061_vm5, %v7482_v44 }
 0x6f8   : > { %12671 = vmatprep.mubr.msk.f32.mxu1 %vm13759_vm8, %v13760_v60 }
 0x6fb   : > { %12672 = vmatmul.mubr.msk.f32.vlgmr.msra.gmra.mrb[88].mxu1 %vm6061_vm5, %v7680_v18 }
 0x6fc   : > { %12674 = vmatprep.mubr.msk.f32.mxu1 %vm13759_vm8, %v13760_v60  ;;  %13422 = vmatpush3.bf16.msra.mxu1 %v13421_v19 }
 0x6fd   : > { %13423 = vmatprep.subr.bf16.mxu1 %v13758_v26 }
 0x6ff   : > { %12675 = vmatmul.mubr.msk.f32.gmra.mrb[90].mxu1 %vm6061_vm5, %v7681_v17 }
 0x700   : > { %12677 = vmatprep.mubr.msk.f32.mxu1 %vm13759_vm8, %v13760_v60  ;;  %13425 = vmatpush3.bf16.msra.mxu1 %v13424_v5 }
 0x703   : > { %12678 = vmatmul.mubr.msk.f32.gmra.mrb[92].mxu1 %vm6061_vm5, %v7682_v1 }
 0x704   : > { %12705 = vmatprep.mubr.msk.f32.mxu1 %vm13759_vm8, %v13760_v60 }
 0x707   : > { %12706 = vmatmul.mubr.msk.f32.vlgmr.msra.gmra.mrb[94].mxu1 %vm6061_vm5, %v7880_v14 }
 0x708   : > { %12708 = vmatprep.mubr.msk.f32.mxu1 %vm13759_vm8, %v13760_v60 }
 0x70b   : > { %12709 = vmatmul.mubr.msk.f32.gmra.mrb[96].mxu1 %vm6061_vm5, %v7881_v20 }
 0x70c   : > { %12711 = vmatprep.mubr.msk.f32.mxu1 %vm13759_vm8, %v13760_v60 }
 0x70f   : > { %12712 = vmatmul.mubr.msk.f32.gmra.mrb[98].mxu1 %vm6061_vm5, %v7882_v54 }
 0x710   : > { %12738 = vmatprep.mubr.msk.f32.mxu1 %vm8001_vm6, %v10373_v7 }
 0x769   : > { %v6663_v27 = vpop.f32.mrb[212].mxu0 }
 0x76a   : > { %v12486_v3 = vpop.f32.mrb[213].mxu0 }
 0x76d   : > { %v6668_v23 = vpop.f32.mrb[214].mxu0 }
 0x76e   : > { %v12489_v12 = vpop.f32.mrb[215].mxu0 }
 0x771   : > { %v6673_v28 = vpop.f32.mrb[216].mxu0 }
 0x772   : > { %v12492_v41 = vpop.f32.mrb[217].mxu0 }
 0x775   : > { %v6863_v42 = vpop.f32.mrb[218].mxu0 }
 0x776   : > { %v12520_v32 = vpop.f32.mrb[219].mxu0 }
 0x779   : > { %v6868_v56 = vpop.f32.mrb[220].mxu0 }
 0x77a   : > { %v12523_v40 = vpop.f32.mrb[221].mxu0  ;;  %v6477_v6 = vpop.f32.mrb[46].mxu1 }
 0x77b   : > { %v12452_v55 = vpop.f32.mrb[47].mxu1 }
 0x77d   : > { %v6873_v37 = vpop.f32.mrb[222].mxu0 }
 0x77e   : > { %v12526_v43 = vpop.f32.mrb[223].mxu0  ;;  %v6482_v15 = vpop.f32.mrb[48].mxu1 }
 0x77f   : > { %v12455_v29 = vpop.f32.mrb[49].mxu1 }
 0x781   : > { %v7063_v39 = vpop.f32.mrb[224].mxu0 }
 0x782   : > { %v6487_v13 = vpop.f32.mrb[50].mxu1  ;;  %v12554_v46 = vpop.f32.mrb[225].mxu0 }
 0x783   : > { %v12458_v30 = vpop.f32.mrb[51].mxu1 }
 0x785   : > { %v7068_v16 = vpop.f32.mrb[226].mxu0 }
 0x786   : > { %v6566_v51 = vpop.f32.mrb[52].mxu1  ;;  %v12557_v34 = vpop.f32.mrb[227].mxu0 }
 0x787   : > { %v6567_v22 = vadd.f32 %v6566_v51, %v6477_v6  ;;  %v12469_v31 = vpop.f32.mrb[53].mxu1 }
 0x789   : > { %v7073_v57 = vpop.f32.mrb[228].mxu0  ;;  %v6677_v52 = vadd.f32 %v6663_v27, %v6567_v22 }
 0x78a   : > { %v6571_v0 = vpop.f32.mrb[54].mxu1  ;;  %v12560_v24 = vpop.f32.mrb[229].mxu0 }
 0x78b   : > { %v6572_v48 = vadd.f32 %v6571_v0, %v6482_v15  ;;  %v12472_v61 = vpop.f32.mrb[55].mxu1 }
 0x78d   : > { %v7263_v21 = vpop.f32.mrb[230].mxu0  ;;  %v6678_v9 = vadd.f32 %v6668_v23, %v6572_v48 }
 0x78e   : > { %v12588_v53 = vpop.f32.mrb[231].mxu0  ;;  %v6576_v35 = vpop.f32.mrb[56].mxu1 }
 0x78f   : > { %v6577_v45 = vadd.f32 %v6576_v35, %v6487_v13  ;;  %v12475_v11 = vpop.f32.mrb[57].mxu1 }
 0x791   : > { %v7268_v38 = vpop.f32.mrb[232].mxu0  ;;  %v6679_v36 = vadd.f32 %v6673_v28, %v6577_v45 }
 0x792   : > { %v12591_v4 = vpop.f32.mrb[233].mxu0  ;;  %v6763_v63 = vpop.f32.mrb[58].mxu1 }
 0x793   : > { %v6777_v33 = vadd.f32 %v6763_v63, %v6677_v52  ;;  %v12503_v62 = vpop.f32.mrb[59].mxu1 }
 0x795   : > { %v7273_v10 = vpop.f32.mrb[234].mxu0  ;;  %v6877_v58 = vadd.f32 %v6863_v42, %v6777_v33 }
 0x796   : > { %v12594_v25 = vpop.f32.mrb[235].mxu0  ;;  %v6768_v2 = vpop.f32.mrb[60].mxu1 }
 0x797   : > { %v6778_v59 = vadd.f32 %v6768_v2, %v6678_v9  ;;  %v12506_v47 = vpop.f32.mrb[61].mxu1 }
 0x799   : > { %v7463_v44 = vpop.f32.mrb[236].mxu0  ;;  %v6878_v19 = vadd.f32 %v6868_v56, %v6778_v59 }
 0x79a   : > { %v12622_v8 = vpop.f32.mrb[237].mxu0  ;;  %v6773_v49 = vpop.f32.mrb[62].mxu1 }
 0x79b   : > { %v6779_v18 = vadd.f32 %v6773_v49, %v6679_v36  ;;  %v12509_v5 = vpop.f32.mrb[63].mxu1 }
 0x79d   : > { %v7468_v17 = vpop.f32.mrb[238].mxu0  ;;  %v6879_v1 = vadd.f32 %v6873_v37, %v6779_v18 }
 0x79e   : > { %v12625_v14 = vpop.f32.mrb[239].mxu0  ;;  %v6963_v20 = vpop.f32.mrb[64].mxu1 }
 0x79f   : > { %v6977_v54 = vadd.f32 %v6963_v20, %v6877_v58  ;;  %v12537_v27 = vpop.f32.mrb[65].mxu1 }
 0x7a1   : > { %v7473_v3 = vpop.f32.mrb[240].mxu0  ;;  %v7077_v23 = vadd.f32 %v7063_v39, %v6977_v54 }
 0x7a2   : > { %v12628_v50 = vpop.f32.mrb[241].mxu0  ;;  %v6968_v12 = vpop.f32.mrb[66].mxu1 }
 0x7a3   : > { %v6978_v28 = vadd.f32 %v6968_v12, %v6878_v19  ;;  %v12540_v41 = vpop.f32.mrb[67].mxu1 }
 0x7a5   : > { %v7663_v42 = vpop.f32.mrb[242].mxu0  ;;  %v7078_v32 = vadd.f32 %v7068_v16, %v6978_v28 }
 0x7a6   : > { %v12656_v40 = vpop.f32.mrb[243].mxu0  ;;  %v6973_v56 = vpop.f32.mrb[68].mxu1 }
 0x7a7   : > { %v6979_v6 = vadd.f32 %v6973_v56, %v6879_v1  ;;  %v12543_v7 = vpop.f32.mrb[69].mxu1 }
 0x7a9   : > { %v7668_v55 = vpop.f32.mrb[244].mxu0  ;;  %v7079_v43 = vadd.f32 %v7073_v57, %v6979_v6  ;;  %v10364_v6 = vld [vmem:[%s16919_s8] ss:$0 sm:$0xff] }
 0x7aa   : > { %v12659_v15 = vpop.f32.mrb[245].mxu0  ;;  %v7163_v37 = vpop.f32.mrb[70].mxu1 }
 0x7ab   : > { %v7177_v29 = vadd.f32 %v7163_v37, %v7077_v23  ;;  %v12571_v13 = vpop.f32.mrb[71].mxu1 }
 0x7ad   : > { %v7673_v46 = vpop.f32.mrb[246].mxu0  ;;  %v7277_v30 = vadd.f32 %v7263_v21, %v7177_v29 }
 0x7ae   : > { %v12662_v51 = vpop.f32.mrb[247].mxu0  ;;  %v7168_v39 = vpop.f32.mrb[72].mxu1 }
 0x7af   : > { %v7178_v34 = vadd.f32 %v7168_v39, %v7078_v32  ;;  %v12574_v22 = vpop.f32.mrb[73].mxu1 }
 0x7b1   : > { %v7863_v31 = vpop.f32.mrb[248].mxu0  ;;  %v7278_v52 = vadd.f32 %v7268_v38, %v7178_v34 }
 0x7b2   : > { %v12690_v0 = vpop.f32.mrb[249].mxu0  ;;  %v7173_v16 = vpop.f32.mrb[74].mxu1 }
 0x7b3   : > { %v7179_v24 = vadd.f32 %v7173_v16, %v7079_v43  ;;  %v12577_v48 = vpop.f32.mrb[75].mxu1 }
 0x7b4   : > { %v8000_v48 = vld [vmem:[%s16920_s9 + $0x8] sm:$0xff] }
 0x7b5   : > { %v7868_v61 = vpop.f32.mrb[250].mxu0  ;;  %v7279_v9 = vadd.f32 %v7273_v10, %v7179_v24 }
 0x7b6   : > { %v12693_v53 = vpop.f32.mrb[251].mxu0  ;;  %v7363_v57 = vpop.f32.mrb[76].mxu1 }
 0x7b7   : > { %v7377_v35 = vadd.f32 %v7363_v57, %v7277_v30  ;;  %v12605_v45 = vpop.f32.mrb[77].mxu1  ;;  %v10369_v53 = vld [vmem:[%s16920_s9 + $0x18] sm:$0xff]  ;;  %v10378_v57 = vld [vmem:[%s16920_s9 + $0x30] sm:$0xff] }
 0x7b8   : > { %v8352_v45 = vld [vmem:[%s16921_s10 + $0x8] sm:$0xff] }
 0x7b9   : > { %v7873_v11 = vpop.f32.mrb[252].mxu0  ;;  %v7477_v36 = vadd.f32 %v7463_v44, %v7377_v35  ;;  %v8351_v35 = vld [vmem:[%s16921_s10] sm:$0xff] }
 0x7ba   : > { %v12696_v4 = vpop.f32.mrb[253].mxu0  ;;  %v7368_v21 = vpop.f32.mrb[78].mxu1 }
 0x7bb   : > { %v7378_v63 = vadd.f32 %v7368_v21, %v7278_v52  ;;  %v12608_v33 = vpop.f32.mrb[79].mxu1  ;;  %v8353_v4 = vld [vmem:[%s16921_s10 + $0x10] sm:$0xff]  ;;  %v8354_v21 = vld [vmem:[%s16921_s10 + $0x18] sm:$0xff] }
 0x7bc   : > { %v10383_v33 = vld [vmem:[%s16921_s10 + $0x40] sm:$0xff] }
 0x7bd   : > { %v7478_v62 = vadd.f32 %v7468_v17, %v7378_v63  ;;  %v13458_v63 = vpack.c.bf16 %v8354_v21, %v8353_v4  ;;  %v10412_v4 = vld [vmem:[%s16921_s10 + $0x108] sm:$0xff] }
 0x7be   : > { %v7373_v58 = vpop.f32.mrb[80].mxu1 }
 0x7bf   : > { %v7379_v25 = vadd.f32 %v7373_v58, %v7279_v9  ;;  %v12611_v38 = vpop.f32.mrb[81].mxu1  ;;  %v10374_v9 = vld [vmem:[%s16920_s9 + $0x28] sm:$0xff] }
 0x7c0   : > { %v8356_v38 = vld [vmem:[%s16921_s10 + $0x28] sm:$0xff] }
 0x7c1   : > { %v7479_v2 = vadd.f32 %v7473_v3, %v7379_v25  ;;  %v8355_v25 = vld [vmem:[%s16921_s10 + $0x20] sm:$0xff] }
 0x7c2   : > { %v7563_v59 = vpop.f32.mrb[82].mxu1 }
 0x7c3   : > { %v7577_v47 = vadd.f32 %v7563_v59, %v7477_v36  ;;  %v12639_v19 = vpop.f32.mrb[83].mxu1  ;;  %v13455_v36 = vpack.c.bf16 %v8352_v45, %v8351_v35  ;;  %v13461_v59 = vpack.c.bf16 %v8356_v38, %v8355_v25  ;;  %v10422_v35 = vld [vmem:[%s16921_s10 + $0x150] sm:$0xff]  ;;  %v10423_v45 = vld [vmem:[%s16921_s10 + $0x158] sm:$0xff] }
 0x7c4   : > { %v13506_v21 = vpack.c.bf16 %v10423_v45, %v10422_v35  ;;  %v10413_v25 = vld [vmem:[%s16921_s10 + $0x110] sm:$0xff]  ;;  %v10414_v38 = vld [vmem:[%s16921_s10 + $0x118] sm:$0xff] }
 0x7c5   : > { %v7677_v8 = vadd.f32 %v7663_v42, %v7577_v47  ;;  %v10386_v47 = vld [vmem:[%s16921_s10 + $0x58] sm:$0xff] }
 0x7c6   : > { %v7568_v10 = vpop.f32.mrb[84].mxu1  ;;  %v10450_v35 = vld [vmem:[%s16921_s10 + $0x218] sm:$0xff] }
 0x7c7   : > { %v7578_v49 = vadd.f32 %v7568_v10, %v7478_v62  ;;  %v12642_v18 = vpop.f32.mrb[85].mxu1  ;;  %v10384_v62 = vld [vmem:[%s16921_s10 + $0x48] sm:$0xff]  ;;  %v8358_v10 = vld [vmem:[%s16921_s10 + $0x38] sm:$0xff] }
 0x7c8   : > { %v13443_v58 = vpack.c.bf16 %v10384_v62, %v10383_v33  ;;  %v10387_v18 = vld [vmem:[%s16921_s10 + $0x60] sm:$0xff]  ;;  %v10425_v33 = vld [vmem:[%s16921_s10 + $0x168] sm:$0xff] }
 0x7c9   : > { %v7678_v5 = vadd.f32 %v7668_v55, %v7578_v49 }
 0x7ca   : > { %v7573_v1 = vpop.f32.mrb[86].mxu1 }
 0x7cb   : > { %v7579_v14 = vadd.f32 %v7573_v1, %v7479_v2  ;;  %v12645_v44 = vpop.f32.mrb[87].mxu1  ;;  %v10385_v2 = vld [vmem:[%s16921_s10 + $0x50] sm:$0xff] }
 0x7cc   : > { %v13446_v19 = vpack.c.bf16 %v10386_v47, %v10385_v2  ;;  %v10390_v44 = vld [vmem:[%s16921_s10 + $0x78] sm:$0xff] }
 0x7cd   : > { %v7679_v20 = vadd.f32 %v7673_v46, %v7579_v14  ;;  %v10389_v14 = vld [vmem:[%s16921_s10 + $0x70] sm:$0xff]  ;;  %v10427_v47 = vld [vmem:[%s16921_s10 + $0x178] sm:$0xff] }
 0x7ce   : > { %v7763_v54 = vpop.f32.mrb[88].mxu1 }
 0x7cf   : > { %v7777_v27 = vadd.f32 %v7763_v54, %v7677_v8  ;;  %v12673_v23 = vpop.f32.mrb[89].mxu1  ;;  %v8357_v8 = vld [vmem:[%s16921_s10 + $0x30] sm:$0xff] }
 0x7d0   : > { %v13464_v49 = vpack.c.bf16 %v8358_v10, %v8357_v8  ;;  %v10415_v8 = vld [vmem:[%s16921_s10 + $0x120] sm:$0xff]  ;;  %v10416_v10 = vld [vmem:[%s16921_s10 + $0x128] sm:$0xff] }
 0x7d1   : > { %v7877_v17 = vadd.f32 %v7863_v31, %v7777_v27 }
 0x7d2   : > { %v7768_v50 = vpop.f32.mrb[90].mxu1 }
 0x7d3   : > { %v7778_v12 = vadd.f32 %v7768_v50, %v7678_v5  ;;  %v12676_v28 = vpop.f32.mrb[91].mxu1  ;;  %v10388_v5 = vld [vmem:[%s16921_s10 + $0x68] sm:$0xff]  ;;  %v10402_v50 = vld [vmem:[%s16921_s10 + $0xc0] sm:$0xff] }
 0x7d4   : > { %v13449_v1 = vpack.c.bf16 %v10388_v5, %v10387_v18  ;;  %v10438_v18 = vld [vmem:[%s16921_s10 + $0x1c0] sm:$0xff]  ;;  %v10439_v5 = vld [vmem:[%s16921_s10 + $0x1c8] sm:$0xff] }
 0x7d5   : > { %v7878_v3 = vadd.f32 %v7868_v61, %v7778_v12  ;;  %v10368_v61 = vld [vmem:[%s16920_s9 + $0x10] sm:$0xff]  ;;  %v10403_v12 = vld [vmem:[%s16921_s10 + $0xc8] sm:$0xff] }
 0x7d6   : > { %v7773_v41 = vpop.f32.mrb[92].mxu1 }
 0x7d7   : > { %v7779_v32 = vadd.f32 %v7773_v41, %v7679_v20  ;;  %v12679_v40 = vpop.f32.mrb[93].mxu1  ;;  %v13452_v20 = vpack.c.bf16 %v10390_v44, %v10389_v14  ;;  %v13479_v41 = vpack.c.bf16 %v10403_v12, %v10402_v50  ;;  %v10417_v14 = vld [vmem:[%s16921_s10 + $0x130] sm:$0xff]  ;;  %v10418_v44 = vld [vmem:[%s16921_s10 + $0x138] sm:$0xff]  ;;  %v10429_v50 = vld [vmem:[%s16921_s10 + $0x180] sm:$0xff] }
 0x7d8   : > { %v10405_v40 = vld [vmem:[%s16921_s10 + $0xd8] sm:$0xff]  ;;  %v10430_v12 = vld [vmem:[%s16921_s10 + $0x188] sm:$0xff] }
 0x7d9   : > { %v7879_v42 = vadd.f32 %v7873_v11, %v7779_v32  ;;  %v10379_v11 = vld [vmem:[%s16920_s9 + $0x38] sm:$0xff]  ;;  %v10404_v32 = vld [vmem:[%s16921_s10 + $0xd0] sm:$0xff] }
 0x7da   : > { %v7963_v56 = vpop.f32.mrb[94].mxu1 }
 0x7db   : > { %v7977_v7 = vadd.f32 %v7963_v56, %v7877_v17  ;;  %v12707_v55 = vpop.f32.mrb[95].mxu1  ;;  %v10393_v56 = vld [vmem:[%s16921_s10 + $0x80] sm:$0xff] }
 0x7dd   : > { %v7987_v43 = vadd.f32 %v10364_v6, %v7977_v7  ;;  %v13482_v7 = vpack.c.bf16 %v10405_v40, %v10404_v32  ;;  %v13515_v32 = vpack.c.bf16 %v10430_v12, %v10429_v50  ;;  %v10431_v40 = vld [vmem:[%s16921_s10 + $0x190] sm:$0xff]  ;;  %v10481_v12 = vld [vmem:[%s16921_s10 + $0x2f8] sm:$0xff] }
 0x7de   : > { %v7968_v15 = vpop.f32.mrb[96].mxu1  ;;  %v10480_v50 = vld [vmem:[%s16921_s10 + $0x2f0] sm:$0xff] }
 0x7df   : > { %v7978_v37 = vadd.f32 %v7968_v15, %v7878_v3  ;;  %v12710_v29 = vpop.f32.mrb[97].mxu1  ;;  %v7993_v13 = vmul.f32 0.2, %v7987_v43  ;;  %vm7990_vm7 = vcmp.ge.f32.partialorder %v7987_v43, 0.0  ;;  %v10407_v15 = vld [vmem:[%s16921_s10 + $0xe8] sm:$0xff] }
 0x7e1   : > { %v7988_v46 = vadd.f32 %v10364_v6, %v7978_v37  ;;  %v7996_v22 = vsel %vm7990_vm7, %v7987_v43, %v7993_v13  ;;  %v10406_v43 = vld [vmem:[%s16921_s10 + $0xe0] sm:$0xff]  ;;  %v10395_v13 = vld [vmem:[%s16921_s10 + $0x90] sm:$0xff] }
 0x7e2   : > { %v7973_v30 = vpop.f32.mrb[98].mxu1 }
 0x7e3   : > { %vm7991_vm9 = vcmp.ge.f32.partialorder %v7988_v46, 0.0  ;;  %v7994_v51 = vmul.f32 0.2, %v7988_v46  ;;  %v7979_v39 = vadd.f32 %v7973_v30, %v7879_v42  ;;  %v12713_v34 = vpop.f32.mrb[99].mxu1 }
 0x7e4   : > { %v10409_v34 = vld [vmem:[%s16921_s10 + $0xf8] sm:$0xff] }
 0x7e5   : > { %v7997_v31 = vsel %vm7991_vm9, %v7988_v46, %v7994_v51  ;;  %v7989_v52 = vadd.f32 %v10364_v6, %v7979_v39  ;;  %v10394_v6 = vld [vmem:[%s16921_s10 + $0x88] sm:$0xff]  ;;  %v10396_v46 = vld [vmem:[%s16921_s10 + $0x98] sm:$0xff]  ;;  %v13485_v51 = vpack.c.bf16 %v10407_v15, %v10406_v43  ;;  %v10408_v39 = vld [vmem:[%s16921_s10 + $0xf0] sm:$0xff] }
 0x7e6   : > { %v13426_v0 = vpack.c.bf16 %v7997_v31, %v7996_v22  ;;  %v13467_v37 = vpack.c.bf16 %v10394_v6, %v10393_v56  ;;  %v13470_v22 = vpack.c.bf16 %v10396_v46, %v10395_v13  ;;  %v10397_v31 = vld [vmem:[%s16921_s10 + $0xa0] sm:$0xff]  ;;  %v10457_v46 = vld [vmem:[%s16921_s10 + $0x248] sm:$0xff] }
 0x7e7   : > { %vm7992_vm10 = vcmp.ge.f32.partialorder %v7989_v52, 0.0  ;;  %v7995_v16 = vmul.f32 0.2, %v7989_v52  ;;  %v10433_v15 = vld [vmem:[%s16921_s10 + $0x1a0] sm:$0xff] }
 0x7e8   : > { %13427 = vmatprep.subr.bf16.mxu0 %v13426_v0  ;;  %13435 = vmatprep.subr.bf16.mxu1 %v13426_v0  ;;  %v10456_v13 = vld [vmem:[%s16921_s10 + $0x240] sm:$0xff] }
 0x7e9   : > { %v7998_v24 = vsel %vm7992_vm10, %v7989_v52, %v7995_v16  ;;  %13429 = vmatpush3.bf16.msra.mxu0 %v13426_v0  ;;  %13437 = vmatpush3.bf16.msra.mxu1 %v13426_v0  ;;  %v10398_v52 = vld [vmem:[%s16921_s10 + $0xa8] sm:$0xff]  ;;  %v10420_v16 = vld [vmem:[%s16921_s10 + $0x140] sm:$0xff] }
 0x7ea   : > { %12718 = vmatprep.subr.msk.mxu0 %vm588_vm0, %v7998_v24  ;;  %12736 = vmatprep.subr.msk.mxu1 %vm588_vm0, %v7998_v24 }
 0x7ed   : > { %12719 = vmatpush3.msk.msra.mxu0 %vm588_vm0, %v7998_v24  ;;  %12737 = vmatpush3.msk.msra.mxu1 %vm588_vm0, %v7998_v24 }
 0x7ee   : > { %12721 = vmatmul.mubr.msk.f32.vlgmr.msra.gmra.mrb[254].mxu0 %vm8001_vm6, %v8000_v48  ;;  %13431 = vmatprep.subr.bf16.mxu0 %v13426_v0  ;;  %v13473_v48 = vpack.c.bf16 %v10398_v52, %v10397_v31  ;;  %v10459_v31 = vld [vmem:[%s16921_s10 + $0x258] sm:$0xff] }
 0x7ef   : > { %13433 = vmatpush3.bf16.msra.mxu0 %v13426_v0  ;;  %12729 = vmatprep.mubr.msk.f32.mxu0 %vm8001_vm6, %v10368_v61  ;;  %v10399_v61 = vld [vmem:[%s16921_s10 + $0xb0] sm:$0xff] }
 0x7f0   : > { %12727 = vmatprep.subr.msk.mxu0 %vm588_vm0, %v7998_v24  ;;  %12739 = vmatmul.mubr.msk.f32.vlgmr.msra.gmra.mrb[100].mxu1 %vm8001_vm6, %v10374_v9  ;;  %v10400_v9 = vld [vmem:[%s16921_s10 + $0xb8] sm:$0xff] }
 0x7f1   : > { %13442 = vmatprep.subr.bf16.mxu1 %v13758_v26  ;;  %12766 = vmatprep.mubr.msk.f32.mxu1 %vm13759_vm8, %v13760_v60 }
 0x7f2   : > { %13444 = vmatpush3.bf16.msra.mxu1 %v13443_v58 }
 0x7f3   : > { %12728 = vmatpush3.msk.msra.mxu0 %vm588_vm0, %v7998_v24  ;;  %13445 = vmatprep.subr.bf16.mxu1 %v13758_v26 }
 0x7f4   : > { %12730 = vmatmul.mubr.msk.f32.vlgmr.msra.gmra.mrb[0].mxu0 %vm8001_vm6, %v10369_v53  ;;  %13439 = vmatprep.subr.bf16.mxu0 %v13426_v0 }
 0x7f5   : > { %13441 = vmatpush3.bf16.msra.mxu0 %v13426_v0  ;;  %12747 = vmatprep.mubr.msk.f32.mxu0 %vm8001_vm6, %v10378_v57  ;;  %v13488_v0 = vpack.c.bf16 %v10409_v34, %v10408_v39  ;;  %v10436_v39 = vld [vmem:[%s16921_s10 + $0x1b8] sm:$0xff]  ;;  %v13551_v34 = vpack.c.bf16 %v10457_v46, %v10456_v13  ;;  %v10483_v13 = vld [vmem:[%s16921_s10 + $0x300] sm:$0xff]  ;;  %v10484_v46 = vld [vmem:[%s16921_s10 + $0x308] sm:$0xff] }
 0x7f6   : > { %12745 = vmatprep.subr.msk.mxu0 %vm588_vm0, %v7998_v24  ;;  %13447 = vmatpush3.bf16.msra.mxu1 %v13446_v19  ;;  %v13494_v19 = vpack.c.bf16 %v10414_v38, %v10413_v25  ;;  %v10475_v25 = vld [vmem:[%s16921_s10 + $0x2c8] sm:$0xff] }
 0x7f7   : > { %13448 = vmatprep.subr.bf16.mxu1 %v13758_v26 }
 0x7f9   : > { %12746 = vmatpush3.msk.msra.mxu0 %vm588_vm0, %v7998_v24  ;;  %vm8086_vm0 = vcmask 523264   ;;  %v10421_v24 = vld [vmem:[%s16921_s10 + $0x148] sm:$0xff] }
 0x7fa   : > { %12748 = vmatmul.mubr.msk.f32.vlgmr.msra.gmra.mrb[2].mxu0 %vm8001_vm6, %v10379_v11  ;;  %13454 = vmatprep.subr.bf16.mxu0 %v13758_v26  ;;  %v13503_v57 = vpack.c.bf16 %v10421_v24, %v10420_v16  ;;  %v13476_v11 = vpack.c.bf16 %v10400_v9, %v10399_v61  ;;  %v10447_v16 = vld [vmem:[%s16921_s10 + $0x200] sm:$0xff]  ;;  %v10448_v24 = vld [vmem:[%s16921_s10 + $0x208] sm:$0xff] }
 0x7fb   : > { %13456 = vmatpush3.bf16.msra.mxu0 %v13455_v36  ;;  %12785 = vmatprep.mubr.msk.f32.mxu0 %vm13759_vm8, %v13760_v60  ;;  %v10411_v36 = vld [vmem:[%s16921_s10 + $0x100] sm:$0xff]  ;;  %v10461_v9 = vld [vmem:[%s16921_s10 + $0x268] sm:$0xff] }
 0x7fc   : > { %13457 = vmatprep.subr.bf16.mxu0 %v13758_v26  ;;  %13450 = vmatpush3.bf16.msra.mxu1 %v13449_v1  ;;  %v13491_v58 = vpack.c.bf16 %v10412_v4, %v10411_v36  ;;  %v13497_v1 = vpack.c.bf16 %v10416_v10, %v10415_v8  ;;  %v10460_v61 = vld [vmem:[%s16921_s10 + $0x260] sm:$0xff]  ;;  %v10462_v36 = vld [vmem:[%s16921_s10 + $0x270] sm:$0xff]  ;;  %v10463_v4 = vld [vmem:[%s16921_s10 + $0x278] sm:$0xff] }
 0x7fd   : > { %13451 = vmatprep.subr.bf16.mxu1 %v13758_v26  ;;  %v10477_v8 = vld [vmem:[%s16921_s10 + $0x2d8] sm:$0xff] }
 0x7ff   : > { %13459 = vmatpush3.bf16.msra.mxu0 %v13458_v63  ;;  %v10424_v63 = vld [vmem:[%s16921_s10 + $0x160] sm:$0xff] }
 0x800   : > { %13460 = vmatprep.subr.bf16.mxu0 %v13758_v26  ;;  %13453 = vmatpush3.bf16.msra.mxu1 %v13452_v20  ;;  %v13509_v2 = vpack.c.bf16 %v10425_v33, %v10424_v63  ;;  %v13527_v20 = vpack.c.bf16 %v10439_v5, %v10438_v18  ;;  %v10451_v63 = vld [vmem:[%s16921_s10 + $0x220] sm:$0xff]  ;;  %v10452_v33 = vld [vmem:[%s16921_s10 + $0x228] sm:$0xff] }
 0x801   : > { %13466 = vmatprep.subr.bf16.mxu1 %v13758_v26  ;;  %v13545_v38 = vpack.c.bf16 %v10452_v33, %v10451_v63  ;;  %v10465_v18 = vld [vmem:[%s16921_s10 + $0x280] sm:$0xff]  ;;  %v10466_v5 = vld [vmem:[%s16921_s10 + $0x288] sm:$0xff]  ;;  %v10513_v63 = vld [vmem:[%s16921_s10 + $0x3d8] sm:$0xff] }
 0x803   : > { %13462 = vmatpush3.bf16.msra.mxu0 %v13461_v59  ;;  %v10426_v59 = vld [vmem:[%s16921_s10 + $0x170] sm:$0xff] }
 0x804   : > { %13463 = vmatprep.subr.bf16.mxu0 %v13758_v26 }
 0x807   : > { %13465 = vmatpush3.bf16.msra.mxu0 %v13464_v49  ;;  %v13512_v49 = vpack.c.bf16 %v10427_v47, %v10426_v59  ;;  %v10454_v59 = vld [vmem:[%s16921_s10 + $0x238] sm:$0xff] }
 0x808   : > { %13478 = vmatprep.subr.bf16.mxu0 %v13758_v26 }
 0x8c1   : > { %v12722_v54 = vpop.f32.mrb[254].mxu0 }
 0x8c2   : > { %8088 = vst.msk [vmem:[#allocation4 + $0x8] sm:$0xff] %vm8086_vm0, %v12722_v54  ;;  %v8077_v27 = vpop.f32.mrb[255].mxu0  ;;  %v10440_v54 = vld [vmem:[%s16921_s10 + $0x1d0] sm:$0xff] }
 0x8c3   : > { %8087 = vst.msk [vmem:[#allocation4] sm:$0xff] %vm8086_vm0, %v8077_v27  ;;  %v12740_v23 = vpop.f32.mrb[100].mxu1  ;;  %v10441_v27 = vld [vmem:[%s16921_s10 + $0x1d8] sm:$0xff] }
 0x8c4   : > { %8262 = vst.msk [vmem:[#allocation4 + $0x28] sm:$0xff] %vm8086_vm0, %v12740_v23  ;;  %v8251_v17 = vpop.f32.mrb[101].mxu1 }
 0x8c5   : > { %8261 = vst.msk [vmem:[#allocation4 + $0x20] sm:$0xff] %vm8086_vm0, %v8251_v17  ;;  %v13500_v17 = vpack.c.bf16 %v10418_v44, %v10417_v14  ;;  %v10478_v14 = vld [vmem:[%s16921_s10 + $0x2e0] sm:$0xff]  ;;  %v10479_v44 = vld [vmem:[%s16921_s10 + $0x2e8] sm:$0xff] }
 0x8c7   : > { %v12731_v28 = vpop.f32.mrb[0].mxu0 }
 0x8c8   : > { %8175 = vst.msk [vmem:[#allocation4 + $0x18] sm:$0xff] %vm8086_vm0, %v12731_v28  ;;  %v8164_v3 = vpop.f32.mrb[1].mxu0  ;;  %v13530_v28 = vpack.c.bf16 %v10441_v27, %v10440_v54  ;;  %v10467_v54 = vld [vmem:[%s16921_s10 + $0x290] sm:$0xff]  ;;  %v10468_v27 = vld [vmem:[%s16921_s10 + $0x298] sm:$0xff] }
 0x8c9   : > { %8174 = vst.msk [vmem:[#allocation4 + $0x10] sm:$0xff] %vm8086_vm0, %v8164_v3  ;;  %v10442_v3 = vld [vmem:[%s16921_s10 + $0x1e0] sm:$0xff] }
 0x8ca   : > { %v8350_v42 = vld [vmem:[#allocation4] sm:$0x3f] }
 0x8cb   : > { %12786 = vmatmul.mubr.msk.f32.vlgmr.msra.gmra.mrb[4].mxu0 %vm8086_vm0, %v8350_v42  ;;  %v10432_v42 = vld [vmem:[%s16921_s10 + $0x198] sm:$0xff]  ;;  %v8683_v56 = vld [vmem:[#allocation4 + $0x1] sm:$0x3f] }
 0x8cc   : > { %13480 = vmatpush3.bf16.msra.mxu0 %v13479_v41  ;;  %12823 = vmatprep.mubr.msk.f32.mxu0 %vm13759_vm8, %v13760_v60  ;;  %v8515_v62 = vld [vmem:[#allocation4 + $0x20] sm:$0x3f]  ;;  %v10443_v41 = vld [vmem:[%s16921_s10 + $0x1e8] sm:$0xff]  ;;  %v13518_v43 = vpack.c.bf16 %v10432_v42, %v10431_v40 }
 0x8cd   : > { %13481 = vmatprep.subr.bf16.mxu0 %v13758_v26  ;;  %v12749_v55 = vpop.f32.mrb[2].mxu0  ;;  %v13533_v6 = vpack.c.bf16 %v10443_v41, %v10442_v3  ;;  %v8851_v45 = vld [vmem:[#allocation4 + $0x21] sm:$0x3f]  ;;  %v10470_v41 = vld [vmem:[%s16921_s10 + $0x2a8] sm:$0xff] }
 0x8ce   : > { %8349 = vst.msk [vmem:[#allocation4 + $0x38] sm:$0xff] %vm8086_vm0, %v12749_v55  ;;  %v8338_v29 = vpop.f32.mrb[3].mxu0  ;;  %v10445_v55 = vld [vmem:[%s16921_s10 + $0x1f8] sm:$0xff]  ;;  %v10469_v3 = vld [vmem:[%s16921_s10 + $0x2a0] sm:$0xff]  ;;  %v10493_v42 = vld [vmem:[%s16921_s10 + $0x348] sm:$0xff] }
 0x8cf   : > { %8348 = vst.msk [vmem:[#allocation4 + $0x30] sm:$0xff] %vm8086_vm0, %v8338_v29  ;;  %v10492_v40 = vld [vmem:[%s16921_s10 + $0x340] sm:$0xff] }
 0x8d0   : > { %13483 = vmatpush3.bf16.msra.mxu0 %v13482_v7  ;;  %v8359_v30 = vld [vmem:[#allocation4 + $0x10] sm:$0x3f] }
 0x8d1   : > { %12767 = vmatmul.mubr.msk.f32.vlgmr.msra.gmra.mrb[102].mxu1 %vm8086_vm0, %v8359_v30  ;;  %13484 = vmatprep.subr.bf16.mxu0 %v13758_v26  ;;  %v8767_v23 = vld [vmem:[#allocation4 + $0x11] sm:$0x3f] }
 0x8d2   : > { %13468 = vmatpush3.bf16.msra.mxu1 %v13467_v37  ;;  %12804 = vmatprep.mubr.msk.f32.mxu1 %vm13759_vm8, %v13760_v60  ;;  %v10444_v7 = vld [vmem:[%s16921_s10 + $0x1f0] sm:$0xff]  ;;  %v10434_v37 = vld [vmem:[%s16921_s10 + $0x1a8] sm:$0xff] }
 0x8d3   : > { %13469 = vmatprep.subr.bf16.mxu1 %v13758_v26  ;;  %v13536_v29 = vpack.c.bf16 %v10445_v55, %v10444_v7  ;;  %v13521_v30 = vpack.c.bf16 %v10434_v37, %v10433_v15  ;;  %v9103_v10 = vld [vmem:[#allocation4 + $0x13] sm:$0x3f]  ;;  %v13599_v55 = vpack.c.bf16 %v10493_v42, %v10492_v40 }
 0x8d4   : > { %13486 = vmatpush3.bf16.msra.mxu0 %v13485_v51  ;;  %v10435_v51 = vld [vmem:[%s16921_s10 + $0x1b0] sm:$0xff]  ;;  %v10472_v7 = vld [vmem:[%s16921_s10 + $0x2b8] sm:$0xff] }
 0x8d5   : > { %13487 = vmatprep.subr.bf16.mxu0 %v13758_v26  ;;  %v10495_v15 = vld [vmem:[%s16921_s10 + $0x358] sm:$0xff] }
 0x8d6   : > { %13471 = vmatpush3.bf16.msra.mxu1 %v13470_v22  ;;  %v8599_v53 = vld [vmem:[#allocation4 + $0x30] sm:$0x3f] }
 0x8d7   : > { %13472 = vmatprep.subr.bf16.mxu1 %v13758_v26  ;;  %v10458_v22 = vld [vmem:[%s16921_s10 + $0x250] sm:$0xff] }
 0x8d8   : > { %13489 = vmatpush3.bf16.msra.mxu0 %v13488_v0  ;;  %v8935_v52 = vld [vmem:[#allocation4 + $0x31] sm:$0x3f]  ;;  %v13524_v0 = vpack.c.bf16 %v10436_v39, %v10435_v51  ;;  %v10496_v51 = vld [vmem:[%s16921_s10 + $0x360] sm:$0xff]  ;;  %v10497_v39 = vld [vmem:[%s16921_s10 + $0x368] sm:$0xff] }
 0x8d9   : > { %13502 = vmatprep.subr.bf16.mxu0 %v13758_v26  ;;  %v9271_v37 = vld [vmem:[#allocation4 + $0x33] sm:$0x3f] }
 0x8da   : > { %13474 = vmatpush3.bf16.msra.mxu1 %v13473_v48  ;;  %v13554_v48 = vpack.c.bf16 %v10459_v31, %v10458_v22  ;;  %v10485_v22 = vld [vmem:[%s16921_s10 + $0x310] sm:$0xff]  ;;  %v10486_v31 = vld [vmem:[%s16921_s10 + $0x318] sm:$0xff] }
 0x8db   : > { %12824 = vmatmul.mubr.msk.f32.vlgmr.msra.gmra.mrb[6].mxu0 %vm8086_vm0, %v8599_v53  ;;  %13475 = vmatprep.subr.bf16.mxu1 %v13758_v26  ;;  %v13539_v53 = vpack.c.bf16 %v10448_v24, %v10447_v16  ;;  %v10498_v16 = vld [vmem:[%s16921_s10 + $0x370] sm:$0xff]  ;;  %v10499_v24 = vld [vmem:[%s16921_s10 + $0x378] sm:$0xff] }
 0x8dc   : > { %13504 = vmatpush3.bf16.msra.mxu0 %v13503_v57  ;;  %12861 = vmatprep.mubr.msk.f32.mxu0 %vm13759_vm8, %v13760_v60  ;;  %v10449_v57 = vld [vmem:[%s16921_s10 + $0x210] sm:$0xff] }
 0x8dd   : > { %13505 = vmatprep.subr.bf16.mxu0 %v13758_v26  ;;  %v9439_v33 = vld [vmem:[#allocation4 + $0x14] sm:$0x3f] }
 0x8de   : > { %13477 = vmatpush3.bf16.msra.mxu1 %v13476_v11  ;;  %v13557_v11 = vpack.c.bf16 %v10461_v9, %v10460_v61  ;;  %v10487_v61 = vld [vmem:[%s16921_s10 + $0x320] sm:$0xff]  ;;  %v10488_v9 = vld [vmem:[%s16921_s10 + $0x328] sm:$0xff] }
 0x8df   : > { %13490 = vmatprep.subr.bf16.mxu1 %v13758_v26 }
 0x8e0   : > { %13507 = vmatpush3.bf16.msra.mxu0 %v13506_v21  ;;  %v13542_v21 = vpack.c.bf16 %v10450_v35, %v10449_v57  ;;  %v10510_v57 = vld [vmem:[%s16921_s10 + $0x3c0] sm:$0xff]  ;;  %v10511_v35 = vld [vmem:[%s16921_s10 + $0x3c8] sm:$0xff] }
 0x8e1   : > { %12805 = vmatmul.mubr.msk.f32.vlgmr.msra.gmra.mrb[104].mxu1 %vm8086_vm0, %v8515_v62  ;;  %13508 = vmatprep.subr.bf16.mxu0 %v13758_v26  ;;  %v13560_v62 = vpack.c.bf16 %v10463_v4, %v10462_v36  ;;  %v10490_v36 = vld [vmem:[%s16921_s10 + $0x338] sm:$0xff]  ;;  %v13623_v4 = vpack.c.bf16 %v10511_v35, %v10510_v57 }
 0x8e2   : > { %13492 = vmatpush3.bf16.msra.mxu1 %v13491_v58  ;;  %12842 = vmatprep.mubr.msk.f32.mxu1 %vm13759_vm8, %v13760_v60  ;;  %v10474_v58 = vld [vmem:[%s16921_s10 + $0x2c0] sm:$0xff] }
 0x8e3   : > { %13493 = vmatprep.subr.bf16.mxu1 %v13758_v26  ;;  %v13575_v47 = vpack.c.bf16 %v10475_v25, %v10474_v58  ;;  %v10501_v58 = vld [vmem:[%s16921_s10 + $0x380] sm:$0xff]  ;;  %v10502_v25 = vld [vmem:[%s16921_s10 + $0x388] sm:$0xff] }
 0x8e4   : > { %13510 = vmatpush3.bf16.msra.mxu0 %v13509_v2  ;;  %v10453_v2 = vld [vmem:[%s16921_s10 + $0x230] sm:$0xff] }
 0x8e5   : > { %13511 = vmatprep.subr.bf16.mxu0 %v13758_v26 }
 0x8e6   : > { %13495 = vmatpush3.bf16.msra.mxu1 %v13494_v19  ;;  %v10476_v19 = vld [vmem:[%s16921_s10 + $0x2d0] sm:$0xff] }
 0x8e7   : > { %13496 = vmatprep.subr.bf16.mxu1 %v13758_v26 }
 0x8e8   : > { %13513 = vmatpush3.bf16.msra.mxu0 %v13512_v49  ;;  %v13548_v49 = vpack.c.bf16 %v10454_v59, %v10453_v2  ;;  %v10514_v2 = vld [vmem:[%s16921_s10 + $0x3e0] sm:$0xff]  ;;  %v10515_v59 = vld [vmem:[%s16921_s10 + $0x3e8] sm:$0xff] }
 0x8e9   : > { %13526 = vmatprep.subr.bf16.mxu0 %v13758_v26 }
 0x8ea   : > { %13498 = vmatpush3.bf16.msra.mxu1 %v13497_v1  ;;  %v13578_v1 = vpack.c.bf16 %v10477_v8, %v10476_v19  ;;  %v10503_v19 = vld [vmem:[%s16921_s10 + $0x390] sm:$0xff]  ;;  %v10504_v8 = vld [vmem:[%s16921_s10 + $0x398] sm:$0xff] }
 0x8eb   : > { %12862 = vmatmul.mubr.msk.f32.vlgmr.msra.gmra.mrb[8].mxu0 %vm8086_vm0, %v8767_v23  ;;  %13499 = vmatprep.subr.bf16.mxu1 %v13758_v26  ;;  %v9019_v23 = vld [vmem:[#allocation4 + $0x3] sm:$0x3f] }
 0x8ec   : > { %13528 = vmatpush3.bf16.msra.mxu0 %v13527_v20  ;;  %12899 = vmatprep.mubr.msk.f32.mxu0 %vm13759_vm8, %v13760_v60  ;;  %v13563_v20 = vpack.c.bf16 %v10466_v5, %v10465_v18  ;;  %v10516_v18 = vld [vmem:[%s16921_s10 + $0x3f0] sm:$0xff]  ;;  %v10517_v5 = vld [vmem:[%s16921_s10 + $0x3f8] sm:$0xff] }
 0x8ed   : > { %13529 = vmatprep.subr.bf16.mxu0 %v13758_v26 }
 0x8ee   : > { %13501 = vmatpush3.bf16.msra.mxu1 %v13500_v17  ;;  %v13581_v17 = vpack.c.bf16 %v10479_v44, %v10478_v14  ;;  %v10505_v14 = vld [vmem:[%s16921_s10 + $0x3a0] sm:$0xff]  ;;  %v10506_v44 = vld [vmem:[%s16921_s10 + $0x3a8] sm:$0xff] }
 0x8ef   : > { %13514 = vmatprep.subr.bf16.mxu1 %v13758_v26 }
 0x8f0   : > { %13531 = vmatpush3.bf16.msra.mxu0 %v13530_v28  ;;  %v13566_v28 = vpack.c.bf16 %v10468_v27, %v10467_v54  ;;  %v13617_v54 = vpack.c.bf16 %v10506_v44, %v10505_v14  ;;  %v10508_v27 = vld [vmem:[%s16921_s10 + $0x3b8] sm:$0xff] }
 0x8f1   : > { %12843 = vmatmul.mubr.msk.f32.vlgmr.msra.gmra.mrb[106].mxu1 %vm8086_vm0, %v8683_v56  ;;  %13532 = vmatprep.subr.bf16.mxu0 %v13758_v26  ;;  %v13569_v56 = vpack.c.bf16 %v10470_v41, %v10469_v3 }
 0x8f2   : > { %13516 = vmatpush3.bf16.msra.mxu1 %v13515_v32  ;;  %12880 = vmatprep.mubr.msk.f32.mxu1 %vm13759_vm8, %v13760_v60  ;;  %v13584_v32 = vpack.c.bf16 %v10481_v12, %v10480_v50  ;;  %v9523_v50 = vld [vmem:[#allocation4 + $0x24] sm:$0x3f] }
 0x8f3   : > { %13517 = vmatprep.subr.bf16.mxu1 %v13758_v26 }
 0x8f4   : > { %13534 = vmatpush3.bf16.msra.mxu0 %v13533_v6  ;;  %v10471_v6 = vld [vmem:[%s16921_s10 + $0x2b0] sm:$0xff] }
 0x8f5   : > { %13535 = vmatprep.subr.bf16.mxu0 %v13758_v26 }
 0x8f6   : > { %13519 = vmatpush3.bf16.msra.mxu1 %v13518_v43  ;;  %v10494_v43 = vld [vmem:[%s16921_s10 + $0x350] sm:$0xff] }
 0x8f7   : > { %13520 = vmatprep.subr.bf16.mxu1 %v13758_v26 }
 0x8f8   : > { %13537 = vmatpush3.bf16.msra.mxu0 %v13536_v29  ;;  %v13572_v29 = vpack.c.bf16 %v10472_v7, %v10471_v6 }
 0x8f9   : > { %13550 = vmatprep.subr.bf16.mxu0 %v13758_v26 }
 0x8fa   : > { %13522 = vmatpush3.bf16.msra.mxu1 %v13521_v30  ;;  %v13602_v30 = vpack.c.bf16 %v10495_v15, %v10494_v43 }
 0x8fb   : > { %12900 = vmatmul.mubr.msk.f32.vlgmr.msra.gmra.mrb[10].mxu0 %vm8086_vm0, %v8935_v52  ;;  %13523 = vmatprep.subr.bf16.mxu1 %v13758_v26  ;;  %v9187_v52 = vld [vmem:[#allocation4 + $0x23] sm:$0x3f] }
 0x8fc   : > { %13552 = vmatpush3.bf16.msra.mxu0 %v13551_v34  ;;  %12937 = vmatprep.mubr.msk.f32.mxu0 %vm13759_vm8, %v13760_v60  ;;  %v13587_v34 = vpack.c.bf16 %v10484_v46, %v10483_v13 }
 0x8fd   : > { %13553 = vmatprep.subr.bf16.mxu0 %v13758_v26 }
 0x8fe   : > { %13525 = vmatpush3.bf16.msra.mxu1 %v13524_v0  ;;  %v13605_v0 = vpack.c.bf16 %v10497_v39, %v10496_v51 }
 0x8ff   : > { %13538 = vmatprep.subr.bf16.mxu1 %v13758_v26 }
 0x900   : > { %13555 = vmatpush3.bf16.msra.mxu0 %v13554_v48  ;;  %v13590_v48 = vpack.c.bf16 %v10486_v31, %v10485_v22 }
 0x901   : > { %12881 = vmatmul.mubr.msk.f32.vlgmr.msra.gmra.mrb[108].mxu1 %vm8086_vm0, %v8851_v45  ;;  %13556 = vmatprep.subr.bf16.mxu0 %v13758_v26  ;;  %v13593_v45 = vpack.c.bf16 %v10488_v9, %v10487_v61 }
 0x902   : > { %13540 = vmatpush3.bf16.msra.mxu1 %v13539_v53  ;;  %12918 = vmatprep.mubr.msk.f32.mxu1 %vm13759_vm8, %v13760_v60  ;;  %v13608_v53 = vpack.c.bf16 %v10499_v24, %v10498_v16 }
 0x903   : > { %13541 = vmatprep.subr.bf16.mxu1 %v13758_v26 }
 0x904   : > { %13558 = vmatpush3.bf16.msra.mxu0 %v13557_v11  ;;  %v10489_v11 = vld [vmem:[%s16921_s10 + $0x330] sm:$0xff] }
 0x905   : > { %13559 = vmatprep.subr.bf16.mxu0 %v13758_v26 }
 0x906   : > { %13543 = vmatpush3.bf16.msra.mxu1 %v13542_v21  ;;  %v10512_v21 = vld [vmem:[%s16921_s10 + $0x3d0] sm:$0xff] }
 0x907   : > { %13544 = vmatprep.subr.bf16.mxu1 %v13758_v26 }
 0x908   : > { %13561 = vmatpush3.bf16.msra.mxu0 %v13560_v62  ;;  %v13596_v62 = vpack.c.bf16 %v10490_v36, %v10489_v11 }
 0x909   : > { %13574 = vmatprep.subr.bf16.mxu0 %v13758_v26 }
 0x90a   : > { %13546 = vmatpush3.bf16.msra.mxu1 %v13545_v38  ;;  %v13626_v38 = vpack.c.bf16 %v10513_v63, %v10512_v21 }
 0x90b   : > { %12938 = vmatmul.mubr.msk.f32.vlgmr.msra.gmra.mrb[12].mxu0 %vm8086_vm0, %v9103_v10  ;;  %13547 = vmatprep.subr.bf16.mxu1 %v13758_v26  ;;  %v9355_v10 = vld [vmem:[#allocation4 + $0x4] sm:$0x3f] }
 0x90c   : > { %13576 = vmatpush3.bf16.msra.mxu0 %v13575_v47  ;;  %12975 = vmatprep.mubr.msk.f32.mxu0 %vm13759_vm8, %v13760_v60  ;;  %v13611_v47 = vpack.c.bf16 %v10502_v25, %v10501_v58 }
 0x90d   : > { %13577 = vmatprep.subr.bf16.mxu0 %v13758_v26 }
 0x90e   : > { %13549 = vmatpush3.bf16.msra.mxu1 %v13548_v49  ;;  %v13629_v49 = vpack.c.bf16 %v10515_v59, %v10514_v2  ;;  %v10519_v59 = vld [vmem:[%s16922_s11] ss:$0 sm:$0xff] }
 0x90f   : > { %13562 = vmatprep.subr.bf16.mxu1 %v13758_v26 }
 0x910   : > { %13579 = vmatpush3.bf16.msra.mxu0 %v13578_v1  ;;  %v13614_v1 = vpack.c.bf16 %v10504_v8, %v10503_v19 }
 0x911   : > { %12919 = vmatmul.mubr.msk.f32.vlgmr.msra.gmra.mrb[110].mxu1 %vm8086_vm0, %v9019_v23  ;;  %13580 = vmatprep.subr.bf16.mxu0 %v13758_v26  ;;  %v9607_v23 = vld [vmem:[#allocation4 + $0x34] sm:$0x3f] }
 0x912   : > { %13564 = vmatpush3.bf16.msra.mxu1 %v13563_v20  ;;  %12956 = vmatprep.mubr.msk.f32.mxu1 %vm13759_vm8, %v13760_v60  ;;  %v13632_v20 = vpack.c.bf16 %v10517_v5, %v10516_v18 }
 0x913   : > { %13565 = vmatprep.subr.bf16.mxu1 %v13758_v26 }
 0x914   : > { %13582 = vmatpush3.bf16.msra.mxu0 %v13581_v17 }
 0x915   : > { %13583 = vmatprep.subr.bf16.mxu0 %v13758_v26 }
 0x916   : > { %13567 = vmatpush3.bf16.msra.mxu1 %v13566_v28 }
 0x917   : > { %13568 = vmatprep.subr.bf16.mxu1 %v13758_v26 }
 0x918   : > { %13585 = vmatpush3.bf16.msra.mxu0 %v13584_v32 }
 0x919   : > { %13598 = vmatprep.subr.bf16.mxu0 %v13758_v26 }
 0x91a   : > { %13570 = vmatpush3.bf16.msra.mxu1 %v13569_v56 }
 0x91b   : > { %12976 = vmatmul.mubr.msk.f32.vlgmr.msra.gmra.mrb[14].mxu0 %vm8086_vm0, %v9271_v37  ;;  %13571 = vmatprep.subr.bf16.mxu1 %v13758_v26 }
 0x91c   : > { %13600 = vmatpush3.bf16.msra.mxu0 %v13599_v55  ;;  %13013 = vmatprep.mubr.msk.f32.mxu0 %vm13759_vm8, %v13760_v60 }
 0x91d   : > { %13601 = vmatprep.subr.bf16.mxu0 %v13758_v26 }
 0x91e   : > { %13573 = vmatpush3.bf16.msra.mxu1 %v13572_v29 }
 0x91f   : > { %13586 = vmatprep.subr.bf16.mxu1 %v13758_v26 }
 0x920   : > { %13603 = vmatpush3.bf16.msra.mxu0 %v13602_v30 }
 0x921   : > { %12957 = vmatmul.mubr.msk.f32.vlgmr.msra.gmra.mrb[112].mxu1 %vm8086_vm0, %v9187_v52  ;;  %13604 = vmatprep.subr.bf16.mxu0 %v13758_v26 }
 0x922   : > { %13588 = vmatpush3.bf16.msra.mxu1 %v13587_v34  ;;  %12994 = vmatprep.mubr.msk.f32.mxu1 %vm13759_vm8, %v13760_v60 }
 0x923   : > { %13589 = vmatprep.subr.bf16.mxu1 %v13758_v26 }
 0x924   : > { %13606 = vmatpush3.bf16.msra.mxu0 %v13605_v0 }
 0x925   : > { %13607 = vmatprep.subr.bf16.mxu0 %v13758_v26 }
 0x926   : > { %13591 = vmatpush3.bf16.msra.mxu1 %v13590_v48 }
 0x927   : > { %13592 = vmatprep.subr.bf16.mxu1 %v13758_v26 }
 0x928   : > { %13609 = vmatpush3.bf16.msra.mxu0 %v13608_v53 }
 0x929   : > { %13622 = vmatprep.subr.bf16.mxu0 %v13758_v26 }
 0x92a   : > { %13594 = vmatpush3.bf16.msra.mxu1 %v13593_v45 }
 0x92b   : > { %13014 = vmatmul.mubr.msk.f32.vlgmr.msra.gmra.mrb[16].mxu0 %vm8086_vm0, %v9439_v33  ;;  %13595 = vmatprep.subr.bf16.mxu1 %v13758_v26 }
 0x92c   : > { %13624 = vmatpush3.bf16.msra.mxu0 %v13623_v4  ;;  %13051 = vmatprep.mubr.msk.f32.mxu0 %vm13759_vm8, %v13760_v60 }
 0x92d   : > { %13625 = vmatprep.subr.bf16.mxu0 %v13758_v26 }
 0x92e   : > { %13597 = vmatpush3.bf16.msra.mxu1 %v13596_v62 }
 0x92f   : > { %13610 = vmatprep.subr.bf16.mxu1 %v13758_v26 }
 0x930   : > { %13627 = vmatpush3.bf16.msra.mxu0 %v13626_v38 }
 0x931   : > { %12995 = vmatmul.mubr.msk.f32.vlgmr.msra.gmra.mrb[114].mxu1 %vm8086_vm0, %v9355_v10  ;;  %13628 = vmatprep.subr.bf16.mxu0 %v13758_v26 }
 0x932   : > { %13612 = vmatpush3.bf16.msra.mxu1 %v13611_v47  ;;  %13032 = vmatprep.mubr.msk.f32.mxu1 %vm13759_vm8, %v13760_v60  ;;  %v10507_v60 = vld [vmem:[%s16921_s10 + $0x3b0] sm:$0xff] }
 0x933   : > { %13613 = vmatprep.subr.bf16.mxu1 %v13758_v26  ;;  %v13620_v17 = vpack.c.bf16 %v10508_v27, %v10507_v60 }
 0x934   : > { %13630 = vmatpush3.bf16.msra.mxu0 %v13629_v49 }
 0x935   : > { %13631 = vmatprep.subr.bf16.mxu0 %v13758_v26 }
 0x936   : > { %13615 = vmatpush3.bf16.msra.mxu1 %v13614_v1 }
 0x937   : > { %13616 = vmatprep.subr.bf16.mxu1 %v13758_v26 }
 0x938   : > { %13633 = vmatpush3.bf16.msra.mxu0 %v13632_v20 }
 0x93a   : > { %13618 = vmatpush3.bf16.msra.mxu1 %v13617_v54 }
 0x93b   : > { %13052 = vmatmul.mubr.msk.f32.vlgmr.msra.gmra.mrb[18].mxu0 %vm8086_vm0, %v9607_v23  ;;  %13619 = vmatprep.subr.bf16.mxu1 %v13758_v26 }
 0x93e   : > { %13621 = vmatpush3.bf16.msra.mxu1 %v13620_v17 }
 0x941   : > { %13033 = vmatmul.mubr.msk.f32.vlgmr.msra.gmra.mrb[116].mxu1 %vm8086_vm0, %v9523_v50 }
 0x99e   : > { %v8511_v12 = vpop.f32.mrb[4].mxu0 }
 0x99f   : > { %v12787_v28 = vpop.f32.mrb[5].mxu0 }
 0x9a4   : > { %v8438_v3 = vpop.f32.mrb[102].mxu1 }
 0x9a5   : > { %v8512_v41 = vadd.f32 %v8511_v12, %v8438_v3  ;;  %v12768_v32 = vpop.f32.mrb[103].mxu1 }
 0x9ae   : > { %v8678_v40 = vpop.f32.mrb[6].mxu0 }
 0x9af   : > { %v12825_v42 = vpop.f32.mrb[7].mxu0 }
 0x9b4   : > { %v8594_v56 = vpop.f32.mrb[104].mxu1 }
 0x9b5   : > { %v8598_v6 = vadd.f32 %v8594_v56, %v8512_v41  ;;  %v12806_v7 = vpop.f32.mrb[105].mxu1 }
 0x9b7   : > { %v8682_v55 = vadd.f32 %v8678_v40, %v8598_v6 }
 0x9be   : > { %v8846_v43 = vpop.f32.mrb[8].mxu0 }
 0x9bf   : > { %v12863_v15 = vpop.f32.mrb[9].mxu0 }
 0x9c4   : > { %v8762_v37 = vpop.f32.mrb[106].mxu1 }
 0x9c5   : > { %v8766_v29 = vadd.f32 %v8762_v37, %v8682_v55  ;;  %v12844_v26 = vpop.f32.mrb[107].mxu1 }
 0x9c7   : > { %v8850_v13 = vadd.f32 %v8846_v43, %v8766_v29 }
 0x9ce   : > { %v9014_v46 = vpop.f32.mrb[10].mxu0 }
 0x9cf   : > { %v12901_v30 = vpop.f32.mrb[11].mxu0 }
 0x9d4   : > { %v8930_v51 = vpop.f32.mrb[108].mxu1 }
 0x9d5   : > { %v8934_v39 = vadd.f32 %v8930_v51, %v8850_v13  ;;  %v12882_v34 = vpop.f32.mrb[109].mxu1 }
 0x9d7   : > { %v9018_v22 = vadd.f32 %v9014_v46, %v8934_v39 }
 0x9de   : > { %v9182_v31 = vpop.f32.mrb[12].mxu0 }
 0x9df   : > { %v12939_v52 = vpop.f32.mrb[13].mxu0 }
 0x9e4   : > { %v9098_v0 = vpop.f32.mrb[110].mxu1 }
 0x9e5   : > { %v9102_v16 = vadd.f32 %v9098_v0, %v9018_v22  ;;  %v12920_v24 = vpop.f32.mrb[111].mxu1 }
 0x9e7   : > { %v9186_v48 = vadd.f32 %v9182_v31, %v9102_v16 }
 0x9ee   : > { %v9350_v61 = vpop.f32.mrb[14].mxu0 }
 0x9ef   : > { %v12977_v9 = vpop.f32.mrb[15].mxu0 }
 0x9f4   : > { %v9266_v53 = vpop.f32.mrb[112].mxu1 }
 0x9f5   : > { %v9270_v57 = vadd.f32 %v9266_v53, %v9186_v48  ;;  %v12958_v35 = vpop.f32.mrb[113].mxu1 }
 0x9f7   : > { %v9354_v45 = vadd.f32 %v9350_v61, %v9270_v57 }
 0x9fe   : > { %v9518_v11 = vpop.f32.mrb[16].mxu0 }
 0x9ff   : > { %v13015_v36 = vpop.f32.mrb[17].mxu0 }
 0xa04   : > { %v9434_v4 = vpop.f32.mrb[114].mxu1 }
 0xa05   : > { %v9438_v21 = vadd.f32 %v9434_v4, %v9354_v45  ;;  %v12996_v63 = vpop.f32.mrb[115].mxu1 }
 0xa07   : > { %v9522_v33 = vadd.f32 %v9518_v11, %v9438_v21 }
 0xa0e   : > { %v9686_v62 = vpop.f32.mrb[18].mxu0 }
 0xa0f   : > { %v13053_v58 = vpop.f32.mrb[19].mxu0 }
 0xa14   : > { %v9602_v25 = vpop.f32.mrb[116].mxu1 }
 0xa15   : > { %v9606_v38 = vadd.f32 %v9602_v25, %v9522_v33  ;;  %v13034_v2 = vpop.f32.mrb[117].mxu1 }
 0xa17   : > { %v9690_v47 = vadd.f32 %v9686_v62, %v9606_v38 }
 0xa19   : > { %v9698_v19 = vadd.f32 %v10519_v59, %v9690_v47 }
 0xa1b   : > { %vm9699_vm8 = vcmp.ge.f32.partialorder %v9698_v19, 0.0  ;;  %v9700_v8 = vmul.f32 0.2, %v9698_v19 }
 0xa1d   : > { %v9701_v10 = vsel %vm9699_vm8, %v9698_v19, %v9700_v8 }
 0xa1e   : > { %9702 = vst [vmem:[%s411_s30] sm:$0x3f] %v9701_v10 }
 0xa1f PF: > { %s22_s21 = sadd.s32 1, %s13755_s21  }
 0xa20   : > { %p19_p4 = scmp.ge.s32.totalorder %s22_s21, 4  }
 0xa22   :  { %21 = sbr.rel (!%p19_p4) target bundleno = 1 (0x1), region = 164 }

</bundles_post_ra>
